<compile_context>
chip_gen: v7x
topology: tpu7x:2x2x1
jax: 0.10.0
libtpu: 0.0.40
codegen_flags: <defaults>
</compile_context>

<pallas_src>
import functools

import jax
import jax.numpy as jnp
from jax.experimental import pallas as pl
from jax.experimental.pallas import tpu as pltpu


# ---------------------------------------------------------------------------
# Pallas kernel: full GNN encoder propagation (whole padded graph VMEM-resident)
# ---------------------------------------------------------------------------
def _gnn_encoder_kernel(
    h0_ref,      # [NP, HP]        f32  initial (padded) node embedding
    a_ref,       # [NP, ET*NP]     bf16 adjacency: A[t, e*NP+s] = #edges of type e, s->t
    wmsg_ref,    # [ET, HP, HP]    bf16 per-edge-type message weights (x @ W layout)
    wtop_ref,    # [NB, HP, 4*HP]  bf16 fused GRU input  weights [r | z | n_in | 0]
    wbot_ref,    # [NB, HP, 4*HP]  bf16 fused GRU hidden weights [r | z | 0 | n_hid]
    gbias_ref,   # [NB, NP, 4*HP]  f32  per-block gate bias (msg bias + GRU biases folded)
    out_ref,     # [NP, HP]        f32  processed node states
    m_ref,       # [ET*NP, HP]     bf16 scratch: stacked per-edge-type messages
    *,
    n_pad,
    h_pad,
    num_edge_types,
    num_gnn_blocks,
    num_propagations,
):
    N, H = n_pad, h_pad
    h = h0_ref[...]                                           # [NP, HP] f32

    unroll = num_propagations <= 8   # full unroll for short loops: cross-iteration
                                     # MXU/VPU overlap for the LLO scheduler

    for blk in range(num_gnn_blocks):                         # static: selects weights

        def prop_body(_, h_cur, blk=blk):
            h_bf = h_cur.astype(jnp.bfloat16)

            # ---- messages: M_e = h @ W_e, stacked into the bf16 scratch --------
            for e in range(num_edge_types):                   # static, tiny
                m_ref[e * N:(e + 1) * N, :] = jnp.dot(
                    h_bf, wmsg_ref[e],
                    preferred_element_type=jnp.float32).astype(jnp.bfloat16)

            # ---- aggregation: ONE wide bf16 matmul, K = ET*NP -------------------
            agg = jnp.dot(a_ref[...], m_ref[...],
                          preferred_element_type=jnp.float32)  # [NP, HP] f32

            # ---- fused torch GRUCell gates (no concat): [r | z | n_in | n_hid] --
            gates = (jnp.dot(agg.astype(jnp.bfloat16), wtop_ref[blk],
                             preferred_element_type=jnp.float32)
                     + jnp.dot(h_bf, wbot_ref[blk],
                               preferred_element_type=jnp.float32)
                     + gbias_ref[blk])                          # [NP, 4*HP] f32
            r = jax.nn.sigmoid(gates[:, 0 * H:1 * H])
            z = jax.nn.sigmoid(gates[:, 1 * H:2 * H])
            n = jnp.tanh(gates[:, 2 * H:3 * H] + r * gates[:, 3 * H:4 * H])
            return (1.0 - z) * n + z * h_cur

        h = jax.lax.fori_loop(0, num_propagations, prop_body, h, unroll=unroll)

    out_ref[...] = h


# ---------------------------------------------------------------------------
# Helpers
# ---------------------------------------------------------------------------
def _round_up(v, m):
    return ((v + m - 1) // m) * m


def _vmem_limit_bytes():
    """Chip-aware scoped-VMEM limit (capacity minus headroom), not a hardcoded cap."""
    cap = None
    try:
        cap = getattr(pltpu.get_tpu_info(), "vmem_capacity_bytes", None)
    except Exception:
        cap = None
    if not cap:
        cap = 64 * 1024 * 1024           # conservative fallback (v7x per-core VMEM)
    return max(32 * 1024 * 1024, int(cap) * 7 // 8)


# ---------------------------------------------------------------------------
# Wrapper: parameter / graph preprocessing (done once, outside the hot kernel)
# ---------------------------------------------------------------------------
def gnn_encoder_forward(
    node_embedding,   # [N, H]  f32 (embedding lookup done in JAX glue)
    src_idx,          # [ET, E] int32
    tgt_idx,          # [ET, E] int32
    w_msg, b_msg,     # [ET, H, H] (stored W^T for x @ W), [ET, H]
    w_ih, w_hh,       # [NB, H, 3H] (stored W^T), [NB, H, 3H]   (torch gate order r,z,n)
    b_ih, b_hh,       # [NB, 3H], [NB, 3H]
    *,
    num_propagations,
):
    N, H = node_embedding.shape
    ET = src_idx.shape[0]
    NB = w_ih.shape[0]

    # Lane/sublane friendly padded sizes: every [*, HP] tensor is lane-dense,
    # gate slices and per-edge-type adjacency blocks sit on 128-lane boundaries.
    HP = _round_up(H, 128)
    NP = _round_up(N, 128)

    # ---- adjacency (small integer counts -> exact in bf16) ----
    e_ids = jnp.broadcast_to(jnp.arange(ET)[:, None], src_idx.shape)
    adj = jnp.zeros((ET, NP, NP), jnp.float32).at[e_ids, tgt_idx, src_idx].add(1.0)
    indeg = adj.sum(axis=2)                                               # [ET, NP]
    a_horiz = jnp.transpose(adj, (1, 0, 2)).reshape(NP, ET * NP).astype(jnp.bfloat16)

    # ---- padded node states / parameters ----
    h0 = jnp.zeros((NP, HP), jnp.float32).at[:N, :H].set(node_embedding)
    w_msg_p = jnp.zeros((ET, HP, HP), jnp.float32).at[:, :H, :H].set(w_msg)
    b_msg_p = jnp.zeros((ET, HP), jnp.float32).at[:, :H].set(b_msg)

    def pad_gate_w(w, g):   # [NB, H, 3H] -> padded [NB, HP, HP] block for gate g
        return jnp.zeros((NB, HP, HP), jnp.float32).at[:, :H, :H].set(
            w[:, :, g * H:(g + 1) * H])

    def pad_gate_b(b, g):   # [NB, 3H] -> padded [NB, HP] block for gate g
        return jnp.zeros((NB, HP), jnp.float32).at[:, :H].set(b[:, g * H:(g + 1) * H])

    zeros_w = jnp.zeros((NB, HP, HP), jnp.float32)
    # Fused gate-column layout [r | z | n_input | n_hidden]; keeps torch semantics
    # n = tanh(gi_n + b_in + r * (gh_n + b_hn)).
    w_top = jnp.concatenate([pad_gate_w(w_ih, 0), pad_gate_w(w_ih, 1),
                             pad_gate_w(w_ih, 2), zeros_w], axis=2)       # [NB, HP, 4HP]
    w_bot = jnp.concatenate([pad_gate_w(w_hh, 0), pad_gate_w(w_hh, 1),
                             zeros_w, pad_gate_w(w_hh, 2)], axis=2)       # [NB, HP, 4HP]
    b_fused = jnp.concatenate([pad_gate_b(b_ih, 0) + pad_gate_b(b_hh, 0),
                               pad_gate_b(b_ih, 1) + pad_gate_b(b_hh, 1),
                               pad_gate_b(b_ih, 2),
                               pad_gate_b(b_hh, 2)], axis=1)              # [NB, 4HP]

    # Fold the per-edge-type message bias (indeg_e * b_msg_e) AND the GRU biases
    # into one per-block gate bias. Exact: agg only enters the GRU via agg @ W_top.
    bias_agg = jnp.einsum('en,eh->nh', indeg, b_msg_p)                    # [NP, HP]
    gate_bias = (jnp.einsum('nh,bhg->bng', bias_agg, w_top)
                 + b_fused[:, None, :])                                   # [NB, NP, 4HP]

    kernel = functools.partial(
        _gnn_encoder_kernel,
        n_pad=NP,
        h_pad=HP,
        num_edge_types=ET,
        num_gnn_blocks=NB,
        num_propagations=num_propagations,
    )

    vmem = pl.BlockSpec(memory_space=pltpu.MemorySpace.VMEM)
    # TODO(synk): for graphs where the bf16 adjacency (ET*NP^2*2 bytes) no longer fits
    # in VMEM (hit first on v7x's 64 MiB), stream A row-tiles from HBM
    # (memory_space=pl.ANY + pltpu.emit_pipeline) or add a node-row grid dimension and
    # shard it across the two v7x TensorCores with dimension_semantics=("parallel",...).
    h_final = pl.pallas_call(
        kernel,
        out_shape=jax.ShapeDtypeStruct((NP, HP), jnp.float32),
        in_specs=[vmem] * 6,
        out_specs=vmem,
        scratch_shapes=[pltpu.VMEM((ET * NP, HP), jnp.bfloat16)],
        compiler_params=pltpu.CompilerParams(vmem_limit_bytes=_vmem_limit_bytes()),
    )(h0, a_horiz, w_msg_p.astype(jnp.bfloat16), w_top.astype(jnp.bfloat16),
      w_bot.astype(jnp.bfloat16), gate_bias)

    # GNNEncoder output: initial embedding stacked with processed node states.
    return jnp.concatenate([node_embedding, h_final[:N, :H]], axis=-1)


# ---------------------------------------------------------------------------
# Pure-JAX f32 reference (mirrors the PyTorch forward) for a correctness check
# ---------------------------------------------------------------------------
def reference_forward(node_embedding, src_idx, tgt_idx, w_msg, b_msg,
                      w_ih, w_hh, b_ih, b_hh, *, num_propagations):
    N, H = node_embedding.shape
    ET = src_idx.shape[0]
    NB = w_ih.shape[0]
    h = node_embedding
    targets = jnp.reshape(tgt_idx, (-1,))
    for blk in range(NB):
        for _ in range(num_propagations):
            msgs = []
            for e in range(ET):
                src_states = h[src_idx[e]]
                msgs.append(src_states @ w_msg[e] + b_msg[e])
            all_msgs = jnp.concatenate(msgs, axis=0)
            agg = jax.ops.segment_sum(all_msgs, targets, num_segments=N)
            gi = agg @ w_ih[blk] + b_ih[blk]
            gh = h @ w_hh[blk] + b_hh[blk]
            r = jax.nn.sigmoid(gi[:, :H] + gh[:, :H])
            z = jax.nn.sigmoid(gi[:, H:2 * H] + gh[:, H:2 * H])
            n = jnp.tanh(gi[:, 2 * H:] + r * gh[:, 2 * H:])
            h = (1.0 - z) * n + z * h
    return jnp.concatenate([node_embedding, h], axis=-1)


# ---------------------------------------------------------------------------
if __name__ == "__main__":
    # Small deterministic configuration.
    NUM_NODE_TYPES = 8
    HIDDEN_DIM = 32
    NUM_EDGE_TYPES = 3
    NUM_PROPAGATIONS = 2
    NUM_GNN_BLOCKS = 2
    NUM_NODES = 16
    EDGES_PER_TYPE = 16

    key = jax.random.PRNGKey(0)
    ks = jax.random.split(key, 8)

    # Inputs (graph structure + node types).
    node_type = jax.random.randint(ks[0], (NUM_NODES,), 0, NUM_NODE_TYPES)
    src_idx = jax.random.randint(ks[1], (NUM_EDGE_TYPES, EDGES_PER_TYPE), 0, NUM_NODES)
    tgt_idx = jax.random.randint(ks[2], (NUM_EDGE_TYPES, EDGES_PER_TYPE), 0, NUM_NODES)

    # Parameters (deterministic synthetic init matching the module's shapes).
    emb_table = jax.random.uniform(
        ks[3], (NUM_NODE_TYPES, HIDDEN_DIM), minval=-0.05, maxval=0.05, dtype=jnp.float32)
    xavier = (6.0 / (HIDDEN_DIM + HIDDEN_DIM)) ** 0.5
    # per-edge-type Linear weights, stored transposed ([in, out]) for x @ W.
    w_msg = jax.random.uniform(
        ks[4], (NUM_EDGE_TYPES, HIDDEN_DIM, HIDDEN_DIM),
        minval=-xavier, maxval=xavier, dtype=jnp.float32)
    b_msg = jnp.full((NUM_EDGE_TYPES, HIDDEN_DIM), 0.01, jnp.float32)  # nonzero: exercises indeg*bias path
    # GRU weights per block, stored transposed ([H, 3H]); torch gate order (r, z, n).
    w_ih = jax.random.uniform(
        ks[5], (NUM_GNN_BLOCKS, HIDDEN_DIM, 3 * HIDDEN_DIM),
        minval=-xavier, maxval=xavier, dtype=jnp.float32)
    # TODO(synk): torch uses orthogonal init for weight_hh; plain uniform is used here
    w_hh = jax.random.uniform(
        ks[6], (NUM_GNN_BLOCKS, HIDDEN_DIM, 3 * HIDDEN_DIM),
        minval=-xavier, maxval=xavier, dtype=jnp.float32)
    b_ih = jnp.full((NUM_GNN_BLOCKS, 3 * HIDDEN_DIM), 0.02, jnp.float32)
    b_hh = jnp.full((NUM_GNN_BLOCKS, 3 * HIDDEN_DIM), -0.01, jnp.float32)

    # JAX glue: embedding lookup.
    node_embedding = emb_table[node_type]                                   # [N, H]

    out = gnn_encoder_forward(
        node_embedding, src_idx, tgt_idx, w_msg, b_msg,
        w_ih, w_hh, b_ih, b_hh, num_propagations=NUM_PROPAGATIONS)
    out = jax.block_until_ready(out)

    ref = reference_forward(
        node_embedding, src_idx, tgt_idx, w_msg, b_msg,
        w_ih, w_hh, b_ih, b_hh, num_propagations=NUM_PROPAGATIONS)
    ref = jax.block_until_ready(ref)

    assert out.shape == (NUM_NODES, 2 * HIDDEN_DIM)
    # bf16 MXU operands (adjacency / weights / activations, f32 accumulation) introduce
    # ~1e-3-scale drift over NUM_GNN_BLOCKS * NUM_PROPAGATIONS GRU steps vs. the pure
    # f32 reference; tolerance reflects that.
    assert jnp.allclose(out, ref, rtol=2e-2, atol=5e-3), "kernel / reference mismatch"
    print("KERNEL_OK")
</pallas_src>

<mosaic_0001>
module attributes {stable_mosaic.version = 11 : i64} {
  func.func @_gnn_encoder_kernel(%arg0: memref<128x128xf32, #tpu.memory_space<vmem>>, %arg1: memref<128x384xbf16, #tpu.memory_space<vmem>>, %arg2: memref<3x128x128xbf16, #tpu.memory_space<vmem>>, %arg3: memref<2x128x512xbf16, #tpu.memory_space<vmem>>, %arg4: memref<2x128x512xbf16, #tpu.memory_space<vmem>>, %arg5: memref<2x128x512xf32, #tpu.memory_space<vmem>>, %arg6: memref<128x128xf32, #tpu.memory_space<vmem>>, %arg7: memref<384x128xbf16, #tpu.memory_space<vmem>>) attributes {dimension_semantics = [], scalar_prefetch = 0 : i64, scratch_operands = 1 : i64, tpu.core_type = #tpu.core_type<tc>} {
    %c0 = arith.constant 0 : index
    %c0_0 = arith.constant 0 : index
    %0 = vector.load %arg0[%c0, %c0_0] : memref<128x128xf32, #tpu.memory_space<vmem>>, vector<128x128xf32>
    %c0_i32 = arith.constant 0 : i32
    %1 = arith.truncf %0 : vector<128x128xf32> to vector<128x128xbf16>
    %c0_1 = arith.constant 0 : index
    %c0_2 = arith.constant 0 : index
    %c0_3 = arith.constant 0 : index
    %2 = vector.load %arg2[%c0_1, %c0_2, %c0_3] : memref<3x128x128xbf16, #tpu.memory_space<vmem>>, vector<1x128x128xbf16>
    %3 = vector.shape_cast %2 : vector<1x128x128xbf16> to vector<128x128xbf16>
    %cst = arith.constant dense<0.000000e+00> : vector<128x128xf32>
    %4 = tpu.matmul %1, %3, %cst {dimension_numbers = #tpu.dot_dimension_numbers<[1], [0], [0], [1], [0, 0, 1, 1], [], []>} : vector<128x128xbf16>, vector<128x128xbf16>, vector<128x128xf32> -> vector<128x128xf32>
    %5 = arith.truncf %4 : vector<128x128xf32> to vector<128x128xbf16>
    %c0_4 = arith.constant 0 : index
    %c0_5 = arith.constant 0 : index
    %6 = vector.load %arg7[%c0_4, %c0_5] : memref<384x128xbf16, #tpu.memory_space<vmem>>, vector<128x128xbf16>
    tpu.vector_store %arg7[%c0_4, %c0_5], %5 {strides = array<i32>} : memref<384x128xbf16, #tpu.memory_space<vmem>>, vector<128x128xbf16>,
    %c1 = arith.constant 1 : index
    %c0_6 = arith.constant 0 : index
    %c0_7 = arith.constant 0 : index
    %7 = vector.load %arg2[%c1, %c0_6, %c0_7] : memref<3x128x128xbf16, #tpu.memory_space<vmem>>, vector<1x128x128xbf16>
    %8 = vector.shape_cast %7 : vector<1x128x128xbf16> to vector<128x128xbf16>
    %cst_8 = arith.constant dense<0.000000e+00> : vector<128x128xf32>
    %9 = tpu.matmul %1, %8, %cst_8 {dimension_numbers = #tpu.dot_dimension_numbers<[1], [0], [0], [1], [0, 0, 1, 1], [], []>} : vector<128x128xbf16>, vector<128x128xbf16>, vector<128x128xf32> -> vector<128x128xf32>
    %10 = arith.truncf %9 : vector<128x128xf32> to vector<128x128xbf16>
    %c128 = arith.constant 128 : index
    %c0_9 = arith.constant 0 : index
    %11 = vector.load %arg7[%c128, %c0_9] : memref<384x128xbf16, #tpu.memory_space<vmem>>, vector<128x128xbf16>
    tpu.vector_store %arg7[%c128, %c0_9], %10 {strides = array<i32>} : memref<384x128xbf16, #tpu.memory_space<vmem>>, vector<128x128xbf16>,
    %c2 = arith.constant 2 : index
    %c0_10 = arith.constant 0 : index
    %c0_11 = arith.constant 0 : index
    %12 = vector.load %arg2[%c2, %c0_10, %c0_11] : memref<3x128x128xbf16, #tpu.memory_space<vmem>>, vector<1x128x128xbf16>
    %13 = vector.shape_cast %12 : vector<1x128x128xbf16> to vector<128x128xbf16>
    %cst_12 = arith.constant dense<0.000000e+00> : vector<128x128xf32>
    %14 = tpu.matmul %1, %13, %cst_12 {dimension_numbers = #tpu.dot_dimension_numbers<[1], [0], [0], [1], [0, 0, 1, 1], [], []>} : vector<128x128xbf16>, vector<128x128xbf16>, vector<128x128xf32> -> vector<128x128xf32>
    %15 = arith.truncf %14 : vector<128x128xf32> to vector<128x128xbf16>
    %c256 = arith.constant 256 : index
    %c0_13 = arith.constant 0 : index
    %16 = vector.load %arg7[%c256, %c0_13] : memref<384x128xbf16, #tpu.memory_space<vmem>>, vector<128x128xbf16>
    tpu.vector_store %arg7[%c256, %c0_13], %15 {strides = array<i32>} : memref<384x128xbf16, #tpu.memory_space<vmem>>, vector<128x128xbf16>,
    %c0_14 = arith.constant 0 : index
    %c0_15 = arith.constant 0 : index
    %17 = vector.load %arg1[%c0_14, %c0_15] : memref<128x384xbf16, #tpu.memory_space<vmem>>, vector<128x384xbf16>
    %c0_16 = arith.constant 0 : index
    %c0_17 = arith.constant 0 : index
    %18 = vector.load %arg7[%c0_16, %c0_17] : memref<384x128xbf16, #tpu.memory_space<vmem>>, vector<384x128xbf16>
    %cst_18 = arith.constant dense<0.000000e+00> : vector<128x128xf32>
    %19 = tpu.matmul %17, %18, %cst_18 {dimension_numbers = #tpu.dot_dimension_numbers<[1], [0], [0], [1], [0, 0, 1, 1], [], []>} : vector<128x384xbf16>, vector<384x128xbf16>, vector<128x128xf32> -> vector<128x128xf32>
    %20 = arith.truncf %19 : vector<128x128xf32> to vector<128x128xbf16>
    %c0_19 = arith.constant 0 : index
    %c0_20 = arith.constant 0 : index
    %c0_21 = arith.constant 0 : index
    %21 = vector.load %arg3[%c0_19, %c0_20, %c0_21] : memref<2x128x512xbf16, #tpu.memory_space<vmem>>, vector<1x128x512xbf16>
    %22 = vector.shape_cast %21 : vector<1x128x512xbf16> to vector<128x512xbf16>
    %cst_22 = arith.constant dense<0.000000e+00> : vector<128x512xf32>
    %23 = tpu.matmul %20, %22, %cst_22 {dimension_numbers = #tpu.dot_dimension_numbers<[1], [0], [0], [1], [0, 0, 1, 1], [], []>} : vector<128x128xbf16>, vector<128x512xbf16>, vector<128x512xf32> -> vector<128x512xf32>
    %c0_23 = arith.constant 0 : index
    %c0_24 = arith.constant 0 : index
    %c0_25 = arith.constant 0 : index
    %24 = vector.load %arg4[%c0_23, %c0_24, %c0_25] : memref<2x128x512xbf16, #tpu.memory_space<vmem>>, vector<1x128x512xbf16>
    %25 = vector.shape_cast %24 : vector<1x128x512xbf16> to vector<128x512xbf16>
    %cst_26 = arith.constant dense<0.000000e+00> : vector<128x512xf32>
    %26 = tpu.matmul %1, %25, %cst_26 {dimension_numbers = #tpu.dot_dimension_numbers<[1], [0], [0], [1], [0, 0, 1, 1], [], []>} : vector<128x128xbf16>, vector<128x512xbf16>, vector<128x512xf32> -> vector<128x512xf32>
    %27 = arith.addf %23, %26 : vector<128x512xf32>
    %c0_27 = arith.constant 0 : index
    %c0_28 = arith.constant 0 : index
    %c0_29 = arith.constant 0 : index
    %28 = vector.load %arg5[%c0_27, %c0_28, %c0_29] : memref<2x128x512xf32, #tpu.memory_space<vmem>>, vector<1x128x512xf32>
    %29 = vector.shape_cast %28 : vector<1x128x512xf32> to vector<128x512xf32>
    %30 = arith.addf %27, %29 : vector<128x512xf32>
    %31 = vector.extract_strided_slice %30 {offsets = [0, 0], sizes = [128, 128], strides = [1, 1]} : vector<128x512xf32> to vector<128x128xf32>
    %32 = arith.negf %31 : vector<128x128xf32>
    %33 = math.exp %32 : vector<128x128xf32>
    %cst_30 = arith.constant 1.000000e+00 : f32
    %34 = vector.broadcast %cst_30 : f32 to vector<128x128xf32>
    %35 = arith.addf %34, %33 : vector<128x128xf32>
    %36 = arith.divf %34, %35 : vector<128x128xf32>
    %37 = vector.extract_strided_slice %30 {offsets = [0, 128], sizes = [128, 128], strides = [1, 1]} : vector<128x512xf32> to vector<128x128xf32>
    %38 = arith.negf %37 : vector<128x128xf32>
    %39 = math.exp %38 : vector<128x128xf32>
    %cst_31 = arith.constant 1.000000e+00 : f32
    %40 = vector.broadcast %cst_31 : f32 to vector<128x128xf32>
    %41 = arith.addf %40, %39 : vector<128x128xf32>
    %42 = arith.divf %40, %41 : vector<128x128xf32>
    %43 = vector.extract_strided_slice %30 {offsets = [0, 256], sizes = [128, 128], strides = [1, 1]} : vector<128x512xf32> to vector<128x128xf32>
    %44 = vector.extract_strided_slice %30 {offsets = [0, 384], sizes = [128, 128], strides = [1, 1]} : vector<128x512xf32> to vector<128x128xf32>
    %45 = arith.mulf %36, %44 : vector<128x128xf32>
    %46 = arith.addf %43, %45 : vector<128x128xf32>
    %47 = math.tanh %46 : vector<128x128xf32>
    %cst_32 = arith.constant 1.000000e+00 : f32
    %48 = vector.broadcast %cst_32 : f32 to vector<128x128xf32>
    %49 = arith.subf %48, %42 : vector<128x128xf32>
    %50 = arith.mulf %49, %47 : vector<128x128xf32>
    %51 = arith.mulf %42, %0 : vector<128x128xf32>
    %52 = arith.addf %50, %51 : vector<128x128xf32>
    %c1_i32 = arith.constant 1 : i32
    %53 = arith.truncf %52 : vector<128x128xf32> to vector<128x128xbf16>
    %c0_33 = arith.constant 0 : index
    %c0_34 = arith.constant 0 : index
    %c0_35 = arith.constant 0 : index
    %54 = vector.load %arg2[%c0_33, %c0_34, %c0_35] : memref<3x128x128xbf16, #tpu.memory_space<vmem>>, vector<1x128x128xbf16>
    %55 = vector.shape_cast %54 : vector<1x128x128xbf16> to vector<128x128xbf16>
    %cst_36 = arith.constant dense<0.000000e+00> : vector<128x128xf32>
    %56 = tpu.matmul %53, %55, %cst_36 {dimension_numbers = #tpu.dot_dimension_numbers<[1], [0], [0], [1], [0, 0, 1, 1], [], []>} : vector<128x128xbf16>, vector<128x128xbf16>, vector<128x128xf32> -> vector<128x128xf32>
    %57 = arith.truncf %56 : vector<128x128xf32> to vector<128x128xbf16>
    %c0_37 = arith.constant 0 : index
    %c0_38 = arith.constant 0 : index
    %58 = vector.load %arg7[%c0_37, %c0_38] : memref<384x128xbf16, #tpu.memory_space<vmem>>, vector<128x128xbf16>
    tpu.vector_store %arg7[%c0_37, %c0_38], %57 {strides = array<i32>} : memref<384x128xbf16, #tpu.memory_space<vmem>>, vector<128x128xbf16>,
    %c1_39 = arith.constant 1 : index
    %c0_40 = arith.constant 0 : index
    %c0_41 = arith.constant 0 : index
    %59 = vector.load %arg2[%c1_39, %c0_40, %c0_41] : memref<3x128x128xbf16, #tpu.memory_space<vmem>>, vector<1x128x128xbf16>
    %60 = vector.shape_cast %59 : vector<1x128x128xbf16> to vector<128x128xbf16>
    %cst_42 = arith.constant dense<0.000000e+00> : vector<128x128xf32>
    %61 = tpu.matmul %53, %60, %cst_42 {dimension_numbers = #tpu.dot_dimension_numbers<[1], [0], [0], [1], [0, 0, 1, 1], [], []>} : vector<128x128xbf16>, vector<128x128xbf16>, vector<128x128xf32> -> vector<128x128xf32>
    %62 = arith.truncf %61 : vector<128x128xf32> to vector<128x128xbf16>
    %c128_43 = arith.constant 128 : index
    %c0_44 = arith.constant 0 : index
    %63 = vector.load %arg7[%c128_43, %c0_44] : memref<384x128xbf16, #tpu.memory_space<vmem>>, vector<128x128xbf16>
    tpu.vector_store %arg7[%c128_43, %c0_44], %62 {strides = array<i32>} : memref<384x128xbf16, #tpu.memory_space<vmem>>, vector<128x128xbf16>,
    %c2_45 = arith.constant 2 : index
    %c0_46 = arith.constant 0 : index
    %c0_47 = arith.constant 0 : index
    %64 = vector.load %arg2[%c2_45, %c0_46, %c0_47] : memref<3x128x128xbf16, #tpu.memory_space<vmem>>, vector<1x128x128xbf16>
    %65 = vector.shape_cast %64 : vector<1x128x128xbf16> to vector<128x128xbf16>
    %cst_48 = arith.constant dense<0.000000e+00> : vector<128x128xf32>
    %66 = tpu.matmul %53, %65, %cst_48 {dimension_numbers = #tpu.dot_dimension_numbers<[1], [0], [0], [1], [0, 0, 1, 1], [], []>} : vector<128x128xbf16>, vector<128x128xbf16>, vector<128x128xf32> -> vector<128x128xf32>
    %67 = arith.truncf %66 : vector<128x128xf32> to vector<128x128xbf16>
    %c256_49 = arith.constant 256 : index
    %c0_50 = arith.constant 0 : index
    %68 = vector.load %arg7[%c256_49, %c0_50] : memref<384x128xbf16, #tpu.memory_space<vmem>>, vector<128x128xbf16>
    tpu.vector_store %arg7[%c256_49, %c0_50], %67 {strides = array<i32>} : memref<384x128xbf16, #tpu.memory_space<vmem>>, vector<128x128xbf16>,
    %c0_51 = arith.constant 0 : index
    %c0_52 = arith.constant 0 : index
    %69 = vector.load %arg1[%c0_51, %c0_52] : memref<128x384xbf16, #tpu.memory_space<vmem>>, vector<128x384xbf16>
    %c0_53 = arith.constant 0 : index
    %c0_54 = arith.constant 0 : index
    %70 = vector.load %arg7[%c0_53, %c0_54] : memref<384x128xbf16, #tpu.memory_space<vmem>>, vector<384x128xbf16>
    %cst_55 = arith.constant dense<0.000000e+00> : vector<128x128xf32>
    %71 = tpu.matmul %69, %70, %cst_55 {dimension_numbers = #tpu.dot_dimension_numbers<[1], [0], [0], [1], [0, 0, 1, 1], [], []>} : vector<128x384xbf16>, vector<384x128xbf16>, vector<128x128xf32> -> vector<128x128xf32>
    %72 = arith.truncf %71 : vector<128x128xf32> to vector<128x128xbf16>
    %c0_56 = arith.constant 0 : index
    %c0_57 = arith.constant 0 : index
    %c0_58 = arith.constant 0 : index
    %73 = vector.load %arg3[%c0_56, %c0_57, %c0_58] : memref<2x128x512xbf16, #tpu.memory_space<vmem>>, vector<1x128x512xbf16>
    %74 = vector.shape_cast %73 : vector<1x128x512xbf16> to vector<128x512xbf16>
    %cst_59 = arith.constant dense<0.000000e+00> : vector<128x512xf32>
    %75 = tpu.matmul %72, %74, %cst_59 {dimension_numbers = #tpu.dot_dimension_numbers<[1], [0], [0], [1], [0, 0, 1, 1], [], []>} : vector<128x128xbf16>, vector<128x512xbf16>, vector<128x512xf32> -> vector<128x512xf32>
    %c0_60 = arith.constant 0 : index
    %c0_61 = arith.constant 0 : index
    %c0_62 = arith.constant 0 : index
    %76 = vector.load %arg4[%c0_60, %c0_61, %c0_62] : memref<2x128x512xbf16, #tpu.memory_space<vmem>>, vector<1x128x512xbf16>
    %77 = vector.shape_cast %76 : vector<1x128x512xbf16> to vector<128x512xbf16>
    %cst_63 = arith.constant dense<0.000000e+00> : vector<128x512xf32>
    %78 = tpu.matmul %53, %77, %cst_63 {dimension_numbers = #tpu.dot_dimension_numbers<[1], [0], [0], [1], [0, 0, 1, 1], [], []>} : vector<128x128xbf16>, vector<128x512xbf16>, vector<128x512xf32> -> vector<128x512xf32>
    %79 = arith.addf %75, %78 : vector<128x512xf32>
    %c0_64 = arith.constant 0 : index
    %c0_65 = arith.constant 0 : index
    %c0_66 = arith.constant 0 : index
    %80 = vector.load %arg5[%c0_64, %c0_65, %c0_66] : memref<2x128x512xf32, #tpu.memory_space<vmem>>, vector<1x128x512xf32>
    %81 = vector.shape_cast %80 : vector<1x128x512xf32> to vector<128x512xf32>
    %82 = arith.addf %79, %81 : vector<128x512xf32>
    %83 = vector.extract_strided_slice %82 {offsets = [0, 0], sizes = [128, 128], strides = [1, 1]} : vector<128x512xf32> to vector<128x128xf32>
    %84 = arith.negf %83 : vector<128x128xf32>
    %85 = math.exp %84 : vector<128x128xf32>
    %cst_67 = arith.constant 1.000000e+00 : f32
    %86 = vector.broadcast %cst_67 : f32 to vector<128x128xf32>
    %87 = arith.addf %86, %85 : vector<128x128xf32>
    %88 = arith.divf %86, %87 : vector<128x128xf32>
    %89 = vector.extract_strided_slice %82 {offsets = [0, 128], sizes = [128, 128], strides = [1, 1]} : vector<128x512xf32> to vector<128x128xf32>
    %90 = arith.negf %89 : vector<128x128xf32>
    %91 = math.exp %90 : vector<128x128xf32>
    %cst_68 = arith.constant 1.000000e+00 : f32
    %92 = vector.broadcast %cst_68 : f32 to vector<128x128xf32>
    %93 = arith.addf %92, %91 : vector<128x128xf32>
    %94 = arith.divf %92, %93 : vector<128x128xf32>
    %95 = vector.extract_strided_slice %82 {offsets = [0, 256], sizes = [128, 128], strides = [1, 1]} : vector<128x512xf32> to vector<128x128xf32>
    %96 = vector.extract_strided_slice %82 {offsets = [0, 384], sizes = [128, 128], strides = [1, 1]} : vector<128x512xf32> to vector<128x128xf32>
    %97 = arith.mulf %88, %96 : vector<128x128xf32>
    %98 = arith.addf %95, %97 : vector<128x128xf32>
    %99 = math.tanh %98 : vector<128x128xf32>
    %cst_69 = arith.constant 1.000000e+00 : f32
    %100 = vector.broadcast %cst_69 : f32 to vector<128x128xf32>
    %101 = arith.subf %100, %94 : vector<128x128xf32>
    %102 = arith.mulf %101, %99 : vector<128x128xf32>
    %103 = arith.mulf %94, %52 : vector<128x128xf32>
    %104 = arith.addf %102, %103 : vector<128x128xf32>
    %c0_i32_70 = arith.constant 0 : i32
    %105 = arith.truncf %104 : vector<128x128xf32> to vector<128x128xbf16>
    %c0_71 = arith.constant 0 : index
    %c0_72 = arith.constant 0 : index
    %c0_73 = arith.constant 0 : index
    %106 = vector.load %arg2[%c0_71, %c0_72, %c0_73] : memref<3x128x128xbf16, #tpu.memory_space<vmem>>, vector<1x128x128xbf16>
    %107 = vector.shape_cast %106 : vector<1x128x128xbf16> to vector<128x128xbf16>
    %cst_74 = arith.constant dense<0.000000e+00> : vector<128x128xf32>
    %108 = tpu.matmul %105, %107, %cst_74 {dimension_numbers = #tpu.dot_dimension_numbers<[1], [0], [0], [1], [0, 0, 1, 1], [], []>} : vector<128x128xbf16>, vector<128x128xbf16>, vector<128x128xf32> -> vector<128x128xf32>
    %109 = arith.truncf %108 : vector<128x128xf32> to vector<128x128xbf16>
    %c0_75 = arith.constant 0 : index
    %c0_76 = arith.constant 0 : index
    %110 = vector.load %arg7[%c0_75, %c0_76] : memref<384x128xbf16, #tpu.memory_space<vmem>>, vector<128x128xbf16>
    tpu.vector_store %arg7[%c0_75, %c0_76], %109 {strides = array<i32>} : memref<384x128xbf16, #tpu.memory_space<vmem>>, vector<128x128xbf16>,
    %c1_77 = arith.constant 1 : index
    %c0_78 = arith.constant 0 : index
    %c0_79 = arith.constant 0 : index
    %111 = vector.load %arg2[%c1_77, %c0_78, %c0_79] : memref<3x128x128xbf16, #tpu.memory_space<vmem>>, vector<1x128x128xbf16>
    %112 = vector.shape_cast %111 : vector<1x128x128xbf16> to vector<128x128xbf16>
    %cst_80 = arith.constant dense<0.000000e+00> : vector<128x128xf32>
    %113 = tpu.matmul %105, %112, %cst_80 {dimension_numbers = #tpu.dot_dimension_numbers<[1], [0], [0], [1], [0, 0, 1, 1], [], []>} : vector<128x128xbf16>, vector<128x128xbf16>, vector<128x128xf32> -> vector<128x128xf32>
    %114 = arith.truncf %113 : vector<128x128xf32> to vector<128x128xbf16>
    %c128_81 = arith.constant 128 : index
    %c0_82 = arith.constant 0 : index
    %115 = vector.load %arg7[%c128_81, %c0_82] : memref<384x128xbf16, #tpu.memory_space<vmem>>, vector<128x128xbf16>
    tpu.vector_store %arg7[%c128_81, %c0_82], %114 {strides = array<i32>} : memref<384x128xbf16, #tpu.memory_space<vmem>>, vector<128x128xbf16>,
    %c2_83 = arith.constant 2 : index
    %c0_84 = arith.constant 0 : index
    %c0_85 = arith.constant 0 : index
    %116 = vector.load %arg2[%c2_83, %c0_84, %c0_85] : memref<3x128x128xbf16, #tpu.memory_space<vmem>>, vector<1x128x128xbf16>
    %117 = vector.shape_cast %116 : vector<1x128x128xbf16> to vector<128x128xbf16>
    %cst_86 = arith.constant dense<0.000000e+00> : vector<128x128xf32>
    %118 = tpu.matmul %105, %117, %cst_86 {dimension_numbers = #tpu.dot_dimension_numbers<[1], [0], [0], [1], [0, 0, 1, 1], [], []>} : vector<128x128xbf16>, vector<128x128xbf16>, vector<128x128xf32> -> vector<128x128xf32>
    %119 = arith.truncf %118 : vector<128x128xf32> to vector<128x128xbf16>
    %c256_87 = arith.constant 256 : index
    %c0_88 = arith.constant 0 : index
    %120 = vector.load %arg7[%c256_87, %c0_88] : memref<384x128xbf16, #tpu.memory_space<vmem>>, vector<128x128xbf16>
    tpu.vector_store %arg7[%c256_87, %c0_88], %119 {strides = array<i32>} : memref<384x128xbf16, #tpu.memory_space<vmem>>, vector<128x128xbf16>,
    %c0_89 = arith.constant 0 : index
    %c0_90 = arith.constant 0 : index
    %121 = vector.load %arg1[%c0_89, %c0_90] : memref<128x384xbf16, #tpu.memory_space<vmem>>, vector<128x384xbf16>
    %c0_91 = arith.constant 0 : index
    %c0_92 = arith.constant 0 : index
    %122 = vector.load %arg7[%c0_91, %c0_92] : memref<384x128xbf16, #tpu.memory_space<vmem>>, vector<384x128xbf16>
    %cst_93 = arith.constant dense<0.000000e+00> : vector<128x128xf32>
    %123 = tpu.matmul %121, %122, %cst_93 {dimension_numbers = #tpu.dot_dimension_numbers<[1], [0], [0], [1], [0, 0, 1, 1], [], []>} : vector<128x384xbf16>, vector<384x128xbf16>, vector<128x128xf32> -> vector<128x128xf32>
    %124 = arith.truncf %123 : vector<128x128xf32> to vector<128x128xbf16>
    %c1_94 = arith.constant 1 : index
    %c0_95 = arith.constant 0 : index
    %c0_96 = arith.constant 0 : index
    %125 = vector.load %arg3[%c1_94, %c0_95, %c0_96] : memref<2x128x512xbf16, #tpu.memory_space<vmem>>, vector<1x128x512xbf16>
    %126 = vector.shape_cast %125 : vector<1x128x512xbf16> to vector<128x512xbf16>
    %cst_97 = arith.constant dense<0.000000e+00> : vector<128x512xf32>
    %127 = tpu.matmul %124, %126, %cst_97 {dimension_numbers = #tpu.dot_dimension_numbers<[1], [0], [0], [1], [0, 0, 1, 1], [], []>} : vector<128x128xbf16>, vector<128x512xbf16>, vector<128x512xf32> -> vector<128x512xf32>
    %c1_98 = arith.constant 1 : index
    %c0_99 = arith.constant 0 : index
    %c0_100 = arith.constant 0 : index
    %128 = vector.load %arg4[%c1_98, %c0_99, %c0_100] : memref<2x128x512xbf16, #tpu.memory_space<vmem>>, vector<1x128x512xbf16>
    %129 = vector.shape_cast %128 : vector<1x128x512xbf16> to vector<128x512xbf16>
    %cst_101 = arith.constant dense<0.000000e+00> : vector<128x512xf32>
    %130 = tpu.matmul %105, %129, %cst_101 {dimension_numbers = #tpu.dot_dimension_numbers<[1], [0], [0], [1], [0, 0, 1, 1], [], []>} : vector<128x128xbf16>, vector<128x512xbf16>, vector<128x512xf32> -> vector<128x512xf32>
    %131 = arith.addf %127, %130 : vector<128x512xf32>
    %c1_102 = arith.constant 1 : index
    %c0_103 = arith.constant 0 : index
    %c0_104 = arith.constant 0 : index
    %132 = vector.load %arg5[%c1_102, %c0_103, %c0_104] : memref<2x128x512xf32, #tpu.memory_space<vmem>>, vector<1x128x512xf32>
    %133 = vector.shape_cast %132 : vector<1x128x512xf32> to vector<128x512xf32>
    %134 = arith.addf %131, %133 : vector<128x512xf32>
    %135 = vector.extract_strided_slice %134 {offsets = [0, 0], sizes = [128, 128], strides = [1, 1]} : vector<128x512xf32> to vector<128x128xf32>
    %136 = arith.negf %135 : vector<128x128xf32>
    %137 = math.exp %136 : vector<128x128xf32>
    %cst_105 = arith.constant 1.000000e+00 : f32
    %138 = vector.broadcast %cst_105 : f32 to vector<128x128xf32>
    %139 = arith.addf %138, %137 : vector<128x128xf32>
    %140 = arith.divf %138, %139 : vector<128x128xf32>
    %141 = vector.extract_strided_slice %134 {offsets = [0, 128], sizes = [128, 128], strides = [1, 1]} : vector<128x512xf32> to vector<128x128xf32>
    %142 = arith.negf %141 : vector<128x128xf32>
    %143 = math.exp %142 : vector<128x128xf32>
    %cst_106 = arith.constant 1.000000e+00 : f32
    %144 = vector.broadcast %cst_106 : f32 to vector<128x128xf32>
    %145 = arith.addf %144, %143 : vector<128x128xf32>
    %146 = arith.divf %144, %145 : vector<128x128xf32>
    %147 = vector.extract_strided_slice %134 {offsets = [0, 256], sizes = [128, 128], strides = [1, 1]} : vector<128x512xf32> to vector<128x128xf32>
    %148 = vector.extract_strided_slice %134 {offsets = [0, 384], sizes = [128, 128], strides = [1, 1]} : vector<128x512xf32> to vector<128x128xf32>
    %149 = arith.mulf %140, %148 : vector<128x128xf32>
    %150 = arith.addf %147, %149 : vector<128x128xf32>
    %151 = math.tanh %150 : vector<128x128xf32>
    %cst_107 = arith.constant 1.000000e+00 : f32
    %152 = vector.broadcast %cst_107 : f32 to vector<128x128xf32>
    %153 = arith.subf %152, %146 : vector<128x128xf32>
    %154 = arith.mulf %153, %151 : vector<128x128xf32>
    %155 = arith.mulf %146, %104 : vector<128x128xf32>
    %156 = arith.addf %154, %155 : vector<128x128xf32>
    %c1_i32_108 = arith.constant 1 : i32
    %157 = arith.truncf %156 : vector<128x128xf32> to vector<128x128xbf16>
    %c0_109 = arith.constant 0 : index
    %c0_110 = arith.constant 0 : index
    %c0_111 = arith.constant 0 : index
    %158 = vector.load %arg2[%c0_109, %c0_110, %c0_111] : memref<3x128x128xbf16, #tpu.memory_space<vmem>>, vector<1x128x128xbf16>
    %159 = vector.shape_cast %158 : vector<1x128x128xbf16> to vector<128x128xbf16>
    %cst_112 = arith.constant dense<0.000000e+00> : vector<128x128xf32>
    %160 = tpu.matmul %157, %159, %cst_112 {dimension_numbers = #tpu.dot_dimension_numbers<[1], [0], [0], [1], [0, 0, 1, 1], [], []>} : vector<128x128xbf16>, vector<128x128xbf16>, vector<128x128xf32> -> vector<128x128xf32>
    %161 = arith.truncf %160 : vector<128x128xf32> to vector<128x128xbf16>
    %c0_113 = arith.constant 0 : index
    %c0_114 = arith.constant 0 : index
    %162 = vector.load %arg7[%c0_113, %c0_114] : memref<384x128xbf16, #tpu.memory_space<vmem>>, vector<128x128xbf16>
    tpu.vector_store %arg7[%c0_113, %c0_114], %161 {strides = array<i32>} : memref<384x128xbf16, #tpu.memory_space<vmem>>, vector<128x128xbf16>,
    %c1_115 = arith.constant 1 : index
    %c0_116 = arith.constant 0 : index
    %c0_117 = arith.constant 0 : index
    %163 = vector.load %arg2[%c1_115, %c0_116, %c0_117] : memref<3x128x128xbf16, #tpu.memory_space<vmem>>, vector<1x128x128xbf16>
    %164 = vector.shape_cast %163 : vector<1x128x128xbf16> to vector<128x128xbf16>
    %cst_118 = arith.constant dense<0.000000e+00> : vector<128x128xf32>
    %165 = tpu.matmul %157, %164, %cst_118 {dimension_numbers = #tpu.dot_dimension_numbers<[1], [0], [0], [1], [0, 0, 1, 1], [], []>} : vector<128x128xbf16>, vector<128x128xbf16>, vector<128x128xf32> -> vector<128x128xf32>
    %166 = arith.truncf %165 : vector<128x128xf32> to vector<128x128xbf16>
    %c128_119 = arith.constant 128 : index
    %c0_120 = arith.constant 0 : index
    %167 = vector.load %arg7[%c128_119, %c0_120] : memref<384x128xbf16, #tpu.memory_space<vmem>>, vector<128x128xbf16>
    tpu.vector_store %arg7[%c128_119, %c0_120], %166 {strides = array<i32>} : memref<384x128xbf16, #tpu.memory_space<vmem>>, vector<128x128xbf16>,
    %c2_121 = arith.constant 2 : index
    %c0_122 = arith.constant 0 : index
    %c0_123 = arith.constant 0 : index
    %168 = vector.load %arg2[%c2_121, %c0_122, %c0_123] : memref<3x128x128xbf16, #tpu.memory_space<vmem>>, vector<1x128x128xbf16>
    %169 = vector.shape_cast %168 : vector<1x128x128xbf16> to vector<128x128xbf16>
    %cst_124 = arith.constant dense<0.000000e+00> : vector<128x128xf32>
    %170 = tpu.matmul %157, %169, %cst_124 {dimension_numbers = #tpu.dot_dimension_numbers<[1], [0], [0], [1], [0, 0, 1, 1], [], []>} : vector<128x128xbf16>, vector<128x128xbf16>, vector<128x128xf32> -> vector<128x128xf32>
    %171 = arith.truncf %170 : vector<128x128xf32> to vector<128x128xbf16>
    %c256_125 = arith.constant 256 : index
    %c0_126 = arith.constant 0 : index
    %172 = vector.load %arg7[%c256_125, %c0_126] : memref<384x128xbf16, #tpu.memory_space<vmem>>, vector<128x128xbf16>
    tpu.vector_store %arg7[%c256_125, %c0_126], %171 {strides = array<i32>} : memref<384x128xbf16, #tpu.memory_space<vmem>>, vector<128x128xbf16>,
    %c0_127 = arith.constant 0 : index
    %c0_128 = arith.constant 0 : index
    %173 = vector.load %arg1[%c0_127, %c0_128] : memref<128x384xbf16, #tpu.memory_space<vmem>>, vector<128x384xbf16>
    %c0_129 = arith.constant 0 : index
    %c0_130 = arith.constant 0 : index
    %174 = vector.load %arg7[%c0_129, %c0_130] : memref<384x128xbf16, #tpu.memory_space<vmem>>, vector<384x128xbf16>
    %cst_131 = arith.constant dense<0.000000e+00> : vector<128x128xf32>
    %175 = tpu.matmul %173, %174, %cst_131 {dimension_numbers = #tpu.dot_dimension_numbers<[1], [0], [0], [1], [0, 0, 1, 1], [], []>} : vector<128x384xbf16>, vector<384x128xbf16>, vector<128x128xf32> -> vector<128x128xf32>
    %176 = arith.truncf %175 : vector<128x128xf32> to vector<128x128xbf16>
    %c1_132 = arith.constant 1 : index
    %c0_133 = arith.constant 0 : index
    %c0_134 = arith.constant 0 : index
    %177 = vector.load %arg3[%c1_132, %c0_133, %c0_134] : memref<2x128x512xbf16, #tpu.memory_space<vmem>>, vector<1x128x512xbf16>
    %178 = vector.shape_cast %177 : vector<1x128x512xbf16> to vector<128x512xbf16>
    %cst_135 = arith.constant dense<0.000000e+00> : vector<128x512xf32>
    %179 = tpu.matmul %176, %178, %cst_135 {dimension_numbers = #tpu.dot_dimension_numbers<[1], [0], [0], [1], [0, 0, 1, 1], [], []>} : vector<128x128xbf16>, vector<128x512xbf16>, vector<128x512xf32> -> vector<128x512xf32>
    %c1_136 = arith.constant 1 : index
    %c0_137 = arith.constant 0 : index
    %c0_138 = arith.constant 0 : index
    %180 = vector.load %arg4[%c1_136, %c0_137, %c0_138] : memref<2x128x512xbf16, #tpu.memory_space<vmem>>, vector<1x128x512xbf16>
    %181 = vector.shape_cast %180 : vector<1x128x512xbf16> to vector<128x512xbf16>
    %cst_139 = arith.constant dense<0.000000e+00> : vector<128x512xf32>
    %182 = tpu.matmul %157, %181, %cst_139 {dimension_numbers = #tpu.dot_dimension_numbers<[1], [0], [0], [1], [0, 0, 1, 1], [], []>} : vector<128x128xbf16>, vector<128x512xbf16>, vector<128x512xf32> -> vector<128x512xf32>
    %183 = arith.addf %179, %182 : vector<128x512xf32>
    %c1_140 = arith.constant 1 : index
    %c0_141 = arith.constant 0 : index
    %c0_142 = arith.constant 0 : index
    %184 = vector.load %arg5[%c1_140, %c0_141, %c0_142] : memref<2x128x512xf32, #tpu.memory_space<vmem>>, vector<1x128x512xf32>
    %185 = vector.shape_cast %184 : vector<1x128x512xf32> to vector<128x512xf32>
    %186 = arith.addf %183, %185 : vector<128x512xf32>
    %187 = vector.extract_strided_slice %186 {offsets = [0, 0], sizes = [128, 128], strides = [1, 1]} : vector<128x512xf32> to vector<128x128xf32>
    %188 = arith.negf %187 : vector<128x128xf32>
    %189 = math.exp %188 : vector<128x128xf32>
    %cst_143 = arith.constant 1.000000e+00 : f32
    %190 = vector.broadcast %cst_143 : f32 to vector<128x128xf32>
    %191 = arith.addf %190, %189 : vector<128x128xf32>
    %192 = arith.divf %190, %191 : vector<128x128xf32>
    %193 = vector.extract_strided_slice %186 {offsets = [0, 128], sizes = [128, 128], strides = [1, 1]} : vector<128x512xf32> to vector<128x128xf32>
    %194 = arith.negf %193 : vector<128x128xf32>
    %195 = math.exp %194 : vector<128x128xf32>
    %cst_144 = arith.constant 1.000000e+00 : f32
    %196 = vector.broadcast %cst_144 : f32 to vector<128x128xf32>
    %197 = arith.addf %196, %195 : vector<128x128xf32>
    %198 = arith.divf %196, %197 : vector<128x128xf32>
    %199 = vector.extract_strided_slice %186 {offsets = [0, 256], sizes = [128, 128], strides = [1, 1]} : vector<128x512xf32> to vector<128x128xf32>
    %200 = vector.extract_strided_slice %186 {offsets = [0, 384], sizes = [128, 128], strides = [1, 1]} : vector<128x512xf32> to vector<128x128xf32>
    %201 = arith.mulf %192, %200 : vector<128x128xf32>
    %202 = arith.addf %199, %201 : vector<128x128xf32>
    %203 = math.tanh %202 : vector<128x128xf32>
    %cst_145 = arith.constant 1.000000e+00 : f32
    %204 = vector.broadcast %cst_145 : f32 to vector<128x128xf32>
    %205 = arith.subf %204, %198 : vector<128x128xf32>
    %206 = arith.mulf %205, %203 : vector<128x128xf32>
    %207 = arith.mulf %198, %156 : vector<128x128xf32>
    %208 = arith.addf %206, %207 : vector<128x128xf32>
    %c0_146 = arith.constant 0 : index
    %c0_147 = arith.constant 0 : index
    %209 = vector.load %arg6[%c0_146, %c0_147] : memref<128x128xf32, #tpu.memory_space<vmem>>, vector<128x128xf32>
    tpu.vector_store %arg6[%c0_146, %c0_147], %208 {strides = array<i32>} : memref<128x128xf32, #tpu.memory_space<vmem>>, vector<128x128xf32>,
    return
  }
}

</mosaic_0001>

<bundles_post_ra>
// kernel: tpu_custom_call.1
= control target key start
LH: loop header
LB: loop body
LE: loop exit
PB: predicated region body
PF: predicated region fallthrough
CT: control target
= control target key end

     0   :  { %11 = vsyncpa [#allocation4], 0  ;;  %s13495_s0 = inlined_call_operand.hbm [shape: f32[128,128], index: 0, kind: input, shape index: {}]   ;;  %s13496_s1 = inlined_call_operand.hbm [shape: bf16[128,384], index: 1, kind: input, shape index: {}]   ;;  %s13497_s2 = inlined_call_operand.hbm [shape: bf16[3,128,128], index: 2, kind: input, shape index: {}]   ;;  %s13498_s3 = inlined_call_operand.hbm [shape: bf16[2,128,512], index: 3, kind: input, shape index: {}]   ;;  %s13499_s4 = inlined_call_operand.hbm [shape: bf16[2,128,512], index: 4, kind: input, shape index: {}]   ;;  %s13500_s5 = inlined_call_operand.hbm [shape: f32[2,128,512], index: 5, kind: input, shape index: {}]   ;;  %s13501_s6 = inlined_call_operand.hbm [shape: f32[128,128], index: 6, kind: output, shape index: {}]  }
   0x1   :  { %12 = vsyncpa [#allocation7], 0 }
   0x2   :  { %13 = vsyncpa [#allocation10], 0 }
   0x3   :  { %14 = vsyncpa [#allocation13], 0 }
   0x4   :  { %15 = vsyncpa [#allocation5], 0  ;;  %s12238_s21 = smov [#allocation6]   ;;  %s12074_s25 = scalar_lea.hbm %s13496_s1, 3072 }
   0x5   :  { %s33_s22 = sshll.u32 %s12238_s21, 4  ;;  %p12075_p0 = scmp.ne.s32.totalorder %s13496_s1, %s12074_s25  ;;  %s34_s22 = int_to_ptr.vmem [resolvable:$true] %s33_s22 }
   0x6   :  { %p12078_p1 = scmp.lt.u32.totalorder %s12074_s25, %s13496_s1 }
   0x8   :  { %p12080_p2 = pnand %p12078_p1, %p12075_p0 }
   0xa   :  { %12083 = shalt.err (!%p12080_p2)
}
   0xb   :  { %s12084_s30 = scalar_lea.vmem %s34_s22, 3072  ;;  %p12089_p4 = scmp.lt.s32.totalorder %s34_s22, %s34_s22 }
   0xc   :  { %p12085_p3 = scmp.ne.s32.totalorder %s34_s22, %s12084_s30  ;;  %p12090_p5 = scmp.lt.s32.totalorder %s12084_s30, %s12084_s30 }
   0xe   :  { %p12091_p6 = por %p12090_p5, %p12089_p4 }
  0x10   :  { %p12092_p7 = pnand %p12091_p6, %p12085_p3 }
  0x12   :  { %12095 = shalt.err (!%p12092_p7)
}
  0x13   :  { %s12239_s7 = smov 192   ;;  %s12240_s8 = smov 12  }
  0x14   :  { %39 = dma.hbm_to_vmem [thread:$0]  %s13496_s1, 3072, %s34_s22, [#allocation7], %s12239_s7, %s12239_s7, %s12240_s8  }
  0x15   :  { %s12241_s11 = smov [#allocation9]   ;;  %s12096_s15 = scalar_lea.hbm %s13498_s3, 8192 }
  0x16   :  { %s57_s12 = sshll.u32 %s12241_s11, 4  ;;  %p12097_p8 = scmp.ne.s32.totalorder %s13498_s3, %s12096_s15  ;;  %s58_s12 = int_to_ptr.vmem [resolvable:$true] %s57_s12 }
  0x17   :  { %p12100_p9 = scmp.lt.u32.totalorder %s12096_s15, %s13498_s3 }
  0x19   :  { %p12102_p10 = pnand %p12100_p9, %p12097_p8 }
  0x1b   :  { %12105 = shalt.err (!%p12102_p10)
}
  0x1c   :  { %s12106_s20 = scalar_lea.vmem %s58_s12, 8192  ;;  %p12111_p12 = scmp.lt.s32.totalorder %s58_s12, %s58_s12 }
  0x1d   :  { %p12107_p11 = scmp.ne.s32.totalorder %s58_s12, %s12106_s20  ;;  %p12112_p13 = scmp.lt.s32.totalorder %s12106_s20, %s12106_s20 }
  0x1f   :  { %p12113_p0 = por %p12112_p13, %p12111_p12 }
  0x21   :  { %p12114_p1 = pnand %p12113_p0, %p12107_p11 }
  0x23   :  { %12117 = shalt.err (!%p12114_p1)
}
  0x24   :  { %s12242_s1 = smov 256   ;;  %s12243_s21 = smov 16  }
  0x25   :  { %63 = dma.hbm_to_vmem [thread:$0]  %s13498_s3, 8192, %s58_s12, [#allocation10], %s12242_s1, %s12242_s1, %s12243_s21  }
  0x26   :  { %s12244_s24 = smov [#allocation3]   ;;  %s12118_s28 = scalar_lea.hbm %s13495_s0, 2048 }
  0x27   :  { %s21_s25 = sshll.u32 %s12244_s24, 4  ;;  %p12119_p2 = scmp.ne.s32.totalorder %s13495_s0, %s12118_s28  ;;  %s22_s25 = int_to_ptr.vmem [resolvable:$true] %s21_s25 }
  0x28   :  { %p12122_p3 = scmp.lt.u32.totalorder %s12118_s28, %s13495_s0 }
  0x2a   :  { %p12124_p4 = pnand %p12122_p3, %p12119_p2 }
  0x2c   :  { %12127 = shalt.err (!%p12124_p4)
}
  0x2d   :  { %s12128_s9 = scalar_lea.vmem %s22_s25, 2048  ;;  %p12133_p6 = scmp.lt.s32.totalorder %s22_s25, %s22_s25 }
  0x2e   :  { %p12129_p5 = scmp.ne.s32.totalorder %s22_s25, %s12128_s9  ;;  %p12134_p7 = scmp.lt.s32.totalorder %s12128_s9, %s12128_s9 }
  0x30   :  { %p12135_p8 = por %p12134_p7, %p12133_p6 }
  0x32   :  { %p12136_p9 = pnand %p12135_p8, %p12129_p5 }
  0x34   :  { %12139 = shalt.err (!%p12136_p9)
}
  0x35   :  { %s12245_s3 = smov 128   ;;  %s12246_s10 = smov 8  }
  0x36   :  { %27 = dma.hbm_to_vmem [thread:$0]  %s13495_s0, 2048, %s22_s25, [#allocation4], %s12245_s3, %s12245_s3, %s12246_s10  }
  0x37   :  { %s12247_s13 = smov [#allocation8]   ;;  %s12140_s17 = scalar_lea.hbm %s13497_s2, 3072 }
  0x38   :  { %s45_s14 = sshll.u32 %s12247_s13, 4  ;;  %p12141_p10 = scmp.ne.s32.totalorder %s13497_s2, %s12140_s17  ;;  %s46_s14 = int_to_ptr.vmem [resolvable:$true] %s45_s14 }
  0x39   :  { %p12144_p11 = scmp.lt.u32.totalorder %s12140_s17, %s13497_s2 }
  0x3b   :  { %p12146_p12 = pnand %p12144_p11, %p12141_p10 }
  0x3d   :  { %12149 = shalt.err (!%p12146_p12)
}
  0x3e   :  { %s12150_s23 = scalar_lea.vmem %s46_s14, 3072  ;;  %p12155_p0 = scmp.lt.s32.totalorder %s46_s14, %s46_s14 }
  0x3f   :  { %p12151_p13 = scmp.ne.s32.totalorder %s46_s14, %s12150_s23  ;;  %p12156_p1 = scmp.lt.s32.totalorder %s12150_s23, %s12150_s23 }
  0x41   :  { %p12157_p2 = por %p12156_p1, %p12155_p0 }
  0x43   :  { %p12158_p3 = pnand %p12157_p2, %p12151_p13 }
  0x45   :  { %12161 = shalt.err (!%p12158_p3)
}
  0x46   :  { %s12248_s0 = smov 64   ;;  %s12249_s24 = smov 4  }
  0x47   :  { %51 = dma.hbm_to_vmem [thread:$0]  %s13497_s2, 3072, %s46_s14, [#allocation7], %s12248_s0, %s12248_s0, %s12249_s24  }
  0x48   :  { %s12250_s27 = smov [#allocation11]   ;;  %s12251_s29 = smov [#allocation12]  }
  0x49   :  { %s69_s28 = sshll.u32 %s12250_s27, 4  ;;  %s81_s30 = sshll.u32 %s12251_s29, 4  ;;  %s70_s28 = int_to_ptr.vmem [resolvable:$true] %s69_s28  ;;  %s12345_s30 = int_to_ptr.vmem [resolvable:$true] %s81_s30 }
  0x4a   :  { %s12162_s9 = scalar_lea.hbm %s13499_s4, 8192 }
  0x4b   :  { %p12163_p4 = scmp.ne.s32.totalorder %s13499_s4, %s12162_s9  ;;  %p12166_p5 = scmp.lt.u32.totalorder %s12162_s9, %s13499_s4 }
  0x4d   :  { %p12168_p6 = pnand %p12166_p5, %p12163_p4 }
  0x4f   :  { %12171 = shalt.err (!%p12168_p6)
}
  0x50   :  { %s12172_s2 = scalar_lea.vmem %s70_s28, 8192  ;;  %p12177_p8 = scmp.lt.s32.totalorder %s70_s28, %s70_s28 }
  0x51   :  { %p12173_p7 = scmp.ne.s32.totalorder %s70_s28, %s12172_s2  ;;  %p12178_p9 = scmp.lt.s32.totalorder %s12172_s2, %s12172_s2 }
  0x53   :  { %p12179_p10 = por %p12178_p9, %p12177_p8 }
  0x55   :  { %p12180_p11 = pnand %p12179_p10, %p12173_p7 }
  0x57   :  { %12183 = shalt.err (!%p12180_p11)
}
  0x58   :  { %75 = dma.hbm_to_vmem [thread:$0]  %s13499_s4, 8192, %s70_s28, [#allocation10], %s12242_s1, %s12242_s1, %s12243_s21  }
  0x59   :  { %s12184_s19 = scalar_lea.hbm %s13500_s5, 16384 }
  0x5a   :  { %p12185_p12 = scmp.ne.s32.totalorder %s13500_s5, %s12184_s19  ;;  %p12188_p13 = scmp.lt.u32.totalorder %s12184_s19, %s13500_s5 }
  0x5c   :  { %p12190_p0 = pnand %p12188_p13, %p12185_p12 }
  0x5e   :  { %12193 = shalt.err (!%p12190_p0)
}
  0x5f   :  { %s12194_s24 = scalar_lea.vmem %s12345_s30, 16384  ;;  %p12199_p2 = scmp.lt.s32.totalorder %s12345_s30, %s12345_s30 }
  0x60   :  { %p12195_p1 = scmp.ne.s32.totalorder %s12345_s30, %s12194_s24  ;;  %p12200_p3 = scmp.lt.s32.totalorder %s12194_s24, %s12194_s24 }
  0x62   :  { %p12201_p4 = por %p12200_p3, %p12199_p2 }
  0x64   :  { %p12202_p5 = pnand %p12201_p4, %p12195_p1 }
  0x66   :  { %12205 = shalt.err (!%p12202_p5)
}
  0x67   :  { %s12252_s4 = smov 512   ;;  %s12253_s1 = smov 32  }
  0x68   :  { %87 = dma.hbm_to_vmem [thread:$0]  %s13500_s5, 16384, %s12345_s30, [#allocation13], %s12252_s4, %s12252_s4, %s12253_s1  }
  0x69   :  { %12228 = dma.done.wait [#allocation4], 2048  }
  0x6a   :  { %12229 = vsyncadd [#allocation4], 4294965248 }
  0x6b   :  { %12230 = dma.done.wait [#allocation7], 6144  }
  0x6c   :  { %12231 = vsyncadd [#allocation7], 4294961152 }
  0x6d   :  { %12232 = dma.done.wait [#allocation10], 16384  }
  0x6e   :  { %12233 = vsyncadd [#allocation10], 4294950912 }
  0x6f   :  { %12234 = dma.done.wait [#allocation13], 16384  }
  0x70   :  { %12235 = vsyncadd [#allocation13], 4294950912  ;;  %v10810_v0 = vld [vmem:[#allocation8] sm:$0xff]   ;;  %v10812_v2 = vld [vmem:[#allocation8 + $0x8] sm:$0xff]   ;;  %s12255_s5 = smov [#allocation14]  }
  0x71   :  { %v10811_v1 = vld [vmem:[#allocation8 + $0x40] sm:$0xff]   ;;  %10024 = vmatprep.subr.bf16.mxu0 %v10810_v0  ;;  %v10813_v3 = vld [vmem:[#allocation8 + $0x48] sm:$0xff]   ;;  %v10814_v4 = vld [vmem:[#allocation8 + $0x10] sm:$0xff]   ;;  %s8921_s26 = sshll.u32 %s12255_s5, 4  ;;  %s8922_s26 = int_to_ptr.vmem [resolvable:$true] %s8921_s26 }
  0x72   :  { %10056 = vmatprep.subr.bf16.mxu1 %v10811_v1  ;;  %10025 = vmatpush3.bf16.msra.mxu0 %v10810_v0  ;;  %v10815_v5 = vld [vmem:[#allocation8 + $0x50] sm:$0xff]   ;;  %v10816_v6 = vld [vmem:[#allocation8 + $0x18] sm:$0xff]   ;;  %v10818_v8 = vld [vmem:[#allocation8 + $0x20] sm:$0xff]   ;;  %s12206_s27 = scalar_lea.vmem %s8922_s26, 2048  ;;  %p12211_p7 = scmp.lt.s32.totalorder %s8922_s26, %s8922_s26 }
  0x73   :  { %10057 = vmatpush3.bf16.msra.mxu1 %v10811_v1  ;;  %10026 = vmatprep.subr.bf16.mxu0 %v10812_v2  ;;  %v10817_v7 = vld [vmem:[#allocation8 + $0x58] sm:$0xff]   ;;  %v10819_v9 = vld [vmem:[#allocation8 + $0x60] sm:$0xff]   ;;  %v10820_v10 = vld [vmem:[#allocation8 + $0x28] sm:$0xff]   ;;  %p12207_p6 = scmp.ne.s32.totalorder %s8922_s26, %s12206_s27  ;;  %p12212_p8 = scmp.lt.s32.totalorder %s12206_s27, %s12206_s27 }
  0x74   :  { %10058 = vmatprep.subr.bf16.mxu1 %v10813_v3  ;;  %v107_v11 = vld [vmem:[#allocation3] sm:$0xff]  ;;  %v108_v12 = vld [vmem:[#allocation3 + $0x8] sm:$0xff]  ;;  %v10822_v15 = vld [vmem:[#allocation8 + $0x30] sm:$0xff]  }
  0x75   :  { %v10821_v13 = vld [vmem:[#allocation8 + $0x68] sm:$0xff]   ;;  %v12379_v14 = vpack.c.bf16 %v108_v12, %v107_v11  ;;  %v10823_v16 = vld [vmem:[#allocation8 + $0x70] sm:$0xff]   ;;  %v10824_v17 = vld [vmem:[#allocation8 + $0x38] sm:$0xff]   ;;  %p12213_p9 = por %p12212_p8, %p12211_p7 }
  0x76   :  { %10027 = vmatpush3.bf16.msra.mxu0 %v10812_v2  ;;  %v10825_v18 = vld [vmem:[#allocation8 + $0x78] sm:$0xff]   ;;  %v109_v19 = vld [vmem:[#allocation3 + $0x10] sm:$0xff]  ;;  %v10826_v21 = vld [vmem:[#allocation8 + $0x80] sm:$0xff]  }
  0x77   :  { %10059 = vmatpush3.bf16.msra.mxu1 %v10813_v3  ;;  %10028 = vmatprep.subr.bf16.mxu0 %v10814_v4  ;;  %v110_v20 = vld [vmem:[#allocation3 + $0x18] sm:$0xff]  ;;  %v111_v22 = vld [vmem:[#allocation3 + $0x20] sm:$0xff]  ;;  %v112_v23 = vld [vmem:[#allocation3 + $0x28] sm:$0xff]  ;;  %p12214_p10 = pnand %p12213_p9, %p12207_p6 }
  0x78   :  { %10060 = vmatprep.subr.bf16.mxu1 %v10815_v5  ;;  %10040 = vmatprep.mubr.bf16.mxu0 %v12379_v14  ;;  %v12383_v24 = vpack.c.bf16 %v110_v20, %v109_v19  ;;  %v10827_v25 = vld [vmem:[#allocation8 + $0x88] sm:$0xff]   ;;  %v12385_v26 = vpack.c.bf16 %v112_v23, %v111_v22  ;;  %v113_v27 = vld [vmem:[#allocation3 + $0x30] sm:$0xff]  ;;  %v114_v28 = vld [vmem:[#allocation3 + $0x38] sm:$0xff] }
  0x79   :  { %10072 = vmatprep.mubr.bf16.mxu1 %v12379_v14  ;;  %v10828_v29 = vld [vmem:[#allocation8 + $0x90] sm:$0xff]   ;;  %v115_v30 = vld [vmem:[#allocation3 + $0x40] sm:$0xff]  ;;  %v116_v31 = vld [vmem:[#allocation3 + $0x48] sm:$0xff]  ;;  %v12391_v32 = vpack.c.bf16 %v114_v28, %v113_v27 }
  0x7a   :  { %10029 = vmatpush3.bf16.msra.mxu0 %v10814_v4  ;;  %v10829_v33 = vld [vmem:[#allocation8 + $0x98] sm:$0xff]   ;;  %v12393_v34 = vpack.c.bf16 %v116_v31, %v115_v30  ;;  %v117_v35 = vld [vmem:[#allocation3 + $0x50] sm:$0xff]  ;;  %v10830_v37 = vld [vmem:[#allocation8 + $0xa0] sm:$0xff]  }
  0x7b   :  { %10061 = vmatpush3.bf16.msra.mxu1 %v10815_v5  ;;  %10030 = vmatprep.subr.bf16.mxu0 %v10816_v6  ;;  %v118_v36 = vld [vmem:[#allocation3 + $0x58] sm:$0xff]  ;;  %v119_v38 = vld [vmem:[#allocation3 + $0x60] sm:$0xff]  ;;  %v120_v39 = vld [vmem:[#allocation3 + $0x68] sm:$0xff] }
  0x7c   :  { %10062 = vmatprep.subr.bf16.mxu1 %v10817_v7  ;;  %v12399_v40 = vpack.c.bf16 %v118_v36, %v117_v35  ;;  %v10831_v41 = vld [vmem:[#allocation8 + $0xa8] sm:$0xff]   ;;  %v12401_v42 = vpack.c.bf16 %v120_v39, %v119_v38  ;;  %v121_v43 = vld [vmem:[#allocation3 + $0x70] sm:$0xff]  ;;  %v122_v44 = vld [vmem:[#allocation3 + $0x78] sm:$0xff] }
  0x7d   :  { %v10832_v45 = vld [vmem:[#allocation8 + $0xb0] sm:$0xff]   ;;  %v12407_v46 = vpack.c.bf16 %v122_v44, %v121_v43  ;;  %v10833_v47 = vld [vmem:[#allocation8 + $0xb8] sm:$0xff]  }
  0x7e   :  { %10031 = vmatpush3.bf16.msra.mxu0 %v10816_v6  ;;  %v10836_v48 = vld [vmem:[#allocation6 + $0x4] ss:$12 sps:$4 sm:$0xff]   ;;  %v10840_v49 = vld [vmem:[#allocation6 + $0x8] ss:$12 sps:$4 sm:$0xff]   ;;  %v10868_v43 = vld [vmem:[#allocation11 + $0xc] ss:$16 sps:$4 sm:$0xff]  }
  0x7f   :  { %10063 = vmatpush3.bf16.msra.mxu1 %v10817_v7  ;;  %10032 = vmatprep.subr.bf16.mxu0 %v10818_v8 }
  0x80   :  { %10064 = vmatprep.subr.bf16.mxu1 %v10819_v9 }
  0x82   :  { %10033 = vmatpush3.bf16.msra.mxu0 %v10818_v8 }
  0x83   :  { %10065 = vmatpush3.bf16.msra.mxu1 %v10819_v9  ;;  %10034 = vmatprep.subr.bf16.mxu0 %v10820_v10 }
  0x84   :  { %10066 = vmatprep.subr.bf16.mxu1 %v10821_v13 }
  0x86   :  { %10035 = vmatpush3.bf16.msra.mxu0 %v10820_v10 }
  0x87   :  { %10067 = vmatpush3.bf16.msra.mxu1 %v10821_v13  ;;  %10036 = vmatprep.subr.bf16.mxu0 %v10822_v15 }
  0x88   :  { %10068 = vmatprep.subr.bf16.mxu1 %v10823_v16 }
  0x8a   :  { %10037 = vmatpush3.bf16.msra.mxu0 %v10822_v15 }
  0x8b   :  { %10069 = vmatpush3.bf16.msra.mxu1 %v10823_v16  ;;  %10038 = vmatprep.subr.bf16.mxu0 %v10824_v17 }
  0x8c   :  { %10070 = vmatprep.subr.bf16.mxu1 %v10825_v18 }
  0x8e   :  { %10039 = vmatpush3.bf16.msra.mxu0 %v10824_v17 }
  0x8f   :  { %10071 = vmatpush3.bf16.msra.mxu1 %v10825_v18  ;;  %10088 = vmatprep.subr.bf16.mxu0 %v10826_v21 }
  0x91   :  { %10041 = vmatmul.mubr.bf16.vlgmr.msra.gmra.mrb[0].mxu0 %v12383_v24 }
  0x92   :  { %10073 = vmatmul.mubr.bf16.vlgmr.msra.gmra.mrb[0].mxu1 %v12383_v24  ;;  %10089 = vmatpush3.bf16.msra.mxu0 %v10826_v21 }
  0x93   :  { %10090 = vmatprep.subr.bf16.mxu0 %v10827_v25  ;;  %10044 = vmatprep.mubr.bf16.mxu0 %v12385_v26 }
  0x94   :  { %10076 = vmatprep.mubr.bf16.mxu1 %v12385_v26 }
  0x96   :  { %10091 = vmatpush3.bf16.msra.mxu0 %v10827_v25 }
  0x97   :  { %10092 = vmatprep.subr.bf16.mxu0 %v10828_v29 }
  0x99   :  { %10045 = vmatmul.mubr.bf16.gmra.mrb[4].mxu0 %v12391_v32 }
  0x9a   :  { %10077 = vmatmul.mubr.bf16.gmra.mrb[4].mxu1 %v12391_v32  ;;  %10093 = vmatpush3.bf16.msra.mxu0 %v10828_v29 }
  0x9b   :  { %10094 = vmatprep.subr.bf16.mxu0 %v10829_v33  ;;  %10048 = vmatprep.mubr.bf16.mxu0 %v12393_v34 }
  0x9c   :  { %10080 = vmatprep.mubr.bf16.mxu1 %v12393_v34 }
  0x9e   :  { %10095 = vmatpush3.bf16.msra.mxu0 %v10829_v33 }
  0x9f   :  { %10096 = vmatprep.subr.bf16.mxu0 %v10830_v37 }
  0xa1   :  { %10049 = vmatmul.mubr.bf16.gmra.mrb[8].mxu0 %v12399_v40 }
  0xa2   :  { %10081 = vmatmul.mubr.bf16.gmra.mrb[8].mxu1 %v12399_v40  ;;  %10097 = vmatpush3.bf16.msra.mxu0 %v10830_v37 }
  0xa3   :  { %10098 = vmatprep.subr.bf16.mxu0 %v10831_v41  ;;  %10052 = vmatprep.mubr.bf16.mxu0 %v12401_v42 }
  0xa4   :  { %10084 = vmatprep.mubr.bf16.mxu1 %v12401_v42 }
  0xa6   :  { %10099 = vmatpush3.bf16.msra.mxu0 %v10831_v41 }
  0xa7   :  { %10100 = vmatprep.subr.bf16.mxu0 %v10832_v45 }
  0xa9   :  { %10053 = vmatmul.mubr.bf16.gmra.mrb[12].mxu0 %v12407_v46 }
  0xaa   :  { %10085 = vmatmul.mubr.bf16.gmra.mrb[12].mxu1 %v12407_v46  ;;  %10101 = vmatpush3.bf16.msra.mxu0 %v10832_v45 }
  0xab   :  { %10102 = vmatprep.subr.bf16.mxu0 %v10833_v47  ;;  %10104 = vmatprep.mubr.bf16.mxu0 %v12379_v14 }
  0xac   :  { %880 = vmatprep.mubr.bf16.mxu1 %v10836_v48  ;;  %v10834_v48 = vld [vmem:[#allocation6] ss:$12 sps:$4 sm:$0xff]  }
  0xae   :  { %10103 = vmatpush3.bf16.msra.mxu0 %v10833_v47 }
  0xb1   :  { %10105 = vmatmul.mubr.bf16.vlgmr.msra.gmra.mrb[16].mxu0 %v12383_v24 }
  0xb2   :  { %10108 = vmatprep.mubr.bf16.mxu0 %v12385_v26 }
  0xb9   :  { %10109 = vmatmul.mubr.bf16.gmra.mrb[20].mxu0 %v12391_v32 }
  0xba   :  { %10112 = vmatprep.mubr.bf16.mxu0 %v12393_v34 }
  0xc1   :  { %10113 = vmatmul.mubr.bf16.gmra.mrb[24].mxu0 %v12399_v40 }
  0xc2   :  { %10116 = vmatprep.mubr.bf16.mxu0 %v12401_v42 }
  0xc9   :  { %10117 = vmatmul.mubr.bf16.gmra.mrb[28].mxu0 %v12407_v46 }
  0xca   :  { %10136 = vmatprep.mubr.bf16.mxu0 %v10840_v49 }
 0x164   :  { %v10042_v50 = vpop.f32.mrb[0].mxu0 }
 0x165   :  { %v10074_v51 = vpop.f32.mrb[0].mxu1  ;;  %v229_v52 = vpop.f32.mrb[1].mxu0 }
 0x166   :  { %v407_v53 = vpop.f32.mrb[1].mxu1  ;;  %v10043_v54 = vpop.f32.mrb[2].mxu0 }
 0x167   :  { %v293_v55 = vpack.c.bf16 %v10043_v54, %v10042_v50  ;;  %v10075_v56 = vpop.f32.mrb[2].mxu1  ;;  %v232_v57 = vpop.f32.mrb[3].mxu0  ;;  %v10837_v50 = vld [vmem:[#allocation6 + $0x1c] ss:$12 sps:$4 sm:$0xff]  }
 0x168   :  { %v471_v58 = vpack.c.bf16 %v10075_v56, %v10074_v51  ;;  %v292_v59 = vpack.c.bf16 %v232_v57, %v229_v52  ;;  %v410_v60 = vpop.f32.mrb[3].mxu1  ;;  %v10866_v51 = vld [vmem:[#allocation11 + $0x8] ss:$16 sps:$4 sm:$0xff]   ;;  %v10874_v52 = vld [vmem:[#allocation11 + $0x2c] ss:$16 sps:$4 sm:$0xff]  }
 0x169   :  { %v470_v61 = vpack.c.bf16 %v410_v60, %v407_v53  ;;  %v10883_v57 = vld [vmem:[#allocation11 + $0x4c] ss:$16 sps:$4 sm:$0xff]   ;;  %v10839_v60 = vld [vmem:[#allocation6 + $0x18] ss:$12 sps:$4 sm:$0xff]  }
 0x16b   :  { %9560 = vmatprep.subr.bf16.mxu1 %v470_v61 }
 0x16c   :  { %9561 = vmatpush3.bf16.msra.mxu1 %v292_v59  ;;  %v10046_v62 = vpop.f32.mrb[4].mxu0 }
 0x16d   :  { %v10078_v63 = vpop.f32.mrb[4].mxu1  ;;  %v245_v0 = vpop.f32.mrb[5].mxu0  ;;  %9562 = vmatprep.subr.bf16.mxu1 %v471_v58 }
 0x16e   :  { %v423_v1 = vpop.f32.mrb[5].mxu1  ;;  %v10047_v2 = vpop.f32.mrb[6].mxu0 }
 0x16f   :  { %v295_v3 = vpack.c.bf16 %v10047_v2, %v10046_v62  ;;  %v10079_v4 = vpop.f32.mrb[6].mxu1  ;;  %v248_v5 = vpop.f32.mrb[7].mxu0  ;;  %v10842_v62 = vld [vmem:[#allocation6 + $0x34] ss:$12 sps:$4 sm:$0xff]  }
 0x170   :  { %v473_v6 = vpack.c.bf16 %v10079_v4, %v10078_v63  ;;  %v294_v7 = vpack.c.bf16 %v248_v5, %v245_v0  ;;  %v426_v8 = vpop.f32.mrb[7].mxu1  ;;  %9563 = vmatpush3.bf16.msra.mxu1 %v293_v55  ;;  %v10872_v55 = vld [vmem:[#allocation11 + $0x28] ss:$16 sps:$4 sm:$0xff]   ;;  %v10889_v0 = vld [vmem:[#allocation11 + $0x6c] ss:$16 sps:$4 sm:$0xff]  }
 0x171   :  { %v472_v9 = vpack.c.bf16 %v426_v8, %v423_v1  ;;  %v10881_v63 = vld [vmem:[#allocation11 + $0x48] ss:$16 sps:$4 sm:$0xff]   ;;  %v10895_v5 = vld [vmem:[#allocation11 + $0x8c] ss:$16 sps:$4 sm:$0xff]  }
 0x172   :  { %v10844_v8 = vld [vmem:[#allocation6 + $0x30] ss:$12 sps:$4 sm:$0xff]  }
 0x173   :  { %9564 = vmatprep.subr.bf16.mxu1 %v472_v9 }
 0x174   :  { %9565 = vmatpush3.bf16.msra.mxu1 %v294_v7  ;;  %v10050_v10 = vpop.f32.mrb[8].mxu0 }
 0x175   :  { %v10082_v11 = vpop.f32.mrb[8].mxu1  ;;  %v261_v12 = vpop.f32.mrb[9].mxu0  ;;  %9566 = vmatprep.subr.bf16.mxu1 %v473_v6 }
 0x176   :  { %v439_v13 = vpop.f32.mrb[9].mxu1  ;;  %v10051_v15 = vpop.f32.mrb[10].mxu0 }
 0x177   :  { %v297_v16 = vpack.c.bf16 %v10051_v15, %v10050_v10  ;;  %v10083_v17 = vpop.f32.mrb[10].mxu1  ;;  %v264_v18 = vpop.f32.mrb[11].mxu0  ;;  %v10845_v10 = vld [vmem:[#allocation6 + $0x4c] ss:$12 sps:$4 sm:$0xff]  }
 0x178   :  { %v475_v19 = vpack.c.bf16 %v10083_v17, %v10082_v11  ;;  %v296_v20 = vpack.c.bf16 %v264_v18, %v261_v12  ;;  %v442_v21 = vpop.f32.mrb[11].mxu1  ;;  %9567 = vmatpush3.bf16.msra.mxu1 %v295_v3  ;;  %v10887_v3 = vld [vmem:[#allocation11 + $0x68] ss:$16 sps:$4 sm:$0xff]   ;;  %v10901_v12 = vld [vmem:[#allocation11 + $0xac] ss:$16 sps:$4 sm:$0xff]  }
 0x179   :  { %v474_v22 = vpack.c.bf16 %v442_v21, %v439_v13  ;;  %v10893_v11 = vld [vmem:[#allocation11 + $0x88] ss:$16 sps:$4 sm:$0xff]   ;;  %v10907_v18 = vld [vmem:[#allocation11 + $0xcc] ss:$16 sps:$4 sm:$0xff]  }
 0x17a   :  { %v10847_v21 = vld [vmem:[#allocation6 + $0x48] ss:$12 sps:$4 sm:$0xff]  }
 0x17b   :  { %9568 = vmatprep.subr.bf16.mxu1 %v474_v22 }
 0x17c   :  { %9569 = vmatpush3.bf16.msra.mxu1 %v296_v20  ;;  %v10054_v23 = vpop.f32.mrb[12].mxu0 }
 0x17d   :  { %v10086_v25 = vpop.f32.mrb[12].mxu1  ;;  %v277_v27 = vpop.f32.mrb[13].mxu0  ;;  %9570 = vmatprep.subr.bf16.mxu1 %v475_v19 }
 0x17e   :  { %v455_v28 = vpop.f32.mrb[13].mxu1  ;;  %v10055_v29 = vpop.f32.mrb[14].mxu0 }
 0x17f   :  { %v299_v30 = vpack.c.bf16 %v10055_v29, %v10054_v23  ;;  %v10087_v31 = vpop.f32.mrb[14].mxu1  ;;  %v280_v33 = vpop.f32.mrb[15].mxu0  ;;  %v10850_v23 = vld [vmem:[#allocation6 + $0x64] ss:$12 sps:$4 sm:$0xff]   ;;  %v10911_v29 = vld [vmem:[#allocation11 + $0xe8] ss:$16 sps:$4 sm:$0xff]  }
 0x180   :  { %v477_v35 = vpack.c.bf16 %v10087_v31, %v10086_v25  ;;  %v298_v36 = vpack.c.bf16 %v280_v33, %v277_v27  ;;  %v458_v37 = vpop.f32.mrb[15].mxu1  ;;  %9571 = vmatpush3.bf16.msra.mxu1 %v297_v16  ;;  %v10899_v16 = vld [vmem:[#allocation11 + $0xa8] ss:$16 sps:$4 sm:$0xff]   ;;  %v10913_v27 = vld [vmem:[#allocation11 + $0xec] ss:$16 sps:$4 sm:$0xff]  }
 0x181   :  { %v476_v38 = vpack.c.bf16 %v458_v37, %v455_v28  ;;  %v10905_v25 = vld [vmem:[#allocation11 + $0xc8] ss:$16 sps:$4 sm:$0xff]   ;;  %v10871_v28 = vld [vmem:[#allocation11 + $0x4] ss:$16 sps:$4 sm:$0xff]   ;;  %v10928_v31 = vld [vmem:[#allocation9 + $0xc] ss:$16 sps:$4 sm:$0xff]  }
 0x182   :  { %v10848_v33 = vld [vmem:[#allocation6 + $0x38] ss:$12 sps:$4 sm:$0xff]   ;;  %v10869_v37 = vld [vmem:[#allocation11] ss:$16 sps:$4 sm:$0xff]  }
 0x183   :  { %9572 = vmatprep.subr.bf16.mxu1 %v476_v38  ;;  %v10877_v38 = vld [vmem:[#allocation11 + $0x24] ss:$16 sps:$4 sm:$0xff]  }
 0x184   :  { %9573 = vmatpush3.bf16.msra.mxu1 %v298_v36  ;;  %v10106_v39 = vpop.f32.mrb[16].mxu0  ;;  %v10853_v36 = vld [vmem:[#allocation6 + $0x7c] ss:$12 sps:$4 sm:$0xff]  }
 0x185   :  { %v585_v41 = vpop.f32.mrb[17].mxu0  ;;  %9574 = vmatprep.subr.bf16.mxu1 %v477_v35  ;;  %v10852_v35 = vld [vmem:[#allocation6 + $0x60] ss:$12 sps:$4 sm:$0xff]  }
 0x186   :  { %v10107_v44 = vpop.f32.mrb[18].mxu0 }
 0x187   :  { %v649_v45 = vpack.c.bf16 %v10107_v44, %v10106_v39  ;;  %v588_v47 = vpop.f32.mrb[19].mxu0  ;;  %v10875_v39 = vld [vmem:[#allocation11 + $0x20] ss:$16 sps:$4 sm:$0xff]   ;;  %v10855_v44 = vld [vmem:[#allocation6 + $0x78] ss:$12 sps:$4 sm:$0xff]  }
 0x188   :  { %v648_v49 = vpack.c.bf16 %v588_v47, %v585_v41  ;;  %9575 = vmatpush3.bf16.msra.mxu1 %v299_v30  ;;  %v10841_v30 = vld [vmem:[#allocation6 + $0x20] ss:$12 sps:$4 sm:$0xff]   ;;  %v10880_v41 = vld [vmem:[#allocation11 + $0x44] ss:$16 sps:$4 sm:$0xff]  }
 0x189   :  { %1387 = vmatprep.subr.bf16.mxu1 %v10868_v43  ;;  %v10849_v43 = vld [vmem:[#allocation6 + $0x50] ss:$12 sps:$4 sm:$0xff]   ;;  %v10858_v47 = vld [vmem:[#allocation6 + $0x94] ss:$12 sps:$4 sm:$0xff]  }
 0x18a   :  { %10120 = vmatprep.subr.bf16.mxu0 %v648_v49 }
 0x18b   :  { %10121 = vmatpush3.bf16.msra.mxu0 %v648_v49  ;;  %881 = vmatmul.mubr.bf16.vlgmr.msra.gmra.mrb[16].mxu1 %v10834_v48  ;;  %v10878_v48 = vld [vmem:[#allocation11 + $0x40] ss:$16 sps:$4 sm:$0xff]   ;;  %v10886_v49 = vld [vmem:[#allocation11 + $0x64] ss:$16 sps:$4 sm:$0xff]  }
 0x18c   :  { %v10110_v53 = vpop.f32.mrb[20].mxu0  ;;  %10122 = vmatprep.subr.bf16.mxu0 %v649_v45  ;;  %888 = vmatprep.mubr.bf16.mxu1 %v10837_v50  ;;  %v10884_v50 = vld [vmem:[#allocation11 + $0x60] ss:$16 sps:$4 sm:$0xff]  }
 0x18d   :  { %v601_v54 = vpop.f32.mrb[21].mxu0  ;;  %1388 = vmatpush1.bf16.msra.mxu1 %v10866_v51  ;;  %v10892_v51 = vld [vmem:[#allocation11 + $0x84] ss:$16 sps:$4 sm:$0xff]  }
 0x18e   :  { %v10111_v56 = vpop.f32.mrb[22].mxu0  ;;  %1389 = vmatprep.subr.bf16.mxu1 %v10874_v52  ;;  %v10857_v52 = vld [vmem:[#allocation6 + $0x80] ss:$12 sps:$4 sm:$0xff]  }
 0x18f   :  { %v651_v58 = vpack.c.bf16 %v10111_v56, %v10110_v53  ;;  %v604_v59 = vpop.f32.mrb[23].mxu0  ;;  %10123 = vmatpush3.bf16.msra.mxu0 %v649_v45  ;;  %v10856_v45 = vld [vmem:[#allocation6 + $0x68] ss:$12 sps:$4 sm:$0xff]   ;;  %v10860_v53 = vld [vmem:[#allocation6 + $0x90] ss:$12 sps:$4 sm:$0xff]  }
 0x190   :  { %v650_v61 = vpack.c.bf16 %v604_v59, %v601_v54  ;;  %v10864_v54 = vld [vmem:[#allocation6 + $0x98] ss:$12 sps:$4 sm:$0xff]   ;;  %v10890_v56 = vld [vmem:[#allocation11 + $0x80] ss:$16 sps:$4 sm:$0xff]  }
 0x191   :  { %1390 = vmatpush1.bf16.msra.mxu1 %v10872_v55  ;;  %v10861_v55 = vld [vmem:[#allocation6 + $0xac] ss:$12 sps:$4 sm:$0xff]   ;;  %v10904_v59 = vld [vmem:[#allocation11 + $0xc4] ss:$16 sps:$4 sm:$0xff]  }
 0x192   :  { %10124 = vmatprep.subr.bf16.mxu0 %v650_v61  ;;  %1391 = vmatprep.subr.bf16.mxu1 %v10883_v57  ;;  %v10898_v57 = vld [vmem:[#allocation11 + $0xa4] ss:$16 sps:$4 sm:$0xff]  }
 0x193   :  { %10125 = vmatpush3.bf16.msra.mxu0 %v650_v61  ;;  %889 = vmatmul.mubr.bf16.gmra.mrb[20].mxu1 %v10839_v60  ;;  %v10865_v60 = vld [vmem:[#allocation6 + $0xb0] ss:$12 sps:$4 sm:$0xff]   ;;  %v10863_v61 = vld [vmem:[#allocation6 + $0xa8] ss:$12 sps:$4 sm:$0xff]  }
 0x194   :  { %v10114_v1 = vpop.f32.mrb[24].mxu0  ;;  %10126 = vmatprep.subr.bf16.mxu0 %v651_v58  ;;  %896 = vmatprep.mubr.bf16.mxu1 %v10842_v62  ;;  %v10902_v62 = vld [vmem:[#allocation11 + $0xc0] ss:$16 sps:$4 sm:$0xff]  }
 0x195   :  { %v617_v2 = vpop.f32.mrb[25].mxu0  ;;  %1392 = vmatpush1.bf16.msra.mxu1 %v10881_v63  ;;  %v10910_v63 = vld [vmem:[#allocation11 + $0xe4] ss:$16 sps:$4 sm:$0xff]  }
 0x196   :  { %v10115_v4 = vpop.f32.mrb[26].mxu0  ;;  %1393 = vmatprep.subr.bf16.mxu1 %v10889_v0  ;;  %v13502_v0 = vmov 0  }
 0x197   :  { %v653_v6 = vpack.c.bf16 %v10115_v4, %v10114_v1  ;;  %v620_v7 = vpop.f32.mrb[27].mxu0  ;;  %10127 = vmatpush3.bf16.msra.mxu0 %v651_v58  ;;  %v10896_v58 = vld [vmem:[#allocation11 + $0xa0] ss:$16 sps:$4 sm:$0xff]   ;;  %v10919_v4 = vld [vmem:[#allocation9 + $0x24] ss:$16 sps:$4 sm:$0xff]  }
 0x198   :  { %v652_v9 = vpack.c.bf16 %v620_v7, %v617_v2  ;;  %v10908_v1 = vld [vmem:[#allocation11 + $0xe0] ss:$16 sps:$4 sm:$0xff]   ;;  %v10916_v2 = vld [vmem:[#allocation9 + $0x4] ss:$16 sps:$4 sm:$0xff]  }
 0x199   :  { %1394 = vmatpush1.bf16.msra.mxu1 %v10887_v3  ;;  %v10914_v3 = vld [vmem:[#allocation9] ss:$16 sps:$4 sm:$0xff]  }
 0x19a   :  { %10128 = vmatprep.subr.bf16.mxu0 %v652_v9  ;;  %1395 = vmatprep.subr.bf16.mxu1 %v10895_v5  ;;  %v10926_v5 = vld [vmem:[#allocation9 + $0x8] ss:$16 sps:$4 sm:$0xff]   ;;  %v10917_v7 = vld [vmem:[#allocation9 + $0x20] ss:$16 sps:$4 sm:$0xff]  }
 0x19b   :  { %10129 = vmatpush3.bf16.msra.mxu0 %v652_v9  ;;  %897 = vmatmul.mubr.bf16.gmra.mrb[24].mxu1 %v10844_v8  ;;  %v10922_v8 = vld [vmem:[#allocation9 + $0x44] ss:$16 sps:$4 sm:$0xff]   ;;  %v10932_v9 = vld [vmem:[#allocation9 + $0x28] ss:$16 sps:$4 sm:$0xff]  }
 0x19c   :  { %v10118_v13 = vpop.f32.mrb[28].mxu0  ;;  %10130 = vmatprep.subr.bf16.mxu0 %v653_v6  ;;  %904 = vmatprep.mubr.bf16.mxu1 %v10845_v10  ;;  %v10920_v10 = vld [vmem:[#allocation9 + $0x40] ss:$16 sps:$4 sm:$0xff]  }
 0x19d   :  { %v633_v15 = vpop.f32.mrb[29].mxu0  ;;  %1396 = vmatpush1.bf16.msra.mxu1 %v10893_v11  ;;  %v10940_v11 = vld [vmem:[#allocation9 + $0x4c] ss:$16 sps:$4 sm:$0xff]  }
 0x19e   :  { %v10119_v17 = vpop.f32.mrb[30].mxu0  ;;  %1397 = vmatprep.subr.bf16.mxu1 %v10901_v12  ;;  %v10925_v12 = vld [vmem:[#allocation9 + $0x64] ss:$16 sps:$4 sm:$0xff]  }
 0x19f   :  { %v655_v19 = vpack.c.bf16 %v10119_v17, %v10118_v13  ;;  %v636_v20 = vpop.f32.mrb[31].mxu0  ;;  %10131 = vmatpush3.bf16.msra.mxu0 %v653_v6  ;;  %v10934_v6 = vld [vmem:[#allocation9 + $0x2c] ss:$16 sps:$4 sm:$0xff]   ;;  %v10938_v13 = vld [vmem:[#allocation9 + $0x48] ss:$16 sps:$4 sm:$0xff]  }
 0x1a0   :  { %v654_v22 = vpack.c.bf16 %v636_v20, %v633_v15  ;;  %v10923_v15 = vld [vmem:[#allocation9 + $0x60] ss:$16 sps:$4 sm:$0xff]   ;;  %v10941_v17 = vld [vmem:[#allocation9 + $0x68] ss:$16 sps:$4 sm:$0xff]   ;;  %v10937_v20 = vld [vmem:[#allocation9 + $0xa4] ss:$16 sps:$4 sm:$0xff]  }
 0x1a1   :  { %1398 = vmatpush1.bf16.msra.mxu1 %v10899_v16  ;;  %v10931_v16 = vld [vmem:[#allocation9 + $0x84] ss:$16 sps:$4 sm:$0xff]  }
 0x1a2   :  { %10132 = vmatprep.subr.bf16.mxu0 %v654_v22  ;;  %1399 = vmatprep.subr.bf16.mxu1 %v10907_v18  ;;  %v10929_v18 = vld [vmem:[#allocation9 + $0x80] ss:$16 sps:$4 sm:$0xff]  }
 0x1a3   :  { %10133 = vmatpush3.bf16.msra.mxu0 %v654_v22  ;;  %905 = vmatmul.mubr.bf16.gmra.mrb[28].mxu1 %v10847_v21  ;;  %v10935_v21 = vld [vmem:[#allocation9 + $0xa0] ss:$16 sps:$4 sm:$0xff]   ;;  %v10946_v22 = vld [vmem:[#allocation9 + $0xc4] ss:$16 sps:$4 sm:$0xff]  }
 0x1a4   :  { %10134 = vmatprep.subr.bf16.mxu0 %v655_v19  ;;  %912 = vmatprep.mubr.bf16.mxu1 %v10850_v23  ;;  %v10944_v23 = vld [vmem:[#allocation9 + $0xc0] ss:$16 sps:$4 sm:$0xff]  }
 0x1a5   :  { %1400 = vmatpush1.bf16.msra.mxu1 %v10905_v25  ;;  %v10950_v25 = vld [vmem:[#allocation9 + $0xa8] ss:$16 sps:$4 sm:$0xff]  }
 0x1a6   :  { %1401 = vmatprep.subr.bf16.mxu1 %v10913_v27  ;;  %v10952_v27 = vld [vmem:[#allocation9 + $0xac] ss:$16 sps:$4 sm:$0xff]  }
 0x1a7   :  { %10135 = vmatpush3.bf16.msra.mxu0 %v655_v19  ;;  %v10949_v19 = vld [vmem:[#allocation9 + $0x8c] ss:$16 sps:$4 sm:$0xff]  }
 0x1a8   :  { %1274 = vmatprep.subr.bf16.mxu0 %v10871_v28  ;;  %v10955_v28 = vld [vmem:[#allocation9 + $0xe4] ss:$16 sps:$4 sm:$0xff]  }
 0x1a9   :  { %1402 = vmatpush1.bf16.msra.mxu1 %v10911_v29  ;;  %v10959_v29 = vld [vmem:[#allocation9 + $0xe8] ss:$16 sps:$4 sm:$0xff]  }
 0x1aa   :  { %10137 = vmatmul.mubr.bf16.vlgmr.msra.gmra.mrb[32].mxu0 %v10841_v30  ;;  %1773 = vmatprep.subr.bf16.mxu1 %v10928_v31 }
 0x1ab   :  { %10140 = vmatprep.mubr.bf16.mxu0 %v10848_v33  ;;  %913 = vmatmul.mubr.bf16.gmra.mrb[32].mxu1 %v10852_v35 }
 0x1ac   :  { %920 = vmatprep.mubr.bf16.mxu1 %v10853_v36  ;;  %1275 = vmatpush1.bf16.msra.mxu0 %v10869_v37 }
 0x1ad   :  { %1276 = vmatprep.subr.bf16.mxu0 %v10877_v38 }
 0x1b0   :  { %1277 = vmatpush1.bf16.msra.mxu0 %v10875_v39 }
 0x1b1   :  { %1278 = vmatprep.subr.bf16.mxu0 %v10880_v41 }
 0x1b2   :  { %10141 = vmatmul.mubr.bf16.gmra.mrb[36].mxu0 %v10849_v43 }
 0x1b3   :  { %921 = vmatmul.mubr.bf16.gmra.mrb[36].mxu1 %v10855_v44  ;;  %10144 = vmatprep.mubr.bf16.mxu0 %v10856_v45 }
 0x1b4   :  { %928 = vmatprep.mubr.bf16.mxu1 %v10858_v47  ;;  %1279 = vmatpush1.bf16.msra.mxu0 %v10878_v48 }
 0x1b5   :  { %1280 = vmatprep.subr.bf16.mxu0 %v10886_v49 }
 0x1b8   :  { %1281 = vmatpush1.bf16.msra.mxu0 %v10884_v50 }
 0x1b9   :  { %1282 = vmatprep.subr.bf16.mxu0 %v10892_v51 }
 0x1ba   :  { %10145 = vmatmul.mubr.bf16.gmra.mrb[40].mxu0 %v10857_v52 }
 0x1bb   :  { %929 = vmatmul.mubr.bf16.gmra.mrb[40].mxu1 %v10860_v53  ;;  %10148 = vmatprep.mubr.bf16.mxu0 %v10864_v54 }
 0x1bc   :  { %936 = vmatprep.mubr.bf16.mxu1 %v10861_v55  ;;  %1283 = vmatpush1.bf16.msra.mxu0 %v10890_v56 }
 0x1bd   :  { %1284 = vmatprep.subr.bf16.mxu0 %v10898_v57 }
 0x1c0   :  { %1285 = vmatpush1.bf16.msra.mxu0 %v10896_v58 }
 0x1c1   :  { %1286 = vmatprep.subr.bf16.mxu0 %v10904_v59 }
 0x1c2   :  { %10149 = vmatmul.mubr.bf16.gmra.mrb[44].mxu0 %v10865_v60 }
 0x1c3   :  { %937 = vmatmul.mubr.bf16.gmra.mrb[44].mxu1 %v10863_v61  ;;  %1306 = vmatprep.mubr.bf16.mxu0 %v13502_v0 }
 0x1c4   :  { %1287 = vmatpush1.bf16.msra.mxu0 %v10902_v62  ;;  %1419 = vmatprep.mubr.bf16.mxu1 %v13502_v0 }
 0x1c5   :  { %1288 = vmatprep.subr.bf16.mxu0 %v10910_v63 }
 0x1c8   :  { %1289 = vmatpush1.bf16.msra.mxu0 %v10908_v1 }
 0x1c9   :  { %1660 = vmatprep.subr.bf16.mxu0 %v10916_v2 }
 0x1cb   :  { %1307 = vmatmul.mubr.bf16.vlgmr.msra.gmra.mrb[48].mxu0 %v12379_v14  ;;  %1420 = vmatmul.mubr.bf16.vlgmr.msra.gmra.mrb[48].mxu1 %v12379_v14  ;;  %v10943_v14 = vld [vmem:[#allocation9 + $0x6c] ss:$16 sps:$4 sm:$0xff]  }
 0x1cc   :  { %1661 = vmatpush1.bf16.msra.mxu0 %v10914_v3  ;;  %1316 = vmatprep.mubr.bf16.mxu0 %v13502_v0 }
 0x1cd   :  { %1429 = vmatprep.mubr.bf16.mxu1 %v13502_v0  ;;  %1662 = vmatprep.subr.bf16.mxu0 %v10919_v4 }
 0x1ce   :  { %1774 = vmatpush1.bf16.msra.mxu1 %v10926_v5 }
 0x1cf   :  { %1775 = vmatprep.subr.bf16.mxu1 %v10934_v6 }
 0x1d0   :  { %1663 = vmatpush1.bf16.msra.mxu0 %v10917_v7 }
 0x1d1   :  { %1664 = vmatprep.subr.bf16.mxu0 %v10922_v8 }
 0x1d2   :  { %1776 = vmatpush1.bf16.msra.mxu1 %v10932_v9 }
 0x1d3   :  { %1317 = vmatmul.mubr.bf16.gmra.mrb[52].mxu0 %v12383_v24  ;;  %1430 = vmatmul.mubr.bf16.gmra.mrb[52].mxu1 %v12383_v24  ;;  %v10947_v24 = vld [vmem:[#allocation9 + $0x88] ss:$16 sps:$4 sm:$0xff]  }
 0x1d4   :  { %1326 = vmatprep.mubr.bf16.mxu0 %v13502_v0  ;;  %1439 = vmatprep.mubr.bf16.mxu1 %v13502_v0 }
 0x1d5   :  { %1665 = vmatpush1.bf16.msra.mxu0 %v10920_v10  ;;  %1777 = vmatprep.subr.bf16.mxu1 %v10940_v11 }
 0x1d6   :  { %1666 = vmatprep.subr.bf16.mxu0 %v10925_v12  ;;  %1778 = vmatpush1.bf16.msra.mxu1 %v10938_v13 }
 0x1d7   :  { %1779 = vmatprep.subr.bf16.mxu1 %v10943_v14 }
 0x1d9   :  { %1667 = vmatpush1.bf16.msra.mxu0 %v10923_v15 }
 0x1da   :  { %1668 = vmatprep.subr.bf16.mxu0 %v10931_v16  ;;  %1780 = vmatpush1.bf16.msra.mxu1 %v10941_v17 }
 0x1db   :  { %1327 = vmatmul.mubr.bf16.gmra.mrb[56].mxu0 %v12385_v26  ;;  %1440 = vmatmul.mubr.bf16.gmra.mrb[56].mxu1 %v12385_v26  ;;  %v10958_v26 = vld [vmem:[#allocation9 + $0xcc] ss:$16 sps:$4 sm:$0xff]  }
 0x1dc   :  { %1336 = vmatprep.mubr.bf16.mxu0 %v13502_v0  ;;  %1449 = vmatprep.mubr.bf16.mxu1 %v13502_v0 }
 0x1dd   :  { %1669 = vmatpush1.bf16.msra.mxu0 %v10929_v18  ;;  %1781 = vmatprep.subr.bf16.mxu1 %v10949_v19 }
 0x1de   :  { %1670 = vmatprep.subr.bf16.mxu0 %v10937_v20  ;;  %1782 = vmatpush1.bf16.msra.mxu1 %v10947_v24 }
 0x1df   :  { %1783 = vmatprep.subr.bf16.mxu1 %v10952_v27 }
 0x1e1   :  { %1671 = vmatpush1.bf16.msra.mxu0 %v10935_v21 }
 0x1e2   :  { %1672 = vmatprep.subr.bf16.mxu0 %v10946_v22  ;;  %1784 = vmatpush1.bf16.msra.mxu1 %v10950_v25 }
 0x1e3   :  { %1337 = vmatmul.mubr.bf16.gmra.mrb[60].mxu0 %v12391_v32  ;;  %1450 = vmatmul.mubr.bf16.gmra.mrb[60].mxu1 %v12391_v32  ;;  %v10956_v32 = vld [vmem:[#allocation9 + $0xc8] ss:$16 sps:$4 sm:$0xff]  }
 0x1e4   :  { %1346 = vmatprep.mubr.bf16.mxu0 %v13502_v0  ;;  %1459 = vmatprep.mubr.bf16.mxu1 %v13502_v0 }
 0x1e5   :  { %1673 = vmatpush1.bf16.msra.mxu0 %v10944_v23  ;;  %1785 = vmatprep.subr.bf16.mxu1 %v10958_v26 }
 0x1e6   :  { %1786 = vmatpush1.bf16.msra.mxu1 %v10956_v32  ;;  %1674 = vmatprep.subr.bf16.mxu0 %v10955_v28 }
 0x1eb   :  { %1347 = vmatmul.mubr.bf16.gmra.mrb[64].mxu0 %v12393_v34  ;;  %1460 = vmatmul.mubr.bf16.gmra.mrb[64].mxu1 %v12393_v34  ;;  %v10953_v34 = vld [vmem:[#allocation9 + $0xe0] ss:$16 sps:$4 sm:$0xff]  }
 0x1ec   :  { %1356 = vmatprep.mubr.bf16.mxu0 %v13502_v0  ;;  %1469 = vmatprep.mubr.bf16.mxu1 %v13502_v0 }
 0x1ed   :  { %1675 = vmatpush1.bf16.msra.mxu0 %v10953_v34 }
 0x1f3   :  { %1357 = vmatmul.mubr.bf16.gmra.mrb[68].mxu0 %v12399_v40  ;;  %1470 = vmatmul.mubr.bf16.gmra.mrb[68].mxu1 %v12399_v40  ;;  %v10961_v40 = vld [vmem:[#allocation9 + $0xec] ss:$16 sps:$4 sm:$0xff]  }
 0x1f4   :  { %1366 = vmatprep.mubr.bf16.mxu0 %v13502_v0  ;;  %1479 = vmatprep.mubr.bf16.mxu1 %v13502_v0 }
 0x1f5   :  { %1787 = vmatprep.subr.bf16.mxu1 %v10961_v40 }
 0x1f6   :  { %1788 = vmatpush1.bf16.msra.mxu1 %v10959_v29 }
 0x1fb   :  { %1367 = vmatmul.mubr.bf16.gmra.mrb[72].mxu0 %v12401_v42  ;;  %1480 = vmatmul.mubr.bf16.gmra.mrb[72].mxu1 %v12401_v42 }
 0x1fc   :  { %1376 = vmatprep.mubr.bf16.mxu0 %v13502_v0  ;;  %1489 = vmatprep.mubr.bf16.mxu1 %v13502_v0 }
 0x203   :  { %1377 = vmatmul.mubr.bf16.gmra.mrb[76].mxu0 %v12407_v46  ;;  %1490 = vmatmul.mubr.bf16.gmra.mrb[76].mxu1 %v12407_v46 }
 0x204   :  { %1692 = vmatprep.mubr.bf16.mxu0 %v13502_v0  ;;  %1805 = vmatprep.mubr.bf16.mxu1 %v13502_v0 }
 0x25e   :  { %v9576_v42 = vpop.f32.mrb[16].mxu1 }
 0x25f   :  { %v9577_v30 = vpop.f32.mrb[17].mxu1 }
 0x260   :  { %v9578_v31 = vadd.f32 %v9577_v30, %v9576_v42  ;;  %v9579_v33 = vpop.f32.mrb[18].mxu1 }
 0x261   :  { %v9580_v35 = vpop.f32.mrb[19].mxu1 }
 0x262   :  { %v9581_v36 = vadd.f32 %v9580_v35, %v9579_v33 }
 0x266   :  { %v9582_v37 = vpop.f32.mrb[20].mxu1 }
 0x267   :  { %v9583_v38 = vpop.f32.mrb[21].mxu1 }
 0x268   :  { %v9584_v39 = vadd.f32 %v9583_v38, %v9582_v37  ;;  %v9585_v41 = vpop.f32.mrb[22].mxu1 }
 0x269   :  { %v9586_v43 = vpop.f32.mrb[23].mxu1 }
 0x26a   :  { %v9587_v44 = vadd.f32 %v9586_v43, %v9585_v41 }
 0x26e   :  { %v9588_v45 = vpop.f32.mrb[24].mxu1 }
 0x26f   :  { %v9589_v47 = vpop.f32.mrb[25].mxu1 }
 0x270   :  { %v9590_v46 = vadd.f32 %v9589_v47, %v9588_v45  ;;  %v9591_v48 = vpop.f32.mrb[26].mxu1 }
 0x271   :  { %v9592_v49 = vpop.f32.mrb[27].mxu1 }
 0x272   :  { %v9593_v50 = vadd.f32 %v9592_v49, %v9591_v48 }
 0x276   :  { %v9594_v51 = vpop.f32.mrb[28].mxu1 }
 0x277   :  { %v9595_v52 = vpop.f32.mrb[29].mxu1 }
 0x278   :  { %v9596_v53 = vadd.f32 %v9595_v52, %v9594_v51  ;;  %v9597_v54 = vpop.f32.mrb[30].mxu1 }
 0x279   :  { %v9598_v55 = vpop.f32.mrb[31].mxu1 }
 0x27a   :  { %v9599_v56 = vadd.f32 %v9598_v55, %v9597_v54 }
 0x27d   :  { %v10138_v57 = vpop.f32.mrb[32].mxu0 }
 0x27e   :  { %v988_v58 = vadd.f32 %v10138_v57, %v9584_v39  ;;  %v979_v59 = vpop.f32.mrb[33].mxu0  ;;  %v9600_v60 = vpop.f32.mrb[32].mxu1 }
 0x27f   :  { %v980_v61 = vadd.f32 %v9578_v31, %v979_v59  ;;  %v10139_v62 = vpop.f32.mrb[34].mxu0  ;;  %v9601_v63 = vpop.f32.mrb[33].mxu1  ;;  %v10964_v59 = vld [vmem:[#allocation8 + $0x40] sm:$0xff]  }
 0x280   :  { %v991_v1 = vadd.f32 %v10139_v62, %v9587_v44  ;;  %v982_v2 = vpop.f32.mrb[35].mxu0  ;;  %v9602_v3 = vadd.f32 %v9601_v63, %v9600_v60  ;;  %v9603_v4 = vpop.f32.mrb[34].mxu1  ;;  %10184 = vmatprep.subr.bf16.mxu1 %v10964_v59  ;;  %v10963_v60 = vld [vmem:[#allocation8 + $0x8] sm:$0xff]   ;;  %v10966_v62 = vld [vmem:[#allocation8 + $0x10] sm:$0xff]  }
 0x281   :  { %v983_v5 = vadd.f32 %v9581_v36, %v982_v2  ;;  %v9604_v6 = vpop.f32.mrb[35].mxu1  ;;  %v10967_v63 = vld [vmem:[#allocation8 + $0x50] sm:$0xff]   ;;  %v10969_v2 = vld [vmem:[#allocation8 + $0x58] sm:$0xff]  }
 0x282   :  { %v1043_v7 = vpack.c.bf16 %v991_v1, %v988_v58  ;;  %v9605_v8 = vadd.f32 %v9604_v6, %v9603_v4  ;;  %v10962_v58 = vld [vmem:[#allocation8] sm:$0xff]   ;;  %v10968_v1 = vld [vmem:[#allocation8 + $0x18] sm:$0xff]   ;;  %v10973_v6 = vld [vmem:[#allocation8 + $0x68] sm:$0xff]  }
 0x283   :  { %v1042_v9 = vpack.c.bf16 %v983_v5, %v980_v61  ;;  %10152 = vmatprep.subr.bf16.mxu0 %v10962_v58  ;;  %v10965_v61 = vld [vmem:[#allocation8 + $0x48] sm:$0xff]   ;;  %v10971_v4 = vld [vmem:[#allocation8 + $0x60] sm:$0xff]  }
 0x284   :  { %v10972_v5 = vld [vmem:[#allocation8 + $0x28] sm:$0xff]  }
 0x285   :  { %1693 = vmatmul.mubr.bf16.vlgmr.msra.gmra.mrb[48].mxu0 %v1042_v9  ;;  %1806 = vmatmul.mubr.bf16.vlgmr.msra.gmra.mrb[48].mxu1 %v1042_v9  ;;  %v10142_v10 = vpop.f32.mrb[36].mxu0  ;;  %v10976_v9 = vld [vmem:[#allocation8 + $0x38] sm:$0xff]  }
 0x286   :  { %v1004_v11 = vadd.f32 %v10142_v10, %v9596_v53  ;;  %v995_v12 = vpop.f32.mrb[37].mxu0  ;;  %1702 = vmatprep.mubr.bf16.mxu0 %v13502_v0  ;;  %1815 = vmatprep.mubr.bf16.mxu1 %v13502_v0  ;;  %v9606_v13 = vpop.f32.mrb[36].mxu1  ;;  %v10977_v10 = vld [vmem:[#allocation8 + $0x78] sm:$0xff]  }
 0x287   :  { %v996_v14 = vadd.f32 %v9590_v46, %v995_v12  ;;  %v10143_v15 = vpop.f32.mrb[38].mxu0  ;;  %v9607_v16 = vpop.f32.mrb[37].mxu1  ;;  %10153 = vmatpush3.bf16.msra.mxu0 %v10962_v58  ;;  %10185 = vmatpush3.bf16.msra.mxu1 %v10964_v59  ;;  %v1886_v12 = vld [vmem:[#allocation12] sm:$0xff] }
 0x288   :  { %v1007_v17 = vadd.f32 %v10143_v15, %v9599_v56  ;;  %v998_v18 = vpop.f32.mrb[39].mxu0  ;;  %v9608_v19 = vadd.f32 %v9607_v16, %v9606_v13  ;;  %v9609_v20 = vpop.f32.mrb[38].mxu1  ;;  %10154 = vmatprep.subr.bf16.mxu0 %v10963_v60  ;;  %10186 = vmatprep.subr.bf16.mxu1 %v10965_v61  ;;  %v1887_v13 = vld [vmem:[#allocation12 + $0x8] sm:$0xff]  ;;  %v1890_v16 = vld [vmem:[#allocation12 + $0x20] sm:$0xff] }
 0x289   :  { %v999_v24 = vadd.f32 %v9593_v50, %v998_v18  ;;  %v9610_v21 = vpop.f32.mrb[39].mxu1  ;;  %v1906_v59 = vld [vmem:[#allocation12 + $0xa0] sm:$0xff] }
 0x28a   :  { %v9611_v22 = vadd.f32 %v9610_v21, %v9609_v20  ;;  %v1045_v23 = vpack.c.bf16 %v1007_v17, %v1004_v11  ;;  %v12467_v11 = vld [vmem:[#allocation8 + $0x80] sm:$0xff]   ;;  %v1891_v20 = vld [vmem:[#allocation12 + $0x28] sm:$0xff] }
 0x28b   :  { %v1044_v25 = vpack.c.bf16 %v999_v24, %v996_v14  ;;  %10155 = vmatpush3.bf16.msra.mxu0 %v10963_v60  ;;  %10187 = vmatpush3.bf16.msra.mxu1 %v10965_v61 }
 0x28c   :  { %10156 = vmatprep.subr.bf16.mxu0 %v10966_v62  ;;  %10188 = vmatprep.subr.bf16.mxu1 %v10967_v63 }
 0x28d   :  { %1703 = vmatmul.mubr.bf16.gmra.mrb[52].mxu0 %v1043_v7  ;;  %1816 = vmatmul.mubr.bf16.gmra.mrb[52].mxu1 %v1043_v7  ;;  %v10146_v27 = vpop.f32.mrb[40].mxu0  ;;  %v10974_v7 = vld [vmem:[#allocation8 + $0x30] sm:$0xff]  }
 0x28e   :  { %1712 = vmatprep.mubr.bf16.mxu0 %v13502_v0  ;;  %1825 = vmatprep.mubr.bf16.mxu1 %v13502_v0  ;;  %v1020_v26 = vadd.f32 %v10146_v27, %v9608_v19  ;;  %v1011_v32 = vpop.f32.mrb[41].mxu0  ;;  %v9612_v34 = vpop.f32.mrb[40].mxu1 }
 0x28f   :  { %v1012_v28 = vadd.f32 %v9602_v3, %v1011_v32  ;;  %v10147_v40 = vpop.f32.mrb[42].mxu0  ;;  %v9613_v29 = vpop.f32.mrb[41].mxu1  ;;  %10157 = vmatpush3.bf16.msra.mxu0 %v10966_v62  ;;  %10189 = vmatpush3.bf16.msra.mxu1 %v10967_v63  ;;  %v10970_v3 = vld [vmem:[#allocation8 + $0x20] sm:$0xff]  }
 0x290   :  { %v1023_v42 = vadd.f32 %v10147_v40, %v9611_v22  ;;  %v1014_v30 = vpop.f32.mrb[43].mxu0  ;;  %v9614_v31 = vadd.f32 %v9613_v29, %v9612_v34  ;;  %v9615_v33 = vpop.f32.mrb[42].mxu1  ;;  %10158 = vmatprep.subr.bf16.mxu0 %v10968_v1  ;;  %10190 = vmatprep.subr.bf16.mxu1 %v10969_v2  ;;  %v1894_v40 = vld [vmem:[#allocation12 + $0x40] sm:$0xff]  ;;  %v1895_v29 = vld [vmem:[#allocation12 + $0x48] sm:$0xff] }
 0x291   :  { %v1015_v35 = vadd.f32 %v9605_v8, %v1014_v30  ;;  %v9616_v36 = vpop.f32.mrb[43].mxu1  ;;  %v10975_v8 = vld [vmem:[#allocation8 + $0x70] sm:$0xff]  }
 0x292   :  { %v9617_v37 = vadd.f32 %v9616_v36, %v9615_v33  ;;  %v1047_v38 = vpack.c.bf16 %v1023_v42, %v1020_v26  ;;  %v1898_v33 = vld [vmem:[#allocation12 + $0x60] sm:$0xff] }
 0x293   :  { %v1046_v39 = vpack.c.bf16 %v1015_v35, %v1012_v28  ;;  %10159 = vmatpush3.bf16.msra.mxu0 %v10968_v1  ;;  %10191 = vmatpush3.bf16.msra.mxu1 %v10969_v2  ;;  %v1907_v1 = vld [vmem:[#allocation12 + $0xa8] sm:$0xff] }
 0x294   :  { %10160 = vmatprep.subr.bf16.mxu0 %v10970_v3  ;;  %10192 = vmatprep.subr.bf16.mxu1 %v10971_v4 }
 0x295   :  { %1713 = vmatmul.mubr.bf16.gmra.mrb[56].mxu0 %v1044_v25  ;;  %1826 = vmatmul.mubr.bf16.gmra.mrb[56].mxu1 %v1044_v25  ;;  %v10150_v41 = vpop.f32.mrb[44].mxu0 }
 0x296   :  { %1722 = vmatprep.mubr.bf16.mxu0 %v13502_v0  ;;  %1835 = vmatprep.mubr.bf16.mxu1 %v13502_v0  ;;  %v9618_v43 = vpop.f32.mrb[44].mxu1  ;;  %v1027_v44 = vpop.f32.mrb[45].mxu0 }
 0x297   :  { %v9619_v45 = vpop.f32.mrb[45].mxu1  ;;  %v1028_v47 = vadd.f32 %v9614_v31, %v1027_v44  ;;  %v10151_v46 = vpop.f32.mrb[46].mxu0  ;;  %10161 = vmatpush3.bf16.msra.mxu0 %v10970_v3  ;;  %10193 = vmatpush3.bf16.msra.mxu1 %v10971_v4 }
 0x298   :  { %v9620_v48 = vadd.f32 %v9619_v45, %v9618_v43  ;;  %v9621_v49 = vpop.f32.mrb[46].mxu1  ;;  %v1030_v50 = vpop.f32.mrb[47].mxu0  ;;  %10162 = vmatprep.subr.bf16.mxu0 %v10972_v5  ;;  %10194 = vmatprep.subr.bf16.mxu1 %v10973_v6 }
 0x299   :  { %v9622_v51 = vpop.f32.mrb[47].mxu1  ;;  %v1031_v52 = vadd.f32 %v9617_v37, %v1030_v50 }
 0x29a   :  { %v1036_v53 = vadd.f32 %v10150_v41, %v9620_v48  ;;  %v9623_v54 = vadd.f32 %v9622_v51, %v9621_v49  ;;  %v1902_v51 = vld [vmem:[#allocation12 + $0x80] sm:$0xff] }
 0x29b   :  { %v1048_v55 = vpack.c.bf16 %v1031_v52, %v1028_v47  ;;  %10163 = vmatpush3.bf16.msra.mxu0 %v10972_v5  ;;  %10195 = vmatpush3.bf16.msra.mxu1 %v10973_v6 }
 0x29c   :  { %v1039_v56 = vadd.f32 %v10151_v46, %v9623_v54  ;;  %10164 = vmatprep.subr.bf16.mxu0 %v10974_v7  ;;  %10196 = vmatprep.subr.bf16.mxu1 %v10975_v8  ;;  %v1903_v54 = vld [vmem:[#allocation12 + $0x88] sm:$0xff] }
 0x29d   :  { %1723 = vmatmul.mubr.bf16.gmra.mrb[60].mxu0 %v1045_v23  ;;  %1836 = vmatmul.mubr.bf16.gmra.mrb[60].mxu1 %v1045_v23 }
 0x29e   :  { %1732 = vmatprep.mubr.bf16.mxu0 %v13502_v0  ;;  %1845 = vmatprep.mubr.bf16.mxu1 %v13502_v0  ;;  %v1049_v57 = vpack.c.bf16 %v1039_v56, %v1036_v53 }
 0x29f   :  { %10165 = vmatpush3.bf16.msra.mxu0 %v10974_v7  ;;  %10197 = vmatpush3.bf16.msra.mxu1 %v10975_v8 }
 0x2a0   :  { %10166 = vmatprep.subr.bf16.mxu0 %v10976_v9  ;;  %10198 = vmatprep.subr.bf16.mxu1 %v10977_v10 }
 0x2a3   :  { %10167 = vmatpush3.bf16.msra.mxu0 %v10976_v9  ;;  %10199 = vmatpush3.bf16.msra.mxu1 %v10977_v10 }
 0x2a4   :  { %10216 = vmatprep.subr.bf16.mxu0 %v12467_v11 }
 0x2a5   :  { %1733 = vmatmul.mubr.bf16.gmra.mrb[64].mxu0 %v1046_v39  ;;  %1846 = vmatmul.mubr.bf16.gmra.mrb[64].mxu1 %v1046_v39 }
 0x2a6   :  { %1742 = vmatprep.mubr.bf16.mxu0 %v13502_v0  ;;  %1855 = vmatprep.mubr.bf16.mxu1 %v13502_v0 }
 0x2ad   :  { %1743 = vmatmul.mubr.bf16.gmra.mrb[68].mxu0 %v1047_v38  ;;  %1856 = vmatmul.mubr.bf16.gmra.mrb[68].mxu1 %v1047_v38  ;;  %v1899_v38 = vld [vmem:[#allocation12 + $0x68] sm:$0xff] }
 0x2ae   :  { %1752 = vmatprep.mubr.bf16.mxu0 %v13502_v0  ;;  %1865 = vmatprep.mubr.bf16.mxu1 %v13502_v0 }
 0x2b5   :  { %1753 = vmatmul.mubr.bf16.gmra.mrb[72].mxu0 %v1048_v55  ;;  %1866 = vmatmul.mubr.bf16.gmra.mrb[72].mxu1 %v1048_v55 }
 0x2b6   :  { %1762 = vmatprep.mubr.bf16.mxu0 %v13502_v0  ;;  %1875 = vmatprep.mubr.bf16.mxu1 %v13502_v0 }
 0x2bd   :  { %1763 = vmatmul.mubr.bf16.gmra.mrb[76].mxu0 %v1049_v57  ;;  %1876 = vmatmul.mubr.bf16.gmra.mrb[76].mxu1 %v1049_v57 }
 0x358   :  { %v1694_v14 = vpop.f32.mrb[48].mxu0  ;;  %v12470_v15 = vpop.f32.mrb[48].mxu1 }
 0x359   :  { %v1950_v17 = vadd.f32 %v1886_v12, %v1694_v14  ;;  %v1696_v18 = vpop.f32.mrb[49].mxu0  ;;  %v12472_v19 = vpop.f32.mrb[49].mxu1 }
 0x35a   :  { %v1951_v24 = vadd.f32 %v1887_v13, %v1696_v18  ;;  %v1698_v21 = vpop.f32.mrb[50].mxu0  ;;  %v12474_v22 = vpop.f32.mrb[50].mxu1 }
 0x35b   :  { %v9048_v23 = vmul.f32 -1.442695, %v1950_v17  ;;  %v1954_v25 = vadd.f32 %v1890_v16, %v1698_v21  ;;  %v1700_v27 = vpop.f32.mrb[51].mxu0  ;;  %v12476_v26 = vpop.f32.mrb[51].mxu1  ;;  %v1910_v17 = vld [vmem:[#allocation12 + $0xc0] sm:$0xff]  ;;  %v1889_v21 = vld [vmem:[#allocation12 + $0x18] sm:$0xff] }
 0x35c   :  { %v9064_v32 = vmul.f32 -1.442695, %v1951_v24  ;;  %v1955_v34 = vadd.f32 %v1891_v20, %v1700_v27  ;;  %v1911_v24 = vld [vmem:[#allocation12 + $0xc8] sm:$0xff] }
 0x35d   :  { %11418 = vpow2.f32 %v9048_v23  ;;  %v9049_v28 = vmul.f32 -1.442695, %v1954_v25 }
 0x35e   :  { %11420 = vpow2.f32 %v9064_v32  ;;  %v9065_v42 = vmul.f32 -1.442695, %v1955_v34  ;;  %v1914_v32 = vld [vmem:[#allocation12 + $0xe0] sm:$0xff] }
 0x35f   :  { %11422 = vpow2.f32 %v9049_v28  ;;  %v1888_v28 = vld [vmem:[#allocation12 + $0x10] sm:$0xff] }
 0x360   :  { %v1704_v30 = vpop.f32.mrb[52].mxu0  ;;  %v12478_v31 = vpop.f32.mrb[52].mxu1  ;;  %11424 = vpow2.f32 %v9065_v42 }
 0x361   :  { %v1958_v35 = vadd.f32 %v1894_v40, %v1704_v30  ;;  %v1706_v36 = vpop.f32.mrb[53].mxu0  ;;  %v12480_v37 = vpop.f32.mrb[53].mxu1 }
 0x362   :  { %v1959_v39 = vadd.f32 %v1895_v29, %v1706_v36  ;;  %v1708_v41 = vpop.f32.mrb[54].mxu0  ;;  %v12482_v43 = vpop.f32.mrb[54].mxu1 }
 0x363   :  { %v9050_v44 = vmul.f32 -1.442695, %v1958_v35  ;;  %v1962_v45 = vadd.f32 %v1898_v33, %v1708_v41  ;;  %v1710_v47 = vpop.f32.mrb[55].mxu0  ;;  %v12484_v46 = vpop.f32.mrb[55].mxu1  ;;  %v1893_v33 = vld [vmem:[#allocation12 + $0x38] sm:$0xff] }
 0x364   :  { %v1963_v48 = vadd.f32 %v1899_v38, %v1710_v47  ;;  %v9066_v49 = vmul.f32 -1.442695, %v1959_v39 }
 0x365   :  { %11426 = vpow2.f32 %v9050_v44  ;;  %v9051_v50 = vmul.f32 -1.442695, %v1962_v45  ;;  %v1953_v44 = vadd.f32 %v1889_v21, %v12472_v19  ;;  %v1892_v45 = vld [vmem:[#allocation12 + $0x30] sm:$0xff] }
 0x366   :  { %v9067_v53 = vmul.f32 -1.442695, %v1963_v48 }
 0x367   :  { %v11419_v52 = vpop.eup %11418  ;;  %11428 = vpow2.f32 %v9051_v50 }
 0x368   :  { %v11421_v55 = vpop.eup %11420  ;;  %v2062_v56 = vadd.f32 1.0, %v11419_v52  ;;  %v1714_v57 = vpop.f32.mrb[56].mxu0  ;;  %11430 = vpow2.f32 %v9066_v49  ;;  %v1952_v52 = vadd.f32 %v1888_v28, %v12470_v15 }
 0x369   :  { %v12486_v58 = vpop.f32.mrb[56].mxu1  ;;  %v11423_v60 = vpop.eup %11422  ;;  %v1966_v61 = vadd.f32 %v1902_v51, %v1714_v57  ;;  %v2158_v6 = vadd.f32 1.0, %v11421_v55  ;;  %v1957_v57 = vadd.f32 %v1893_v33, %v12476_v26  ;;  %v1919_v33 = vld [vmem:[#allocation12 + $0x108] sm:$0xff] }
 0x36a   :  { %v1716_v62 = vpop.f32.mrb[57].mxu0  ;;  %v12488_v63 = vpop.f32.mrb[57].mxu1  ;;  %11432 = vrcp.f32 %v2062_v56  ;;  %v2063_v2 = vadd.f32 1.0, %v11423_v60  ;;  %v1956_v60 = vadd.f32 %v1892_v45, %v12474_v22  ;;  %v1905_v45 = vld [vmem:[#allocation12 + $0x98] sm:$0xff] }
 0x36b   :  { %v1967_v3 = vadd.f32 %v1903_v54, %v1716_v62  ;;  %v1718_v4 = vpop.f32.mrb[58].mxu0  ;;  %v12490_v5 = vpop.f32.mrb[58].mxu1  ;;  %11434 = vpow2.f32 %v9067_v53  ;;  %v9052_v7 = vmul.f32 -1.442695, %v1966_v61  ;;  %v1915_v54 = vld [vmem:[#allocation12 + $0xe8] sm:$0xff]  ;;  %v1918_v62 = vld [vmem:[#allocation12 + $0x100] sm:$0xff] }
 0x36c   :  { %v1970_v8 = vadd.f32 %v1906_v59, %v1718_v4  ;;  %v1720_v9 = vpop.f32.mrb[59].mxu0  ;;  %v12492_v10 = vpop.f32.mrb[59].mxu1  ;;  %11436 = vrcp.f32 %v2063_v2  ;;  %v1897_v4 = vld [vmem:[#allocation12 + $0x58] sm:$0xff] }
 0x36d   :  { %v1971_v12 = vadd.f32 %v1907_v1, %v1720_v9  ;;  %v9068_v13 = vmul.f32 -1.442695, %v1967_v3  ;;  %v11425_v16 = vpop.eup %11424  ;;  %11438 = vpow2.f32 %v9052_v7 }
 0x36e   :  { %v9053_v14 = vmul.f32 -1.442695, %v1970_v8  ;;  %11440 = vrcp.f32 %v2158_v6  ;;  %v2159_v40 = vadd.f32 1.0, %v11425_v16 }
 0x36f   :  { %v11427_v18 = vpop.eup %11426  ;;  %v9069_v20 = vmul.f32 -1.442695, %v1971_v12 }
 0x370   :  { %v2064_v23 = vadd.f32 1.0, %v11427_v18  ;;  %11442 = vpow2.f32 %v9053_v14  ;;  %v1724_v25 = vpop.f32.mrb[60].mxu0  ;;  %v12494_v27 = vpop.f32.mrb[60].mxu1  ;;  %v1901_v18 = vld [vmem:[#allocation12 + $0x78] sm:$0xff] }
 0x371   :  { %v11429_v34 = vpop.eup %11428  ;;  %11444 = vpow2.f32 %v9068_v13  ;;  %v1974_v29 = vadd.f32 %v1910_v17, %v1724_v25  ;;  %v1726_v42 = vpop.f32.mrb[61].mxu0  ;;  %v1896_v17 = vld [vmem:[#allocation12 + $0x50] sm:$0xff] }
 0x372   :  { %v12496_v30 = vpop.f32.mrb[61].mxu1  ;;  %11446 = vrcp.f32 %v2064_v23  ;;  %v2065_v35 = vadd.f32 1.0, %v11429_v34  ;;  %v1975_v36 = vadd.f32 %v1911_v24, %v1726_v42  ;;  %v1728_v38 = vpop.f32.mrb[62].mxu0  ;;  %v1961_v23 = vadd.f32 %v1897_v4, %v12480_v37  ;;  %v1900_v25 = vld [vmem:[#allocation12 + $0x70] sm:$0xff]  ;;  %v1922_v37 = vld [vmem:[#allocation12 + $0x120] sm:$0xff] }
 0x373   :  { %v12498_v39 = vpop.f32.mrb[62].mxu1  ;;  %v11431_v41 = vpop.eup %11430  ;;  %11448 = vpow2.f32 %v9069_v20  ;;  %v9054_v47 = vmul.f32 -1.442695, %v1974_v29  ;;  %v1978_v48 = vadd.f32 %v1914_v32, %v1728_v38 }
 0x374   :  { %v1730_v49 = vpop.f32.mrb[63].mxu0  ;;  %v12501_v50 = vpop.f32.mrb[63].mxu1  ;;  %11450 = vrcp.f32 %v2065_v35  ;;  %v9070_v53 = vmul.f32 -1.442695, %v1975_v36  ;;  %v2160_v61 = vadd.f32 1.0, %v11431_v41  ;;  %v1960_v36 = vadd.f32 %v1896_v17, %v12478_v31  ;;  %v1926_v31 = vld [vmem:[#allocation12 + $0x140] sm:$0xff] }
 0x375   :  { %v11433_v51 = vpop.eup %11432  ;;  %11452 = vrcp.f32 %v2159_v40  ;;  %v9055_v59 = vmul.f32 -1.442695, %v1978_v48  ;;  %v1979_v3 = vadd.f32 %v1915_v54, %v1730_v49  ;;  %v1965_v41 = vadd.f32 %v1901_v18, %v12484_v46  ;;  %v1908_v54 = vld [vmem:[#allocation12 + $0xb0] sm:$0xff] }
 0x376   :  { %v11435_v55 = vpop.eup %11434  ;;  %v2206_v56 = vmul.f32 %v11433_v51, %v1953_v44  ;;  %11454 = vpow2.f32 %v9054_v47  ;;  %v1904_v44 = vld [vmem:[#allocation12 + $0x90] sm:$0xff]  ;;  %v1964_v48 = vadd.f32 %v1900_v25, %v12482_v43  ;;  %v1969_v46 = vadd.f32 %v1905_v45, %v12488_v63 }
 0x377   :  { %v11437_v19 = vpop.eup %11436  ;;  %11456 = vpow2.f32 %v9070_v53  ;;  %v2161_v6 = vadd.f32 1.0, %v11435_v55  ;;  %v9071_v34 = vmul.f32 -1.442695, %v1979_v3  ;;  %v1909_v55 = vld [vmem:[#allocation12 + $0xb8] sm:$0xff] }
 0x378   :  { %v2222_v1 = vadd.f32 %v2206_v56, %v1952_v52  ;;  %v2207_v2 = vmul.f32 %v11437_v19, %v1957_v57  ;;  %v11439_v15 = vpop.eup %11438  ;;  %11458 = vpow2.f32 %v9055_v59  ;;  %v1734_v7 = vpop.f32.mrb[64].mxu0  ;;  %v12521_v59 = vadd.f32 %v1904_v44, %v12486_v58 }
 0x379   :  { %v12506_v8 = vpop.f32.mrb[64].mxu1  ;;  %v12508_v9 = vpop.eup %11440  ;;  %v2066_v12 = vadd.f32 1.0, %v11439_v15  ;;  %v1982_v22 = vadd.f32 %v1918_v62, %v1734_v7  ;;  %v12529_v58 = vadd.f32 %v1908_v54, %v12490_v5  ;;  %v1973_v63 = vadd.f32 %v1909_v55, %v12492_v10 }
 0x37a   :  { %11460 = vtanh.f32 %v2222_v1  ;;  %v2223_v26 = vadd.f32 %v2207_v2, %v1956_v60  ;;  %v1736_v13 = vpop.f32.mrb[65].mxu0  ;;  %v12510_v14 = vpop.f32.mrb[65].mxu1  ;;  %v1923_v60 = vld [vmem:[#allocation12 + $0x128] sm:$0xff]  ;;  %v2254_v10 = vsub.f32 1.0, %v12508_v9 }
 0x37b   :  { %v11443_v16 = vpop.eup %11442  ;;  %11462 = vrcp.f32 %v2160_v61  ;;  %v1738_v20 = vpop.f32.mrb[66].mxu0  ;;  %v9056_v42 = vmul.f32 -1.442695, %v1982_v22  ;;  %v1983_v56 = vadd.f32 %v1919_v33, %v1736_v13 }
 0x37c   :  { %v12512_v24 = vpop.f32.mrb[66].mxu1  ;;  %v11445_v21 = vpop.eup %11444  ;;  %11464 = vtanh.f32 %v2223_v26  ;;  %v2067_v32 = vadd.f32 1.0, %v11443_v16  ;;  %v1986_v19 = vadd.f32 %v1922_v37, %v1738_v20 }
 0x37d   :  { %v1740_v28 = vpop.f32.mrb[67].mxu0  ;;  %v12515_v40 = vpop.f32.mrb[67].mxu1  ;;  %11466 = vrcp.f32 %v2066_v12  ;;  %v2162_v49 = vadd.f32 1.0, %v11445_v21  ;;  %v9072_v16 = vmul.f32 -1.442695, %v1983_v56 }
 0x37e   :  { %v11447_v29 = vpop.eup %11446  ;;  %11468 = vrcp.f32 %v2161_v6  ;;  %v1987_v17 = vadd.f32 %v1923_v60, %v1740_v28  ;;  %v9057_v5 = vmul.f32 -1.442695, %v1986_v19  ;;  %v12059_v28 = vld [vmem:[#allocation3 + $0x8] sm:$0xff] }
 0x37f   :  { %v11449_v35 = vpop.eup %11448  ;;  %v2208_v38 = vmul.f32 %v11447_v29, %v1961_v23  ;;  %11470 = vrcp.f32 %v2067_v32  ;;  %v1927_v23 = vld [vmem:[#allocation12 + $0x148] sm:$0xff]  ;;  %v1930_v29 = vld [vmem:[#allocation12 + $0x160] sm:$0xff] }
 0x380   :  { %v11451_v47 = vpop.eup %11450  ;;  %11472 = vpow2.f32 %v9071_v34  ;;  %v1744_v43 = vpop.f32.mrb[68].mxu0  ;;  %v2163_v2 = vadd.f32 1.0, %v11449_v35 }
 0x381   :  { %v11453_v51 = vpop.eup %11452  ;;  %v2224_v52 = vadd.f32 %v2208_v38, %v1960_v36  ;;  %v2209_v53 = vmul.f32 %v11451_v47, %v1965_v41  ;;  %11474 = vpow2.f32 %v9056_v42  ;;  %v12524_v61 = vpop.f32.mrb[68].mxu1  ;;  %v1990_v7 = vadd.f32 %v1926_v31, %v1744_v43  ;;  %v12058_v42 = vld [vmem:[#allocation3] sm:$0xff]  ;;  %v1912_v38 = vld [vmem:[#allocation12 + $0xd0] sm:$0xff]  ;;  %v1931_v43 = vld [vmem:[#allocation12 + $0x168] sm:$0xff] }
 0x382   :  { %v11455_v57 = vpop.eup %11454  ;;  %v1746_v15 = vpop.f32.mrb[69].mxu0  ;;  %v2255_v25 = vsub.f32 1.0, %v11453_v51  ;;  %v2286_v33 = vmul.f32 %v12058_v42, %v12508_v9  ;;  %v2287_v35 = vmul.f32 %v12059_v28, %v11453_v51  ;;  %v1916_v28 = vld [vmem:[#allocation12 + $0xf0] sm:$0xff] }
 0x383   :  { %v11457_v62 = vpop.eup %11456  ;;  %11476 = vtanh.f32 %v2224_v52  ;;  %v2225_v1 = vadd.f32 %v2209_v53, %v1964_v48  ;;  %v2068_v3 = vadd.f32 1.0, %v11455_v57  ;;  %v12526_v4 = vpop.f32.mrb[69].mxu1  ;;  %v9058_v41 = vmul.f32 -1.442695, %v1990_v7  ;;  %v1913_v48 = vld [vmem:[#allocation12 + $0xd8] sm:$0xff]  ;;  %v1934_v53 = vld [vmem:[#allocation12 + $0x180] sm:$0xff] }
 0x384   :  { %v11459_v6 = vpop.eup %11458  ;;  %11478 = vrcp.f32 %v2162_v49  ;;  %v1748_v26 = vpop.f32.mrb[70].mxu0  ;;  %v2164_v34 = vadd.f32 1.0, %v11457_v62  ;;  %v9073_v49 = vmul.f32 -1.442695, %v1987_v17  ;;  %v1991_v52 = vadd.f32 %v1927_v23, %v1746_v15 }
 0x385   :  { %v12532_v12 = vpop.f32.mrb[70].mxu1  ;;  %v11461_v22 = vpop.eup %11460  ;;  %11480 = vtanh.f32 %v2225_v1  ;;  %v2069_v13 = vadd.f32 1.0, %v11459_v6  ;;  %v1994_v55 = vadd.f32 %v1930_v29, %v1748_v26  ;;  %v1935_v6 = vld [vmem:[#allocation12 + $0x188] sm:$0xff] }
 0x386   :  { %v12534_v18 = vpop.f32.mrb[71].mxu0  ;;  %v12536_v20 = vpop.f32.mrb[71].mxu1  ;;  %11482 = vrcp.f32 %v2068_v3  ;;  %v2270_v44 = vmul.f32 %v11461_v22, %v2254_v10  ;;  %v1977_v3 = vadd.f32 %v1913_v48, %v12496_v30  ;;  %v1917_v30 = vld [vmem:[#allocation12 + $0xf8] sm:$0xff] }
 0x387   :  { %v12538_v21 = vpop.eup %11462  ;;  %11484 = vrcp.f32 %v2163_v2  ;;  %v9059_v23 = vmul.f32 -1.442695, %v1994_v55  ;;  %v1995_v10 = vadd.f32 %v1931_v43, %v12534_v18 }
 0x388   :  { %v11465_v32 = vpop.eup %11464  ;;  %11486 = vrcp.f32 %v2069_v13  ;;  %v1754_v9 = vpop.f32.mrb[72].mxu0  ;;  %v12546_v51 = vadd.f32 %v2286_v33, %v2270_v44  ;;  %v2256_v22 = vsub.f32 1.0, %v12538_v21  ;;  %v9074_v13 = vmul.f32 -1.442695, %v1991_v52  ;;  %v1942_v52 = vld [vmem:[#allocation12 + $0x1c0] sm:$0xff] }
 0x389   :  { %v11467_v36 = vpop.eup %11466  ;;  %v2271_v45 = vmul.f32 %v11465_v32, %v2255_v25  ;;  %11488 = vpow2.f32 %v9072_v16  ;;  %v12544_v56 = vpop.f32.mrb[72].mxu1  ;;  %v1998_v15 = vadd.f32 %v1934_v53, %v1754_v9  ;;  %v1981_v44 = vadd.f32 %v1917_v30, %v12501_v50 }
 0x38a   :  { %v12542_v37 = vpop.eup %11468  ;;  %v2210_v47 = vmul.f32 %v11467_v36, %v1969_v46  ;;  %11490 = vpow2.f32 %v9057_v5  ;;  %v1976_v46 = vadd.f32 %v1912_v38, %v12494_v27  ;;  %v1756_v62 = vpop.f32.mrb[73].mxu0  ;;  %v1980_v50 = vadd.f32 %v1916_v28, %v12498_v39  ;;  %v1939_v28 = vld [vmem:[#allocation12 + $0x1a8] sm:$0xff] }
 0x38b   :  { %v11471_v54 = vpop.eup %11470  ;;  %v12548_v31 = vadd.f32 %v2287_v35, %v2271_v45  ;;  %11492 = vrcp.f32 %v2164_v34  ;;  %v12552_v1 = vpop.f32.mrb[73].mxu1  ;;  %v2257_v25 = vsub.f32 1.0, %v12542_v37  ;;  %v1999_v29 = vadd.f32 %v1935_v6, %v1756_v62  ;;  %v1938_v45 = vld [vmem:[#allocation12 + $0x1a0] sm:$0xff] }
 0x38c   :  { %v11473_v57 = vpop.eup %11472  ;;  %v2226_v19 = vadd.f32 %v2210_v47, %v12521_v59  ;;  %v2211_v60 = vmul.f32 %v11471_v54, %v1973_v63  ;;  %11494 = vpow2.f32 %v9058_v41  ;;  %v1758_v7 = vpop.f32.mrb[74].mxu0  ;;  %v9060_v35 = vmul.f32 -1.442695, %v1998_v15 }
 0x38d   :  { %v11475_v2 = vpop.eup %11474  ;;  %v12555_v26 = vpop.f32.mrb[74].mxu1  ;;  %v2165_v34 = vadd.f32 1.0, %v11473_v57  ;;  %v12570_v36 = vpack.c.bf16 %v12548_v31, %v12546_v51  ;;  %v2002_v15 = vadd.f32 %v1938_v45, %v1758_v7  ;;  %v12061_v7 = vld [vmem:[#allocation3 + $0x18] sm:$0xff] }
 0x38e   :  { %v11477_v59 = vpop.eup %11476  ;;  %11496 = vtanh.f32 %v2226_v19  ;;  %v2227_v27 = vadd.f32 %v2211_v60, %v12529_v58  ;;  %v2070_v63 = vadd.f32 1.0, %v11475_v2  ;;  %v12559_v16 = vpop.f32.mrb[75].mxu0  ;;  %v12060_v58 = vld [vmem:[#allocation3 + $0x10] sm:$0xff]  ;;  %v1921_v60 = vld [vmem:[#allocation12 + $0x118] sm:$0xff] }
 0x38f   :  { %v12561_v17 = vpop.f32.mrb[75].mxu1  ;;  %v12563_v5 = vpop.eup %11478  ;;  %11498 = vpow2.f32 %v9073_v49  ;;  %v2288_v42 = vmul.f32 %v12060_v58, %v12538_v21  ;;  %v2272_v38 = vmul.f32 %v11477_v59, %v2256_v22  ;;  %v9075_v21 = vmul.f32 -1.442695, %v1995_v10  ;;  %10168 = vmatprep.mubr.bf16.mxu0 %v12570_v36  ;;  %10200 = vmatprep.mubr.bf16.mxu1 %v12570_v36  ;;  %v1920_v19 = vld [vmem:[#allocation12 + $0x110] sm:$0xff] }
 0x390   :  { %v11481_v32 = vpop.eup %11480  ;;  %11500 = vtanh.f32 %v2227_v27  ;;  %v1764_v49 = vpop.f32.mrb[76].mxu0  ;;  %v1985_v10 = vadd.f32 %v1921_v60, %v12510_v14  ;;  %v2258_v58 = vsub.f32 1.0, %v12563_v5 }
 0x391   :  { %v11483_v33 = vpop.eup %11482  ;;  %11502 = vrcp.f32 %v2070_v63  ;;  %v2273_v47 = vmul.f32 %v11481_v32, %v2257_v25  ;;  %v12577_v53 = vpop.f32.mrb[76].mxu1  ;;  %v12579_v54 = vadd.f32 %v2288_v42, %v2272_v38  ;;  %v2006_v39 = vadd.f32 %v1942_v52, %v1764_v49 }
 0x392   :  { %v12572_v41 = vpop.eup %11484  ;;  %v2212_v18 = vmul.f32 %v11483_v33, %v1977_v3  ;;  %11504 = vpow2.f32 %v9074_v13  ;;  %v1766_v43 = vpop.f32.mrb[77].mxu0  ;;  %v9076_v3 = vmul.f32 -1.442695, %v1999_v29  ;;  %v2289_v25 = vmul.f32 %v12061_v7, %v12542_v37  ;;  %v12062_v37 = vld [vmem:[#allocation3 + $0x20] sm:$0xff]  ;;  %v10980_v7 = vld [vmem:[#allocation8 + $0x90] sm:$0xff]  }
 0x393   :  { %v11487_v48 = vpop.eup %11486  ;;  %11506 = vpow2.f32 %v9059_v23  ;;  %v12582_v62 = vpop.f32.mrb[77].mxu1  ;;  %v1984_v23 = vadd.f32 %v1920_v19, %v12506_v8  ;;  %v9061_v33 = vmul.f32 -1.442695, %v2002_v15  ;;  %v2259_v8 = vsub.f32 1.0, %v12572_v41 }
 0x394   :  { %v11489_v55 = vpop.eup %11488  ;;  %v2228_v9 = vadd.f32 %v2212_v18, %v1976_v46  ;;  %11508 = vrcp.f32 %v2165_v34  ;;  %v2213_v57 = vmul.f32 %v11487_v48, %v1981_v44  ;;  %v1768_v6 = vpop.f32.mrb[78].mxu0  ;;  %v9062_v14 = vmul.f32 -1.442695, %v2006_v39  ;;  %v1943_v18 = vld [vmem:[#allocation12 + $0x1c8] sm:$0xff] }
 0x395   :  { %v11491_v2 = vpop.eup %11490  ;;  %11510 = vpow2.f32 %v9060_v35  ;;  %v12584_v22 = vpop.f32.mrb[78].mxu1  ;;  %v2166_v34 = vadd.f32 1.0, %v11489_v55  ;;  %v12596_v35 = vadd.f32 %v2289_v25, %v2273_v47  ;;  %v2290_v45 = vmul.f32 %v12062_v37, %v12563_v5  ;;  %v12063_v47 = vld [vmem:[#allocation3 + $0x28] sm:$0xff] }
 0x396   :  { %v12586_v59 = vpop.eup %11492  ;;  %11512 = vtanh.f32 %v2228_v9  ;;  %v2229_v46 = vadd.f32 %v2213_v57, %v1980_v50  ;;  %v2071_v27 = vadd.f32 1.0, %v11491_v2  ;;  %v12588_v63 = vpop.f32.mrb[79].mxu0  ;;  %v2291_v55 = vmul.f32 %v12063_v47, %v12572_v41  ;;  %v10979_v9 = vld [vmem:[#allocation8 + $0x88] sm:$0xff]  }
 0x397   :  { %v12590_v13 = vpop.f32.mrb[79].mxu1  ;;  %v11495_v30 = vpop.eup %11494  ;;  %11514 = vpow2.f32 %v9075_v21  ;;  %v1946_v21 = vld [vmem:[#allocation12 + $0x1e0] sm:$0xff]  ;;  %v12602_v49 = vpack.c.bf16 %v12596_v35, %v12579_v54  ;;  %v2003_v19 = vadd.f32 %v1939_v28, %v12559_v16  ;;  %v2007_v2 = vadd.f32 %v1943_v18, %v1766_v43  ;;  %v1925_v16 = vld [vmem:[#allocation12 + $0x138] sm:$0xff] }
 0x398   :  { %v11497_v32 = vpop.eup %11496  ;;  %11516 = vtanh.f32 %v2229_v46  ;;  %v2072_v29 = vadd.f32 1.0, %v11495_v30  ;;  %v2010_v39 = vadd.f32 %v1946_v21, %v1768_v6  ;;  %v2260_v43 = vsub.f32 1.0, %v12586_v59  ;;  %v1924_v6 = vld [vmem:[#allocation12 + $0x130] sm:$0xff]  ;;  %v12065_v21 = vld [vmem:[#allocation3 + $0x38] sm:$0xff] }
 0x399   :  { %v11499_v42 = vpop.eup %11498  ;;  %11518 = vrcp.f32 %v2071_v27  ;;  %v2274_v44 = vmul.f32 %v11497_v32, %v2258_v58  ;;  %10169 = vmatmul.mubr.bf16.vlgmr.msra.gmra.mrb[80].mxu0 %v12602_v49  ;;  %10201 = vmatmul.mubr.bf16.vlgmr.msra.gmra.mrb[80].mxu1 %v12602_v49  ;;  %v1929_v58 = vld [vmem:[#allocation12 + $0x158] sm:$0xff]  ;;  %v9078_v18 = vmul.f32 -1.442695, %v2007_v2 }
 0x39a   :  { %v11501_v38 = vpop.eup %11500  ;;  %11520 = vpow2.f32 %v9076_v3  ;;  %v2167_v41 = vadd.f32 1.0, %v11499_v42  ;;  %10217 = vmatpush3.bf16.msra.mxu0 %v12467_v11 }
 0x39b   :  { %v11503_v48 = vpop.eup %11502  ;;  %11522 = vrcp.f32 %v2072_v29  ;;  %v2275_v52 = vmul.f32 %v11501_v38, %v2259_v8  ;;  %v12606_v60 = vadd.f32 %v2290_v45, %v2274_v44  ;;  %10218 = vmatprep.subr.bf16.mxu0 %v10979_v9  ;;  %v1989_v38 = vadd.f32 %v1925_v16, %v12515_v40  ;;  %v1947_v45 = vld [vmem:[#allocation12 + $0x1e8] sm:$0xff] }
 0x39c   :  { %v11505_v50 = vpop.eup %11504  ;;  %11524 = vrcp.f32 %v2166_v34  ;;  %v2214_v57 = vmul.f32 %v11503_v48, %v1985_v10  ;;  %v9077_v34 = vmul.f32 -1.442695, %v2003_v19  ;;  %v9063_v44 = vmul.f32 -1.442695, %v2010_v39 }
 0x39d   :  { %v11507_v5 = vpop.eup %11506  ;;  %11526 = vpow2.f32 %v9061_v33  ;;  %v12610_v3 = vadd.f32 %v2291_v55, %v2275_v52  ;;  %v2168_v32 = vadd.f32 1.0, %v11505_v50  ;;  %v12064_v33 = vld [vmem:[#allocation3 + $0x30] sm:$0xff]  ;;  %v10981_v55 = vld [vmem:[#allocation8 + $0x98] sm:$0xff]   ;;  %v1993_v40 = vadd.f32 %v1929_v58, %v12526_v4 }
 0x39e   :  { %v11509_v15 = vpop.eup %11508  ;;  %v2230_v46 = vadd.f32 %v2214_v57, %v1984_v23  ;;  %v2073_v27 = vadd.f32 1.0, %v11507_v5  ;;  %11528 = vpow2.f32 %v9062_v14  ;;  %v2292_v28 = vmul.f32 %v12064_v33, %v12586_v59  ;;  %v1928_v14 = vld [vmem:[#allocation12 + $0x150] sm:$0xff]  ;;  %10219 = vmatpush3.bf16.msra.mxu0 %v10979_v9 }
 0x39f   :  { %v11511_v30 = vpop.eup %11510  ;;  %v12615_v10 = vpack.c.bf16 %v12610_v3, %v12606_v60  ;;  %v2261_v11 = vsub.f32 1.0, %v11509_v15  ;;  %v2293_v52 = vmul.f32 %v12065_v21, %v11509_v15  ;;  %10220 = vmatprep.subr.bf16.mxu0 %v10980_v7  ;;  %v1988_v59 = vadd.f32 %v1924_v6, %v12512_v24  ;;  %v1933_v24 = vld [vmem:[#allocation12 + $0x178] sm:$0xff]  ;;  %v1936_v33 = vld [vmem:[#allocation12 + $0x190] sm:$0xff] }
 0x3a0   :  { %v11513_v25 = vpop.eup %11512  ;;  %11530 = vtanh.f32 %v2230_v46  ;;  %v2074_v23 = vadd.f32 1.0, %v11511_v30  ;;  %v1992_v9 = vadd.f32 %v1928_v14, %v12524_v61  ;;  %v10982_v61 = vld [vmem:[#allocation8 + $0xa0] sm:$0xff]   ;;  %v2000_v21 = vadd.f32 %v1936_v33, %v12544_v56 }
 0x3a1   :  { %v11515_v29 = vpop.eup %11514  ;;  %11532 = vrcp.f32 %v2073_v27  ;;  %10172 = vmatprep.mubr.bf16.mxu0 %v12615_v10  ;;  %10204 = vmatprep.mubr.bf16.mxu1 %v12615_v10  ;;  %v2276_v42 = vmul.f32 %v11513_v25, %v2260_v43  ;;  %v2011_v27 = vadd.f32 %v1947_v45, %v12588_v63 }
 0x3a2   :  { %v11517_v8 = vpop.eup %11516  ;;  %11534 = vrcp.f32 %v2167_v41  ;;  %v2169_v5 = vadd.f32 1.0, %v11515_v29  ;;  %10221 = vmatpush3.bf16.msra.mxu0 %v10980_v7  ;;  %v1997_v7 = vadd.f32 %v1933_v24, %v12536_v20 }
 0x3a3   :  { %v11519_v37 = vpop.eup %11518  ;;  %11536 = vrcp.f32 %v2074_v23  ;;  %v2277_v48 = vmul.f32 %v11517_v8, %v2261_v11  ;;  %v12622_v47 = vadd.f32 %v2292_v28, %v2276_v42  ;;  %10222 = vmatprep.subr.bf16.mxu0 %v10981_v55  ;;  %v1932_v23 = vld [vmem:[#allocation12 + $0x170] sm:$0xff]  ;;  %v9079_v6 = vmul.f32 -1.442695, %v2011_v27  ;;  %v12066_v11 = vld [vmem:[#allocation3 + $0x40] sm:$0xff]  ;;  %v10983_v8 = vld [vmem:[#allocation8 + $0xa8] sm:$0xff]  }
 0x3a4   :  { %v11521_v50 = vpop.eup %11520  ;;  %v2215_v57 = vmul.f32 %v11519_v37, %v1989_v38  ;;  %11538 = vrcp.f32 %v2168_v32  ;;  %v1996_v14 = vadd.f32 %v1932_v23, %v12532_v12  ;;  %v1940_v27 = vld [vmem:[#allocation12 + $0x1b0] sm:$0xff] }
 0x3a5   :  { %v11523_v19 = vpop.eup %11522  ;;  %11540 = vpow2.f32 %v9077_v34  ;;  %v12627_v2 = vadd.f32 %v2293_v52, %v2277_v48  ;;  %v2170_v16 = vadd.f32 1.0, %v11521_v50  ;;  %v1937_v34 = vld [vmem:[#allocation12 + $0x198] sm:$0xff]  ;;  %v10984_v50 = vld [vmem:[#allocation8 + $0xb0] sm:$0xff]  }
 0x3a6   :  { %v11525_v46 = vpop.eup %11524  ;;  %v2231_v15 = vadd.f32 %v2215_v57, %v1988_v59  ;;  %v2216_v41 = vmul.f32 %v11523_v19, %v1993_v40  ;;  %11542 = vpow2.f32 %v9063_v44  ;;  %10223 = vmatpush3.bf16.msra.mxu0 %v10981_v55  ;;  %v2001_v44 = vadd.f32 %v1937_v34, %v12552_v1  ;;  %v1941_v1 = vld [vmem:[#allocation12 + $0x1b8] sm:$0xff]  ;;  %v1944_v34 = vld [vmem:[#allocation12 + $0x1d0] sm:$0xff] }
 0x3a7   :  { %v11527_v39 = vpop.eup %11526  ;;  %11544 = vpow2.f32 %v9078_v18  ;;  %v12632_v4 = vpack.c.bf16 %v12627_v2, %v12622_v47  ;;  %v2262_v32 = vsub.f32 1.0, %v11525_v46  ;;  %v2294_v42 = vmul.f32 %v12066_v11, %v11525_v46  ;;  %10224 = vmatprep.subr.bf16.mxu0 %v10982_v61 }
 0x3a8   :  { %11546 = vtanh.f32 %v2231_v15  ;;  %v2232_v30 = vadd.f32 %v2216_v41, %v1992_v9  ;;  %v2075_v43 = vadd.f32 1.0, %v11527_v39  ;;  %v11529_v25 = vpop.eup %11528  ;;  %v12067_v15 = vld [vmem:[#allocation3 + $0x48] sm:$0xff]  ;;  %v1945_v39 = vld [vmem:[#allocation12 + $0x1d8] sm:$0xff] }
 0x3a9   :  { %11548 = vrcp.f32 %v2169_v5  ;;  %10173 = vmatmul.mubr.bf16.gmra.mrb[84].mxu0 %v12632_v4  ;;  %10205 = vmatmul.mubr.bf16.gmra.mrb[84].mxu1 %v12632_v4  ;;  %v2076_v29 = vadd.f32 1.0, %v11529_v25  ;;  %v2009_v11 = vadd.f32 %v1945_v39, %v12582_v62  ;;  %v12071_v39 = vld [vmem:[#allocation3 + $0x68] sm:$0xff] }
 0x3aa   :  { %v11531_v63 = vpop.eup %11530  ;;  %11550 = vtanh.f32 %v2232_v30  ;;  %10225 = vmatpush3.bf16.msra.mxu0 %v10982_v61  ;;  %v10985_v61 = vld [vmem:[#allocation8 + $0xb8] sm:$0xff]  }
 0x3ab   :  { %v11533_v58 = vpop.eup %11532  ;;  %11552 = vrcp.f32 %v2075_v43  ;;  %v2278_v28 = vmul.f32 %v11531_v63, %v2262_v32  ;;  %10226 = vmatprep.subr.bf16.mxu0 %v10983_v8  ;;  %v12068_v32 = vld [vmem:[#allocation3 + $0x50] sm:$0xff] }
 0x3ac   :  { %v11535_v38 = vpop.eup %11534  ;;  %v2217_v18 = vmul.f32 %v11533_v58, %v1997_v7  ;;  %11554 = vrcp.f32 %v2170_v16  ;;  %v2005_v16 = vadd.f32 %v1941_v1, %v12561_v17 }
 0x3ad   :  { %v11537_v37 = vpop.eup %11536  ;;  %11556 = vrcp.f32 %v2076_v29  ;;  %v12639_v20 = vadd.f32 %v2294_v42, %v2278_v28  ;;  %v2263_v40 = vsub.f32 1.0, %v11535_v38  ;;  %v2295_v56 = vmul.f32 %v12067_v15, %v11535_v38 }
 0x3ae   :  { %v11539_v45 = vpop.eup %11538  ;;  %v2233_v48 = vadd.f32 %v2217_v18, %v1996_v14  ;;  %v2218_v52 = vmul.f32 %v11537_v37, %v2001_v44  ;;  %11558 = vpow2.f32 %v9079_v6  ;;  %10227 = vmatpush3.bf16.msra.mxu0 %v10983_v8  ;;  %v2004_v6 = vadd.f32 %v1940_v27, %v12555_v26  ;;  %v1949_v44 = vld [vmem:[#allocation12 + $0x1f8] sm:$0xff] }
 0x3af   :  { %v11541_v55 = vpop.eup %11540  ;;  %v2264_v41 = vsub.f32 1.0, %v11539_v45  ;;  %10228 = vmatprep.subr.bf16.mxu0 %v10984_v50  ;;  %v2296_v23 = vmul.f32 %v12068_v32, %v11539_v45  ;;  %v2008_v38 = vadd.f32 %v1944_v34, %v12577_v53  ;;  %v12069_v37 = vld [vmem:[#allocation3 + $0x58] sm:$0xff]  ;;  %v12070_v53 = vld [vmem:[#allocation3 + $0x60] sm:$0xff] }
 0x3b0   :  { %v11543_v59 = vpop.eup %11542  ;;  %11560 = vtanh.f32 %v2233_v48  ;;  %v2234_v12 = vadd.f32 %v2218_v52, %v2000_v21  ;;  %v2171_v5 = vadd.f32 1.0, %v11541_v55  ;;  %v1948_v21 = vld [vmem:[#allocation12 + $0x1f0] sm:$0xff] }
 0x3b1   :  { %v11545_v57 = vpop.eup %11544  ;;  %v2077_v19 = vadd.f32 1.0, %v11543_v59 }
 0x3b2   :  { %v11547_v9 = vpop.eup %11546  ;;  %11562 = vtanh.f32 %v2234_v12  ;;  %v2172_v43 = vadd.f32 1.0, %v11545_v57  ;;  %10229 = vmatpush3.bf16.msra.mxu0 %v10984_v50  ;;  %v2013_v12 = vadd.f32 %v1949_v44, %v12590_v13 }
 0x3b3   :  { %v11549_v46 = vpop.eup %11548  ;;  %v2279_v24 = vmul.f32 %v11547_v9, %v2263_v40  ;;  %11564 = vrcp.f32 %v2077_v19  ;;  %10230 = vmatprep.subr.bf16.mxu0 %v10985_v61  ;;  %v2012_v19 = vadd.f32 %v1948_v21, %v12584_v22 }
 0x3b4   :  { %v11551_v30 = vpop.eup %11550  ;;  %11566 = vrcp.f32 %v2171_v5  ;;  %v2265_v26 = vsub.f32 1.0, %v11549_v46  ;;  %v2297_v45 = vmul.f32 %v12069_v37, %v11549_v46 }
 0x3b5   :  { %v11553_v25 = vpop.eup %11552  ;;  %v12643_v63 = vadd.f32 %v2295_v56, %v2279_v24  ;;  %v2280_v7 = vmul.f32 %v11551_v30, %v2264_v41  ;;  %11568 = vrcp.f32 %v2172_v43 }
 0x3b6   :  { %v11555_v29 = vpop.eup %11554  ;;  %v2219_v58 = vmul.f32 %v11553_v25, %v2005_v16  ;;  %10231 = vmatpush3.bf16.msra.mxu0 %v10985_v61  ;;  %v12072_v16 = vld [vmem:[#allocation3 + $0x70] sm:$0xff] }
 0x3b7   :  { %v11557_v42 = vpop.eup %11556  ;;  %v12649_v17 = vpack.c.bf16 %v12643_v63, %v12639_v20  ;;  %v12651_v33 = vadd.f32 %v2296_v23, %v2280_v7  ;;  %v2266_v48 = vsub.f32 1.0, %v11555_v29  ;;  %v2298_v59 = vmul.f32 %v12070_v53, %v11555_v29 }
 0x3b8   :  { %v11559_v28 = vpop.eup %11558  ;;  %v2235_v8 = vadd.f32 %v2219_v58, %v2004_v6  ;;  %v2220_v14 = vmul.f32 %v11557_v42, %v2009_v11  ;;  %v12073_v58 = vld [vmem:[#allocation3 + $0x78] sm:$0xff] }
 0x3b9   :  { %10176 = vmatprep.mubr.bf16.mxu0 %v12649_v17  ;;  %10208 = vmatprep.mubr.bf16.mxu1 %v12649_v17  ;;  %v2173_v52 = vadd.f32 1.0, %v11559_v28 }
 0x3ba   :  { %v11561_v62 = vpop.eup %11560  ;;  %11570 = vtanh.f32 %v2235_v8  ;;  %v2236_v18 = vadd.f32 %v2220_v14, %v2008_v38  ;;  %v10988_v38 = vld [vmem:[#allocation6 + $0x4] ss:$12 sps:$4 sm:$0xff]   ;;  %v11000_v14 = vld [vmem:[#allocation6 + $0x8] ss:$12 sps:$4 sm:$0xff]  }
 0x3bb   :  { %v2281_v55 = vmul.f32 %v11561_v62, %v2265_v26 }
 0x3bc   :  { %v11563_v50 = vpop.eup %11562  ;;  %11572 = vtanh.f32 %v2236_v18 }
 0x3bd   :  { %v12657_v57 = vadd.f32 %v2297_v45, %v2281_v55  ;;  %v2282_v40 = vmul.f32 %v11563_v50, %v2266_v48  ;;  %v11565_v1 = vpop.eup %11564  ;;  %11574 = vrcp.f32 %v2173_v52 }
 0x3be   :  { %v2221_v9 = vmul.f32 %v11565_v1, %v2013_v12  ;;  %v11567_v15 = vpop.eup %11566 }
 0x3bf   :  { %v12662_v5 = vpack.c.bf16 %v12657_v57, %v12651_v33  ;;  %v12664_v46 = vadd.f32 %v2298_v59, %v2282_v40  ;;  %v11569_v13 = vpop.eup %11568  ;;  %v2267_v41 = vsub.f32 1.0, %v11567_v15  ;;  %v2299_v22 = vmul.f32 %v12071_v39, %v11567_v15 }
 0x3c0   :  { %v2237_v56 = vadd.f32 %v2221_v9, %v2012_v19  ;;  %v2268_v24 = vsub.f32 1.0, %v11569_v13  ;;  %v2300_v43 = vmul.f32 %v12072_v16, %v11569_v13 }
 0x3c1   :  { %10177 = vmatmul.mubr.bf16.gmra.mrb[88].mxu0 %v12662_v5  ;;  %10209 = vmatmul.mubr.bf16.gmra.mrb[88].mxu1 %v12662_v5 }
 0x3c2   :  { %11576 = vtanh.f32 %v2237_v56 }
 0x3c4   :  { %v11571_v27 = vpop.eup %11570 }
 0x3c5   :  { %v2283_v61 = vmul.f32 %v11571_v27, %v2267_v41 }
 0x3c6   :  { %v11573_v30 = vpop.eup %11572 }
 0x3c7   :  { %v12668_v25 = vadd.f32 %v2299_v22, %v2283_v61  ;;  %v2284_v32 = vmul.f32 %v11573_v30, %v2268_v24  ;;  %v11575_v23 = vpop.eup %11574 }
 0x3c8   :  { %v2269_v29 = vsub.f32 1.0, %v11575_v23  ;;  %v2301_v11 = vmul.f32 %v12073_v58, %v11575_v23 }
 0x3c9   :  { %13514 = vst [vmem:[#allocation20_spill] sm:$0xff] %v12668_v25  ;;  %v12672_v34 = vpack.c.bf16 %v12668_v25, %v12664_v46  ;;  %v12674_v7 = vadd.f32 %v2300_v43, %v2284_v32 }
 0x3cb   :  { %13515 = vst [vmem:[#allocation21_spill] sm:$0xff] %v12674_v7  ;;  %10180 = vmatprep.mubr.bf16.mxu0 %v12672_v34  ;;  %10212 = vmatprep.mubr.bf16.mxu1 %v12672_v34 }
 0x3cc   :  { %v11577_v6 = vpop.eup %11576 }
 0x3cd   :  { %v2285_v42 = vmul.f32 %v11577_v6, %v2269_v29 }
 0x3cf   :  { %v12678_v28 = vadd.f32 %v2301_v11, %v2285_v42 }
 0x3d1   :  { %13516 = vst [vmem:[#allocation22_spill] sm:$0xff] %v12678_v28  ;;  %v12682_v8 = vpack.c.bf16 %v12678_v28, %v12674_v7  ;;  %v4127_v7 = vld [vmem:[#allocation12 + $0x180] sm:$0xff] }
 0x3d3   :  { %10181 = vmatmul.mubr.bf16.gmra.mrb[92].mxu0 %v12682_v8  ;;  %10213 = vmatmul.mubr.bf16.gmra.mrb[92].mxu1 %v12682_v8 }
 0x3d4   :  { %10232 = vmatprep.mubr.bf16.mxu0 %v12570_v36  ;;  %3073 = vmatprep.mubr.bf16.mxu1 %v10988_v38 }
 0x3db   :  { %10233 = vmatmul.mubr.bf16.vlgmr.msra.gmra.mrb[96].mxu0 %v12602_v49 }
 0x3dc   :  { %10236 = vmatprep.mubr.bf16.mxu0 %v12615_v10 }
 0x3e3   :  { %10237 = vmatmul.mubr.bf16.gmra.mrb[100].mxu0 %v12632_v4 }
 0x3e4   :  { %10240 = vmatprep.mubr.bf16.mxu0 %v12649_v17 }
 0x3eb   :  { %10241 = vmatmul.mubr.bf16.gmra.mrb[104].mxu0 %v12662_v5 }
 0x3ec   :  { %10244 = vmatprep.mubr.bf16.mxu0 %v12672_v34 }
 0x3f3   :  { %10245 = vmatmul.mubr.bf16.gmra.mrb[108].mxu0 %v12682_v8 }
 0x3f4   :  { %10264 = vmatprep.mubr.bf16.mxu0 %v11000_v14 }
 0x46c   :  { %v10170_v26 = vpop.f32.mrb[80].mxu0  ;;  %v10202_v62 = vpop.f32.mrb[80].mxu1 }
 0x46d   :  { %v2424_v18 = vpop.f32.mrb[81].mxu0  ;;  %v2601_v44 = vpop.f32.mrb[81].mxu1 }
 0x46e   :  { %v10171_v37 = vpop.f32.mrb[82].mxu0  ;;  %v10203_v45 = vpop.f32.mrb[82].mxu1 }
 0x46f   :  { %v2488_v48 = vpack.c.bf16 %v10171_v37, %v10170_v26  ;;  %v2665_v21 = vpack.c.bf16 %v10203_v45, %v10202_v62  ;;  %v2427_v52 = vpop.f32.mrb[83].mxu0  ;;  %v2604_v55 = vpop.f32.mrb[83].mxu1 }
 0x470   :  { %v2487_v50 = vpack.c.bf16 %v2427_v52, %v2424_v18  ;;  %v2664_v53 = vpack.c.bf16 %v2604_v55, %v2601_v44 }
 0x472   :  { %9688 = vmatprep.subr.bf16.mxu1 %v2664_v53 }
 0x473   :  { %9689 = vmatpush3.bf16.msra.mxu1 %v2487_v50  ;;  %v11008_v50 = vld [vmem:[#allocation11 + $0xc] ss:$16 sps:$4 sm:$0xff]  }
 0x474   :  { %9690 = vmatprep.subr.bf16.mxu1 %v2665_v21 }
 0x477   :  { %9691 = vmatpush3.bf16.msra.mxu1 %v2488_v48 }
 0x47c   :  { %v10174_v59 = vpop.f32.mrb[84].mxu0  ;;  %v10206_v12 = vpop.f32.mrb[84].mxu1 }
 0x47d   :  { %v2440_v40 = vpop.f32.mrb[85].mxu0  ;;  %v2617_v1 = vpop.f32.mrb[85].mxu1 }
 0x47e   :  { %v10175_v19 = vpop.f32.mrb[86].mxu0  ;;  %v10207_v9 = vpop.f32.mrb[86].mxu1 }
 0x47f   :  { %v2490_v15 = vpack.c.bf16 %v10175_v19, %v10174_v59  ;;  %v2667_v56 = vpack.c.bf16 %v10207_v9, %v10206_v12  ;;  %v2443_v13 = vpop.f32.mrb[87].mxu0  ;;  %v2620_v41 = vpop.f32.mrb[87].mxu1  ;;  %v10986_v12 = vld [vmem:[#allocation6] ss:$12 sps:$4 sm:$0xff]   ;;  %v10989_v19 = vld [vmem:[#allocation6 + $0x1c] ss:$12 sps:$4 sm:$0xff]  }
 0x480   :  { %v2489_v27 = vpack.c.bf16 %v2443_v13, %v2440_v40  ;;  %v2666_v39 = vpack.c.bf16 %v2620_v41, %v2617_v1  ;;  %v11012_v41 = vld [vmem:[#allocation11 + $0x28] ss:$16 sps:$4 sm:$0xff]  }
 0x482   :  { %9692 = vmatprep.subr.bf16.mxu1 %v2666_v39  ;;  %v11025_v39 = vld [vmem:[#allocation11 + $0x4c] ss:$16 sps:$4 sm:$0xff]  }
 0x483   :  { %9693 = vmatpush3.bf16.msra.mxu1 %v2489_v27 }
 0x484   :  { %9694 = vmatprep.subr.bf16.mxu1 %v2667_v56  ;;  %v11014_v56 = vld [vmem:[#allocation11 + $0x2c] ss:$16 sps:$4 sm:$0xff]  }
 0x487   :  { %9695 = vmatpush3.bf16.msra.mxu1 %v2490_v15  ;;  %v11006_v15 = vld [vmem:[#allocation11 + $0x8] ss:$16 sps:$4 sm:$0xff]  }
 0x494   :  { %v10178_v22 = vpop.f32.mrb[88].mxu0  ;;  %v10210_v24 = vpop.f32.mrb[88].mxu1 }
 0x495   :  { %v2456_v61 = vpop.f32.mrb[89].mxu0  ;;  %v2633_v30 = vpop.f32.mrb[89].mxu1 }
 0x496   :  { %v10179_v16 = vpop.f32.mrb[90].mxu0  ;;  %v10211_v43 = vpop.f32.mrb[90].mxu1 }
 0x497   :  { %v2492_v32 = vpack.c.bf16 %v10179_v16, %v10178_v22  ;;  %v2669_v23 = vpack.c.bf16 %v10211_v43, %v10210_v24  ;;  %v2459_v29 = vpop.f32.mrb[91].mxu0  ;;  %v2636_v6 = vpop.f32.mrb[91].mxu1  ;;  %v10991_v24 = vld [vmem:[#allocation6 + $0x18] ss:$12 sps:$4 sm:$0xff]   ;;  %v10992_v16 = vld [vmem:[#allocation6 + $0x34] ss:$12 sps:$4 sm:$0xff]  }
 0x498   :  { %v2491_v58 = vpack.c.bf16 %v2459_v29, %v2456_v61  ;;  %v2668_v11 = vpack.c.bf16 %v2636_v6, %v2633_v30  ;;  %v11029_v6 = vld [vmem:[#allocation11 + $0x68] ss:$16 sps:$4 sm:$0xff]  }
 0x49a   :  { %9696 = vmatprep.subr.bf16.mxu1 %v2668_v11  ;;  %v11042_v11 = vld [vmem:[#allocation11 + $0x8c] ss:$16 sps:$4 sm:$0xff]  }
 0x49b   :  { %9697 = vmatpush3.bf16.msra.mxu1 %v2491_v58 }
 0x49c   :  { %9698 = vmatprep.subr.bf16.mxu1 %v2669_v23  ;;  %v11031_v23 = vld [vmem:[#allocation11 + $0x6c] ss:$16 sps:$4 sm:$0xff]  }
 0x49f   :  { %9699 = vmatpush3.bf16.msra.mxu1 %v2492_v32  ;;  %v11023_v32 = vld [vmem:[#allocation11 + $0x48] ss:$16 sps:$4 sm:$0xff]  }
 0x4a6   :  { %v10182_v42 = vpop.f32.mrb[92].mxu0  ;;  %v10214_v38 = vpop.f32.mrb[92].mxu1 }
 0x4a7   :  { %v2472_v14 = vpop.f32.mrb[93].mxu0  ;;  %v2649_v26 = vpop.f32.mrb[93].mxu1 }
 0x4a8   :  { %v10183_v62 = vpop.f32.mrb[94].mxu0  ;;  %v10215_v18 = vpop.f32.mrb[94].mxu1 }
 0x4a9   :  { %v2494_v44 = vpack.c.bf16 %v10183_v62, %v10182_v42  ;;  %v2671_v37 = vpack.c.bf16 %v10215_v18, %v10214_v38  ;;  %v2475_v45 = vpop.f32.mrb[95].mxu0  ;;  %v2652_v48 = vpop.f32.mrb[95].mxu1  ;;  %v10994_v38 = vld [vmem:[#allocation6 + $0x30] ss:$12 sps:$4 sm:$0xff]   ;;  %v10995_v62 = vld [vmem:[#allocation6 + $0x4c] ss:$12 sps:$4 sm:$0xff]  }
 0x4aa   :  { %v2493_v21 = vpack.c.bf16 %v2475_v45, %v2472_v14  ;;  %v2670_v52 = vpack.c.bf16 %v2652_v48, %v2649_v26  ;;  %v11046_v48 = vld [vmem:[#allocation11 + $0xa8] ss:$16 sps:$4 sm:$0xff]  }
 0x4ac   :  { %9700 = vmatprep.subr.bf16.mxu1 %v2670_v52  ;;  %v11059_v52 = vld [vmem:[#allocation11 + $0xcc] ss:$16 sps:$4 sm:$0xff]  }
 0x4ad   :  { %9701 = vmatpush3.bf16.msra.mxu1 %v2493_v21 }
 0x4ae   :  { %v10234_v55 = vpop.f32.mrb[96].mxu0  ;;  %9702 = vmatprep.subr.bf16.mxu1 %v2671_v37  ;;  %v11048_v37 = vld [vmem:[#allocation11 + $0xac] ss:$16 sps:$4 sm:$0xff]  }
 0x4af   :  { %v2778_v53 = vpop.f32.mrb[97].mxu0 }
 0x4b0   :  { %v10235_v59 = vpop.f32.mrb[98].mxu0 }
 0x4b1   :  { %v2842_v40 = vpack.c.bf16 %v10235_v59, %v10234_v55  ;;  %v2781_v1 = vpop.f32.mrb[99].mxu0  ;;  %9703 = vmatpush3.bf16.msra.mxu1 %v2494_v44  ;;  %v11040_v44 = vld [vmem:[#allocation11 + $0x88] ss:$16 sps:$4 sm:$0xff]  }
 0x4b2   :  { %v2841_v9 = vpack.c.bf16 %v2781_v1, %v2778_v53  ;;  %3580 = vmatprep.subr.bf16.mxu1 %v11008_v50  ;;  %v10997_v50 = vld [vmem:[#allocation6 + $0x48] ss:$12 sps:$4 sm:$0xff]  }
 0x4b3   :  { %v11057_v1 = vld [vmem:[#allocation11 + $0xc8] ss:$16 sps:$4 sm:$0xff]  }
 0x4b4   :  { %3074 = vmatmul.mubr.bf16.vlgmr.msra.gmra.mrb[96].mxu1 %v10986_v12  ;;  %10248 = vmatprep.subr.bf16.mxu0 %v2841_v9  ;;  %v10998_v12 = vld [vmem:[#allocation6 + $0x64] ss:$12 sps:$4 sm:$0xff]  }
 0x4b5   :  { %10249 = vmatpush3.bf16.msra.mxu0 %v2841_v9  ;;  %3081 = vmatprep.mubr.bf16.mxu1 %v10989_v19  ;;  %v11065_v19 = vld [vmem:[#allocation11 + $0xec] ss:$16 sps:$4 sm:$0xff]   ;;  %v11005_v9 = vld [vmem:[#allocation11 + $0x4] ss:$16 sps:$4 sm:$0xff]  }
 0x4b6   :  { %v10238_v13 = vpop.f32.mrb[100].mxu0  ;;  %10250 = vmatprep.subr.bf16.mxu0 %v2842_v40  ;;  %3581 = vmatpush1.bf16.msra.mxu1 %v11006_v15  ;;  %v11063_v15 = vld [vmem:[#allocation11 + $0xe8] ss:$16 sps:$4 sm:$0xff]  }
 0x4b7   :  { %v2794_v27 = vpop.f32.mrb[101].mxu0  ;;  %3582 = vmatprep.subr.bf16.mxu1 %v11014_v56  ;;  %v11080_v56 = vld [vmem:[#allocation9 + $0xc] ss:$16 sps:$4 sm:$0xff]  }
 0x4b8   :  { %v10239_v22 = vpop.f32.mrb[102].mxu0 }
 0x4b9   :  { %v2844_v61 = vpack.c.bf16 %v10239_v22, %v10238_v13  ;;  %v2797_v30 = vpop.f32.mrb[103].mxu0  ;;  %10251 = vmatpush3.bf16.msra.mxu0 %v2842_v40  ;;  %v11001_v13 = vld [vmem:[#allocation6 + $0x60] ss:$12 sps:$4 sm:$0xff]   ;;  %v11011_v22 = vld [vmem:[#allocation11 + $0x24] ss:$16 sps:$4 sm:$0xff]  }
 0x4ba   :  { %v2843_v43 = vpack.c.bf16 %v2797_v30, %v2794_v27  ;;  %3583 = vmatpush1.bf16.msra.mxu1 %v11012_v41  ;;  %v11002_v41 = vld [vmem:[#allocation6 + $0x20] ss:$12 sps:$4 sm:$0xff]   ;;  %v11022_v30 = vld [vmem:[#allocation11 + $0x44] ss:$16 sps:$4 sm:$0xff]  }
 0x4bb   :  { %3584 = vmatprep.subr.bf16.mxu1 %v11025_v39  ;;  %v11003_v27 = vld [vmem:[#allocation11] ss:$16 sps:$4 sm:$0xff]   ;;  %v11015_v39 = vld [vmem:[#allocation6 + $0x7c] ss:$12 sps:$4 sm:$0xff]  }
 0x4bc   :  { %3082 = vmatmul.mubr.bf16.gmra.mrb[100].mxu1 %v10991_v24  ;;  %10252 = vmatprep.subr.bf16.mxu0 %v2843_v43  ;;  %v11017_v24 = vld [vmem:[#allocation6 + $0x38] ss:$12 sps:$4 sm:$0xff]  }
 0x4bd   :  { %10253 = vmatpush3.bf16.msra.mxu0 %v2843_v43  ;;  %3089 = vmatprep.mubr.bf16.mxu1 %v10992_v16  ;;  %v11018_v16 = vld [vmem:[#allocation6 + $0x78] ss:$12 sps:$4 sm:$0xff]   ;;  %v11019_v43 = vld [vmem:[#allocation6 + $0x50] ss:$12 sps:$4 sm:$0xff]  }
 0x4be   :  { %v10242_v29 = vpop.f32.mrb[104].mxu0  ;;  %10254 = vmatprep.subr.bf16.mxu0 %v2844_v61  ;;  %3585 = vmatpush1.bf16.msra.mxu1 %v11023_v32  ;;  %v11020_v32 = vld [vmem:[#allocation11 + $0x40] ss:$16 sps:$4 sm:$0xff]  }
 0x4bf   :  { %v2810_v58 = vpop.f32.mrb[105].mxu0  ;;  %3586 = vmatprep.subr.bf16.mxu1 %v11031_v23  ;;  %v11032_v23 = vld [vmem:[#allocation6 + $0x94] ss:$12 sps:$4 sm:$0xff]  }
 0x4c0   :  { %v10243_v42 = vpop.f32.mrb[106].mxu0 }
 0x4c1   :  { %v2846_v14 = vpack.c.bf16 %v10243_v42, %v10242_v29  ;;  %v2813_v26 = vpop.f32.mrb[107].mxu0  ;;  %10255 = vmatpush3.bf16.msra.mxu0 %v2844_v61  ;;  %v11009_v61 = vld [vmem:[#allocation11 + $0x20] ss:$16 sps:$4 sm:$0xff]   ;;  %v11028_v29 = vld [vmem:[#allocation11 + $0x64] ss:$16 sps:$4 sm:$0xff]  }
 0x4c2   :  { %v2845_v18 = vpack.c.bf16 %v2813_v26, %v2810_v58  ;;  %3587 = vmatpush1.bf16.msra.mxu1 %v11029_v6  ;;  %v11034_v6 = vld [vmem:[#allocation6 + $0x68] ss:$12 sps:$4 sm:$0xff]   ;;  %v11026_v58 = vld [vmem:[#allocation11 + $0x60] ss:$16 sps:$4 sm:$0xff]   ;;  %v11049_v26 = vld [vmem:[#allocation6 + $0xac] ss:$12 sps:$4 sm:$0xff]  }
 0x4c3   :  { %3588 = vmatprep.subr.bf16.mxu1 %v11042_v11  ;;  %v11039_v11 = vld [vmem:[#allocation11 + $0x84] ss:$16 sps:$4 sm:$0xff]   ;;  %v11035_v42 = vld [vmem:[#allocation6 + $0x90] ss:$12 sps:$4 sm:$0xff]  }
 0x4c4   :  { %3090 = vmatmul.mubr.bf16.gmra.mrb[104].mxu1 %v10994_v38  ;;  %10256 = vmatprep.subr.bf16.mxu0 %v2845_v18  ;;  %v11036_v38 = vld [vmem:[#allocation6 + $0x80] ss:$12 sps:$4 sm:$0xff]  }
 0x4c5   :  { %10257 = vmatpush3.bf16.msra.mxu0 %v2845_v18  ;;  %3097 = vmatprep.mubr.bf16.mxu1 %v10995_v62  ;;  %v11045_v62 = vld [vmem:[#allocation11 + $0xa4] ss:$16 sps:$4 sm:$0xff]  }
 0x4c6   :  { %v10246_v45 = vpop.f32.mrb[108].mxu0  ;;  %10258 = vmatprep.subr.bf16.mxu0 %v2846_v14  ;;  %3589 = vmatpush1.bf16.msra.mxu1 %v11040_v44  ;;  %v11051_v18 = vld [vmem:[#allocation6 + $0x98] ss:$12 sps:$4 sm:$0xff]   ;;  %v11043_v44 = vld [vmem:[#allocation11 + $0xa0] ss:$16 sps:$4 sm:$0xff]  }
 0x4c7   :  { %v2826_v21 = vpop.f32.mrb[109].mxu0  ;;  %3590 = vmatprep.subr.bf16.mxu1 %v11048_v37  ;;  %v11056_v37 = vld [vmem:[#allocation11 + $0xc4] ss:$16 sps:$4 sm:$0xff]  }
 0x4c8   :  { %v10247_v55 = vpop.f32.mrb[110].mxu0 }
 0x4c9   :  { %v2848_v53 = vpack.c.bf16 %v10247_v55, %v10246_v45  ;;  %v2829_v59 = vpop.f32.mrb[111].mxu0  ;;  %10259 = vmatpush3.bf16.msra.mxu0 %v2846_v14  ;;  %v11037_v14 = vld [vmem:[#allocation11 + $0x80] ss:$16 sps:$4 sm:$0xff]   ;;  %v11052_v45 = vld [vmem:[#allocation6 + $0xa8] ss:$12 sps:$4 sm:$0xff]  }
 0x4ca   :  { %v2847_v40 = vpack.c.bf16 %v2829_v59, %v2826_v21  ;;  %3591 = vmatpush1.bf16.msra.mxu1 %v11046_v48  ;;  %v11053_v48 = vld [vmem:[#allocation6 + $0xb0] ss:$12 sps:$4 sm:$0xff]   ;;  %v11078_v59 = vld [vmem:[#allocation9 + $0x8] ss:$16 sps:$4 sm:$0xff]  }
 0x4cb   :  { %3592 = vmatprep.subr.bf16.mxu1 %v11059_v52  ;;  %v11054_v21 = vld [vmem:[#allocation11 + $0xc0] ss:$16 sps:$4 sm:$0xff]   ;;  %v11062_v52 = vld [vmem:[#allocation11 + $0xe4] ss:$16 sps:$4 sm:$0xff]  }
 0x4cc   :  { %3098 = vmatmul.mubr.bf16.gmra.mrb[108].mxu1 %v10997_v50  ;;  %10260 = vmatprep.subr.bf16.mxu0 %v2847_v40  ;;  %v11060_v55 = vld [vmem:[#allocation11 + $0xe0] ss:$16 sps:$4 sm:$0xff]   ;;  %v11068_v50 = vld [vmem:[#allocation9 + $0x4] ss:$16 sps:$4 sm:$0xff]  }
 0x4cd   :  { %10261 = vmatpush3.bf16.msra.mxu0 %v2847_v40  ;;  %3105 = vmatprep.mubr.bf16.mxu1 %v10998_v12  ;;  %v11071_v12 = vld [vmem:[#allocation9 + $0x24] ss:$16 sps:$4 sm:$0xff]   ;;  %v11086_v40 = vld [vmem:[#allocation9 + $0x2c] ss:$16 sps:$4 sm:$0xff]  }
 0x4ce   :  { %10262 = vmatprep.subr.bf16.mxu0 %v2848_v53  ;;  %3593 = vmatpush1.bf16.msra.mxu1 %v11057_v1  ;;  %v11069_v1 = vld [vmem:[#allocation9 + $0x20] ss:$16 sps:$4 sm:$0xff]  }
 0x4cf   :  { %3594 = vmatprep.subr.bf16.mxu1 %v11065_v19  ;;  %v11084_v19 = vld [vmem:[#allocation9 + $0x28] ss:$16 sps:$4 sm:$0xff]  }
 0x4d1   :  { %10263 = vmatpush3.bf16.msra.mxu0 %v2848_v53  ;;  %v11066_v53 = vld [vmem:[#allocation9] ss:$16 sps:$4 sm:$0xff]  }
 0x4d2   :  { %3467 = vmatprep.subr.bf16.mxu0 %v11005_v9  ;;  %3595 = vmatpush1.bf16.msra.mxu1 %v11063_v15  ;;  %v11074_v9 = vld [vmem:[#allocation9 + $0x44] ss:$16 sps:$4 sm:$0xff]   ;;  %v11092_v15 = vld [vmem:[#allocation9 + $0x4c] ss:$16 sps:$4 sm:$0xff]  }
 0x4d3   :  { %3966 = vmatprep.subr.bf16.mxu1 %v11080_v56  ;;  %v11072_v56 = vld [vmem:[#allocation9 + $0x40] ss:$16 sps:$4 sm:$0xff]  }
 0x4d4   :  { %3106 = vmatmul.mubr.bf16.gmra.mrb[112].mxu1 %v11001_v13  ;;  %10265 = vmatmul.mubr.bf16.vlgmr.msra.gmra.mrb[112].mxu0 %v11002_v41  ;;  %v11090_v13 = vld [vmem:[#allocation9 + $0x48] ss:$16 sps:$4 sm:$0xff]   ;;  %v11077_v41 = vld [vmem:[#allocation9 + $0x64] ss:$16 sps:$4 sm:$0xff]  }
 0x4d5   :  { %3468 = vmatpush1.bf16.msra.mxu0 %v11003_v27  ;;  %3113 = vmatprep.mubr.bf16.mxu1 %v11015_v39  ;;  %v11075_v27 = vld [vmem:[#allocation9 + $0x60] ss:$16 sps:$4 sm:$0xff]   ;;  %v11093_v39 = vld [vmem:[#allocation9 + $0x68] ss:$16 sps:$4 sm:$0xff]  }
 0x4d6   :  { %3469 = vmatprep.subr.bf16.mxu0 %v11011_v22  ;;  %10268 = vmatprep.mubr.bf16.mxu0 %v11017_v24  ;;  %v11083_v22 = vld [vmem:[#allocation9 + $0x84] ss:$16 sps:$4 sm:$0xff]   ;;  %v11101_v24 = vld [vmem:[#allocation9 + $0x8c] ss:$16 sps:$4 sm:$0xff]  }
 0x4d9   :  { %3470 = vmatpush1.bf16.msra.mxu0 %v11009_v61  ;;  %v11081_v61 = vld [vmem:[#allocation9 + $0x80] ss:$16 sps:$4 sm:$0xff]  }
 0x4da   :  { %3471 = vmatprep.subr.bf16.mxu0 %v11022_v30  ;;  %v11099_v30 = vld [vmem:[#allocation9 + $0x88] ss:$16 sps:$4 sm:$0xff]  }
 0x4dc   :  { %3114 = vmatmul.mubr.bf16.gmra.mrb[116].mxu1 %v11018_v16  ;;  %10269 = vmatmul.mubr.bf16.gmra.mrb[116].mxu0 %v11019_v43  ;;  %v11089_v16 = vld [vmem:[#allocation9 + $0xa4] ss:$16 sps:$4 sm:$0xff]  }
 0x4dd   :  { %3472 = vmatpush1.bf16.msra.mxu0 %v11020_v32  ;;  %3121 = vmatprep.mubr.bf16.mxu1 %v11032_v23  ;;  %v11098_v43 = vld [vmem:[#allocation9 + $0xc4] ss:$16 sps:$4 sm:$0xff]   ;;  %v11096_v32 = vld [vmem:[#allocation9 + $0xc0] ss:$16 sps:$4 sm:$0xff]   ;;  %v11102_v23 = vld [vmem:[#allocation9 + $0xa8] ss:$16 sps:$4 sm:$0xff]  }
 0x4de   :  { %3473 = vmatprep.subr.bf16.mxu0 %v11028_v29  ;;  %10272 = vmatprep.mubr.bf16.mxu0 %v11034_v6  ;;  %v11104_v29 = vld [vmem:[#allocation9 + $0xac] ss:$16 sps:$4 sm:$0xff]  }
 0x4df   :  { %v11110_v6 = vld [vmem:[#allocation9 + $0xcc] ss:$16 sps:$4 sm:$0xff]  }
 0x4e1   :  { %3474 = vmatpush1.bf16.msra.mxu0 %v11026_v58  ;;  %v11111_v58 = vld [vmem:[#allocation9 + $0xe8] ss:$16 sps:$4 sm:$0xff]  }
 0x4e2   :  { %3475 = vmatprep.subr.bf16.mxu0 %v11039_v11 }
 0x4e4   :  { %3122 = vmatmul.mubr.bf16.gmra.mrb[120].mxu1 %v11035_v42  ;;  %10273 = vmatmul.mubr.bf16.gmra.mrb[120].mxu0 %v11036_v38 }
 0x4e5   :  { %3476 = vmatpush1.bf16.msra.mxu0 %v11037_v14  ;;  %3129 = vmatprep.mubr.bf16.mxu1 %v11049_v26 }
 0x4e6   :  { %3477 = vmatprep.subr.bf16.mxu0 %v11045_v62  ;;  %10276 = vmatprep.mubr.bf16.mxu0 %v11051_v18 }
 0x4e9   :  { %3478 = vmatpush1.bf16.msra.mxu0 %v11043_v44 }
 0x4ea   :  { %3479 = vmatprep.subr.bf16.mxu0 %v11056_v37 }
 0x4ec   :  { %3130 = vmatmul.mubr.bf16.gmra.mrb[124].mxu1 %v11052_v45  ;;  %10277 = vmatmul.mubr.bf16.gmra.mrb[124].mxu0 %v11053_v48 }
 0x4ed   :  { %3480 = vmatpush1.bf16.msra.mxu0 %v11054_v21  ;;  %3499 = vmatprep.mubr.bf16.mxu0 %v13502_v0 }
 0x4ee   :  { %3481 = vmatprep.subr.bf16.mxu0 %v11062_v52  ;;  %3612 = vmatprep.mubr.bf16.mxu1 %v13502_v0 }
 0x4f1   :  { %3482 = vmatpush1.bf16.msra.mxu0 %v11060_v55 }
 0x4f2   :  { %3853 = vmatprep.subr.bf16.mxu0 %v11068_v50 }
 0x4f4   :  { %3500 = vmatmul.mubr.bf16.vlgmr.msra.gmra.mrb[128].mxu0 %v12570_v36  ;;  %3613 = vmatmul.mubr.bf16.vlgmr.msra.gmra.mrb[128].mxu1 %v12570_v36  ;;  %v11095_v36 = vld [vmem:[#allocation9 + $0x6c] ss:$16 sps:$4 sm:$0xff]  }
 0x4f5   :  { %3509 = vmatprep.mubr.bf16.mxu0 %v13502_v0  ;;  %3622 = vmatprep.mubr.bf16.mxu1 %v13502_v0 }
 0x4f6   :  { %3854 = vmatpush1.bf16.msra.mxu0 %v11066_v53  ;;  %3967 = vmatpush1.bf16.msra.mxu1 %v11078_v59 }
 0x4f7   :  { %3855 = vmatprep.subr.bf16.mxu0 %v11071_v12  ;;  %3968 = vmatprep.subr.bf16.mxu1 %v11086_v40 }
 0x4fa   :  { %3856 = vmatpush1.bf16.msra.mxu0 %v11069_v1  ;;  %3969 = vmatpush1.bf16.msra.mxu1 %v11084_v19 }
 0x4fb   :  { %3857 = vmatprep.subr.bf16.mxu0 %v11074_v9  ;;  %3970 = vmatprep.subr.bf16.mxu1 %v11092_v15 }
 0x4fc   :  { %3510 = vmatmul.mubr.bf16.gmra.mrb[132].mxu0 %v12602_v49  ;;  %3623 = vmatmul.mubr.bf16.gmra.mrb[132].mxu1 %v12602_v49  ;;  %v11087_v49 = vld [vmem:[#allocation9 + $0xa0] ss:$16 sps:$4 sm:$0xff]  }
 0x4fd   :  { %3519 = vmatprep.mubr.bf16.mxu0 %v13502_v0  ;;  %3632 = vmatprep.mubr.bf16.mxu1 %v13502_v0 }
 0x4fe   :  { %3858 = vmatpush1.bf16.msra.mxu0 %v11072_v56  ;;  %3971 = vmatpush1.bf16.msra.mxu1 %v11090_v13 }
 0x4ff   :  { %3859 = vmatprep.subr.bf16.mxu0 %v11077_v41  ;;  %3972 = vmatprep.subr.bf16.mxu1 %v11095_v36 }
 0x502   :  { %3860 = vmatpush1.bf16.msra.mxu0 %v11075_v27  ;;  %3973 = vmatpush1.bf16.msra.mxu1 %v11093_v39 }
 0x503   :  { %3861 = vmatprep.subr.bf16.mxu0 %v11083_v22  ;;  %3974 = vmatprep.subr.bf16.mxu1 %v11101_v24 }
 0x504   :  { %3520 = vmatmul.mubr.bf16.gmra.mrb[136].mxu0 %v12615_v10  ;;  %3633 = vmatmul.mubr.bf16.gmra.mrb[136].mxu1 %v12615_v10  ;;  %v11105_v10 = vld [vmem:[#allocation9 + $0xe0] ss:$16 sps:$4 sm:$0xff]  }
 0x505   :  { %3529 = vmatprep.mubr.bf16.mxu0 %v13502_v0  ;;  %3642 = vmatprep.mubr.bf16.mxu1 %v13502_v0 }
 0x506   :  { %3862 = vmatpush1.bf16.msra.mxu0 %v11081_v61  ;;  %3975 = vmatpush1.bf16.msra.mxu1 %v11099_v30 }
 0x507   :  { %3863 = vmatprep.subr.bf16.mxu0 %v11089_v16  ;;  %3976 = vmatprep.subr.bf16.mxu1 %v11104_v29 }
 0x50a   :  { %3864 = vmatpush1.bf16.msra.mxu0 %v11087_v49  ;;  %3977 = vmatpush1.bf16.msra.mxu1 %v11102_v23 }
 0x50b   :  { %3865 = vmatprep.subr.bf16.mxu0 %v11098_v43  ;;  %3978 = vmatprep.subr.bf16.mxu1 %v11110_v6 }
 0x50c   :  { %3530 = vmatmul.mubr.bf16.gmra.mrb[140].mxu0 %v12632_v4  ;;  %3643 = vmatmul.mubr.bf16.gmra.mrb[140].mxu1 %v12632_v4  ;;  %v11107_v4 = vld [vmem:[#allocation9 + $0xe4] ss:$16 sps:$4 sm:$0xff]  }
 0x50d   :  { %3539 = vmatprep.mubr.bf16.mxu0 %v13502_v0  ;;  %3652 = vmatprep.mubr.bf16.mxu1 %v13502_v0 }
 0x50e   :  { %3866 = vmatpush1.bf16.msra.mxu0 %v11096_v32 }
 0x50f   :  { %3867 = vmatprep.subr.bf16.mxu0 %v11107_v4 }
 0x512   :  { %3868 = vmatpush1.bf16.msra.mxu0 %v11105_v10 }
 0x514   :  { %3540 = vmatmul.mubr.bf16.gmra.mrb[144].mxu0 %v12649_v17  ;;  %3653 = vmatmul.mubr.bf16.gmra.mrb[144].mxu1 %v12649_v17  ;;  %v11108_v17 = vld [vmem:[#allocation9 + $0xc8] ss:$16 sps:$4 sm:$0xff]  }
 0x515   :  { %3549 = vmatprep.mubr.bf16.mxu0 %v13502_v0  ;;  %3662 = vmatprep.mubr.bf16.mxu1 %v13502_v0 }
 0x516   :  { %3979 = vmatpush1.bf16.msra.mxu1 %v11108_v17 }
 0x51c   :  { %3550 = vmatmul.mubr.bf16.gmra.mrb[148].mxu0 %v12662_v5  ;;  %3663 = vmatmul.mubr.bf16.gmra.mrb[148].mxu1 %v12662_v5  ;;  %v11113_v5 = vld [vmem:[#allocation9 + $0xec] ss:$16 sps:$4 sm:$0xff]  }
 0x51d   :  { %3559 = vmatprep.mubr.bf16.mxu0 %v13502_v0  ;;  %3672 = vmatprep.mubr.bf16.mxu1 %v13502_v0 }
 0x51e   :  { %3980 = vmatprep.subr.bf16.mxu1 %v11113_v5 }
 0x51f   :  { %3981 = vmatpush1.bf16.msra.mxu1 %v11111_v58 }
 0x524   :  { %3560 = vmatmul.mubr.bf16.gmra.mrb[152].mxu0 %v12672_v34  ;;  %3673 = vmatmul.mubr.bf16.gmra.mrb[152].mxu1 %v12672_v34 }
 0x525   :  { %3569 = vmatprep.mubr.bf16.mxu0 %v13502_v0  ;;  %3682 = vmatprep.mubr.bf16.mxu1 %v13502_v0 }
 0x52c   :  { %3570 = vmatmul.mubr.bf16.gmra.mrb[156].mxu0 %v12682_v8  ;;  %3683 = vmatmul.mubr.bf16.gmra.mrb[156].mxu1 %v12682_v8 }
 0x52d   :  { %3885 = vmatprep.mubr.bf16.mxu0 %v13502_v0  ;;  %3998 = vmatprep.mubr.bf16.mxu1 %v13502_v0 }
 0x587   :  { %v9704_v34 = vpop.f32.mrb[96].mxu1 }
 0x588   :  { %v9705_v11 = vpop.f32.mrb[97].mxu1 }
 0x589   :  { %v9706_v42 = vadd.f32 %v9705_v11, %v9704_v34  ;;  %v9707_v38 = vpop.f32.mrb[98].mxu1 }
 0x58a   :  { %v9708_v14 = vpop.f32.mrb[99].mxu1 }
 0x58b   :  { %v9709_v26 = vadd.f32 %v9708_v14, %v9707_v38 }
 0x58f   :  { %v9710_v62 = vpop.f32.mrb[100].mxu1 }
 0x590   :  { %v9711_v18 = vpop.f32.mrb[101].mxu1 }
 0x591   :  { %v9712_v44 = vadd.f32 %v9711_v18, %v9710_v62  ;;  %v9713_v37 = vpop.f32.mrb[102].mxu1 }
 0x592   :  { %v9714_v8 = vpop.f32.mrb[103].mxu1 }
 0x593   :  { %v9715_v45 = vadd.f32 %v9714_v8, %v9713_v37 }
 0x597   :  { %v9716_v48 = vpop.f32.mrb[104].mxu1 }
 0x598   :  { %v9717_v21 = vpop.f32.mrb[105].mxu1 }
 0x599   :  { %v9718_v52 = vadd.f32 %v9717_v21, %v9716_v48  ;;  %v9719_v55 = vpop.f32.mrb[106].mxu1 }
 0x59a   :  { %v9720_v50 = vpop.f32.mrb[107].mxu1 }
 0x59b   :  { %v9721_v53 = vadd.f32 %v9720_v50, %v9719_v55 }
 0x59f   :  { %v9722_v59 = vpop.f32.mrb[108].mxu1 }
 0x5a0   :  { %v9723_v12 = vpop.f32.mrb[109].mxu1 }
 0x5a1   :  { %v9724_v40 = vadd.f32 %v9723_v12, %v9722_v59  ;;  %v9725_v1 = vpop.f32.mrb[110].mxu1 }
 0x5a2   :  { %v9726_v19 = vpop.f32.mrb[111].mxu1 }
 0x5a3   :  { %v9727_v9 = vadd.f32 %v9726_v19, %v9725_v1 }
 0x5a7   :  { %v10266_v15 = vpop.f32.mrb[112].mxu0  ;;  %v9728_v56 = vpop.f32.mrb[112].mxu1 }
 0x5a8   :  { %v3181_v13 = vadd.f32 %v10266_v15, %v9712_v44  ;;  %v3172_v41 = vpop.f32.mrb[113].mxu0  ;;  %v9729_v36 = vpop.f32.mrb[113].mxu1 }
 0x5a9   :  { %v3173_v27 = vadd.f32 %v9706_v42, %v3172_v41  ;;  %v10267_v39 = vpop.f32.mrb[114].mxu0  ;;  %v9730_v22 = vadd.f32 %v9729_v36, %v9728_v56  ;;  %v9731_v24 = vpop.f32.mrb[114].mxu1 }
 0x5aa   :  { %v3184_v61 = vadd.f32 %v10267_v39, %v9715_v45  ;;  %v3175_v30 = vpop.f32.mrb[115].mxu0  ;;  %v9732_v16 = vpop.f32.mrb[115].mxu1 }
 0x5ab   :  { %v3176_v49 = vadd.f32 %v9709_v26, %v3175_v30  ;;  %v9733_v43 = vadd.f32 %v9732_v16, %v9731_v24 }
 0x5ac   :  { %v3236_v32 = vpack.c.bf16 %v3184_v61, %v3181_v13 }
 0x5ad   :  { %v3235_v23 = vpack.c.bf16 %v3176_v49, %v3173_v27 }
 0x5af   :  { %3886 = vmatmul.mubr.bf16.vlgmr.msra.gmra.mrb[128].mxu0 %v3235_v23  ;;  %3999 = vmatmul.mubr.bf16.vlgmr.msra.gmra.mrb[128].mxu1 %v3235_v23  ;;  %v10270_v29 = vpop.f32.mrb[116].mxu0  ;;  %v9734_v10 = vpop.f32.mrb[116].mxu1 }
 0x5b0   :  { %v3197_v4 = vadd.f32 %v10270_v29, %v9724_v40  ;;  %v3188_v17 = vpop.f32.mrb[117].mxu0  ;;  %3895 = vmatprep.mubr.bf16.mxu0 %v13502_v0  ;;  %4008 = vmatprep.mubr.bf16.mxu1 %v13502_v0  ;;  %v9735_v6 = vpop.f32.mrb[117].mxu1 }
 0x5b1   :  { %v3189_v5 = vadd.f32 %v9718_v52, %v3188_v17  ;;  %v10271_v58 = vpop.f32.mrb[118].mxu0  ;;  %v9736_v34 = vadd.f32 %v9735_v6, %v9734_v10  ;;  %v9737_v11 = vpop.f32.mrb[118].mxu1  ;;  %v11114_v10 = vld [vmem:[#allocation8] sm:$0xff]   ;;  %v11115_v17 = vld [vmem:[#allocation8 + $0x8] sm:$0xff]  }
 0x5b2   :  { %v3200_v42 = vadd.f32 %v10271_v58, %v9727_v9  ;;  %v3191_v38 = vpop.f32.mrb[119].mxu0  ;;  %v9738_v14 = vpop.f32.mrb[119].mxu1  ;;  %10280 = vmatprep.subr.bf16.mxu0 %v11114_v10  ;;  %v11117_v6 = vld [vmem:[#allocation8 + $0x48] sm:$0xff]   ;;  %v11119_v58 = vld [vmem:[#allocation8 + $0x50] sm:$0xff]  }
 0x5b3   :  { %v3192_v26 = vadd.f32 %v9721_v53, %v3191_v38  ;;  %v9739_v62 = vadd.f32 %v9738_v14, %v9737_v11  ;;  %10281 = vmatpush3.bf16.msra.mxu0 %v11114_v10  ;;  %v11121_v11 = vld [vmem:[#allocation8 + $0x58] sm:$0xff]   ;;  %v11123_v38 = vld [vmem:[#allocation8 + $0x60] sm:$0xff]   ;;  %v11124_v14 = vld [vmem:[#allocation8 + $0x28] sm:$0xff]  }
 0x5b4   :  { %v3238_v18 = vpack.c.bf16 %v3200_v42, %v3197_v4  ;;  %v11116_v4 = vld [vmem:[#allocation8 + $0x40] sm:$0xff]   ;;  %10282 = vmatprep.subr.bf16.mxu0 %v11115_v17 }
 0x5b5   :  { %v3237_v44 = vpack.c.bf16 %v3192_v26, %v3189_v5  ;;  %10312 = vmatprep.subr.bf16.mxu1 %v11116_v4  ;;  %v11118_v5 = vld [vmem:[#allocation8 + $0x10] sm:$0xff]   ;;  %v11122_v42 = vld [vmem:[#allocation8 + $0x20] sm:$0xff]   ;;  %v11125_v26 = vld [vmem:[#allocation8 + $0x68] sm:$0xff]  }
 0x5b6   :  { %10313 = vmatpush3.bf16.msra.mxu1 %v11116_v4 }
 0x5b7   :  { %3896 = vmatmul.mubr.bf16.gmra.mrb[132].mxu0 %v3236_v32  ;;  %4009 = vmatmul.mubr.bf16.gmra.mrb[132].mxu1 %v3236_v32  ;;  %v10274_v37 = vpop.f32.mrb[120].mxu0  ;;  %v9740_v8 = vpop.f32.mrb[120].mxu1 }
 0x5b8   :  { %3905 = vmatprep.mubr.bf16.mxu0 %v13502_v0  ;;  %4018 = vmatprep.mubr.bf16.mxu1 %v13502_v0  ;;  %v3213_v45 = vadd.f32 %v10274_v37, %v9736_v34  ;;  %v3204_v48 = vpop.f32.mrb[121].mxu0  ;;  %v9741_v21 = vpop.f32.mrb[121].mxu1  ;;  %v11120_v34 = vld [vmem:[#allocation8 + $0x18] sm:$0xff]  }
 0x5b9   :  { %v3205_v52 = vadd.f32 %v9730_v22, %v3204_v48  ;;  %v10275_v55 = vpop.f32.mrb[122].mxu0  ;;  %v9742_v50 = vadd.f32 %v9741_v21, %v9740_v8  ;;  %v9743_v59 = vpop.f32.mrb[122].mxu1  ;;  %10283 = vmatpush3.bf16.msra.mxu0 %v11115_v17  ;;  %10314 = vmatprep.subr.bf16.mxu1 %v11117_v6  ;;  %v11129_v37 = vld [vmem:[#allocation8 + $0x78] sm:$0xff]   ;;  %v12742_v8 = vld [vmem:[#allocation8 + $0x80] sm:$0xff]   ;;  %v4080_v48 = vld [vmem:[#allocation12 + $0x8] sm:$0xff] }
 0x5ba   :  { %v3216_v12 = vadd.f32 %v10275_v55, %v9739_v62  ;;  %v3207_v53 = vpop.f32.mrb[123].mxu0  ;;  %v9744_v40 = vpop.f32.mrb[123].mxu1  ;;  %10315 = vmatpush3.bf16.msra.mxu1 %v11117_v6  ;;  %10284 = vmatprep.subr.bf16.mxu0 %v11118_v5  ;;  %v11126_v62 = vld [vmem:[#allocation8 + $0x30] sm:$0xff]   ;;  %v4083_v55 = vld [vmem:[#allocation12 + $0x20] sm:$0xff] }
 0x5bb   :  { %v3208_v1 = vadd.f32 %v9733_v43, %v3207_v53  ;;  %v9745_v19 = vadd.f32 %v9744_v40, %v9743_v59  ;;  %10316 = vmatprep.subr.bf16.mxu1 %v11119_v58  ;;  %v4084_v53 = vld [vmem:[#allocation12 + $0x28] sm:$0xff] }
 0x5bc   :  { %v3240_v9 = vpack.c.bf16 %v3216_v12, %v3213_v45  ;;  %v4079_v45 = vld [vmem:[#allocation12] sm:$0xff] }
 0x5bd   :  { %v3239_v15 = vpack.c.bf16 %v3208_v1, %v3205_v52  ;;  %10285 = vmatpush3.bf16.msra.mxu0 %v11118_v5 }
 0x5be   :  { %10317 = vmatpush3.bf16.msra.mxu1 %v11119_v58  ;;  %10286 = vmatprep.subr.bf16.mxu0 %v11120_v34 }
 0x5bf   :  { %3906 = vmatmul.mubr.bf16.gmra.mrb[136].mxu0 %v3237_v44  ;;  %4019 = vmatmul.mubr.bf16.gmra.mrb[136].mxu1 %v3237_v44  ;;  %v9746_v56 = vpop.f32.mrb[124].mxu1  ;;  %v10278_v13 = vpop.f32.mrb[124].mxu0  ;;  %v11128_v44 = vld [vmem:[#allocation8 + $0x38] sm:$0xff]  }
 0x5c0   :  { %3915 = vmatprep.mubr.bf16.mxu0 %v13502_v0  ;;  %4028 = vmatprep.mubr.bf16.mxu1 %v13502_v0  ;;  %v9747_v41 = vpop.f32.mrb[125].mxu1  ;;  %v3220_v36 = vpop.f32.mrb[125].mxu0 }
 0x5c1   :  { %v9748_v27 = vadd.f32 %v9747_v41, %v9746_v56  ;;  %v9749_v39 = vpop.f32.mrb[126].mxu1  ;;  %v3221_v22 = vadd.f32 %v9742_v50, %v3220_v36  ;;  %v10279_v24 = vpop.f32.mrb[126].mxu0  ;;  %10318 = vmatprep.subr.bf16.mxu1 %v11121_v11  ;;  %10287 = vmatpush3.bf16.msra.mxu0 %v11120_v34 }
 0x5c2   :  { %v9750_v61 = vpop.f32.mrb[127].mxu1  ;;  %v3223_v30 = vpop.f32.mrb[127].mxu0  ;;  %10319 = vmatpush3.bf16.msra.mxu1 %v11121_v11  ;;  %10288 = vmatprep.subr.bf16.mxu0 %v11122_v42 }
 0x5c3   :  { %v3229_v16 = vadd.f32 %v10278_v13, %v9748_v27  ;;  %v9751_v49 = vadd.f32 %v9750_v61, %v9749_v39  ;;  %v3224_v43 = vadd.f32 %v9745_v19, %v3223_v30  ;;  %10320 = vmatprep.subr.bf16.mxu1 %v11123_v38 }
 0x5c5   :  { %v3232_v32 = vadd.f32 %v10279_v24, %v9751_v49  ;;  %v3241_v23 = vpack.c.bf16 %v3224_v43, %v3221_v22  ;;  %10289 = vmatpush3.bf16.msra.mxu0 %v11122_v42  ;;  %v4087_v22 = vld [vmem:[#allocation12 + $0x40] sm:$0xff]  ;;  %v4088_v24 = vld [vmem:[#allocation12 + $0x48] sm:$0xff] }
 0x5c6   :  { %10321 = vmatpush3.bf16.msra.mxu1 %v11123_v38  ;;  %10290 = vmatprep.subr.bf16.mxu0 %v11124_v14  ;;  %v4095_v38 = vld [vmem:[#allocation12 + $0x80] sm:$0xff] }
 0x5c7   :  { %3916 = vmatmul.mubr.bf16.gmra.mrb[140].mxu0 %v3238_v18  ;;  %4029 = vmatmul.mubr.bf16.gmra.mrb[140].mxu1 %v3238_v18  ;;  %v3242_v29 = vpack.c.bf16 %v3232_v32, %v3229_v16  ;;  %v11127_v18 = vld [vmem:[#allocation8 + $0x70] sm:$0xff]   ;;  %v4091_v16 = vld [vmem:[#allocation12 + $0x60] sm:$0xff] }
 0x5c8   :  { %3925 = vmatprep.mubr.bf16.mxu0 %v13502_v0  ;;  %4038 = vmatprep.mubr.bf16.mxu1 %v13502_v0 }
 0x5c9   :  { %10322 = vmatprep.subr.bf16.mxu1 %v11125_v26  ;;  %10291 = vmatpush3.bf16.msra.mxu0 %v11124_v14 }
 0x5ca   :  { %10323 = vmatpush3.bf16.msra.mxu1 %v11125_v26  ;;  %10292 = vmatprep.subr.bf16.mxu0 %v11126_v62 }
 0x5cb   :  { %10324 = vmatprep.subr.bf16.mxu1 %v11127_v18 }
 0x5cd   :  { %10293 = vmatpush3.bf16.msra.mxu0 %v11126_v62  ;;  %v4096_v62 = vld [vmem:[#allocation12 + $0x88] sm:$0xff] }
 0x5ce   :  { %10325 = vmatpush3.bf16.msra.mxu1 %v11127_v18  ;;  %10294 = vmatprep.subr.bf16.mxu0 %v11128_v44 }
 0x5cf   :  { %3926 = vmatmul.mubr.bf16.gmra.mrb[144].mxu0 %v3239_v15  ;;  %4039 = vmatmul.mubr.bf16.gmra.mrb[144].mxu1 %v3239_v15 }
 0x5d0   :  { %3935 = vmatprep.mubr.bf16.mxu0 %v13502_v0  ;;  %4048 = vmatprep.mubr.bf16.mxu1 %v13502_v0 }
 0x5d1   :  { %10326 = vmatprep.subr.bf16.mxu1 %v11129_v37  ;;  %10295 = vmatpush3.bf16.msra.mxu0 %v11128_v44 }
 0x5d2   :  { %10327 = vmatpush3.bf16.msra.mxu1 %v11129_v37  ;;  %10344 = vmatprep.subr.bf16.mxu0 %v12742_v8 }
 0x5d7   :  { %3936 = vmatmul.mubr.bf16.gmra.mrb[148].mxu0 %v3240_v9  ;;  %4049 = vmatmul.mubr.bf16.gmra.mrb[148].mxu1 %v3240_v9 }
 0x5d8   :  { %3945 = vmatprep.mubr.bf16.mxu0 %v13502_v0  ;;  %4058 = vmatprep.mubr.bf16.mxu1 %v13502_v0 }
 0x5df   :  { %3946 = vmatmul.mubr.bf16.gmra.mrb[152].mxu0 %v3241_v23  ;;  %4059 = vmatmul.mubr.bf16.gmra.mrb[152].mxu1 %v3241_v23  ;;  %v4092_v23 = vld [vmem:[#allocation12 + $0x68] sm:$0xff] }
 0x5e0   :  { %3955 = vmatprep.mubr.bf16.mxu0 %v13502_v0  ;;  %4068 = vmatprep.mubr.bf16.mxu1 %v13502_v0 }
 0x5e7   :  { %3956 = vmatmul.mubr.bf16.gmra.mrb[156].mxu0 %v3242_v29  ;;  %4069 = vmatmul.mubr.bf16.gmra.mrb[156].mxu1 %v3242_v29 }
 0x682   :  { %v3887_v21 = vpop.f32.mrb[128].mxu0  ;;  %v12745_v52 = vpop.f32.mrb[128].mxu1 }
 0x683   :  { %v4143_v50 = vadd.f32 %v4079_v45, %v3887_v21  ;;  %v3889_v59 = vpop.f32.mrb[129].mxu0  ;;  %v12747_v12 = vpop.f32.mrb[129].mxu1 }
 0x684   :  { %v4144_v40 = vadd.f32 %v4080_v48, %v3889_v59  ;;  %v3891_v1 = vpop.f32.mrb[130].mxu0  ;;  %v12749_v19 = vpop.f32.mrb[130].mxu1  ;;  %v4099_v48 = vld [vmem:[#allocation12 + $0xa0] sm:$0xff] }
 0x685   :  { %v9192_v9 = vmul.f32 -1.442695, %v4143_v50  ;;  %v4147_v15 = vadd.f32 %v4083_v55, %v3891_v1  ;;  %v3893_v56 = vpop.f32.mrb[131].mxu0  ;;  %v12751_v13 = vpop.f32.mrb[131].mxu1 }
 0x686   :  { %v9208_v41 = vmul.f32 -1.442695, %v4144_v40  ;;  %v4148_v36 = vadd.f32 %v4084_v53, %v3893_v56  ;;  %v4100_v40 = vld [vmem:[#allocation12 + $0xa8] sm:$0xff] }
 0x687   :  { %11578 = vpow2.f32 %v9192_v9  ;;  %v9193_v27 = vmul.f32 -1.442695, %v4147_v15 }
 0x688   :  { %11580 = vpow2.f32 %v9208_v41  ;;  %v9209_v39 = vmul.f32 -1.442695, %v4148_v36 }
 0x689   :  { %11582 = vpow2.f32 %v9193_v27 }
 0x68a   :  { %v3897_v61 = vpop.f32.mrb[132].mxu0  ;;  %v12753_v30 = vpop.f32.mrb[132].mxu1  ;;  %11584 = vpow2.f32 %v9209_v39 }
 0x68b   :  { %v4151_v49 = vadd.f32 %v4087_v22, %v3897_v61  ;;  %v3899_v43 = vpop.f32.mrb[133].mxu0  ;;  %v12755_v32 = vpop.f32.mrb[133].mxu1 }
 0x68c   :  { %v4152_v29 = vadd.f32 %v4088_v24, %v3899_v43  ;;  %v3901_v10 = vpop.f32.mrb[134].mxu0  ;;  %v12757_v4 = vpop.f32.mrb[134].mxu1  ;;  %v4103_v43 = vld [vmem:[#allocation12 + $0xc0] sm:$0xff] }
 0x68d   :  { %v9194_v17 = vmul.f32 -1.442695, %v4151_v49  ;;  %v4155_v6 = vadd.f32 %v4091_v16, %v3901_v10  ;;  %v3903_v5 = vpop.f32.mrb[135].mxu0  ;;  %v12759_v58 = vpop.f32.mrb[135].mxu1  ;;  %v4104_v10 = vld [vmem:[#allocation12 + $0xc8] sm:$0xff] }
 0x68e   :  { %v9210_v34 = vmul.f32 -1.442695, %v4152_v29  ;;  %v4156_v11 = vadd.f32 %v4092_v23, %v3903_v5 }
 0x68f   :  { %11586 = vpow2.f32 %v9194_v17  ;;  %v9195_v42 = vmul.f32 -1.442695, %v4155_v6  ;;  %v4082_v6 = vld [vmem:[#allocation12 + $0x18] sm:$0xff] }
 0x690   :  { %11588 = vpow2.f32 %v9210_v34  ;;  %v9211_v26 = vmul.f32 -1.442695, %v4156_v11 }
 0x691   :  { %v11579_v14 = vpop.eup %11578  ;;  %11590 = vpow2.f32 %v9195_v42  ;;  %v4107_v42 = vld [vmem:[#allocation12 + $0xe0] sm:$0xff] }
 0x692   :  { %v11581_v18 = vpop.eup %11580  ;;  %v4255_v44 = vadd.f32 1.0, %v11579_v14  ;;  %v3907_v37 = vpop.f32.mrb[136].mxu0  ;;  %v4081_v14 = vld [vmem:[#allocation12 + $0x10] sm:$0xff] }
 0x693   :  { %v12761_v45 = vpop.f32.mrb[136].mxu1  ;;  %v11583_v21 = vpop.eup %11582  ;;  %v4351_v55 = vadd.f32 1.0, %v11581_v18  ;;  %v4159_v50 = vadd.f32 %v4095_v38, %v3907_v37  ;;  %v4108_v37 = vld [vmem:[#allocation12 + $0xe8] sm:$0xff] }
 0x694   :  { %v3909_v59 = vpop.f32.mrb[137].mxu0  ;;  %v12763_v53 = vpop.f32.mrb[137].mxu1  ;;  %11592 = vrcp.f32 %v4255_v44  ;;  %v4256_v1 = vadd.f32 1.0, %v11583_v21 }
 0x695   :  { %v4160_v9 = vadd.f32 %v4096_v62, %v3909_v59  ;;  %v3911_v15 = vpop.f32.mrb[138].mxu0  ;;  %v12765_v56 = vpop.f32.mrb[138].mxu1  ;;  %11594 = vpow2.f32 %v9211_v26  ;;  %v9196_v41 = vmul.f32 -1.442695, %v4159_v50 }
 0x696   :  { %v4163_v36 = vadd.f32 %v4099_v48, %v3911_v15  ;;  %v3913_v27 = vpop.f32.mrb[139].mxu0  ;;  %v12767_v39 = vpop.f32.mrb[139].mxu1  ;;  %11596 = vrcp.f32 %v4256_v1  ;;  %v4086_v48 = vld [vmem:[#allocation12 + $0x38] sm:$0xff] }
 0x697   :  { %v11585_v22 = vpop.eup %11584  ;;  %v9212_v24 = vmul.f32 -1.442695, %v4160_v9  ;;  %v4164_v61 = vadd.f32 %v4100_v40, %v3913_v27  ;;  %11598 = vrcp.f32 %v4351_v55  ;;  %v4146_v40 = vadd.f32 %v4082_v6, %v12747_v12 }
 0x698   :  { %v9197_v16 = vmul.f32 -1.442695, %v4163_v36  ;;  %11600 = vpow2.f32 %v9196_v41  ;;  %v4352_v29 = vadd.f32 1.0, %v11585_v22  ;;  %v4145_v27 = vadd.f32 %v4081_v14, %v12745_v52  ;;  %v4085_v22 = vld [vmem:[#allocation12 + $0x30] sm:$0xff] }
 0x699   :  { %v9213_v49 = vmul.f32 -1.442695, %v4164_v61  ;;  %v11587_v23 = vpop.eup %11586  ;;  %11602 = vpow2.f32 %v9212_v24 }
 0x69a   :  { %v11589_v17 = vpop.eup %11588  ;;  %v4257_v5 = vadd.f32 1.0, %v11587_v23  ;;  %11604 = vpow2.f32 %v9197_v16  ;;  %v3917_v34 = vpop.f32.mrb[140].mxu0 }
 0x69b   :  { %v12769_v11 = vpop.f32.mrb[140].mxu1  ;;  %v11591_v38 = vpop.eup %11590  ;;  %v4353_v26 = vadd.f32 1.0, %v11589_v17  ;;  %11606 = vpow2.f32 %v9213_v49  ;;  %v4167_v62 = vadd.f32 %v4103_v43, %v3917_v34  ;;  %v4150_v43 = vadd.f32 %v4086_v48, %v12751_v13  ;;  %v4112_v34 = vld [vmem:[#allocation12 + $0x108] sm:$0xff] }
 0x69c   :  { %v3919_v18 = vpop.f32.mrb[141].mxu0  ;;  %v12771_v44 = vpop.f32.mrb[141].mxu1  ;;  %11608 = vrcp.f32 %v4257_v5  ;;  %v4258_v21 = vadd.f32 1.0, %v11591_v38  ;;  %v4149_v5 = vadd.f32 %v4085_v22, %v12749_v19  ;;  %v4090_v38 = vld [vmem:[#allocation12 + $0x58] sm:$0xff] }
 0x69d   :  { %v4168_v55 = vadd.f32 %v4104_v10, %v3919_v18  ;;  %v3921_v50 = vpop.f32.mrb[142].mxu0  ;;  %v12773_v59 = vpop.f32.mrb[142].mxu1  ;;  %11610 = vrcp.f32 %v4352_v29  ;;  %v9198_v1 = vmul.f32 -1.442695, %v4167_v62  ;;  %v4111_v10 = vld [vmem:[#allocation12 + $0x100] sm:$0xff] }
 0x69e   :  { %v4171_v9 = vadd.f32 %v4107_v42, %v3921_v50  ;;  %v3923_v15 = vpop.f32.mrb[143].mxu0  ;;  %v12776_v41 = vpop.f32.mrb[143].mxu1  ;;  %11612 = vrcp.f32 %v4258_v21 }
 0x69f   :  { %v11593_v36 = vpop.eup %11592  ;;  %v9214_v24 = vmul.f32 -1.442695, %v4168_v55  ;;  %v4172_v61 = vadd.f32 %v4108_v37, %v3923_v15  ;;  %11614 = vrcp.f32 %v4353_v26  ;;  %v4089_v37 = vld [vmem:[#allocation12 + $0x50] sm:$0xff] }
 0x6a0   :  { %v11595_v16 = vpop.eup %11594  ;;  %v4399_v49 = vmul.f32 %v11593_v36, %v4146_v40  ;;  %v9199_v23 = vmul.f32 -1.442695, %v4171_v9  ;;  %11616 = vpow2.f32 %v9198_v1  ;;  %v4094_v40 = vld [vmem:[#allocation12 + $0x78] sm:$0xff] }
 0x6a1   :  { %v11597_v12 = vpop.eup %11596  ;;  %v9215_v29 = vmul.f32 -1.442695, %v4172_v61  ;;  %11618 = vpow2.f32 %v9214_v24  ;;  %v4354_v14 = vadd.f32 1.0, %v11595_v16 }
 0x6a2   :  { %v12780_v17 = vpop.eup %11598  ;;  %v4415_v6 = vadd.f32 %v4399_v49, %v4145_v27  ;;  %v4400_v52 = vmul.f32 %v11597_v12, %v4150_v43  ;;  %11620 = vpow2.f32 %v9199_v23  ;;  %v3927_v62 = vpop.f32.mrb[144].mxu0  ;;  %v4154_v27 = vadd.f32 %v4090_v38, %v12755_v32  ;;  %v4093_v23 = vld [vmem:[#allocation12 + $0x70] sm:$0xff] }
 0x6a3   :  { %v11601_v42 = vpop.eup %11600  ;;  %v12783_v13 = vpop.f32.mrb[144].mxu1  ;;  %v4175_v21 = vadd.f32 %v4111_v10, %v3927_v62  ;;  %v4153_v43 = vadd.f32 %v4089_v37, %v12753_v30  ;;  %v4157_v62 = vadd.f32 %v4093_v23, %v12757_v4  ;;  %v4119_v37 = vld [vmem:[#allocation12 + $0x140] sm:$0xff] }
 0x6a4   :  { %v11603_v26 = vpop.eup %11602  ;;  %11622 = vtanh.f32 %v4415_v6  ;;  %v4416_v18 = vadd.f32 %v4400_v52, %v4149_v5  ;;  %v4259_v48 = vadd.f32 1.0, %v11601_v42  ;;  %v3929_v55 = vpop.f32.mrb[145].mxu0  ;;  %v4158_v6 = vadd.f32 %v4094_v40, %v12759_v58  ;;  %v4115_v52 = vld [vmem:[#allocation12 + $0x120] sm:$0xff] }
 0x6a5   :  { %v12785_v50 = vpop.f32.mrb[145].mxu1  ;;  %v11605_v19 = vpop.eup %11604  ;;  %11624 = vpow2.f32 %v9215_v29  ;;  %v4176_v1 = vadd.f32 %v4112_v34, %v3929_v55  ;;  %v4355_v22 = vadd.f32 1.0, %v11603_v26  ;;  %v9200_v12 = vmul.f32 -1.442695, %v4175_v21  ;;  %v4097_v26 = vld [vmem:[#allocation12 + $0x90] sm:$0xff]  ;;  %v4116_v21 = vld [vmem:[#allocation12 + $0x128] sm:$0xff] }
 0x6a6   :  { %v3931_v9 = vpop.f32.mrb[146].mxu0  ;;  %v12787_v15 = vpop.f32.mrb[146].mxu1  ;;  %11626 = vtanh.f32 %v4416_v18  ;;  %v4260_v24 = vadd.f32 1.0, %v11605_v19  ;;  %v4098_v18 = vld [vmem:[#allocation12 + $0x98] sm:$0xff] }
 0x6a7   :  { %v11607_v36 = vpop.eup %11606  ;;  %v3933_v61 = vpop.f32.mrb[147].mxu0  ;;  %11628 = vrcp.f32 %v4259_v48  ;;  %v9216_v34 = vmul.f32 -1.442695, %v4176_v1 }
 0x6a8   :  { %v12790_v16 = vpop.f32.mrb[147].mxu1  ;;  %v11609_v49 = vpop.eup %11608  ;;  %11630 = vrcp.f32 %v4354_v14  ;;  %v4356_v5 = vadd.f32 1.0, %v11607_v36  ;;  %v4179_v14 = vadd.f32 %v4115_v52, %v3931_v9 }
 0x6a9   :  { %v12793_v29 = vpop.eup %11610  ;;  %v4401_v10 = vmul.f32 %v11609_v49, %v4154_v27  ;;  %11632 = vrcp.f32 %v4260_v24  ;;  %v4161_v24 = vadd.f32 %v4097_v26, %v12761_v45  ;;  %v4102_v49 = vld [vmem:[#allocation12 + $0xb8] sm:$0xff] }
 0x6aa   :  { %v11613_v32 = vpop.eup %11612  ;;  %11634 = vrcp.f32 %v4355_v22  ;;  %v3937_v58 = vpop.f32.mrb[148].mxu0  ;;  %v4162_v22 = vadd.f32 %v4098_v18, %v12763_v53  ;;  %v4448_v45 = vsub.f32 1.0, %v12793_v29  ;;  %v9201_v53 = vmul.f32 -1.442695, %v4179_v14 }
 0x6ab   :  { %v12796_v42 = vpop.eup %11614  ;;  %v4417_v38 = vadd.f32 %v4401_v10, %v4153_v43  ;;  %v4402_v30 = vmul.f32 %v11613_v32, %v4158_v6  ;;  %11636 = vpow2.f32 %v9200_v12  ;;  %v12799_v55 = vpop.f32.mrb[148].mxu1  ;;  %v4183_v43 = vadd.f32 %v4119_v37, %v3937_v58 }
 0x6ac   :  { %v11617_v48 = vpop.eup %11616  ;;  %11638 = vrcp.f32 %v4356_v5  ;;  %v3939_v36 = vpop.f32.mrb[149].mxu0  ;;  %v4180_v5 = vadd.f32 %v4116_v21, %v3933_v61  ;;  %v4479_v18 = vmul.f32 %v12780_v17, %v12546_v51  ;;  %v4123_v61 = vld [vmem:[#allocation12 + $0x160] sm:$0xff]  ;;  %v4101_v21 = vld [vmem:[#allocation12 + $0xb0] sm:$0xff] }
 0x6ad   :  { %v11619_v19 = vpop.eup %11618  ;;  %v4418_v40 = vadd.f32 %v4402_v30, %v4157_v62  ;;  %v4261_v1 = vadd.f32 1.0, %v11617_v48  ;;  %v12801_v27 = vpop.f32.mrb[149].mxu1  ;;  %11640 = vpow2.f32 %v9216_v34  ;;  %v4447_v30 = vsub.f32 1.0, %v12780_v17  ;;  %v4120_v34 = vld [vmem:[#allocation12 + $0x148] sm:$0xff] }
 0x6ae   :  { %v11621_v4 = vpop.eup %11620  ;;  %v3941_v9 = vpop.f32.mrb[150].mxu0  ;;  %11642 = vtanh.f32 %v4417_v38  ;;  %v4357_v10 = vadd.f32 1.0, %v11619_v19  ;;  %v4166_v38 = vadd.f32 %v4102_v49, %v12767_v39  ;;  %v9202_v58 = vmul.f32 -1.442695, %v4183_v43 }
 0x6af   :  { %v12805_v23 = vpop.f32.mrb[150].mxu1  ;;  %v11623_v12 = vpop.eup %11622  ;;  %v4262_v6 = vadd.f32 1.0, %v11621_v4  ;;  %11644 = vrcp.f32 %v4261_v1  ;;  %v9217_v14 = vmul.f32 -1.442695, %v4180_v5  ;;  %v4184_v28 = vadd.f32 %v4120_v34, %v3939_v36 }
 0x6b0   :  { %v3943_v52 = vpop.f32.mrb[151].mxu0  ;;  %v12807_v32 = vpop.f32.mrb[151].mxu1  ;;  %11646 = vtanh.f32 %v4418_v40  ;;  %v4463_v19 = vmul.f32 %v11623_v12, %v4447_v30  ;;  %v4187_v51 = vadd.f32 %v4123_v61, %v3941_v9  ;;  %v4165_v12 = vadd.f32 %v4101_v21, %v12765_v56  ;;  %v4106_v30 = vld [vmem:[#allocation12 + $0xd8] sm:$0xff]  ;;  %v4128_v21 = vld [vmem:[#allocation12 + $0x188] sm:$0xff] }
 0x6b1   :  { %v11625_v62 = vpop.eup %11624  ;;  %11648 = vrcp.f32 %v4262_v6 }
 0x6b2   :  { %v11627_v26 = vpop.eup %11626  ;;  %v4358_v37 = vadd.f32 1.0, %v11625_v62  ;;  %11650 = vrcp.f32 %v4357_v10  ;;  %v3947_v17 = vpop.f32.mrb[152].mxu0  ;;  %v12818_v40 = vadd.f32 %v4479_v18, %v4463_v19  ;;  %v4105_v62 = vld [vmem:[#allocation12 + $0xd0] sm:$0xff]  ;;  %v4480_v19 = vmul.f32 %v12793_v29, %v12548_v31 }
 0x6b3   :  { %v11629_v48 = vpop.eup %11628  ;;  %v4464_v4 = vmul.f32 %v11627_v26, %v4448_v45  ;;  %11652 = vpow2.f32 %v9201_v53  ;;  %v12816_v39 = vpop.f32.mrb[152].mxu1  ;;  %v4191_v9 = vadd.f32 %v4127_v7, %v3947_v17  ;;  %v4169_v61 = vadd.f32 %v4105_v62, %v12769_v11 }
 0x6b4   :  { %v12814_v0 = vpop.eup %11630  ;;  %v4403_v1 = vmul.f32 %v11629_v48, %v4162_v22  ;;  %11654 = vrcp.f32 %v4358_v37  ;;  %v4124_v22 = vld [vmem:[#allocation12 + $0x168] sm:$0xff]  ;;  %v3949_v10 = vpop.f32.mrb[153].mxu0  ;;  %v9203_v48 = vmul.f32 -1.442695, %v4187_v51  ;;  %v4113_v51 = vld [vmem:[#allocation12 + $0x110] sm:$0xff] }
 0x6b5   :  { %v11633_v25 = vpop.eup %11632  ;;  %v12823_v36 = vpop.f32.mrb[153].mxu1  ;;  %11656 = vpow2.f32 %v9202_v58  ;;  %v4188_v7 = vadd.f32 %v4124_v22, %v3943_v52  ;;  %v4192_v62 = vadd.f32 %v4128_v21, %v3949_v10  ;;  %v4131_v22 = vld [vmem:[#allocation12 + $0x1a0] sm:$0xff]  ;;  %v12841_v31 = vadd.f32 %v4480_v19, %v4464_v4 }
 0x6b6   :  { %v12820_v49 = vpop.eup %11634  ;;  %v4419_v43 = vadd.f32 %v4403_v1, %v4161_v24  ;;  %v4404_v6 = vmul.f32 %v11633_v25, %v4166_v38  ;;  %v3951_v45 = vpop.f32.mrb[154].mxu0  ;;  %v4110_v24 = vld [vmem:[#allocation12 + $0xf8] sm:$0xff]  ;;  %11658 = vpow2.f32 %v9217_v14  ;;  %v9218_v25 = vmul.f32 -1.442695, %v4184_v28  ;;  %v4109_v14 = vld [vmem:[#allocation12 + $0xf0] sm:$0xff]  ;;  %v4135_v4 = vld [vmem:[#allocation12 + $0x1c0] sm:$0xff] }
 0x6b7   :  { %v11637_v5 = vpop.eup %11636  ;;  %v12825_v53 = vpop.f32.mrb[154].mxu1  ;;  %v4170_v1 = vadd.f32 %v4106_v30, %v12771_v44  ;;  %13517 = vst [vmem:[#allocation23_spill] sm:$0xff] %v12841_v31  ;;  %v4173_v44 = vadd.f32 %v4109_v14, %v12773_v59  ;;  %v12850_v10 = vpack.c.bf16 %v12841_v31, %v12818_v40  ;;  %v4195_v21 = vadd.f32 %v4131_v22, %v3951_v45 }
 0x6b8   :  { %v12827_v34 = vpop.eup %11638  ;;  %v4420_v26 = vadd.f32 %v4404_v6, %v4165_v12  ;;  %v4263_v18 = vadd.f32 1.0, %v11637_v5  ;;  %v12829_v56 = vpop.f32.mrb[155].mxu0  ;;  %11660 = vtanh.f32 %v4419_v43  ;;  %v4449_v12 = vsub.f32 1.0, %v12796_v42 }
 0x6b9   :  { %v12831_v38 = vpop.f32.mrb[155].mxu1  ;;  %v11641_v37 = vpop.eup %11640  ;;  %v4174_v6 = vadd.f32 %v4110_v24, %v12776_v41  ;;  %v9204_v43 = vmul.f32 -1.442695, %v4191_v9  ;;  %v9219_v5 = vmul.f32 -1.442695, %v4188_v7  ;;  %v4177_v7 = vadd.f32 %v4113_v51, %v12783_v13  ;;  %10296 = vmatprep.mubr.bf16.mxu0 %v12850_v10  ;;  %10328 = vmatprep.mubr.bf16.mxu1 %v12850_v10 }
 0x6ba   :  { %v11643_v58 = vpop.eup %11642  ;;  %11662 = vtanh.f32 %v4420_v26  ;;  %v4359_v28 = vadd.f32 1.0, %v11641_v37  ;;  %v3957_v30 = vpop.f32.mrb[156].mxu0  ;;  %v4114_v37 = vld [vmem:[#allocation12 + $0x118] sm:$0xff]  ;;  %v4481_v45 = vmul.f32 %v12796_v42, %v12579_v54  ;;  %v4450_v22 = vsub.f32 1.0, %v12814_v0 }
 0x6bb   :  { %v11645_v17 = vpop.eup %11644  ;;  %11664 = vrcp.f32 %v4263_v18  ;;  %v12844_v26 = vpop.f32.mrb[156].mxu1  ;;  %v4465_v41 = vmul.f32 %v11643_v58, %v4449_v12  ;;  %v4132_v58 = vld [vmem:[#allocation12 + $0x1a8] sm:$0xff]  ;;  %v4452_v42 = vsub.f32 1.0, %v12827_v34 }
 0x6bc   :  { %v12839_v11 = vpop.eup %11646  ;;  %v4405_v52 = vmul.f32 %v11645_v17, %v4170_v1  ;;  %11666 = vpow2.f32 %v9218_v25  ;;  %v12852_v25 = vpop.f32.mrb[157].mxu0  ;;  %v9220_v17 = vmul.f32 -1.442695, %v4192_v62 }
 0x6bd   :  { %v11649_v29 = vpop.eup %11648  ;;  %11668 = vpow2.f32 %v9203_v48  ;;  %v12854_v59 = vpop.f32.mrb[157].mxu1 }
 0x6be   :  { %v12846_v24 = vpop.eup %11650  ;;  %v4421_v9 = vadd.f32 %v4405_v52, %v4169_v61  ;;  %v4406_v18 = vmul.f32 %v11649_v29, %v4174_v6  ;;  %11670 = vrcp.f32 %v4359_v28  ;;  %v3961_v19 = vpop.f32.mrb[158].mxu0  ;;  %v4199_v52 = vadd.f32 %v4135_v4, %v3957_v30 }
 0x6bf   :  { %v11653_v48 = vpop.eup %11652  ;;  %11672 = vpow2.f32 %v9204_v43  ;;  %v12857_v61 = vpop.f32.mrb[158].mxu1  ;;  %v4178_v43 = vadd.f32 %v4114_v37, %v12785_v50  ;;  %v4196_v29 = vadd.f32 %v4132_v58, %v12829_v56  ;;  %v4483_v50 = vmul.f32 %v12820_v49, %v12606_v60  ;;  %v4139_v37 = vld [vmem:[#allocation12 + $0x1e0] sm:$0xff] }
 0x6c0   :  { %v12859_v1 = vpop.eup %11654  ;;  %11674 = vtanh.f32 %v4421_v9  ;;  %v4422_v14 = vadd.f32 %v4406_v18, %v4173_v44  ;;  %v4264_v28 = vadd.f32 1.0, %v11653_v48  ;;  %v12863_v12 = vpop.f32.mrb[159].mxu0  ;;  %v4482_v9 = vmul.f32 %v12814_v0, %v12596_v35 }
 0x6c1   :  { %v12865_v6 = vpop.f32.mrb[159].mxu1  ;;  %v11657_v13 = vpop.eup %11656  ;;  %11676 = vpow2.f32 %v9219_v5  ;;  %v4451_v18 = vsub.f32 1.0, %v12820_v49  ;;  %v9205_v48 = vmul.f32 -1.442695, %v4195_v21  ;;  %v4484_v5 = vmul.f32 %v12827_v34, %v12610_v3 }
 0x6c2   :  { %v11659_v51 = vpop.eup %11658  ;;  %11678 = vtanh.f32 %v4422_v14  ;;  %v4265_v62 = vadd.f32 1.0, %v11657_v13  ;;  %v9206_v56 = vmul.f32 -1.442695, %v4199_v52  ;;  %v4466_v0 = vmul.f32 %v12839_v11, %v4450_v22  ;;  %v4136_v14 = vld [vmem:[#allocation12 + $0x1c8] sm:$0xff] }
 0x6c3   :  { %v11661_v44 = vpop.eup %11660  ;;  %11680 = vrcp.f32 %v4264_v28  ;;  %v12881_v35 = vadd.f32 %v4481_v45, %v4465_v41  ;;  %v9221_v58 = vmul.f32 -1.442695, %v4196_v29  ;;  %v4453_v13 = vsub.f32 1.0, %v12846_v24 }
 0x6c4   :  { %v11663_v54 = vpop.eup %11662  ;;  %11682 = vpow2.f32 %v9220_v17  ;;  %v4467_v28 = vmul.f32 %v11661_v44, %v4451_v18  ;;  %v4360_v31 = vadd.f32 1.0, %v11659_v51  ;;  %v12884_v3 = vadd.f32 %v4482_v9, %v4466_v0  ;;  %v11131_v9 = vld [vmem:[#allocation8 + $0x88] sm:$0xff]  }
 0x6c5   :  { %v11665_v30 = vpop.eup %11664  ;;  %11684 = vrcp.f32 %v4265_v62  ;;  %v4468_v60 = vmul.f32 %v11663_v54, %v4452_v42  ;;  %v4203_v11 = vadd.f32 %v4139_v37, %v3961_v19  ;;  %v4200_v22 = vadd.f32 %v4136_v14, %v12852_v25  ;;  %v4117_v54 = vld [vmem:[#allocation12 + $0x130] sm:$0xff] }
 0x6c6   :  { %v11667_v4 = vpop.eup %11666  ;;  %v4407_v21 = vmul.f32 %v11665_v30, %v4178_v43  ;;  %11686 = vpow2.f32 %v9205_v48  ;;  %v12888_v41 = vadd.f32 %v4483_v50, %v4467_v28  ;;  %v4118_v43 = vld [vmem:[#allocation12 + $0x138] sm:$0xff]  ;;  %v12893_v62 = vpack.c.bf16 %v12884_v3, %v12881_v35  ;;  %v4121_v30 = vld [vmem:[#allocation12 + $0x150] sm:$0xff] }
 0x6c7   :  { %v11669_v49 = vpop.eup %11668  ;;  %11688 = vpow2.f32 %v9206_v56  ;;  %v12895_v51 = vadd.f32 %v4484_v5, %v4468_v60  ;;  %v4485_v44 = vmul.f32 %v12846_v24, %v12622_v47  ;;  %v4454_v48 = vsub.f32 1.0, %v12859_v1  ;;  %v4122_v50 = vld [vmem:[#allocation12 + $0x158] sm:$0xff]  ;;  %v11132_v28 = vld [vmem:[#allocation8 + $0x90] sm:$0xff]  }
 0x6c8   :  { %v12886_v34 = vpop.eup %11670  ;;  %v4423_v17 = vadd.f32 %v4407_v21, %v4177_v7  ;;  %v4266_v52 = vadd.f32 1.0, %v11669_v49  ;;  %v4361_v7 = vadd.f32 1.0, %v11667_v4  ;;  %10297 = vmatmul.mubr.bf16.vlgmr.msra.gmra.mrb[160].mxu0 %v12893_v62  ;;  %10329 = vmatmul.mubr.bf16.vlgmr.msra.gmra.mrb[160].mxu1 %v12893_v62  ;;  %v4486_v24 = vmul.f32 %v12859_v1, %v12627_v2  ;;  %v4140_v4 = vld [vmem:[#allocation12 + $0x1e8] sm:$0xff] }
 0x6c9   :  { %v11673_v45 = vpop.eup %11672  ;;  %v12904_v25 = vpack.c.bf16 %v12895_v51, %v12888_v41  ;;  %v4182_v5 = vadd.f32 %v4118_v43, %v12790_v16  ;;  %v9207_v56 = vmul.f32 -1.442695, %v4203_v11  ;;  %10345 = vmatpush3.bf16.msra.mxu0 %v12742_v8  ;;  %v9222_v0 = vmul.f32 -1.442695, %v4200_v22  ;;  %v11133_v43 = vld [vmem:[#allocation8 + $0x98] sm:$0xff]  }
 0x6ca   :  { %v11675_v29 = vpop.eup %11674  ;;  %11690 = vtanh.f32 %v4423_v17  ;;  %v4267_v19 = vadd.f32 1.0, %v11673_v45  ;;  %v4186_v1 = vadd.f32 %v4122_v50, %v12801_v27  ;;  %10346 = vmatprep.subr.bf16.mxu0 %v11131_v9  ;;  %v4185_v60 = vadd.f32 %v4121_v30, %v12799_v55 }
 0x6cb   :  { %v11677_v18 = vpop.eup %11676  ;;  %11692 = vrcp.f32 %v4266_v52  ;;  %v4469_v42 = vmul.f32 %v11675_v29, %v4453_v13  ;;  %10300 = vmatprep.mubr.bf16.mxu0 %v12904_v25  ;;  %10332 = vmatprep.mubr.bf16.mxu1 %v12904_v25  ;;  %v4204_v11 = vadd.f32 %v4140_v4, %v12863_v12  ;;  %v4130_v12 = vld [vmem:[#allocation12 + $0x198] sm:$0xff]  ;;  %v4487_v50 = vmul.f32 %v12886_v34, %v12639_v20 }
 0x6cc   :  { %v11679_v47 = vpop.eup %11678  ;;  %11694 = vrcp.f32 %v4360_v31  ;;  %v4181_v31 = vadd.f32 %v4117_v54, %v12787_v15  ;;  %v4362_v49 = vadd.f32 1.0, %v11677_v18  ;;  %v4126_v15 = vld [vmem:[#allocation12 + $0x178] sm:$0xff] }
 0x6cd   :  { %v11681_v37 = vpop.eup %11680  ;;  %11696 = vrcp.f32 %v4267_v19  ;;  %v4470_v21 = vmul.f32 %v11679_v47, %v4454_v48  ;;  %v12912_v14 = vadd.f32 %v4485_v44, %v4469_v42  ;;  %10347 = vmatpush3.bf16.msra.mxu0 %v11131_v9  ;;  %v4455_v44 = vsub.f32 1.0, %v12886_v34  ;;  %v4129_v42 = vld [vmem:[#allocation12 + $0x190] sm:$0xff] }
 0x6ce   :  { %v11683_v2 = vpop.eup %11682  ;;  %v4408_v16 = vmul.f32 %v11681_v37, %v4182_v5  ;;  %11698 = vrcp.f32 %v4361_v7  ;;  %10348 = vmatprep.subr.bf16.mxu0 %v11132_v28  ;;  %v4125_v7 = vld [vmem:[#allocation12 + $0x170] sm:$0xff]  ;;  %v4190_v9 = vadd.f32 %v4126_v15, %v12807_v32  ;;  %v9223_v48 = vmul.f32 -1.442695, %v4204_v11 }
 0x6cf   :  { %v11685_v8 = vpop.eup %11684  ;;  %11700 = vpow2.f32 %v9221_v58  ;;  %v12917_v13 = vadd.f32 %v4486_v24, %v4470_v21  ;;  %v4363_v58 = vadd.f32 1.0, %v11683_v2  ;;  %v11134_v24 = vld [vmem:[#allocation8 + $0xa0] sm:$0xff]   ;;  %v4189_v30 = vadd.f32 %v4125_v7, %v12805_v23  ;;  %v11135_v2 = vld [vmem:[#allocation8 + $0xa8] sm:$0xff]   ;;  %v4133_v11 = vld [vmem:[#allocation12 + $0x1b0] sm:$0xff] }
 0x6d0   :  { %v4424_v17 = vadd.f32 %v4408_v16, %v4181_v31  ;;  %v4409_v52 = vmul.f32 %v11685_v8, %v4186_v1  ;;  %11702 = vpow2.f32 %v9207_v56  ;;  %v11687_v45 = vpop.eup %11686  ;;  %v4194_v37 = vadd.f32 %v4130_v12, %v12823_v36  ;;  %v4134_v36 = vld [vmem:[#allocation12 + $0x1b8] sm:$0xff]  ;;  %v4137_v7 = vld [vmem:[#allocation12 + $0x1d0] sm:$0xff] }
 0x6d1   :  { %11704 = vpow2.f32 %v9222_v0  ;;  %v12922_v27 = vpack.c.bf16 %v12917_v13, %v12912_v14  ;;  %v4268_v22 = vadd.f32 1.0, %v11687_v45  ;;  %v11689_v29 = vpop.eup %11688  ;;  %10349 = vmatpush3.bf16.msra.mxu0 %v11132_v28  ;;  %v4193_v20 = vadd.f32 %v4129_v42, %v12816_v39  ;;  %v4138_v45 = vld [vmem:[#allocation12 + $0x1d8] sm:$0xff] }
 0x6d2   :  { %11706 = vtanh.f32 %v4424_v17  ;;  %v4425_v55 = vadd.f32 %v4409_v52, %v4185_v60  ;;  %v4269_v18 = vadd.f32 1.0, %v11689_v29  ;;  %10350 = vmatprep.subr.bf16.mxu0 %v11133_v43 }
 0x6d3   :  { %11708 = vrcp.f32 %v4362_v49  ;;  %10301 = vmatmul.mubr.bf16.gmra.mrb[164].mxu0 %v12922_v27  ;;  %10333 = vmatmul.mubr.bf16.gmra.mrb[164].mxu1 %v12922_v27 }
 0x6d4   :  { %v11691_v19 = vpop.eup %11690  ;;  %11710 = vtanh.f32 %v4425_v55 }
 0x6d5   :  { %v11693_v54 = vpop.eup %11692  ;;  %11712 = vrcp.f32 %v4268_v22  ;;  %v4471_v47 = vmul.f32 %v11691_v19, %v4455_v44  ;;  %10351 = vmatpush3.bf16.msra.mxu0 %v11133_v43  ;;  %v11136_v43 = vld [vmem:[#allocation8 + $0xb0] sm:$0xff]  }
 0x6d6   :  { %v11695_v5 = vpop.eup %11694  ;;  %v4410_v56 = vmul.f32 %v11693_v54, %v4190_v9  ;;  %11714 = vrcp.f32 %v4363_v58  ;;  %10352 = vmatprep.subr.bf16.mxu0 %v11134_v24  ;;  %v4198_v58 = vadd.f32 %v4134_v36, %v12831_v38 }
 0x6d7   :  { %v11697_v32 = vpop.eup %11696  ;;  %11716 = vrcp.f32 %v4269_v18  ;;  %v12932_v0 = vadd.f32 %v4487_v50, %v4471_v47  ;;  %v4456_v1 = vsub.f32 1.0, %v11695_v5  ;;  %v4488_v39 = vmul.f32 %v11695_v5, %v12643_v63 }
 0x6d8   :  { %v11699_v4 = vpop.eup %11698  ;;  %v4426_v21 = vadd.f32 %v4410_v56, %v4189_v30  ;;  %v4411_v34 = vmul.f32 %v11697_v32, %v4194_v37  ;;  %11718 = vpow2.f32 %v9223_v48  ;;  %v4197_v63 = vadd.f32 %v4133_v11, %v12825_v53  ;;  %v4142_v56 = vld [vmem:[#allocation12 + $0x1f8] sm:$0xff] }
 0x6d9   :  { %v11701_v28 = vpop.eup %11700  ;;  %10353 = vmatpush3.bf16.msra.mxu0 %v11134_v24  ;;  %v4457_v52 = vsub.f32 1.0, %v11699_v4  ;;  %v4489_v44 = vmul.f32 %v11699_v4, %v12651_v33  ;;  %v4202_v48 = vadd.f32 %v4138_v45, %v12854_v59  ;;  %v11137_v33 = vld [vmem:[#allocation8 + $0xb8] sm:$0xff]   ;;  %v4201_v24 = vadd.f32 %v4137_v7, %v12844_v26  ;;  %v4141_v4 = vld [vmem:[#allocation12 + $0x1f0] sm:$0xff]  ;;  %v13519_v45 = vld [vmem:[#allocation21_spill] sm:$0xff] }
 0x6da   :  { %v11703_v31 = vpop.eup %11702  ;;  %11720 = vtanh.f32 %v4426_v21  ;;  %v4427_v23 = vadd.f32 %v4411_v34, %v4193_v20  ;;  %v4364_v49 = vadd.f32 1.0, %v11701_v28  ;;  %10354 = vmatprep.subr.bf16.mxu0 %v11135_v2  ;;  %v4206_v28 = vadd.f32 %v4142_v56, %v12865_v6 }
 0x6db   :  { %v11705_v16 = vpop.eup %11704  ;;  %v4270_v8 = vadd.f32 1.0, %v11703_v31 }
 0x6dc   :  { %v11707_v60 = vpop.eup %11706  ;;  %11722 = vtanh.f32 %v4427_v23  ;;  %v4365_v22 = vadd.f32 1.0, %v11705_v16  ;;  %v4205_v16 = vadd.f32 %v4141_v4, %v12857_v61  ;;  %v13518_v61 = vld [vmem:[#allocation20_spill] sm:$0xff] }
 0x6dd   :  { %v11709_v17 = vpop.eup %11708  ;;  %v4472_v15 = vmul.f32 %v11707_v60, %v4456_v1  ;;  %11724 = vrcp.f32 %v4270_v8  ;;  %10355 = vmatpush3.bf16.msra.mxu0 %v11135_v2 }
 0x6de   :  { %v11711_v55 = vpop.eup %11710  ;;  %11726 = vrcp.f32 %v4364_v49  ;;  %10356 = vmatprep.subr.bf16.mxu0 %v11136_v43  ;;  %v4458_v5 = vsub.f32 1.0, %v11709_v17  ;;  %v4490_v37 = vmul.f32 %v11709_v17, %v12657_v57 }
 0x6df   :  { %v11713_v29 = vpop.eup %11712  ;;  %v12938_v12 = vadd.f32 %v4488_v39, %v4472_v15  ;;  %v4473_v19 = vmul.f32 %v11711_v55, %v4457_v52  ;;  %11728 = vrcp.f32 %v4365_v22 }
 0x6e0   :  { %v11715_v9 = vpop.eup %11714  ;;  %v4412_v18 = vmul.f32 %v11713_v29, %v4198_v58 }
 0x6e1   :  { %v11717_v54 = vpop.eup %11716  ;;  %v12944_v38 = vpack.c.bf16 %v12938_v12, %v12932_v0  ;;  %v12946_v50 = vadd.f32 %v4489_v44, %v4473_v19  ;;  %10357 = vmatpush3.bf16.msra.mxu0 %v11136_v43  ;;  %v4459_v32 = vsub.f32 1.0, %v11715_v9  ;;  %v4491_v34 = vmul.f32 %v11715_v9, %v12664_v46  ;;  %v13521_v19 = vld [vmem:[#allocation22_spill] sm:$0xff] }
 0x6e2   :  { %v11719_v42 = vpop.eup %11718  ;;  %v4428_v47 = vadd.f32 %v4412_v18, %v4197_v63  ;;  %v4413_v53 = vmul.f32 %v11717_v54, %v4202_v48  ;;  %10358 = vmatprep.subr.bf16.mxu0 %v11137_v33  ;;  %v11140_v54 = vld [vmem:[#allocation6 + $0x4] ss:$12 sps:$4 sm:$0xff]  }
 0x6e3   :  { %10304 = vmatprep.mubr.bf16.mxu0 %v12944_v38  ;;  %10336 = vmatprep.mubr.bf16.mxu1 %v12944_v38  ;;  %v4366_v21 = vadd.f32 1.0, %v11719_v42 }
 0x6e4   :  { %v11721_v59 = vpop.eup %11720  ;;  %11730 = vtanh.f32 %v4428_v47  ;;  %v4429_v30 = vadd.f32 %v4413_v53, %v4201_v24 }
 0x6e5   :  { %v4474_v20 = vmul.f32 %v11721_v59, %v4458_v5  ;;  %10359 = vmatpush3.bf16.msra.mxu0 %v11137_v33  ;;  %v11152_v33 = vld [vmem:[#allocation6 + $0x8] ss:$12 sps:$4 sm:$0xff]  }
 0x6e6   :  { %v11723_v26 = vpop.eup %11722  ;;  %11732 = vtanh.f32 %v4429_v30 }
 0x6e7   :  { %v12954_v2 = vadd.f32 %v4490_v37, %v4474_v20  ;;  %v4475_v31 = vmul.f32 %v11723_v26, %v4459_v32  ;;  %v11725_v23 = vpop.eup %11724  ;;  %11734 = vrcp.f32 %v4366_v21 }
 0x6e8   :  { %v4414_v57 = vmul.f32 %v11725_v23, %v4206_v28  ;;  %v11727_v8 = vpop.eup %11726 }
 0x6e9   :  { %v12959_v1 = vpack.c.bf16 %v12954_v2, %v12946_v50  ;;  %v12961_v36 = vadd.f32 %v4491_v34, %v4475_v31  ;;  %v11729_v46 = vpop.eup %11728  ;;  %v4460_v6 = vsub.f32 1.0, %v11727_v8  ;;  %v4492_v17 = vmul.f32 %v11727_v8, %v13518_v61 }
 0x6ea   :  { %v4430_v60 = vadd.f32 %v4414_v57, %v4205_v16  ;;  %v4461_v39 = vsub.f32 1.0, %v11729_v46  ;;  %v4493_v15 = vmul.f32 %v11729_v46, %v13519_v45 }
 0x6eb   :  { %10305 = vmatmul.mubr.bf16.gmra.mrb[168].mxu0 %v12959_v1  ;;  %10337 = vmatmul.mubr.bf16.gmra.mrb[168].mxu1 %v12959_v1 }
 0x6ec   :  { %11736 = vtanh.f32 %v4430_v60 }
 0x6ee   :  { %v11731_v49 = vpop.eup %11730 }
 0x6ef   :  { %v4476_v52 = vmul.f32 %v11731_v49, %v4460_v6 }
 0x6f0   :  { %v11733_v11 = vpop.eup %11732 }
 0x6f1   :  { %v12967_v43 = vadd.f32 %v4492_v17, %v4476_v52  ;;  %v4477_v55 = vmul.f32 %v11733_v11, %v4461_v39  ;;  %v11735_v58 = vpop.eup %11734 }
 0x6f2   :  { %v4462_v44 = vsub.f32 1.0, %v11735_v58  ;;  %v4494_v9 = vmul.f32 %v11735_v58, %v13521_v19 }
 0x6f3   :  { %v12971_v22 = vpack.c.bf16 %v12967_v43, %v12961_v36  ;;  %v12973_v29 = vadd.f32 %v4493_v15, %v4477_v55 }
 0x6f5   :  { %13520 = vst [vmem:[#allocation20_spill] sm:$0xff] %v12973_v29  ;;  %10308 = vmatprep.mubr.bf16.mxu0 %v12971_v22  ;;  %10340 = vmatprep.mubr.bf16.mxu1 %v12971_v22 }
 0x6f6   :  { %v11737_v7 = vpop.eup %11736 }
 0x6f7   :  { %v4478_v63 = vmul.f32 %v11737_v7, %v4462_v44 }
 0x6f9   :  { %v12978_v18 = vadd.f32 %v4494_v9, %v4478_v63 }
 0x6fb   :  { %13522 = vst [vmem:[#allocation21_spill] sm:$0xff] %v12978_v18  ;;  %v12982_v48 = vpack.c.bf16 %v12978_v18, %v12973_v29  ;;  %v6323_v18 = vld [vmem:[#allocation12 + $0x380] sm:$0xff] }
 0x6fd   :  { %10309 = vmatmul.mubr.bf16.gmra.mrb[172].mxu0 %v12982_v48  ;;  %10341 = vmatmul.mubr.bf16.gmra.mrb[172].mxu1 %v12982_v48 }
 0x6fe   :  { %10360 = vmatprep.mubr.bf16.mxu0 %v12850_v10  ;;  %5266 = vmatprep.mubr.bf16.mxu1 %v11140_v54 }
 0x705   :  { %10361 = vmatmul.mubr.bf16.vlgmr.msra.gmra.mrb[176].mxu0 %v12893_v62 }
 0x706   :  { %10364 = vmatprep.mubr.bf16.mxu0 %v12904_v25 }
 0x70d   :  { %10365 = vmatmul.mubr.bf16.gmra.mrb[180].mxu0 %v12922_v27 }
 0x70e   :  { %10368 = vmatprep.mubr.bf16.mxu0 %v12944_v38 }
 0x715   :  { %10369 = vmatmul.mubr.bf16.gmra.mrb[184].mxu0 %v12959_v1 }
 0x716   :  { %10372 = vmatprep.mubr.bf16.mxu0 %v12971_v22 }
 0x71d   :  { %10373 = vmatmul.mubr.bf16.gmra.mrb[188].mxu0 %v12982_v48 }
 0x71e   :  { %10392 = vmatprep.mubr.bf16.mxu0 %v11152_v33 }
 0x79b   :  { %v10298_v42 = vpop.f32.mrb[160].mxu0  ;;  %v10330_v47 = vpop.f32.mrb[160].mxu1 }
 0x79c   :  { %v4617_v24 = vpop.f32.mrb[161].mxu0  ;;  %v4794_v53 = vpop.f32.mrb[161].mxu1 }
 0x79d   :  { %v10299_v5 = vpop.f32.mrb[162].mxu0  ;;  %v10331_v59 = vpop.f32.mrb[162].mxu1 }
 0x79e   :  { %v4681_v30 = vpack.c.bf16 %v10299_v5, %v10298_v42  ;;  %v4858_v56 = vpack.c.bf16 %v10331_v59, %v10330_v47  ;;  %v4620_v37 = vpop.f32.mrb[163].mxu0  ;;  %v4797_v32 = vpop.f32.mrb[163].mxu1 }
 0x79f   :  { %v4680_v4 = vpack.c.bf16 %v4620_v37, %v4617_v24  ;;  %v4857_v21 = vpack.c.bf16 %v4797_v32, %v4794_v53  ;;  %v11160_v37 = vld [vmem:[#allocation11 + $0x10c] ss:$16 sps:$4 sm:$0xff]  }
 0x7a1   :  { %9816 = vmatprep.subr.bf16.mxu1 %v4857_v21  ;;  %v11138_v21 = vld [vmem:[#allocation6] ss:$12 sps:$4 sm:$0xff]  }
 0x7a2   :  { %9817 = vmatpush3.bf16.msra.mxu1 %v4680_v4 }
 0x7a3   :  { %9818 = vmatprep.subr.bf16.mxu1 %v4858_v56 }
 0x7a6   :  { %v10302_v20 = vpop.f32.mrb[164].mxu0  ;;  %v10334_v26 = vpop.f32.mrb[164].mxu1  ;;  %9819 = vmatpush3.bf16.msra.mxu1 %v4681_v30 }
 0x7a7   :  { %v4633_v34 = vpop.f32.mrb[165].mxu0  ;;  %v4810_v28 = vpop.f32.mrb[165].mxu1 }
 0x7a8   :  { %v10303_v31 = vpop.f32.mrb[166].mxu0  ;;  %v10335_v23 = vpop.f32.mrb[166].mxu1 }
 0x7a9   :  { %v4683_v16 = vpack.c.bf16 %v10303_v31, %v10302_v20  ;;  %v4860_v57 = vpack.c.bf16 %v10335_v23, %v10334_v26  ;;  %v4636_v8 = vpop.f32.mrb[167].mxu0  ;;  %v4813_v60 = vpop.f32.mrb[167].mxu1  ;;  %v11158_v31 = vld [vmem:[#allocation11 + $0x108] ss:$16 sps:$4 sm:$0xff]   ;;  %v11166_v23 = vld [vmem:[#allocation11 + $0x12c] ss:$16 sps:$4 sm:$0xff]  }
 0x7aa   :  { %v4682_v46 = vpack.c.bf16 %v4636_v8, %v4633_v34  ;;  %v4859_v6 = vpack.c.bf16 %v4813_v60, %v4810_v28  ;;  %v11141_v34 = vld [vmem:[#allocation6 + $0x1c] ss:$12 sps:$4 sm:$0xff]  }
 0x7ab   :  { %v11177_v60 = vld [vmem:[#allocation11 + $0x14c] ss:$16 sps:$4 sm:$0xff]  }
 0x7ac   :  { %9820 = vmatprep.subr.bf16.mxu1 %v4859_v6  ;;  %v11143_v6 = vld [vmem:[#allocation6 + $0x18] ss:$12 sps:$4 sm:$0xff]  }
 0x7ad   :  { %9821 = vmatpush3.bf16.msra.mxu1 %v4682_v46 }
 0x7ae   :  { %9822 = vmatprep.subr.bf16.mxu1 %v4860_v57  ;;  %v11164_v57 = vld [vmem:[#allocation11 + $0x128] ss:$16 sps:$4 sm:$0xff]  }
 0x7b1   :  { %9823 = vmatpush3.bf16.msra.mxu1 %v4683_v16 }
 0x7be   :  { %v10306_v49 = vpop.f32.mrb[168].mxu0  ;;  %v10338_v61 = vpop.f32.mrb[168].mxu1 }
 0x7bf   :  { %v4649_v17 = vpop.f32.mrb[169].mxu0  ;;  %v4826_v39 = vpop.f32.mrb[169].mxu1 }
 0x7c0   :  { %v10307_v52 = vpop.f32.mrb[170].mxu0  ;;  %v10339_v11 = vpop.f32.mrb[170].mxu1 }
 0x7c1   :  { %v4685_v45 = vpack.c.bf16 %v10307_v52, %v10306_v49  ;;  %v4862_v15 = vpack.c.bf16 %v10339_v11, %v10338_v61  ;;  %v4652_v55 = vpop.f32.mrb[171].mxu0  ;;  %v4829_v58 = vpop.f32.mrb[171].mxu1  ;;  %v11175_v52 = vld [vmem:[#allocation11 + $0x148] ss:$16 sps:$4 sm:$0xff]   ;;  %v11183_v11 = vld [vmem:[#allocation11 + $0x16c] ss:$16 sps:$4 sm:$0xff]  }
 0x7c2   :  { %v4684_v44 = vpack.c.bf16 %v4652_v55, %v4649_v17  ;;  %v4861_v7 = vpack.c.bf16 %v4829_v58, %v4826_v39  ;;  %v11144_v17 = vld [vmem:[#allocation6 + $0x34] ss:$12 sps:$4 sm:$0xff]   ;;  %v11194_v58 = vld [vmem:[#allocation11 + $0x18c] ss:$16 sps:$4 sm:$0xff]  }
 0x7c4   :  { %9824 = vmatprep.subr.bf16.mxu1 %v4861_v7  ;;  %v11146_v7 = vld [vmem:[#allocation6 + $0x30] ss:$12 sps:$4 sm:$0xff]  }
 0x7c5   :  { %9825 = vmatpush3.bf16.msra.mxu1 %v4684_v44 }
 0x7c6   :  { %9826 = vmatprep.subr.bf16.mxu1 %v4862_v15  ;;  %v11181_v15 = vld [vmem:[#allocation11 + $0x168] ss:$16 sps:$4 sm:$0xff]  }
 0x7c9   :  { %9827 = vmatpush3.bf16.msra.mxu1 %v4685_v45 }
 0x7d0   :  { %v10310_v19 = vpop.f32.mrb[172].mxu0  ;;  %v10342_v9 = vpop.f32.mrb[172].mxu1 }
 0x7d1   :  { %v4665_v63 = vpop.f32.mrb[173].mxu0  ;;  %v4842_v54 = vpop.f32.mrb[173].mxu1 }
 0x7d2   :  { %v10311_v33 = vpop.f32.mrb[174].mxu0  ;;  %v10343_v42 = vpop.f32.mrb[174].mxu1 }
 0x7d3   :  { %v4687_v47 = vpack.c.bf16 %v10311_v33, %v10310_v19  ;;  %v4864_v24 = vpack.c.bf16 %v10343_v42, %v10342_v9  ;;  %v4668_v53 = vpop.f32.mrb[175].mxu0  ;;  %v4845_v5 = vpop.f32.mrb[175].mxu1  ;;  %v11192_v33 = vld [vmem:[#allocation11 + $0x188] ss:$16 sps:$4 sm:$0xff]   ;;  %v11200_v42 = vld [vmem:[#allocation11 + $0x1ac] ss:$16 sps:$4 sm:$0xff]  }
 0x7d4   :  { %v4686_v59 = vpack.c.bf16 %v4668_v53, %v4665_v63  ;;  %v4863_v30 = vpack.c.bf16 %v4845_v5, %v4842_v54  ;;  %v11147_v63 = vld [vmem:[#allocation6 + $0x4c] ss:$12 sps:$4 sm:$0xff]  }
 0x7d5   :  { %v11211_v5 = vld [vmem:[#allocation11 + $0x1cc] ss:$16 sps:$4 sm:$0xff]  }
 0x7d6   :  { %9828 = vmatprep.subr.bf16.mxu1 %v4863_v30  ;;  %v11149_v30 = vld [vmem:[#allocation6 + $0x48] ss:$12 sps:$4 sm:$0xff]  }
 0x7d7   :  { %9829 = vmatpush3.bf16.msra.mxu1 %v4686_v59 }
 0x7d8   :  { %v10362_v56 = vpop.f32.mrb[176].mxu0  ;;  %9830 = vmatprep.subr.bf16.mxu1 %v4864_v24  ;;  %v11198_v24 = vld [vmem:[#allocation11 + $0x1a8] ss:$16 sps:$4 sm:$0xff]  }
 0x7d9   :  { %v4971_v32 = vpop.f32.mrb[177].mxu0 }
 0x7da   :  { %v10363_v4 = vpop.f32.mrb[178].mxu0 }
 0x7db   :  { %v5035_v20 = vpack.c.bf16 %v10363_v4, %v10362_v56  ;;  %v4974_v26 = vpop.f32.mrb[179].mxu0  ;;  %9831 = vmatpush3.bf16.msra.mxu1 %v4687_v47 }
 0x7dc   :  { %v5034_v28 = vpack.c.bf16 %v4974_v26, %v4971_v32  ;;  %5775 = vmatprep.subr.bf16.mxu1 %v11160_v37  ;;  %v11150_v32 = vld [vmem:[#allocation6 + $0x64] ss:$12 sps:$4 sm:$0xff]  }
 0x7dd   :  { %v11157_v26 = vld [vmem:[#allocation11 + $0x104] ss:$16 sps:$4 sm:$0xff]  }
 0x7de   :  { %5267 = vmatmul.mubr.bf16.vlgmr.msra.gmra.mrb[176].mxu1 %v11138_v21  ;;  %10376 = vmatprep.subr.bf16.mxu0 %v5034_v28  ;;  %v11209_v21 = vld [vmem:[#allocation11 + $0x1c8] ss:$16 sps:$4 sm:$0xff]  }
 0x7df   :  { %10377 = vmatpush3.bf16.msra.mxu0 %v5034_v28  ;;  %5274 = vmatprep.mubr.bf16.mxu1 %v11141_v34  ;;  %v11215_v34 = vld [vmem:[#allocation11 + $0x1e8] ss:$16 sps:$4 sm:$0xff]   ;;  %v11232_v28 = vld [vmem:[#allocation9 + $0x10c] ss:$16 sps:$4 sm:$0xff]  }
 0x7e0   :  { %v10366_v16 = vpop.f32.mrb[180].mxu0  ;;  %10378 = vmatprep.subr.bf16.mxu0 %v5035_v20  ;;  %5776 = vmatpush1.bf16.msra.mxu1 %v11158_v31  ;;  %v11153_v31 = vld [vmem:[#allocation6 + $0x60] ss:$12 sps:$4 sm:$0xff]  }
 0x7e1   :  { %v4987_v8 = vpop.f32.mrb[181].mxu0  ;;  %5777 = vmatprep.subr.bf16.mxu1 %v11166_v23  ;;  %v11154_v23 = vld [vmem:[#allocation6 + $0x20] ss:$12 sps:$4 sm:$0xff]  }
 0x7e2   :  { %v10367_v46 = vpop.f32.mrb[182].mxu0 }
 0x7e3   :  { %v5037_v49 = vpack.c.bf16 %v10367_v46, %v10366_v16  ;;  %v4990_v61 = vpop.f32.mrb[183].mxu0  ;;  %10379 = vmatpush3.bf16.msra.mxu0 %v5035_v20  ;;  %v11217_v20 = vld [vmem:[#allocation11 + $0x1ec] ss:$16 sps:$4 sm:$0xff]   ;;  %v11155_v16 = vld [vmem:[#allocation11 + $0x100] ss:$16 sps:$4 sm:$0xff]  }
 0x7e4   :  { %v5036_v39 = vpack.c.bf16 %v4990_v61, %v4987_v8  ;;  %5778 = vmatpush1.bf16.msra.mxu1 %v11164_v57  ;;  %v11167_v57 = vld [vmem:[#allocation6 + $0x7c] ss:$12 sps:$4 sm:$0xff]   ;;  %v11163_v8 = vld [vmem:[#allocation11 + $0x124] ss:$16 sps:$4 sm:$0xff]   ;;  %v11161_v46 = vld [vmem:[#allocation11 + $0x120] ss:$16 sps:$4 sm:$0xff]  }
 0x7e5   :  { %5779 = vmatprep.subr.bf16.mxu1 %v11177_v60  ;;  %v11169_v60 = vld [vmem:[#allocation6 + $0x38] ss:$12 sps:$4 sm:$0xff]   ;;  %v11171_v61 = vld [vmem:[#allocation6 + $0x50] ss:$12 sps:$4 sm:$0xff]  }
 0x7e6   :  { %5275 = vmatmul.mubr.bf16.gmra.mrb[180].mxu1 %v11143_v6  ;;  %10380 = vmatprep.subr.bf16.mxu0 %v5036_v39  ;;  %v11174_v6 = vld [vmem:[#allocation11 + $0x144] ss:$16 sps:$4 sm:$0xff]  }
 0x7e7   :  { %10381 = vmatpush3.bf16.msra.mxu0 %v5036_v39  ;;  %5282 = vmatprep.mubr.bf16.mxu1 %v11144_v17  ;;  %v11172_v17 = vld [vmem:[#allocation11 + $0x140] ss:$16 sps:$4 sm:$0xff]  }
 0x7e8   :  { %v10370_v45 = vpop.f32.mrb[184].mxu0  ;;  %10382 = vmatprep.subr.bf16.mxu0 %v5037_v49  ;;  %5780 = vmatpush1.bf16.msra.mxu1 %v11175_v52  ;;  %v11184_v39 = vld [vmem:[#allocation6 + $0x94] ss:$12 sps:$4 sm:$0xff]  }
 0x7e9   :  { %v5003_v55 = vpop.f32.mrb[185].mxu0  ;;  %5781 = vmatprep.subr.bf16.mxu1 %v11183_v11  ;;  %v11180_v52 = vld [vmem:[#allocation11 + $0x164] ss:$16 sps:$4 sm:$0xff]  }
 0x7ea   :  { %v10371_v44 = vpop.f32.mrb[186].mxu0  ;;  %v11186_v11 = vld [vmem:[#allocation6 + $0x68] ss:$12 sps:$4 sm:$0xff]  }
 0x7eb   :  { %v5039_v19 = vpack.c.bf16 %v10371_v44, %v10370_v45  ;;  %v5006_v9 = vpop.f32.mrb[187].mxu0  ;;  %10383 = vmatpush3.bf16.msra.mxu0 %v5037_v49  ;;  %v11170_v49 = vld [vmem:[#allocation6 + $0x78] ss:$12 sps:$4 sm:$0xff]   ;;  %v11178_v45 = vld [vmem:[#allocation11 + $0x160] ss:$16 sps:$4 sm:$0xff]  }
 0x7ec   :  { %v5038_v54 = vpack.c.bf16 %v5006_v9, %v5003_v55  ;;  %5782 = vmatpush1.bf16.msra.mxu1 %v11181_v15  ;;  %v11191_v15 = vld [vmem:[#allocation11 + $0x184] ss:$16 sps:$4 sm:$0xff]   ;;  %v11187_v55 = vld [vmem:[#allocation6 + $0x90] ss:$12 sps:$4 sm:$0xff]  }
 0x7ed   :  { %5783 = vmatprep.subr.bf16.mxu1 %v11194_v58  ;;  %v11188_v58 = vld [vmem:[#allocation6 + $0x80] ss:$12 sps:$4 sm:$0xff]   ;;  %v11203_v9 = vld [vmem:[#allocation6 + $0x98] ss:$12 sps:$4 sm:$0xff]  }
 0x7ee   :  { %5283 = vmatmul.mubr.bf16.gmra.mrb[184].mxu1 %v11146_v7  ;;  %10384 = vmatprep.subr.bf16.mxu0 %v5038_v54  ;;  %v11189_v44 = vld [vmem:[#allocation11 + $0x180] ss:$16 sps:$4 sm:$0xff]   ;;  %v11201_v7 = vld [vmem:[#allocation6 + $0xac] ss:$12 sps:$4 sm:$0xff]  }
 0x7ef   :  { %10385 = vmatpush3.bf16.msra.mxu0 %v5038_v54  ;;  %5290 = vmatprep.mubr.bf16.mxu1 %v11147_v63  ;;  %v11195_v63 = vld [vmem:[#allocation11 + $0x1a0] ss:$16 sps:$4 sm:$0xff]   ;;  %v11208_v54 = vld [vmem:[#allocation11 + $0x1c4] ss:$16 sps:$4 sm:$0xff]  }
 0x7f0   :  { %v10374_v47 = vpop.f32.mrb[188].mxu0  ;;  %10386 = vmatprep.subr.bf16.mxu0 %v5039_v19  ;;  %5784 = vmatpush1.bf16.msra.mxu1 %v11192_v33  ;;  %v11204_v33 = vld [vmem:[#allocation6 + $0xa8] ss:$12 sps:$4 sm:$0xff]  }
 0x7f1   :  { %v5019_v53 = vpop.f32.mrb[189].mxu0  ;;  %5785 = vmatprep.subr.bf16.mxu1 %v11200_v42  ;;  %v11205_v42 = vld [vmem:[#allocation6 + $0xb0] ss:$12 sps:$4 sm:$0xff]  }
 0x7f2   :  { %v10375_v59 = vpop.f32.mrb[190].mxu0 }
 0x7f3   :  { %v5041_v56 = vpack.c.bf16 %v10375_v59, %v10374_v47  ;;  %v5022_v37 = vpop.f32.mrb[191].mxu0  ;;  %10387 = vmatpush3.bf16.msra.mxu0 %v5039_v19  ;;  %v11197_v19 = vld [vmem:[#allocation11 + $0x1a4] ss:$16 sps:$4 sm:$0xff]   ;;  %v11206_v47 = vld [vmem:[#allocation11 + $0x1c0] ss:$16 sps:$4 sm:$0xff]  }
 0x7f4   :  { %v5040_v4 = vpack.c.bf16 %v5022_v37, %v5019_v53  ;;  %5786 = vmatpush1.bf16.msra.mxu1 %v11198_v24  ;;  %v11214_v24 = vld [vmem:[#allocation11 + $0x1e4] ss:$16 sps:$4 sm:$0xff]   ;;  %v11212_v53 = vld [vmem:[#allocation11 + $0x1e0] ss:$16 sps:$4 sm:$0xff]  }
 0x7f5   :  { %5787 = vmatprep.subr.bf16.mxu1 %v11211_v5  ;;  %v13523_v5 = vmov 0   ;;  %v11220_v59 = vld [vmem:[#allocation9 + $0x104] ss:$16 sps:$4 sm:$0xff]  }
 0x7f6   :  { %5291 = vmatmul.mubr.bf16.gmra.mrb[188].mxu1 %v11149_v30  ;;  %10388 = vmatprep.subr.bf16.mxu0 %v5040_v4  ;;  %v11218_v30 = vld [vmem:[#allocation9 + $0x100] ss:$16 sps:$4 sm:$0xff]   ;;  %v11223_v37 = vld [vmem:[#allocation9 + $0x124] ss:$16 sps:$4 sm:$0xff]  }
 0x7f7   :  { %10389 = vmatpush3.bf16.msra.mxu0 %v5040_v4  ;;  %5298 = vmatprep.mubr.bf16.mxu1 %v11150_v32  ;;  %v11238_v32 = vld [vmem:[#allocation9 + $0x12c] ss:$16 sps:$4 sm:$0xff]   ;;  %v11221_v4 = vld [vmem:[#allocation9 + $0x120] ss:$16 sps:$4 sm:$0xff]  }
 0x7f8   :  { %10390 = vmatprep.subr.bf16.mxu0 %v5041_v56  ;;  %5788 = vmatpush1.bf16.msra.mxu1 %v11209_v21  ;;  %v11236_v21 = vld [vmem:[#allocation9 + $0x128] ss:$16 sps:$4 sm:$0xff]  }
 0x7f9   :  { %5789 = vmatprep.subr.bf16.mxu1 %v11217_v20  ;;  %v11226_v20 = vld [vmem:[#allocation9 + $0x144] ss:$16 sps:$4 sm:$0xff]  }
 0x7fb   :  { %10391 = vmatpush3.bf16.msra.mxu0 %v5041_v56  ;;  %v11230_v56 = vld [vmem:[#allocation9 + $0x108] ss:$16 sps:$4 sm:$0xff]  }
 0x7fc   :  { %5662 = vmatprep.subr.bf16.mxu0 %v11157_v26  ;;  %5790 = vmatpush1.bf16.msra.mxu1 %v11215_v34  ;;  %v11244_v26 = vld [vmem:[#allocation9 + $0x14c] ss:$16 sps:$4 sm:$0xff]   ;;  %v11224_v34 = vld [vmem:[#allocation9 + $0x140] ss:$16 sps:$4 sm:$0xff]  }
 0x7fd   :  { %6161 = vmatprep.subr.bf16.mxu1 %v11232_v28  ;;  %v11242_v28 = vld [vmem:[#allocation9 + $0x148] ss:$16 sps:$4 sm:$0xff]  }
 0x7fe   :  { %5299 = vmatmul.mubr.bf16.gmra.mrb[192].mxu1 %v11153_v31  ;;  %10393 = vmatmul.mubr.bf16.vlgmr.msra.gmra.mrb[192].mxu0 %v11154_v23  ;;  %v11229_v31 = vld [vmem:[#allocation9 + $0x164] ss:$16 sps:$4 sm:$0xff]   ;;  %v11227_v23 = vld [vmem:[#allocation9 + $0x160] ss:$16 sps:$4 sm:$0xff]  }
 0x7ff   :  { %5663 = vmatpush1.bf16.msra.mxu0 %v11155_v16  ;;  %5306 = vmatprep.mubr.bf16.mxu1 %v11167_v57  ;;  %v11245_v16 = vld [vmem:[#allocation9 + $0x168] ss:$16 sps:$4 sm:$0xff]   ;;  %v11235_v57 = vld [vmem:[#allocation9 + $0x184] ss:$16 sps:$4 sm:$0xff]  }
 0x800   :  { %5664 = vmatprep.subr.bf16.mxu0 %v11163_v8  ;;  %10396 = vmatprep.mubr.bf16.mxu0 %v11169_v60  ;;  %v11253_v8 = vld [vmem:[#allocation9 + $0x18c] ss:$16 sps:$4 sm:$0xff]   ;;  %v11233_v60 = vld [vmem:[#allocation9 + $0x180] ss:$16 sps:$4 sm:$0xff]  }
 0x803   :  { %5665 = vmatpush1.bf16.msra.mxu0 %v11161_v46  ;;  %v11251_v46 = vld [vmem:[#allocation9 + $0x188] ss:$16 sps:$4 sm:$0xff]  }
 0x804   :  { %5666 = vmatprep.subr.bf16.mxu0 %v11174_v6  ;;  %v11241_v6 = vld [vmem:[#allocation9 + $0x1a4] ss:$16 sps:$4 sm:$0xff]  }
 0x806   :  { %5307 = vmatmul.mubr.bf16.gmra.mrb[196].mxu1 %v11170_v49  ;;  %10397 = vmatmul.mubr.bf16.gmra.mrb[196].mxu0 %v11171_v61  ;;  %v11250_v49 = vld [vmem:[#allocation9 + $0x1c4] ss:$16 sps:$4 sm:$0xff]   ;;  %v11248_v61 = vld [vmem:[#allocation9 + $0x1c0] ss:$16 sps:$4 sm:$0xff]  }
 0x807   :  { %5667 = vmatpush1.bf16.msra.mxu0 %v11172_v17  ;;  %5314 = vmatprep.mubr.bf16.mxu1 %v11184_v39  ;;  %v11254_v17 = vld [vmem:[#allocation9 + $0x1a8] ss:$16 sps:$4 sm:$0xff]   ;;  %v11256_v39 = vld [vmem:[#allocation9 + $0x1ac] ss:$16 sps:$4 sm:$0xff]  }
 0x808   :  { %5668 = vmatprep.subr.bf16.mxu0 %v11180_v52  ;;  %10400 = vmatprep.mubr.bf16.mxu0 %v11186_v11  ;;  %v11259_v52 = vld [vmem:[#allocation9 + $0x1e4] ss:$16 sps:$4 sm:$0xff]   ;;  %v11265_v11 = vld [vmem:[#allocation9 + $0x1ec] ss:$16 sps:$4 sm:$0xff]  }
 0x80b   :  { %5669 = vmatpush1.bf16.msra.mxu0 %v11178_v45 }
 0x80c   :  { %5670 = vmatprep.subr.bf16.mxu0 %v11191_v15 }
 0x80e   :  { %5315 = vmatmul.mubr.bf16.gmra.mrb[200].mxu1 %v11187_v55  ;;  %10401 = vmatmul.mubr.bf16.gmra.mrb[200].mxu0 %v11188_v58 }
 0x80f   :  { %5671 = vmatpush1.bf16.msra.mxu0 %v11189_v44  ;;  %5322 = vmatprep.mubr.bf16.mxu1 %v11201_v7 }
 0x810   :  { %5672 = vmatprep.subr.bf16.mxu0 %v11197_v19  ;;  %10404 = vmatprep.mubr.bf16.mxu0 %v11203_v9 }
 0x813   :  { %5673 = vmatpush1.bf16.msra.mxu0 %v11195_v63 }
 0x814   :  { %5674 = vmatprep.subr.bf16.mxu0 %v11208_v54 }
 0x816   :  { %5323 = vmatmul.mubr.bf16.gmra.mrb[204].mxu1 %v11204_v33  ;;  %10405 = vmatmul.mubr.bf16.gmra.mrb[204].mxu0 %v11205_v42 }
 0x817   :  { %5675 = vmatpush1.bf16.msra.mxu0 %v11206_v47  ;;  %5694 = vmatprep.mubr.bf16.mxu0 %v13523_v5 }
 0x818   :  { %5676 = vmatprep.subr.bf16.mxu0 %v11214_v24  ;;  %5807 = vmatprep.mubr.bf16.mxu1 %v13523_v5 }
 0x81b   :  { %5677 = vmatpush1.bf16.msra.mxu0 %v11212_v53 }
 0x81c   :  { %6048 = vmatprep.subr.bf16.mxu0 %v11220_v59 }
 0x81e   :  { %5695 = vmatmul.mubr.bf16.vlgmr.msra.gmra.mrb[208].mxu0 %v12850_v10  ;;  %5808 = vmatmul.mubr.bf16.vlgmr.msra.gmra.mrb[208].mxu1 %v12850_v10  ;;  %v11247_v10 = vld [vmem:[#allocation9 + $0x16c] ss:$16 sps:$4 sm:$0xff]  }
 0x81f   :  { %5704 = vmatprep.mubr.bf16.mxu0 %v13523_v5  ;;  %5817 = vmatprep.mubr.bf16.mxu1 %v13523_v5 }
 0x820   :  { %6049 = vmatpush1.bf16.msra.mxu0 %v11218_v30  ;;  %6162 = vmatpush1.bf16.msra.mxu1 %v11230_v56 }
 0x821   :  { %6050 = vmatprep.subr.bf16.mxu0 %v11223_v37  ;;  %6163 = vmatprep.subr.bf16.mxu1 %v11238_v32 }
 0x824   :  { %6051 = vmatpush1.bf16.msra.mxu0 %v11221_v4  ;;  %6164 = vmatpush1.bf16.msra.mxu1 %v11236_v21 }
 0x825   :  { %6052 = vmatprep.subr.bf16.mxu0 %v11226_v20  ;;  %6165 = vmatprep.subr.bf16.mxu1 %v11244_v26 }
 0x826   :  { %5705 = vmatmul.mubr.bf16.gmra.mrb[212].mxu0 %v12893_v62  ;;  %5818 = vmatmul.mubr.bf16.gmra.mrb[212].mxu1 %v12893_v62  ;;  %v11239_v62 = vld [vmem:[#allocation9 + $0x1a0] ss:$16 sps:$4 sm:$0xff]  }
 0x827   :  { %5714 = vmatprep.mubr.bf16.mxu0 %v13523_v5  ;;  %5827 = vmatprep.mubr.bf16.mxu1 %v13523_v5 }
 0x828   :  { %6053 = vmatpush1.bf16.msra.mxu0 %v11224_v34  ;;  %6166 = vmatpush1.bf16.msra.mxu1 %v11242_v28 }
 0x829   :  { %6054 = vmatprep.subr.bf16.mxu0 %v11229_v31  ;;  %6167 = vmatprep.subr.bf16.mxu1 %v11247_v10 }
 0x82c   :  { %6055 = vmatpush1.bf16.msra.mxu0 %v11227_v23  ;;  %6168 = vmatpush1.bf16.msra.mxu1 %v11245_v16 }
 0x82d   :  { %6056 = vmatprep.subr.bf16.mxu0 %v11235_v57  ;;  %6169 = vmatprep.subr.bf16.mxu1 %v11253_v8 }
 0x82e   :  { %5715 = vmatmul.mubr.bf16.gmra.mrb[216].mxu0 %v12904_v25  ;;  %5828 = vmatmul.mubr.bf16.gmra.mrb[216].mxu1 %v12904_v25  ;;  %v11262_v25 = vld [vmem:[#allocation9 + $0x1cc] ss:$16 sps:$4 sm:$0xff]  }
 0x82f   :  { %5724 = vmatprep.mubr.bf16.mxu0 %v13523_v5  ;;  %5837 = vmatprep.mubr.bf16.mxu1 %v13523_v5 }
 0x830   :  { %6057 = vmatpush1.bf16.msra.mxu0 %v11233_v60  ;;  %6170 = vmatpush1.bf16.msra.mxu1 %v11251_v46 }
 0x831   :  { %6058 = vmatprep.subr.bf16.mxu0 %v11241_v6  ;;  %6171 = vmatprep.subr.bf16.mxu1 %v11256_v39 }
 0x834   :  { %6059 = vmatpush1.bf16.msra.mxu0 %v11239_v62  ;;  %6172 = vmatpush1.bf16.msra.mxu1 %v11254_v17 }
 0x835   :  { %6060 = vmatprep.subr.bf16.mxu0 %v11250_v49  ;;  %6173 = vmatprep.subr.bf16.mxu1 %v11262_v25 }
 0x836   :  { %5725 = vmatmul.mubr.bf16.gmra.mrb[220].mxu0 %v12922_v27  ;;  %5838 = vmatmul.mubr.bf16.gmra.mrb[220].mxu1 %v12922_v27  ;;  %v11260_v27 = vld [vmem:[#allocation9 + $0x1c8] ss:$16 sps:$4 sm:$0xff]  }
 0x837   :  { %5734 = vmatprep.mubr.bf16.mxu0 %v13523_v5  ;;  %5847 = vmatprep.mubr.bf16.mxu1 %v13523_v5 }
 0x838   :  { %6061 = vmatpush1.bf16.msra.mxu0 %v11248_v61  ;;  %6174 = vmatpush1.bf16.msra.mxu1 %v11260_v27 }
 0x839   :  { %6062 = vmatprep.subr.bf16.mxu0 %v11259_v52  ;;  %6175 = vmatprep.subr.bf16.mxu1 %v11265_v11 }
 0x83e   :  { %5735 = vmatmul.mubr.bf16.gmra.mrb[224].mxu0 %v12944_v38  ;;  %5848 = vmatmul.mubr.bf16.gmra.mrb[224].mxu1 %v12944_v38  ;;  %v11257_v38 = vld [vmem:[#allocation9 + $0x1e0] ss:$16 sps:$4 sm:$0xff]  }
 0x83f   :  { %5744 = vmatprep.mubr.bf16.mxu0 %v13523_v5  ;;  %5857 = vmatprep.mubr.bf16.mxu1 %v13523_v5 }
 0x840   :  { %6063 = vmatpush1.bf16.msra.mxu0 %v11257_v38 }
 0x846   :  { %5745 = vmatmul.mubr.bf16.gmra.mrb[228].mxu0 %v12959_v1  ;;  %5858 = vmatmul.mubr.bf16.gmra.mrb[228].mxu1 %v12959_v1  ;;  %v11263_v1 = vld [vmem:[#allocation9 + $0x1e8] ss:$16 sps:$4 sm:$0xff]  }
 0x847   :  { %5754 = vmatprep.mubr.bf16.mxu0 %v13523_v5  ;;  %5867 = vmatprep.mubr.bf16.mxu1 %v13523_v5 }
 0x848   :  { %6176 = vmatpush1.bf16.msra.mxu1 %v11263_v1 }
 0x84e   :  { %5755 = vmatmul.mubr.bf16.gmra.mrb[232].mxu0 %v12971_v22  ;;  %5868 = vmatmul.mubr.bf16.gmra.mrb[232].mxu1 %v12971_v22 }
 0x84f   :  { %5764 = vmatprep.mubr.bf16.mxu0 %v13523_v5  ;;  %5877 = vmatprep.mubr.bf16.mxu1 %v13523_v5 }
 0x856   :  { %5765 = vmatmul.mubr.bf16.gmra.mrb[236].mxu0 %v12982_v48  ;;  %5878 = vmatmul.mubr.bf16.gmra.mrb[236].mxu1 %v12982_v48 }
 0x857   :  { %6080 = vmatprep.mubr.bf16.mxu0 %v13523_v5  ;;  %6193 = vmatprep.mubr.bf16.mxu1 %v13523_v5 }
 0x8b1   :  { %v9832_v22 = vpop.f32.mrb[176].mxu1 }
 0x8b2   :  { %v9833_v45 = vpop.f32.mrb[177].mxu1 }
 0x8b3   :  { %v9834_v15 = vadd.f32 %v9833_v45, %v9832_v22  ;;  %v9835_v55 = vpop.f32.mrb[178].mxu1 }
 0x8b4   :  { %v9836_v58 = vpop.f32.mrb[179].mxu1 }
 0x8b5   :  { %v9837_v44 = vadd.f32 %v9836_v58, %v9835_v55 }
 0x8b9   :  { %v9838_v7 = vpop.f32.mrb[180].mxu1 }
 0x8ba   :  { %v9839_v19 = vpop.f32.mrb[181].mxu1 }
 0x8bb   :  { %v9840_v9 = vadd.f32 %v9839_v19, %v9838_v7  ;;  %v9841_v63 = vpop.f32.mrb[182].mxu1 }
 0x8bc   :  { %v9842_v54 = vpop.f32.mrb[183].mxu1 }
 0x8bd   :  { %v9843_v33 = vadd.f32 %v9842_v54, %v9841_v63 }
 0x8c1   :  { %v9844_v42 = vpop.f32.mrb[184].mxu1 }
 0x8c2   :  { %v9845_v47 = vpop.f32.mrb[185].mxu1 }
 0x8c3   :  { %v9846_v48 = vadd.f32 %v9845_v47, %v9844_v42  ;;  %v9847_v24 = vpop.f32.mrb[186].mxu1 }
 0x8c4   :  { %v9848_v53 = vpop.f32.mrb[187].mxu1 }
 0x8c5   :  { %v9849_v59 = vadd.f32 %v9848_v53, %v9847_v24 }
 0x8c9   :  { %v9850_v30 = vpop.f32.mrb[188].mxu1 }
 0x8ca   :  { %v9851_v56 = vpop.f32.mrb[189].mxu1 }
 0x8cb   :  { %v9852_v37 = vadd.f32 %v9851_v56, %v9850_v30  ;;  %v9853_v32 = vpop.f32.mrb[190].mxu1 }
 0x8cc   :  { %v9854_v4 = vpop.f32.mrb[191].mxu1 }
 0x8cd   :  { %v9855_v21 = vadd.f32 %v9854_v4, %v9853_v32 }
 0x8d1   :  { %v10394_v20 = vpop.f32.mrb[192].mxu0  ;;  %v9856_v26 = vpop.f32.mrb[192].mxu1 }
 0x8d2   :  { %v5374_v34 = vadd.f32 %v10394_v20, %v9840_v9  ;;  %v5365_v28 = vpop.f32.mrb[193].mxu0  ;;  %v9857_v31 = vpop.f32.mrb[193].mxu1 }
 0x8d3   :  { %v5366_v10 = vadd.f32 %v9834_v15, %v5365_v28  ;;  %v10395_v23 = vpop.f32.mrb[194].mxu0  ;;  %v9858_v16 = vadd.f32 %v9857_v31, %v9856_v26  ;;  %v9859_v57 = vpop.f32.mrb[194].mxu1 }
 0x8d4   :  { %v5377_v8 = vadd.f32 %v10395_v23, %v9843_v33  ;;  %v5368_v60 = vpop.f32.mrb[195].mxu0  ;;  %v9860_v46 = vpop.f32.mrb[195].mxu1 }
 0x8d5   :  { %v5369_v6 = vadd.f32 %v9837_v44, %v5368_v60  ;;  %v9861_v62 = vadd.f32 %v9860_v46, %v9859_v57 }
 0x8d6   :  { %v5429_v49 = vpack.c.bf16 %v5377_v8, %v5374_v34 }
 0x8d7   :  { %v5428_v61 = vpack.c.bf16 %v5369_v6, %v5366_v10 }
 0x8d9   :  { %6081 = vmatmul.mubr.bf16.vlgmr.msra.gmra.mrb[208].mxu0 %v5428_v61  ;;  %6194 = vmatmul.mubr.bf16.vlgmr.msra.gmra.mrb[208].mxu1 %v5428_v61  ;;  %v10398_v17 = vpop.f32.mrb[196].mxu0  ;;  %v9862_v39 = vpop.f32.mrb[196].mxu1 }
 0x8da   :  { %v5390_v25 = vadd.f32 %v10398_v17, %v9852_v37  ;;  %v5381_v27 = vpop.f32.mrb[197].mxu0  ;;  %6090 = vmatprep.mubr.bf16.mxu0 %v13523_v5  ;;  %6203 = vmatprep.mubr.bf16.mxu1 %v13523_v5  ;;  %v9863_v38 = vpop.f32.mrb[197].mxu1  ;;  %v11266_v17 = vld [vmem:[#allocation8] sm:$0xff]  }
 0x8db   :  { %v5382_v52 = vadd.f32 %v9846_v48, %v5381_v27  ;;  %v10399_v11 = vpop.f32.mrb[198].mxu0  ;;  %v9864_v1 = vadd.f32 %v9863_v38, %v9862_v39  ;;  %v9865_v22 = vpop.f32.mrb[198].mxu1  ;;  %v11268_v39 = vld [vmem:[#allocation8 + $0x40] sm:$0xff]   ;;  %10408 = vmatprep.subr.bf16.mxu0 %v11266_v17  ;;  %v11269_v27 = vld [vmem:[#allocation8 + $0x48] sm:$0xff]   ;;  %v11270_v38 = vld [vmem:[#allocation8 + $0x10] sm:$0xff]  }
 0x8dc   :  { %v5393_v45 = vadd.f32 %v10399_v11, %v9855_v21  ;;  %v5384_v15 = vpop.f32.mrb[199].mxu0  ;;  %v9866_v55 = vpop.f32.mrb[199].mxu1  ;;  %10409 = vmatpush3.bf16.msra.mxu0 %v11266_v17  ;;  %10440 = vmatprep.subr.bf16.mxu1 %v11268_v39  ;;  %v11272_v11 = vld [vmem:[#allocation8 + $0x18] sm:$0xff]  }
 0x8dd   :  { %v5385_v58 = vadd.f32 %v9849_v59, %v5384_v15  ;;  %v9867_v44 = vadd.f32 %v9866_v55, %v9865_v22  ;;  %10441 = vmatpush3.bf16.msra.mxu1 %v11268_v39  ;;  %v11274_v22 = vld [vmem:[#allocation8 + $0x20] sm:$0xff]   ;;  %v11276_v15 = vld [vmem:[#allocation8 + $0x28] sm:$0xff]  }
 0x8de   :  { %v5431_v7 = vpack.c.bf16 %v5393_v45, %v5390_v25  ;;  %v11267_v25 = vld [vmem:[#allocation8 + $0x8] sm:$0xff]   ;;  %10442 = vmatprep.subr.bf16.mxu1 %v11269_v27  ;;  %v11275_v45 = vld [vmem:[#allocation8 + $0x60] sm:$0xff]  }
 0x8df   :  { %v5430_v19 = vpack.c.bf16 %v5385_v58, %v5382_v52  ;;  %10410 = vmatprep.subr.bf16.mxu0 %v11267_v25  ;;  %v11271_v52 = vld [vmem:[#allocation8 + $0x50] sm:$0xff]   ;;  %v11277_v55 = vld [vmem:[#allocation8 + $0x68] sm:$0xff]  }
 0x8e0   :  { %10411 = vmatpush3.bf16.msra.mxu0 %v11267_v25  ;;  %v11278_v58 = vld [vmem:[#allocation8 + $0x30] sm:$0xff]  }
 0x8e1   :  { %6091 = vmatmul.mubr.bf16.gmra.mrb[212].mxu0 %v5429_v49  ;;  %6204 = vmatmul.mubr.bf16.gmra.mrb[212].mxu1 %v5429_v49  ;;  %v10402_v9 = vpop.f32.mrb[200].mxu0  ;;  %v9868_v63 = vpop.f32.mrb[200].mxu1 }
 0x8e2   :  { %6100 = vmatprep.mubr.bf16.mxu0 %v13523_v5  ;;  %6213 = vmatprep.mubr.bf16.mxu1 %v13523_v5  ;;  %v5406_v54 = vadd.f32 %v10402_v9, %v9864_v1  ;;  %v5397_v33 = vpop.f32.mrb[201].mxu0  ;;  %v9869_v42 = vpop.f32.mrb[201].mxu1  ;;  %v11273_v1 = vld [vmem:[#allocation8 + $0x58] sm:$0xff]   ;;  %v13042_v9 = vld [vmem:[#allocation8 + $0x80] sm:$0xff]  }
 0x8e3   :  { %v5398_v47 = vadd.f32 %v9858_v16, %v5397_v33  ;;  %v10403_v48 = vpop.f32.mrb[202].mxu0  ;;  %v9870_v24 = vadd.f32 %v9869_v42, %v9868_v63  ;;  %v9871_v53 = vpop.f32.mrb[202].mxu1  ;;  %10443 = vmatpush3.bf16.msra.mxu1 %v11269_v27  ;;  %10412 = vmatprep.subr.bf16.mxu0 %v11270_v38  ;;  %v6275_v63 = vld [vmem:[#allocation12 + $0x200] sm:$0xff] }
 0x8e4   :  { %v5409_v30 = vadd.f32 %v10403_v48, %v9867_v44  ;;  %v5400_v59 = vpop.f32.mrb[203].mxu0  ;;  %v9872_v56 = vpop.f32.mrb[203].mxu1  ;;  %10444 = vmatprep.subr.bf16.mxu1 %v11271_v52  ;;  %10413 = vmatpush3.bf16.msra.mxu0 %v11270_v38  ;;  %v11279_v44 = vld [vmem:[#allocation8 + $0x70] sm:$0xff]  }
 0x8e5   :  { %v5401_v37 = vadd.f32 %v9861_v62, %v5400_v59  ;;  %v9873_v32 = vadd.f32 %v9872_v56, %v9871_v53  ;;  %10414 = vmatprep.subr.bf16.mxu0 %v11272_v11 }
 0x8e6   :  { %v5433_v4 = vpack.c.bf16 %v5409_v30, %v5406_v54  ;;  %v6276_v54 = vld [vmem:[#allocation12 + $0x208] sm:$0xff] }
 0x8e7   :  { %v5432_v21 = vpack.c.bf16 %v5401_v37, %v5398_v47  ;;  %10445 = vmatpush3.bf16.msra.mxu1 %v11271_v52  ;;  %v6279_v47 = vld [vmem:[#allocation12 + $0x220] sm:$0xff]  ;;  %v6280_v30 = vld [vmem:[#allocation12 + $0x228] sm:$0xff] }
 0x8e8   :  { %10446 = vmatprep.subr.bf16.mxu1 %v11273_v1  ;;  %10415 = vmatpush3.bf16.msra.mxu0 %v11272_v11 }
 0x8e9   :  { %6101 = vmatmul.mubr.bf16.gmra.mrb[216].mxu0 %v5430_v19  ;;  %6214 = vmatmul.mubr.bf16.gmra.mrb[216].mxu1 %v5430_v19  ;;  %v9874_v20 = vpop.f32.mrb[204].mxu1  ;;  %v10406_v26 = vpop.f32.mrb[204].mxu0  ;;  %v11281_v19 = vld [vmem:[#allocation8 + $0x78] sm:$0xff]  }
 0x8ea   :  { %6110 = vmatprep.mubr.bf16.mxu0 %v13523_v5  ;;  %6223 = vmatprep.mubr.bf16.mxu1 %v13523_v5  ;;  %v9875_v34 = vpop.f32.mrb[205].mxu1  ;;  %v5413_v28 = vpop.f32.mrb[205].mxu0 }
 0x8eb   :  { %v9876_v31 = vadd.f32 %v9875_v34, %v9874_v20  ;;  %v9877_v10 = vpop.f32.mrb[206].mxu1  ;;  %v5414_v23 = vadd.f32 %v9870_v24, %v5413_v28  ;;  %v10407_v16 = vpop.f32.mrb[206].mxu0  ;;  %10447 = vmatpush3.bf16.msra.mxu1 %v11273_v1  ;;  %10416 = vmatprep.subr.bf16.mxu0 %v11274_v22 }
 0x8ec   :  { %v9878_v57 = vpop.f32.mrb[207].mxu1  ;;  %v5416_v8 = vpop.f32.mrb[207].mxu0  ;;  %10448 = vmatprep.subr.bf16.mxu1 %v11275_v45  ;;  %10417 = vmatpush3.bf16.msra.mxu0 %v11274_v22  ;;  %v6291_v22 = vld [vmem:[#allocation12 + $0x280] sm:$0xff] }
 0x8ed   :  { %v5422_v60 = vadd.f32 %v10406_v26, %v9876_v31  ;;  %v9879_v46 = vadd.f32 %v9878_v57, %v9877_v10  ;;  %v5417_v6 = vadd.f32 %v9873_v32, %v5416_v8  ;;  %10418 = vmatprep.subr.bf16.mxu0 %v11276_v15  ;;  %v6283_v10 = vld [vmem:[#allocation12 + $0x240] sm:$0xff] }
 0x8ee   :  { %v6287_v8 = vld [vmem:[#allocation12 + $0x260] sm:$0xff] }
 0x8ef   :  { %v5425_v62 = vadd.f32 %v10407_v16, %v9879_v46  ;;  %v5434_v49 = vpack.c.bf16 %v5417_v6, %v5414_v23  ;;  %10449 = vmatpush3.bf16.msra.mxu1 %v11275_v45  ;;  %v6284_v23 = vld [vmem:[#allocation12 + $0x248] sm:$0xff] }
 0x8f0   :  { %10450 = vmatprep.subr.bf16.mxu1 %v11277_v55  ;;  %10419 = vmatpush3.bf16.msra.mxu0 %v11276_v15 }
 0x8f1   :  { %6111 = vmatmul.mubr.bf16.gmra.mrb[220].mxu0 %v5431_v7  ;;  %6224 = vmatmul.mubr.bf16.gmra.mrb[220].mxu1 %v5431_v7  ;;  %v5435_v61 = vpack.c.bf16 %v5425_v62, %v5422_v60  ;;  %v11280_v7 = vld [vmem:[#allocation8 + $0x38] sm:$0xff]   ;;  %v6288_v62 = vld [vmem:[#allocation12 + $0x268] sm:$0xff] }
 0x8f2   :  { %6120 = vmatprep.mubr.bf16.mxu0 %v13523_v5  ;;  %6233 = vmatprep.mubr.bf16.mxu1 %v13523_v5 }
 0x8f3   :  { %10451 = vmatpush3.bf16.msra.mxu1 %v11277_v55  ;;  %10420 = vmatprep.subr.bf16.mxu0 %v11278_v58  ;;  %v6292_v55 = vld [vmem:[#allocation12 + $0x288] sm:$0xff] }
 0x8f4   :  { %10452 = vmatprep.subr.bf16.mxu1 %v11279_v44  ;;  %10421 = vmatpush3.bf16.msra.mxu0 %v11278_v58 }
 0x8f5   :  { %10422 = vmatprep.subr.bf16.mxu0 %v11280_v7 }
 0x8f7   :  { %10453 = vmatpush3.bf16.msra.mxu1 %v11279_v44 }
 0x8f8   :  { %10454 = vmatprep.subr.bf16.mxu1 %v11281_v19  ;;  %10423 = vmatpush3.bf16.msra.mxu0 %v11280_v7 }
 0x8f9   :  { %6121 = vmatmul.mubr.bf16.gmra.mrb[224].mxu0 %v5432_v21  ;;  %6234 = vmatmul.mubr.bf16.gmra.mrb[224].mxu1 %v5432_v21 }
 0x8fa   :  { %6130 = vmatprep.mubr.bf16.mxu0 %v13523_v5  ;;  %6243 = vmatprep.mubr.bf16.mxu1 %v13523_v5 }
 0x8fb   :  { %10455 = vmatpush3.bf16.msra.mxu1 %v11281_v19  ;;  %10472 = vmatprep.subr.bf16.mxu0 %v13042_v9 }
 0x901   :  { %6131 = vmatmul.mubr.bf16.gmra.mrb[228].mxu0 %v5433_v4  ;;  %6244 = vmatmul.mubr.bf16.gmra.mrb[228].mxu1 %v5433_v4 }
 0x902   :  { %6140 = vmatprep.mubr.bf16.mxu0 %v13523_v5  ;;  %6253 = vmatprep.mubr.bf16.mxu1 %v13523_v5 }
 0x909   :  { %6141 = vmatmul.mubr.bf16.gmra.mrb[232].mxu0 %v5434_v49  ;;  %6254 = vmatmul.mubr.bf16.gmra.mrb[232].mxu1 %v5434_v49 }
 0x90a   :  { %6150 = vmatprep.mubr.bf16.mxu0 %v13523_v5  ;;  %6263 = vmatprep.mubr.bf16.mxu1 %v13523_v5 }
 0x911   :  { %6151 = vmatmul.mubr.bf16.gmra.mrb[236].mxu0 %v5435_v61  ;;  %6264 = vmatmul.mubr.bf16.gmra.mrb[236].mxu1 %v5435_v61 }
 0x9ac   :  { %v6082_v33 = vpop.f32.mrb[208].mxu0  ;;  %v13045_v42 = vpop.f32.mrb[208].mxu1 }
 0x9ad   :  { %v6339_v48 = vadd.f32 %v6275_v63, %v6082_v33  ;;  %v6084_v24 = vpop.f32.mrb[209].mxu0  ;;  %v13047_v53 = vpop.f32.mrb[209].mxu1  ;;  %v6295_v63 = vld [vmem:[#allocation12 + $0x2a0] sm:$0xff] }
 0x9ae   :  { %v6340_v59 = vadd.f32 %v6276_v54, %v6084_v24  ;;  %v6086_v56 = vpop.f32.mrb[210].mxu0  ;;  %v13049_v37 = vpop.f32.mrb[210].mxu1 }
 0x9af   :  { %v9336_v32 = vmul.f32 -1.442695, %v6339_v48  ;;  %v6343_v4 = vadd.f32 %v6279_v47, %v6086_v56  ;;  %v6088_v21 = vpop.f32.mrb[211].mxu0  ;;  %v13051_v20 = vpop.f32.mrb[211].mxu1 }
 0x9b0   :  { %v9352_v26 = vmul.f32 -1.442695, %v6340_v59  ;;  %v6344_v34 = vadd.f32 %v6280_v30, %v6088_v21  ;;  %v6296_v30 = vld [vmem:[#allocation12 + $0x2a8] sm:$0xff] }
 0x9b1   :  { %11738 = vpow2.f32 %v9336_v32  ;;  %v9337_v28 = vmul.f32 -1.442695, %v6343_v4 }
 0x9b2   :  { %11740 = vpow2.f32 %v9352_v26  ;;  %v9353_v31 = vmul.f32 -1.442695, %v6344_v34 }
 0x9b3   :  { %11742 = vpow2.f32 %v9337_v28 }
 0x9b4   :  { %v6092_v16 = vpop.f32.mrb[212].mxu0  ;;  %v13053_v57 = vpop.f32.mrb[212].mxu1  ;;  %11744 = vpow2.f32 %v9353_v31 }
 0x9b5   :  { %v6347_v60 = vadd.f32 %v6283_v10, %v6092_v16  ;;  %v6094_v46 = vpop.f32.mrb[213].mxu0  ;;  %v13055_v6 = vpop.f32.mrb[213].mxu1 }
 0x9b6   :  { %v6348_v49 = vadd.f32 %v6284_v23, %v6094_v46  ;;  %v6096_v61 = vpop.f32.mrb[214].mxu0  ;;  %v13057_v17 = vpop.f32.mrb[214].mxu1 }
 0x9b7   :  { %v9338_v39 = vmul.f32 -1.442695, %v6347_v60  ;;  %v6351_v25 = vadd.f32 %v6287_v8, %v6096_v61  ;;  %v6098_v27 = vpop.f32.mrb[215].mxu0  ;;  %v13059_v38 = vpop.f32.mrb[215].mxu1  ;;  %v6299_v60 = vld [vmem:[#allocation12 + $0x2c0] sm:$0xff] }
 0x9b8   :  { %v9354_v52 = vmul.f32 -1.442695, %v6348_v49  ;;  %v6352_v11 = vadd.f32 %v6288_v62, %v6098_v27  ;;  %v6300_v49 = vld [vmem:[#allocation12 + $0x2c8] sm:$0xff] }
 0x9b9   :  { %11746 = vpow2.f32 %v9338_v39  ;;  %v9339_v1 = vmul.f32 -1.442695, %v6351_v25  ;;  %v6278_v39 = vld [vmem:[#allocation12 + $0x218] sm:$0xff] }
 0x9ba   :  { %11748 = vpow2.f32 %v9354_v52  ;;  %v9355_v15 = vmul.f32 -1.442695, %v6352_v11  ;;  %v6303_v11 = vld [vmem:[#allocation12 + $0x2e0] sm:$0xff] }
 0x9bb   :  { %v11739_v45 = vpop.eup %11738  ;;  %11750 = vpow2.f32 %v9339_v1 }
 0x9bc   :  { %v11741_v58 = vpop.eup %11740  ;;  %v6451_v44 = vadd.f32 1.0, %v11739_v45  ;;  %v6102_v7 = vpop.f32.mrb[216].mxu0 }
 0x9bd   :  { %v13061_v19 = vpop.f32.mrb[216].mxu1  ;;  %v11743_v54 = vpop.eup %11742  ;;  %v6547_v33 = vadd.f32 1.0, %v11741_v58  ;;  %v6355_v47 = vadd.f32 %v6291_v22, %v6102_v7  ;;  %v6277_v22 = vld [vmem:[#allocation12 + $0x210] sm:$0xff]  ;;  %v6282_v7 = vld [vmem:[#allocation12 + $0x238] sm:$0xff] }
 0x9be   :  { %v6104_v48 = vpop.f32.mrb[217].mxu0  ;;  %v13063_v24 = vpop.f32.mrb[217].mxu1  ;;  %11752 = vrcp.f32 %v6451_v44  ;;  %v6452_v59 = vadd.f32 1.0, %v11743_v54  ;;  %v6304_v44 = vld [vmem:[#allocation12 + $0x2e8] sm:$0xff] }
 0x9bf   :  { %v6356_v56 = vadd.f32 %v6292_v55, %v6104_v48  ;;  %v6106_v32 = vpop.f32.mrb[218].mxu0  ;;  %v13065_v4 = vpop.f32.mrb[218].mxu1  ;;  %11754 = vpow2.f32 %v9355_v15  ;;  %v9340_v21 = vmul.f32 -1.442695, %v6355_v47  ;;  %v6342_v48 = vadd.f32 %v6278_v39, %v13047_v53 }
 0x9c0   :  { %v6359_v26 = vadd.f32 %v6295_v63, %v6106_v32  ;;  %v6108_v34 = vpop.f32.mrb[219].mxu0  ;;  %v13067_v28 = vpop.f32.mrb[219].mxu1  ;;  %11756 = vrcp.f32 %v6452_v59 }
 0x9c1   :  { %v11745_v31 = vpop.eup %11744  ;;  %v9356_v10 = vmul.f32 -1.442695, %v6356_v56  ;;  %v6360_v23 = vadd.f32 %v6296_v30, %v6108_v34  ;;  %11758 = vrcp.f32 %v6547_v33  ;;  %v6281_v34 = vld [vmem:[#allocation12 + $0x230] sm:$0xff] }
 0x9c2   :  { %v9341_v16 = vmul.f32 -1.442695, %v6359_v26  ;;  %11760 = vpow2.f32 %v9340_v21  ;;  %v6548_v62 = vadd.f32 1.0, %v11745_v31  ;;  %v6341_v26 = vadd.f32 %v6277_v22, %v13045_v42 }
 0x9c3   :  { %v9357_v8 = vmul.f32 -1.442695, %v6360_v23  ;;  %v11747_v46 = vpop.eup %11746  ;;  %11762 = vpow2.f32 %v9356_v10  ;;  %v6345_v39 = vadd.f32 %v6281_v34, %v13049_v37 }
 0x9c4   :  { %v11749_v61 = vpop.eup %11748  ;;  %v6453_v25 = vadd.f32 1.0, %v11747_v46  ;;  %11764 = vpow2.f32 %v9341_v16  ;;  %v6112_v27 = vpop.f32.mrb[220].mxu0 }
 0x9c5   :  { %v13069_v52 = vpop.f32.mrb[220].mxu1  ;;  %v11751_v1 = vpop.eup %11750  ;;  %v6549_v45 = vadd.f32 1.0, %v11749_v61  ;;  %11766 = vpow2.f32 %v9357_v8  ;;  %v6363_v15 = vadd.f32 %v6299_v60, %v6112_v27  ;;  %v6346_v8 = vadd.f32 %v6282_v7, %v13051_v20 }
 0x9c6   :  { %v6114_v55 = vpop.f32.mrb[221].mxu0  ;;  %v13071_v58 = vpop.f32.mrb[221].mxu1  ;;  %11768 = vrcp.f32 %v6453_v25  ;;  %v6454_v63 = vadd.f32 1.0, %v11751_v1  ;;  %v6308_v25 = vld [vmem:[#allocation12 + $0x308] sm:$0xff] }
 0x9c7   :  { %v6364_v54 = vadd.f32 %v6300_v49, %v6114_v55  ;;  %v6116_v33 = vpop.f32.mrb[222].mxu0  ;;  %v13073_v47 = vpop.f32.mrb[222].mxu1  ;;  %11770 = vrcp.f32 %v6548_v62  ;;  %v9342_v30 = vmul.f32 -1.442695, %v6363_v15  ;;  %v6307_v62 = vld [vmem:[#allocation12 + $0x300] sm:$0xff]  ;;  %v6285_v55 = vld [vmem:[#allocation12 + $0x250] sm:$0xff] }
 0x9c8   :  { %v6367_v59 = vadd.f32 %v6303_v11, %v6116_v33  ;;  %v6118_v56 = vpop.f32.mrb[223].mxu0  ;;  %v13076_v32 = vpop.f32.mrb[223].mxu1  ;;  %11772 = vrcp.f32 %v6454_v63  ;;  %v6286_v11 = vld [vmem:[#allocation12 + $0x258] sm:$0xff] }
 0x9c9   :  { %v11753_v21 = vpop.eup %11752  ;;  %v9358_v31 = vmul.f32 -1.442695, %v6364_v54  ;;  %v6368_v10 = vadd.f32 %v6304_v44, %v6118_v56  ;;  %11774 = vrcp.f32 %v6549_v45  ;;  %v6290_v33 = vld [vmem:[#allocation12 + $0x278] sm:$0xff] }
 0x9ca   :  { %v11755_v23 = vpop.eup %11754  ;;  %v6595_v16 = vmul.f32 %v11753_v21, %v6342_v48  ;;  %v9343_v60 = vmul.f32 -1.442695, %v6367_v59  ;;  %11776 = vpow2.f32 %v9342_v30  ;;  %v6350_v21 = vadd.f32 %v6286_v11, %v13055_v6 }
 0x9cb   :  { %v11757_v53 = vpop.eup %11756  ;;  %v9359_v46 = vmul.f32 -1.442695, %v6368_v10  ;;  %11778 = vpow2.f32 %v9358_v31  ;;  %v6550_v1 = vadd.f32 1.0, %v11755_v23 }
 0x9cc   :  { %v13080_v49 = vpop.eup %11758  ;;  %v6611_v61 = vadd.f32 %v6595_v16, %v6341_v26  ;;  %v6596_v42 = vmul.f32 %v11757_v53, %v6346_v8  ;;  %11780 = vpow2.f32 %v9343_v60  ;;  %v6122_v22 = vpop.f32.mrb[224].mxu0  ;;  %v6349_v16 = vadd.f32 %v6285_v55, %v13053_v57  ;;  %v6289_v8 = vld [vmem:[#allocation12 + $0x270] sm:$0xff] }
 0x9cd   :  { %v11761_v27 = vpop.eup %11760  ;;  %v13083_v20 = vpop.f32.mrb[224].mxu1  ;;  %v6371_v7 = vadd.f32 %v6307_v62, %v6122_v22  ;;  %v6354_v62 = vadd.f32 %v6290_v33, %v13059_v38  ;;  %v6353_v11 = vadd.f32 %v6289_v8, %v13057_v17  ;;  %v6293_v22 = vld [vmem:[#allocation12 + $0x290] sm:$0xff] }
 0x9ce   :  { %v11763_v45 = vpop.eup %11762  ;;  %11782 = vtanh.f32 %v6611_v61  ;;  %v6612_v15 = vadd.f32 %v6596_v42, %v6345_v39  ;;  %v6455_v44 = vadd.f32 1.0, %v11761_v27  ;;  %v6124_v63 = vpop.f32.mrb[225].mxu0  ;;  %v6311_v39 = vld [vmem:[#allocation12 + $0x320] sm:$0xff] }
 0x9cf   :  { %v13085_v54 = vpop.f32.mrb[225].mxu1  ;;  %v11765_v37 = vpop.eup %11764  ;;  %11784 = vpow2.f32 %v9359_v46  ;;  %v6372_v48 = vadd.f32 %v6308_v25, %v6124_v63  ;;  %v6551_v26 = vadd.f32 1.0, %v11763_v45  ;;  %v9344_v60 = vmul.f32 -1.442695, %v6371_v7  ;;  %v6294_v45 = vld [vmem:[#allocation12 + $0x298] sm:$0xff] }
 0x9d0   :  { %v6126_v30 = vpop.f32.mrb[226].mxu0  ;;  %v13087_v59 = vpop.f32.mrb[226].mxu1  ;;  %11786 = vtanh.f32 %v6612_v15  ;;  %v6456_v34 = vadd.f32 1.0, %v11765_v37  ;;  %v6315_v15 = vld [vmem:[#allocation12 + $0x340] sm:$0xff] }
 0x9d1   :  { %v11767_v56 = vpop.eup %11766  ;;  %v6128_v31 = vpop.f32.mrb[227].mxu0  ;;  %11788 = vrcp.f32 %v6455_v44  ;;  %v9360_v42 = vmul.f32 -1.442695, %v6372_v48  ;;  %v6312_v44 = vld [vmem:[#allocation12 + $0x328] sm:$0xff] }
 0x9d2   :  { %v13090_v10 = vpop.f32.mrb[227].mxu1  ;;  %v11769_v23 = vpop.eup %11768  ;;  %11790 = vrcp.f32 %v6550_v1  ;;  %v6552_v61 = vadd.f32 1.0, %v11767_v56  ;;  %v6375_v1 = vadd.f32 %v6311_v39, %v6126_v30 }
 0x9d3   :  { %v13093_v53 = vpop.eup %11770  ;;  %v6597_v46 = vmul.f32 %v11769_v23, %v6350_v21  ;;  %11792 = vrcp.f32 %v6456_v34  ;;  %v6357_v21 = vadd.f32 %v6293_v22, %v13061_v19  ;;  %v6298_v34 = vld [vmem:[#allocation12 + $0x2b8] sm:$0xff]  ;;  %v6675_v22 = vmul.f32 %v13080_v49, %v12818_v40 }
 0x9d4   :  { %v11773_v6 = vpop.eup %11772  ;;  %11794 = vrcp.f32 %v6551_v26  ;;  %v6132_v38 = vpop.f32.mrb[228].mxu0  ;;  %v6358_v26 = vadd.f32 %v6294_v45, %v13063_v24  ;;  %v6644_v19 = vsub.f32 1.0, %v13093_v53  ;;  %v9345_v24 = vmul.f32 -1.442695, %v6375_v1 }
 0x9d5   :  { %v13096_v25 = vpop.eup %11774  ;;  %v6613_v27 = vadd.f32 %v6597_v46, %v6349_v16  ;;  %v6598_v57 = vmul.f32 %v11773_v6, %v6354_v62  ;;  %11796 = vpow2.f32 %v9344_v60  ;;  %v13099_v7 = vpop.f32.mrb[228].mxu1  ;;  %v6379_v23 = vadd.f32 %v6315_v15, %v6132_v38 }
 0x9d6   :  { %v11777_v55 = vpop.eup %11776  ;;  %11798 = vrcp.f32 %v6552_v61  ;;  %v6134_v48 = vpop.f32.mrb[229].mxu0  ;;  %v6376_v62 = vadd.f32 %v6312_v44, %v6128_v31  ;;  %v6319_v31 = vld [vmem:[#allocation12 + $0x360] sm:$0xff] }
 0x9d7   :  { %v11779_v63 = vpop.eup %11778  ;;  %v6614_v37 = vadd.f32 %v6598_v57, %v6353_v11  ;;  %v6457_v33 = vadd.f32 1.0, %v11777_v55  ;;  %v13101_v56 = vpop.f32.mrb[229].mxu1  ;;  %11800 = vpow2.f32 %v9360_v42  ;;  %v6643_v11 = vsub.f32 1.0, %v13080_v49  ;;  %v6316_v42 = vld [vmem:[#allocation12 + $0x348] sm:$0xff]  ;;  %v6297_v55 = vld [vmem:[#allocation12 + $0x2b0] sm:$0xff] }
 0x9d8   :  { %v11781_v17 = vpop.eup %11780  ;;  %v6136_v30 = vpop.f32.mrb[230].mxu0  ;;  %11802 = vtanh.f32 %v6613_v27  ;;  %v6553_v60 = vadd.f32 1.0, %v11779_v63  ;;  %v6362_v27 = vadd.f32 %v6298_v34, %v13067_v28  ;;  %v9346_v44 = vmul.f32 -1.442695, %v6379_v23 }
 0x9d9   :  { %v13105_v16 = vpop.f32.mrb[230].mxu1  ;;  %v11783_v8 = vpop.eup %11782  ;;  %v6458_v46 = vadd.f32 1.0, %v11781_v17  ;;  %11804 = vrcp.f32 %v6457_v33  ;;  %v9361_v1 = vmul.f32 -1.442695, %v6376_v62  ;;  %v6380_v5 = vadd.f32 %v6316_v42, %v6134_v48 }
 0x9da   :  { %v6138_v61 = vpop.f32.mrb[231].mxu0  ;;  %v13107_v39 = vpop.f32.mrb[231].mxu1  ;;  %11806 = vtanh.f32 %v6614_v37  ;;  %v6659_v38 = vmul.f32 %v11783_v8, %v6643_v11  ;;  %v6383_v40 = vadd.f32 %v6319_v31, %v6136_v30  ;;  %v6361_v8 = vadd.f32 %v6297_v55, %v13065_v4  ;;  %v6302_v11 = vld [vmem:[#allocation12 + $0x2d8] sm:$0xff]  ;;  %v6324_v55 = vld [vmem:[#allocation12 + $0x388] sm:$0xff] }
 0x9db   :  { %v11785_v6 = vpop.eup %11784  ;;  %11808 = vrcp.f32 %v6458_v46 }
 0x9dc   :  { %v11787_v57 = vpop.eup %11786  ;;  %v6554_v45 = vadd.f32 1.0, %v11785_v6  ;;  %11810 = vrcp.f32 %v6553_v60  ;;  %v6142_v49 = vpop.f32.mrb[232].mxu0  ;;  %v13118_v37 = vadd.f32 %v6675_v22, %v6659_v38  ;;  %v6301_v6 = vld [vmem:[#allocation12 + $0x2d0] sm:$0xff]  ;;  %v13525_v38 = vld [vmem:[#allocation23_spill] sm:$0xff] }
 0x9dd   :  { %v11789_v15 = vpop.eup %11788  ;;  %v6660_v63 = vmul.f32 %v11787_v57, %v6644_v19  ;;  %11812 = vpow2.f32 %v9345_v24  ;;  %v13116_v28 = vpop.f32.mrb[232].mxu1  ;;  %v6387_v30 = vadd.f32 %v6323_v18, %v6142_v49  ;;  %v6365_v31 = vadd.f32 %v6301_v6, %v13069_v52 }
 0x9de   :  { %v13114_v17 = vpop.eup %11790  ;;  %v6599_v33 = vmul.f32 %v11789_v15, %v6358_v26  ;;  %13524 = vst [vmem:[#allocation22_spill] sm:$0xff] %v13118_v37  ;;  %11814 = vrcp.f32 %v6554_v45  ;;  %v6320_v26 = vld [vmem:[#allocation12 + $0x368] sm:$0xff]  ;;  %v6144_v60 = vpop.f32.mrb[233].mxu0  ;;  %v9347_v15 = vmul.f32 -1.442695, %v6383_v40  ;;  %v6366_v49 = vadd.f32 %v6302_v11, %v13071_v58  ;;  %v6309_v40 = vld [vmem:[#allocation12 + $0x310] sm:$0xff] }
 0x9df   :  { %v11793_v29 = vpop.eup %11792  ;;  %v13123_v48 = vpop.f32.mrb[233].mxu1  ;;  %11816 = vpow2.f32 %v9346_v44  ;;  %v6384_v18 = vadd.f32 %v6320_v26, %v6138_v61  ;;  %v6388_v6 = vadd.f32 %v6324_v55, %v6144_v60  ;;  %v6327_v26 = vld [vmem:[#allocation12 + $0x3a0] sm:$0xff] }
 0x9e0   :  { %v13120_v34 = vpop.eup %11794  ;;  %v6615_v23 = vadd.f32 %v6599_v33, %v6357_v21  ;;  %v6600_v46 = vmul.f32 %v11793_v29, %v6362_v27  ;;  %v6146_v19 = vpop.f32.mrb[234].mxu0  ;;  %v6306_v21 = vld [vmem:[#allocation12 + $0x2f8] sm:$0xff]  ;;  %11818 = vpow2.f32 %v9361_v1  ;;  %v9362_v29 = vmul.f32 -1.442695, %v6380_v5  ;;  %v6305_v1 = vld [vmem:[#allocation12 + $0x2f0] sm:$0xff] }
 0x9e1   :  { %v11797_v62 = vpop.eup %11796  ;;  %v13125_v24 = vpop.f32.mrb[234].mxu1  ;;  %v6676_v33 = vmul.f32 %v13093_v53, %v13525_v38  ;;  %v6369_v58 = vadd.f32 %v6305_v1, %v13073_v47  ;;  %v9363_v11 = vmul.f32 -1.442695, %v6384_v18  ;;  %v6373_v18 = vadd.f32 %v6309_v40, %v13083_v20 }
 0x9e2   :  { %v13127_v42 = vpop.eup %11798  ;;  %v6616_v57 = vadd.f32 %v6600_v46, %v6361_v8  ;;  %v6459_v22 = vadd.f32 1.0, %v11797_v62  ;;  %v13129_v4 = vpop.f32.mrb[235].mxu0  ;;  %11820 = vtanh.f32 %v6615_v23  ;;  %v6645_v46 = vsub.f32 1.0, %v13096_v25 }
 0x9e3   :  { %v13131_v27 = vpop.f32.mrb[235].mxu1  ;;  %v11801_v45 = vpop.eup %11800  ;;  %v6370_v62 = vadd.f32 %v6306_v21, %v13076_v32  ;;  %v9348_v23 = vmul.f32 -1.442695, %v6387_v30  ;;  %v13141_v53 = vadd.f32 %v6676_v33, %v6660_v63  ;;  %v6331_v63 = vld [vmem:[#allocation12 + $0x3c0] sm:$0xff]  ;;  %v6391_v55 = vadd.f32 %v6327_v26, %v6146_v19 }
 0x9e4   :  { %v11803_v44 = vpop.eup %11802  ;;  %11822 = vtanh.f32 %v6616_v57  ;;  %v6555_v5 = vadd.f32 1.0, %v11801_v45  ;;  %v6152_v45 = vpop.f32.mrb[236].mxu0  ;;  %v6677_v19 = vmul.f32 %v13096_v25, %v12881_v35  ;;  %v6648_v25 = vsub.f32 1.0, %v13127_v42 }
 0x9e5   :  { %v11805_v8 = vpop.eup %11804  ;;  %11824 = vrcp.f32 %v6459_v22  ;;  %13526 = vst [vmem:[#allocation23_spill] sm:$0xff] %v13141_v53  ;;  %v13144_v38 = vpop.f32.mrb[236].mxu1  ;;  %v6661_v32 = vmul.f32 %v11803_v44, %v6645_v46  ;;  %v13150_v60 = vpack.c.bf16 %v13141_v53, %v13118_v37  ;;  %v6328_v44 = vld [vmem:[#allocation12 + $0x3a8] sm:$0xff]  ;;  %v9364_v46 = vmul.f32 -1.442695, %v6388_v6 }
 0x9e6   :  { %v13139_v52 = vpop.eup %11806  ;;  %v6601_v61 = vmul.f32 %v11805_v8, %v6366_v49  ;;  %11826 = vpow2.f32 %v9362_v29  ;;  %v6310_v49 = vld [vmem:[#allocation12 + $0x318] sm:$0xff]  ;;  %v13152_v29 = vpop.f32.mrb[237].mxu0  ;;  %v6395_v40 = vadd.f32 %v6331_v63, %v6152_v45  ;;  %v9349_v53 = vmul.f32 -1.442695, %v6391_v55 }
 0x9e7   :  { %v11809_v57 = vpop.eup %11808  ;;  %11828 = vpow2.f32 %v9347_v15  ;;  %v13154_v47 = vpop.f32.mrb[237].mxu1  ;;  %10424 = vmatprep.mubr.bf16.mxu0 %v13150_v60  ;;  %10456 = vmatprep.mubr.bf16.mxu1 %v13150_v60 }
 0x9e8   :  { %v13146_v21 = vpop.eup %11810  ;;  %v6617_v30 = vadd.f32 %v6601_v61, %v6365_v31  ;;  %v6602_v22 = vmul.f32 %v11809_v57, %v6370_v62  ;;  %11830 = vrcp.f32 %v6555_v5  ;;  %v6156_v33 = vpop.f32.mrb[238].mxu0  ;;  %v6646_v57 = vsub.f32 1.0, %v13114_v17 }
 0x9e9   :  { %v11813_v15 = vpop.eup %11812  ;;  %11832 = vpow2.f32 %v9348_v23  ;;  %v13157_v31 = vpop.f32.mrb[238].mxu1  ;;  %v6374_v23 = vadd.f32 %v6310_v49, %v13085_v54  ;;  %v6679_v54 = vmul.f32 %v13120_v34, %v12888_v41  ;;  %v6335_v49 = vld [vmem:[#allocation12 + $0x3e0] sm:$0xff] }
 0x9ea   :  { %v13159_v1 = vpop.eup %11814  ;;  %11834 = vtanh.f32 %v6617_v30  ;;  %v6618_v5 = vadd.f32 %v6602_v22, %v6369_v58  ;;  %v6460_v8 = vadd.f32 1.0, %v11813_v15  ;;  %v13163_v62 = vpop.f32.mrb[239].mxu0  ;;  %v6392_v58 = vadd.f32 %v6328_v44, %v13129_v4 }
 0x9eb   :  { %v13165_v61 = vpop.f32.mrb[239].mxu1  ;;  %v11817_v20 = vpop.eup %11816  ;;  %11836 = vpow2.f32 %v9363_v11  ;;  %v6678_v22 = vmul.f32 %v13114_v17, %v12884_v3  ;;  %v6647_v15 = vsub.f32 1.0, %v13120_v34  ;;  %v6680_v11 = vmul.f32 %v13127_v42, %v12895_v51 }
 0x9ec   :  { %v11819_v26 = vpop.eup %11818  ;;  %11838 = vtanh.f32 %v6618_v5  ;;  %v6461_v6 = vadd.f32 1.0, %v11817_v20  ;;  %v9350_v4 = vmul.f32 -1.442695, %v6395_v40  ;;  %v6662_v3 = vmul.f32 %v13139_v52, %v6646_v57  ;;  %v6332_v5 = vld [vmem:[#allocation12 + $0x3c8] sm:$0xff] }
 0x9ed   :  { %v11821_v30 = vpop.eup %11820  ;;  %11840 = vrcp.f32 %v6460_v8  ;;  %v13181_v17 = vadd.f32 %v6677_v19, %v6661_v32  ;;  %v9365_v44 = vmul.f32 -1.442695, %v6392_v58  ;;  %v6649_v20 = vsub.f32 1.0, %v13146_v21 }
 0x9ee   :  { %v11823_v35 = vpop.eup %11822  ;;  %11842 = vpow2.f32 %v9364_v46  ;;  %v6663_v8 = vmul.f32 %v11821_v30, %v6647_v15  ;;  %v6556_v37 = vadd.f32 1.0, %v11819_v26  ;;  %v13184_v51 = vadd.f32 %v6678_v22, %v6662_v3  ;;  %v11283_v30 = vld [vmem:[#allocation8 + $0x88] sm:$0xff]  }
 0x9ef   :  { %v11825_v45 = vpop.eup %11824  ;;  %11844 = vrcp.f32 %v6461_v6  ;;  %v6664_v41 = vmul.f32 %v11823_v35, %v6648_v25  ;;  %v6399_v52 = vadd.f32 %v6335_v49, %v6156_v33  ;;  %v6396_v57 = vadd.f32 %v6332_v5, %v13152_v29  ;;  %v6313_v35 = vld [vmem:[#allocation12 + $0x330] sm:$0xff] }
 0x9f0   :  { %v11827_v63 = vpop.eup %11826  ;;  %v6603_v55 = vmul.f32 %v11825_v45, %v6374_v23  ;;  %11846 = vpow2.f32 %v9349_v53  ;;  %v13188_v32 = vadd.f32 %v6679_v54, %v6663_v8  ;;  %v6314_v23 = vld [vmem:[#allocation12 + $0x338] sm:$0xff]  ;;  %v13193_v6 = vpack.c.bf16 %v13184_v51, %v13181_v17  ;;  %v6317_v45 = vld [vmem:[#allocation12 + $0x350] sm:$0xff] }
 0x9f1   :  { %v11829_v34 = vpop.eup %11828  ;;  %11848 = vpow2.f32 %v9350_v4  ;;  %v13195_v26 = vadd.f32 %v6680_v11, %v6664_v41  ;;  %v6681_v58 = vmul.f32 %v13146_v21, %v12912_v14  ;;  %v6650_v15 = vsub.f32 1.0, %v13159_v1  ;;  %v6318_v54 = vld [vmem:[#allocation12 + $0x358] sm:$0xff]  ;;  %v11284_v8 = vld [vmem:[#allocation8 + $0x90] sm:$0xff]  }
 0x9f2   :  { %v13186_v42 = vpop.eup %11830  ;;  %v6619_v46 = vadd.f32 %v6603_v55, %v6373_v18  ;;  %v6462_v40 = vadd.f32 1.0, %v11829_v34  ;;  %v6557_v18 = vadd.f32 1.0, %v11827_v63  ;;  %10425 = vmatmul.mubr.bf16.vlgmr.msra.gmra.mrb[240].mxu0 %v13193_v6  ;;  %10457 = vmatmul.mubr.bf16.vlgmr.msra.gmra.mrb[240].mxu1 %v13193_v6  ;;  %v6682_v21 = vmul.f32 %v13159_v1, %v12917_v13  ;;  %v6336_v63 = vld [vmem:[#allocation12 + $0x3e8] sm:$0xff] }
 0x9f3   :  { %v11833_v19 = vpop.eup %11832  ;;  %v13204_v29 = vpack.c.bf16 %v13195_v26, %v13188_v32  ;;  %v6378_v11 = vadd.f32 %v6314_v23, %v13090_v10  ;;  %v9351_v4 = vmul.f32 -1.442695, %v6399_v52  ;;  %10473 = vmatpush3.bf16.msra.mxu0 %v13042_v9  ;;  %v9366_v3 = vmul.f32 -1.442695, %v6396_v57  ;;  %v11285_v23 = vld [vmem:[#allocation8 + $0x98] sm:$0xff]  }
 0x9f4   :  { %v11835_v53 = vpop.eup %11834  ;;  %11850 = vtanh.f32 %v6619_v46  ;;  %v6463_v33 = vadd.f32 1.0, %v11833_v19  ;;  %v6382_v1 = vadd.f32 %v6318_v54, %v13101_v56  ;;  %10474 = vmatprep.subr.bf16.mxu0 %v11283_v30  ;;  %v6381_v41 = vadd.f32 %v6317_v45, %v13099_v7 }
 0x9f5   :  { %v11837_v22 = vpop.eup %11836  ;;  %11852 = vrcp.f32 %v6462_v40  ;;  %v6665_v25 = vmul.f32 %v11835_v53, %v6649_v20  ;;  %10428 = vmatprep.mubr.bf16.mxu0 %v13204_v29  ;;  %10460 = vmatprep.mubr.bf16.mxu1 %v13204_v29  ;;  %v6400_v52 = vadd.f32 %v6336_v63, %v13163_v62  ;;  %v6326_v62 = vld [vmem:[#allocation12 + $0x398] sm:$0xff]  ;;  %v6683_v54 = vmul.f32 %v13186_v42, %v12932_v0 }
 0x9f6   :  { %v11839_v14 = vpop.eup %11838  ;;  %11854 = vrcp.f32 %v6556_v37  ;;  %v6377_v37 = vadd.f32 %v6313_v35, %v13087_v59  ;;  %v6558_v34 = vadd.f32 1.0, %v11837_v22  ;;  %v6322_v59 = vld [vmem:[#allocation12 + $0x378] sm:$0xff] }
 0x9f7   :  { %v11841_v49 = vpop.eup %11840  ;;  %11856 = vrcp.f32 %v6463_v33  ;;  %v6666_v55 = vmul.f32 %v11839_v14, %v6650_v15  ;;  %v13212_v5 = vadd.f32 %v6681_v58, %v6665_v25  ;;  %10475 = vmatpush3.bf16.msra.mxu0 %v11283_v30  ;;  %v6651_v58 = vsub.f32 1.0, %v13186_v42  ;;  %v6325_v25 = vld [vmem:[#allocation12 + $0x390] sm:$0xff] }
 0x9f8   :  { %v11843_v13 = vpop.eup %11842  ;;  %v6604_v10 = vmul.f32 %v11841_v49, %v6378_v11  ;;  %11858 = vrcp.f32 %v6557_v18  ;;  %10476 = vmatprep.subr.bf16.mxu0 %v11284_v8  ;;  %v6321_v18 = vld [vmem:[#allocation12 + $0x370] sm:$0xff]  ;;  %v6386_v30 = vadd.f32 %v6322_v59, %v13107_v39  ;;  %v9367_v15 = vmul.f32 -1.442695, %v6400_v52 }
 0x9f9   :  { %v11845_v9 = vpop.eup %11844  ;;  %11860 = vpow2.f32 %v9365_v44  ;;  %v13217_v20 = vadd.f32 %v6682_v21, %v6666_v55  ;;  %v6559_v44 = vadd.f32 1.0, %v11843_v13  ;;  %v11286_v21 = vld [vmem:[#allocation8 + $0xa0] sm:$0xff]   ;;  %v6385_v45 = vadd.f32 %v6321_v18, %v13105_v16  ;;  %v11287_v13 = vld [vmem:[#allocation8 + $0xa8] sm:$0xff]   ;;  %v6329_v52 = vld [vmem:[#allocation12 + $0x3b0] sm:$0xff] }
 0x9fa   :  { %v6620_v46 = vadd.f32 %v6604_v10, %v6377_v37  ;;  %v6605_v40 = vmul.f32 %v11845_v9, %v6382_v1  ;;  %11862 = vpow2.f32 %v9351_v4  ;;  %v11847_v19 = vpop.eup %11846  ;;  %v6390_v49 = vadd.f32 %v6326_v62, %v13123_v48  ;;  %v6330_v48 = vld [vmem:[#allocation12 + $0x3b8] sm:$0xff]  ;;  %v6333_v18 = vld [vmem:[#allocation12 + $0x3d0] sm:$0xff] }
 0x9fb   :  { %11864 = vpow2.f32 %v9366_v3  ;;  %v13222_v56 = vpack.c.bf16 %v13217_v20, %v13212_v5  ;;  %v6464_v57 = vadd.f32 1.0, %v11847_v19  ;;  %v11849_v53 = vpop.eup %11848  ;;  %10477 = vmatpush3.bf16.msra.mxu0 %v11284_v8  ;;  %v6389_v0 = vadd.f32 %v6325_v25, %v13116_v28  ;;  %v6334_v19 = vld [vmem:[#allocation12 + $0x3d8] sm:$0xff] }
 0x9fc   :  { %11866 = vtanh.f32 %v6620_v46  ;;  %v6621_v7 = vadd.f32 %v6605_v40, %v6381_v41  ;;  %v6465_v22 = vadd.f32 1.0, %v11849_v53  ;;  %10478 = vmatprep.subr.bf16.mxu0 %v11285_v23 }
 0x9fd   :  { %11868 = vrcp.f32 %v6558_v34  ;;  %10429 = vmatmul.mubr.bf16.gmra.mrb[244].mxu0 %v13222_v56  ;;  %10461 = vmatmul.mubr.bf16.gmra.mrb[244].mxu1 %v13222_v56 }
 0x9fe   :  { %v11851_v33 = vpop.eup %11850  ;;  %11870 = vtanh.f32 %v6621_v7 }
 0x9ff   :  { %v11853_v35 = vpop.eup %11852  ;;  %11872 = vrcp.f32 %v6464_v57  ;;  %v6667_v14 = vmul.f32 %v11851_v33, %v6651_v58  ;;  %10479 = vmatpush3.bf16.msra.mxu0 %v11285_v23  ;;  %v11288_v23 = vld [vmem:[#allocation8 + $0xb0] sm:$0xff]  }
 0xa00   :  { %v11855_v11 = vpop.eup %11854  ;;  %v6606_v4 = vmul.f32 %v11853_v35, %v6386_v30  ;;  %11874 = vrcp.f32 %v6559_v44  ;;  %10480 = vmatprep.subr.bf16.mxu0 %v11286_v21  ;;  %v6394_v44 = vadd.f32 %v6330_v48, %v13131_v27 }
 0xa01   :  { %v11857_v39 = vpop.eup %11856  ;;  %11876 = vrcp.f32 %v6465_v22  ;;  %v13232_v3 = vadd.f32 %v6683_v54, %v6667_v14  ;;  %v6652_v1 = vsub.f32 1.0, %v11855_v11  ;;  %v6684_v28 = vmul.f32 %v11855_v11, %v12938_v12 }
 0xa02   :  { %v11859_v63 = vpop.eup %11858  ;;  %v6622_v55 = vadd.f32 %v6606_v4, %v6385_v45  ;;  %v6607_v42 = vmul.f32 %v11857_v39, %v6390_v49  ;;  %11878 = vpow2.f32 %v9367_v15  ;;  %v6393_v12 = vadd.f32 %v6329_v52, %v13125_v24  ;;  %v6338_v4 = vld [vmem:[#allocation12 + $0x3f8] sm:$0xff]  ;;  %v13527_v52 = vld [vmem:[#allocation20_spill] sm:$0xff] }
 0xa03   :  { %v11861_v8 = vpop.eup %11860  ;;  %10481 = vmatpush3.bf16.msra.mxu0 %v11286_v21  ;;  %v6653_v40 = vsub.f32 1.0, %v11859_v63  ;;  %v6685_v58 = vmul.f32 %v11859_v63, %v12946_v50  ;;  %v6398_v15 = vadd.f32 %v6334_v19, %v13154_v47  ;;  %v11289_v50 = vld [vmem:[#allocation8 + $0xb8] sm:$0xff]   ;;  %v6397_v21 = vadd.f32 %v6333_v18, %v13144_v38  ;;  %v6337_v63 = vld [vmem:[#allocation12 + $0x3f0] sm:$0xff] }
 0xa04   :  { %v11863_v37 = vpop.eup %11862  ;;  %11880 = vtanh.f32 %v6622_v55  ;;  %v6623_v16 = vadd.f32 %v6607_v42, %v6389_v0  ;;  %v6560_v34 = vadd.f32 1.0, %v11861_v8  ;;  %10482 = vmatprep.subr.bf16.mxu0 %v11287_v13  ;;  %v6402_v8 = vadd.f32 %v6338_v4, %v13165_v61 }
 0xa05   :  { %v11865_v10 = vpop.eup %11864  ;;  %v6466_v9 = vadd.f32 1.0, %v11863_v37 }
 0xa06   :  { %v11867_v41 = vpop.eup %11866  ;;  %11882 = vtanh.f32 %v6623_v16  ;;  %v6561_v57 = vadd.f32 1.0, %v11865_v10  ;;  %v6401_v10 = vadd.f32 %v6337_v63, %v13157_v31 }
 0xa07   :  { %v11869_v46 = vpop.eup %11868  ;;  %v6668_v59 = vmul.f32 %v11867_v41, %v6652_v1  ;;  %11884 = vrcp.f32 %v6466_v9  ;;  %10483 = vmatpush3.bf16.msra.mxu0 %v11287_v13 }
 0xa08   :  { %v11871_v7 = vpop.eup %11870  ;;  %11886 = vrcp.f32 %v6560_v34  ;;  %10484 = vmatprep.subr.bf16.mxu0 %v11288_v23  ;;  %v6654_v11 = vsub.f32 1.0, %v11869_v46  ;;  %v6686_v49 = vmul.f32 %v11869_v46, %v12954_v2 }
 0xa09   :  { %v11873_v53 = vpop.eup %11872  ;;  %v13238_v62 = vadd.f32 %v6684_v28, %v6668_v59  ;;  %v6669_v33 = vmul.f32 %v11871_v7, %v6653_v40  ;;  %11888 = vrcp.f32 %v6561_v57 }
 0xa0a   :  { %v11875_v30 = vpop.eup %11874  ;;  %v6608_v22 = vmul.f32 %v11873_v53, %v6394_v44 }
 0xa0b   :  { %v11877_v35 = vpop.eup %11876  ;;  %v13244_v27 = vpack.c.bf16 %v13238_v62, %v13232_v3  ;;  %v13246_v54 = vadd.f32 %v6685_v58, %v6669_v33  ;;  %10485 = vmatpush3.bf16.msra.mxu0 %v11288_v23  ;;  %v6655_v39 = vsub.f32 1.0, %v11875_v30  ;;  %v6687_v42 = vmul.f32 %v11875_v30, %v12961_v36  ;;  %v13528_v58 = vld [vmem:[#allocation21_spill] sm:$0xff] }
 0xa0c   :  { %v11879_v25 = vpop.eup %11878  ;;  %v6624_v14 = vadd.f32 %v6608_v22, %v6393_v12  ;;  %v6609_v24 = vmul.f32 %v11877_v35, %v6398_v15  ;;  %10486 = vmatprep.subr.bf16.mxu0 %v11289_v50  ;;  %v11292_v22 = vld [vmem:[#allocation6 + $0x4] ss:$12 sps:$4 sm:$0xff]   ;;  %v11305_v15 = vld [vmem:[#allocation6 + $0x8] ss:$12 sps:$4 sm:$0xff]  }
 0xa0d   :  { %10432 = vmatprep.mubr.bf16.mxu0 %v13244_v27  ;;  %10464 = vmatprep.mubr.bf16.mxu1 %v13244_v27  ;;  %v6562_v55 = vadd.f32 1.0, %v11879_v25 }
 0xa0e   :  { %v11881_v47 = vpop.eup %11880  ;;  %11890 = vtanh.f32 %v6624_v14  ;;  %v6625_v45 = vadd.f32 %v6609_v24, %v6397_v21 }
 0xa0f   :  { %v6670_v0 = vmul.f32 %v11881_v47, %v6654_v11  ;;  %10487 = vmatpush3.bf16.msra.mxu0 %v11289_v50 }
 0xa10   :  { %v11883_v38 = vpop.eup %11882  ;;  %11892 = vtanh.f32 %v6625_v45 }
 0xa11   :  { %v13254_v13 = vadd.f32 %v6686_v49, %v6670_v0  ;;  %v6671_v37 = vmul.f32 %v11883_v38, %v6655_v39  ;;  %v11885_v16 = vpop.eup %11884  ;;  %11894 = vrcp.f32 %v6562_v55 }
 0xa12   :  { %v6610_v2 = vmul.f32 %v11885_v16, %v6402_v8  ;;  %v11887_v9 = vpop.eup %11886 }
 0xa13   :  { %v13259_v1 = vpack.c.bf16 %v13254_v13, %v13246_v54  ;;  %v13261_v48 = vadd.f32 %v6687_v42, %v6671_v37  ;;  %v11889_v36 = vpop.eup %11888  ;;  %v6656_v61 = vsub.f32 1.0, %v11887_v9  ;;  %v6688_v31 = vmul.f32 %v11887_v9, %v12967_v43 }
 0xa14   :  { %v6626_v41 = vadd.f32 %v6610_v2, %v6401_v10  ;;  %v6657_v46 = vsub.f32 1.0, %v11889_v36  ;;  %v6689_v19 = vmul.f32 %v11889_v36, %v13527_v52 }
 0xa15   :  { %10433 = vmatmul.mubr.bf16.gmra.mrb[248].mxu0 %v13259_v1  ;;  %10465 = vmatmul.mubr.bf16.gmra.mrb[248].mxu1 %v13259_v1 }
 0xa16   :  { %11896 = vtanh.f32 %v6626_v41 }
 0xa18   :  { %v11891_v34 = vpop.eup %11890 }
 0xa19   :  { %v6672_v28 = vmul.f32 %v11891_v34, %v6656_v61 }
 0xa1a   :  { %v11893_v40 = vpop.eup %11892 }
 0xa1b   :  { %v13267_v59 = vadd.f32 %v6688_v31, %v6672_v28  ;;  %v6673_v23 = vmul.f32 %v11893_v40, %v6657_v46  ;;  %v11895_v7 = vpop.eup %11894 }
 0xa1c   :  { %v6658_v43 = vsub.f32 1.0, %v11895_v7  ;;  %v6690_v18 = vmul.f32 %v11895_v7, %v13528_v58 }
 0xa1d   :  { %v13271_v44 = vpack.c.bf16 %v13267_v59, %v13261_v48  ;;  %v13273_v57 = vadd.f32 %v6689_v19, %v6673_v23 }
 0xa1f   :  { %10436 = vmatprep.mubr.bf16.mxu0 %v13271_v44  ;;  %10468 = vmatprep.mubr.bf16.mxu1 %v13271_v44 }
 0xa20   :  { %v11897_v53 = vpop.eup %11896 }
 0xa21   :  { %v6674_v33 = vmul.f32 %v11897_v53, %v6658_v43 }
 0xa23   :  { %v13278_v30 = vadd.f32 %v6690_v18, %v6674_v33 }
 0xa25   :  { %13529 = vst [vmem:[#allocation20_spill] sm:$0xff] %v13278_v30  ;;  %v13282_v12 = vpack.c.bf16 %v13278_v30, %v13273_v57 }
 0xa27   :  { %10437 = vmatmul.mubr.bf16.gmra.mrb[252].mxu0 %v13282_v12  ;;  %10469 = vmatmul.mubr.bf16.gmra.mrb[252].mxu1 %v13282_v12 }
 0xa28   :  { %10488 = vmatprep.mubr.bf16.mxu0 %v13150_v60  ;;  %7462 = vmatprep.mubr.bf16.mxu1 %v11292_v22 }
 0xa2f   :  { %10489 = vmatmul.mubr.bf16.vlgmr.msra.gmra.mrb[0].mxu0 %v13193_v6 }
 0xa30   :  { %10492 = vmatprep.mubr.bf16.mxu0 %v13204_v29 }
 0xa37   :  { %10493 = vmatmul.mubr.bf16.gmra.mrb[4].mxu0 %v13222_v56 }
 0xa38   :  { %10496 = vmatprep.mubr.bf16.mxu0 %v13244_v27 }
 0xa3f   :  { %10497 = vmatmul.mubr.bf16.gmra.mrb[8].mxu0 %v13259_v1 }
 0xa40   :  { %10500 = vmatprep.mubr.bf16.mxu0 %v13271_v44 }
 0xa47   :  { %10501 = vmatmul.mubr.bf16.gmra.mrb[12].mxu0 %v13282_v12 }
 0xa48   :  { %10520 = vmatprep.mubr.bf16.mxu0 %v11305_v15 }
 0xac5   :  { %v10426_v35 = vpop.f32.mrb[240].mxu0  ;;  %v10458_v50 = vpop.f32.mrb[240].mxu1 }
 0xac6   :  { %v6813_v25 = vpop.f32.mrb[241].mxu0  ;;  %v6990_v14 = vpop.f32.mrb[241].mxu1 }
 0xac7   :  { %v10427_v21 = vpop.f32.mrb[242].mxu0  ;;  %v10459_v24 = vpop.f32.mrb[242].mxu1 }
 0xac8   :  { %v6877_v11 = vpack.c.bf16 %v10427_v21, %v10426_v35  ;;  %v7054_v47 = vpack.c.bf16 %v10459_v24, %v10458_v50  ;;  %v6816_v45 = vpop.f32.mrb[243].mxu0  ;;  %v6993_v4 = vpop.f32.mrb[243].mxu1 }
 0xac9   :  { %v6876_v49 = vpack.c.bf16 %v6816_v45, %v6813_v25  ;;  %v7053_v39 = vpack.c.bf16 %v6993_v4, %v6990_v14 }
 0xacb   :  { %9944 = vmatprep.subr.bf16.mxu1 %v7053_v39 }
 0xacc   :  { %9945 = vmatpush3.bf16.msra.mxu1 %v6876_v49  ;;  %v11290_v49 = vld [vmem:[#allocation6] ss:$12 sps:$4 sm:$0xff]  }
 0xacd   :  { %9946 = vmatprep.subr.bf16.mxu1 %v7054_v47  ;;  %v11312_v47 = vld [vmem:[#allocation11 + $0x10c] ss:$16 sps:$4 sm:$0xff]  }
 0xad0   :  { %v10430_v63 = vpop.f32.mrb[244].mxu0  ;;  %v10462_v55 = vpop.f32.mrb[244].mxu1  ;;  %9947 = vmatpush3.bf16.msra.mxu1 %v6877_v11 }
 0xad1   :  { %v6829_v0 = vpop.f32.mrb[245].mxu0  ;;  %v7006_v38 = vpop.f32.mrb[245].mxu1 }
 0xad2   :  { %v10431_v42 = vpop.f32.mrb[246].mxu0  ;;  %v10463_v8 = vpop.f32.mrb[246].mxu1 }
 0xad3   :  { %v6879_v37 = vpack.c.bf16 %v10431_v42, %v10430_v63  ;;  %v7056_v16 = vpack.c.bf16 %v10463_v8, %v10462_v55  ;;  %v6832_v10 = vpop.f32.mrb[247].mxu0  ;;  %v7009_v2 = vpop.f32.mrb[247].mxu1  ;;  %v11295_v55 = vld [vmem:[#allocation6 + $0x1c] ss:$12 sps:$4 sm:$0xff]  }
 0xad4   :  { %v6878_v9 = vpack.c.bf16 %v6832_v10, %v6829_v0  ;;  %v7055_v41 = vpack.c.bf16 %v7009_v2, %v7006_v38  ;;  %v11310_v38 = vld [vmem:[#allocation11 + $0x108] ss:$16 sps:$4 sm:$0xff]   ;;  %v11318_v42 = vld [vmem:[#allocation11 + $0x12c] ss:$16 sps:$4 sm:$0xff]  }
 0xad5   :  { %v11329_v10 = vld [vmem:[#allocation11 + $0x14c] ss:$16 sps:$4 sm:$0xff]  }
 0xad6   :  { %9948 = vmatprep.subr.bf16.mxu1 %v7055_v41 }
 0xad7   :  { %9949 = vmatpush3.bf16.msra.mxu1 %v6878_v9  ;;  %v11293_v9 = vld [vmem:[#allocation6 + $0x18] ss:$12 sps:$4 sm:$0xff]  }
 0xad8   :  { %9950 = vmatprep.subr.bf16.mxu1 %v7056_v16 }
 0xadb   :  { %9951 = vmatpush3.bf16.msra.mxu1 %v6879_v37  ;;  %v11316_v37 = vld [vmem:[#allocation11 + $0x128] ss:$16 sps:$4 sm:$0xff]  }
 0xae8   :  { %v10434_v36 = vpop.f32.mrb[248].mxu0  ;;  %v10466_v61 = vpop.f32.mrb[248].mxu1 }
 0xae9   :  { %v6845_v34 = vpop.f32.mrb[249].mxu0  ;;  %v7022_v31 = vpop.f32.mrb[249].mxu1 }
 0xaea   :  { %v10435_v46 = vpop.f32.mrb[250].mxu0  ;;  %v10467_v28 = vpop.f32.mrb[250].mxu1 }
 0xaeb   :  { %v6881_v40 = vpack.c.bf16 %v10435_v46, %v10434_v36  ;;  %v7058_v52 = vpack.c.bf16 %v10467_v28, %v10466_v61  ;;  %v6848_v19 = vpop.f32.mrb[251].mxu0  ;;  %v7025_v23 = vpop.f32.mrb[251].mxu1  ;;  %v11298_v61 = vld [vmem:[#allocation6 + $0x34] ss:$12 sps:$4 sm:$0xff]   ;;  %v11335_v46 = vld [vmem:[#allocation11 + $0x16c] ss:$16 sps:$4 sm:$0xff]  }
 0xaec   :  { %v6880_v7 = vpack.c.bf16 %v6848_v19, %v6845_v34  ;;  %v7057_v43 = vpack.c.bf16 %v7025_v23, %v7022_v31  ;;  %v11327_v31 = vld [vmem:[#allocation11 + $0x148] ss:$16 sps:$4 sm:$0xff]   ;;  %v11346_v19 = vld [vmem:[#allocation11 + $0x18c] ss:$16 sps:$4 sm:$0xff]  }
 0xaee   :  { %9952 = vmatprep.subr.bf16.mxu1 %v7057_v43 }
 0xaef   :  { %9953 = vmatpush3.bf16.msra.mxu1 %v6880_v7  ;;  %v11296_v7 = vld [vmem:[#allocation6 + $0x30] ss:$12 sps:$4 sm:$0xff]  }
 0xaf0   :  { %9954 = vmatprep.subr.bf16.mxu1 %v7058_v52 }
 0xaf3   :  { %9955 = vmatpush3.bf16.msra.mxu1 %v6881_v40  ;;  %v11333_v40 = vld [vmem:[#allocation11 + $0x168] ss:$16 sps:$4 sm:$0xff]  }
 0xafa   :  { %v10438_v53 = vpop.f32.mrb[252].mxu0  ;;  %v10470_v58 = vpop.f32.mrb[252].mxu1 }
 0xafb   :  { %v6861_v18 = vpop.f32.mrb[253].mxu0  ;;  %v7038_v33 = vpop.f32.mrb[253].mxu1 }
 0xafc   :  { %v10439_v22 = vpop.f32.mrb[254].mxu0  ;;  %v10471_v15 = vpop.f32.mrb[254].mxu1 }
 0xafd   :  { %v6883_v35 = vpack.c.bf16 %v10439_v22, %v10438_v53  ;;  %v7060_v50 = vpack.c.bf16 %v10471_v15, %v10470_v58  ;;  %v6864_v25 = vpop.f32.mrb[255].mxu0  ;;  %v7041_v14 = vpop.f32.mrb[255].mxu1  ;;  %v11301_v58 = vld [vmem:[#allocation6 + $0x4c] ss:$12 sps:$4 sm:$0xff]  }
 0xafe   :  { %v6882_v21 = vpack.c.bf16 %v6864_v25, %v6861_v18  ;;  %v7059_v24 = vpack.c.bf16 %v7041_v14, %v7038_v33  ;;  %v11344_v33 = vld [vmem:[#allocation11 + $0x188] ss:$16 sps:$4 sm:$0xff]   ;;  %v11352_v22 = vld [vmem:[#allocation11 + $0x1ac] ss:$16 sps:$4 sm:$0xff]  }
 0xaff   :  { %v11363_v25 = vld [vmem:[#allocation11 + $0x1cc] ss:$16 sps:$4 sm:$0xff]  }
 0xb00   :  { %9956 = vmatprep.subr.bf16.mxu1 %v7059_v24 }
 0xb01   :  { %9957 = vmatpush3.bf16.msra.mxu1 %v6882_v21  ;;  %v11299_v21 = vld [vmem:[#allocation6 + $0x48] ss:$12 sps:$4 sm:$0xff]  }
 0xb02   :  { %v10490_v11 = vpop.f32.mrb[0].mxu0  ;;  %9958 = vmatprep.subr.bf16.mxu1 %v7060_v50 }
 0xb03   :  { %v7167_v45 = vpop.f32.mrb[1].mxu0 }
 0xb04   :  { %v10491_v4 = vpop.f32.mrb[2].mxu0 }
 0xb05   :  { %v7231_v39 = vpack.c.bf16 %v10491_v4, %v10490_v11  ;;  %v7170_v63 = vpop.f32.mrb[3].mxu0  ;;  %9959 = vmatpush3.bf16.msra.mxu1 %v6883_v35  ;;  %v11350_v35 = vld [vmem:[#allocation11 + $0x1a8] ss:$16 sps:$4 sm:$0xff]  }
 0xb06   :  { %v7230_v0 = vpack.c.bf16 %v7170_v63, %v7167_v45  ;;  %7969 = vmatprep.subr.bf16.mxu1 %v11312_v47  ;;  %v11304_v47 = vld [vmem:[#allocation6 + $0x64] ss:$12 sps:$4 sm:$0xff]   ;;  %v11361_v4 = vld [vmem:[#allocation11 + $0x1c8] ss:$16 sps:$4 sm:$0xff]  }
 0xb07   :  { %v11367_v63 = vld [vmem:[#allocation11 + $0x1e8] ss:$16 sps:$4 sm:$0xff]  }
 0xb08   :  { %7463 = vmatmul.mubr.bf16.vlgmr.msra.gmra.mrb[0].mxu1 %v11290_v49  ;;  %10504 = vmatprep.subr.bf16.mxu0 %v7230_v0  ;;  %v11369_v49 = vld [vmem:[#allocation11 + $0x1ec] ss:$16 sps:$4 sm:$0xff]  }
 0xb09   :  { %10505 = vmatpush3.bf16.msra.mxu0 %v7230_v0  ;;  %7470 = vmatprep.mubr.bf16.mxu1 %v11295_v55  ;;  %v11384_v55 = vld [vmem:[#allocation9 + $0x10c] ss:$16 sps:$4 sm:$0xff]  }
 0xb0a   :  { %v10494_v8 = vpop.f32.mrb[4].mxu0  ;;  %10506 = vmatprep.subr.bf16.mxu0 %v7231_v39  ;;  %7970 = vmatpush1.bf16.msra.mxu1 %v11310_v38  ;;  %v11302_v0 = vld [vmem:[#allocation6 + $0x60] ss:$12 sps:$4 sm:$0xff]  }
 0xb0b   :  { %v7183_v16 = vpop.f32.mrb[5].mxu0  ;;  %7971 = vmatprep.subr.bf16.mxu1 %v11318_v42  ;;  %v11306_v38 = vld [vmem:[#allocation6 + $0x20] ss:$12 sps:$4 sm:$0xff]  }
 0xb0c   :  { %v10495_v2 = vpop.f32.mrb[6].mxu0  ;;  %v11307_v42 = vld [vmem:[#allocation11 + $0x100] ss:$16 sps:$4 sm:$0xff]  }
 0xb0d   :  { %v7233_v41 = vpack.c.bf16 %v10495_v2, %v10494_v8  ;;  %v7186_v36 = vpop.f32.mrb[7].mxu0  ;;  %10507 = vmatpush3.bf16.msra.mxu0 %v7231_v39  ;;  %v11309_v39 = vld [vmem:[#allocation11 + $0x104] ss:$16 sps:$4 sm:$0xff]   ;;  %v11321_v8 = vld [vmem:[#allocation6 + $0x7c] ss:$12 sps:$4 sm:$0xff]  }
 0xb0e   :  { %v7232_v34 = vpack.c.bf16 %v7186_v36, %v7183_v16  ;;  %7972 = vmatpush1.bf16.msra.mxu1 %v11316_v37  ;;  %v11315_v37 = vld [vmem:[#allocation11 + $0x124] ss:$16 sps:$4 sm:$0xff]   ;;  %v11324_v36 = vld [vmem:[#allocation11 + $0x140] ss:$16 sps:$4 sm:$0xff]  }
 0xb0f   :  { %7973 = vmatprep.subr.bf16.mxu1 %v11329_v10  ;;  %v11322_v16 = vld [vmem:[#allocation6 + $0x38] ss:$12 sps:$4 sm:$0xff]   ;;  %v11313_v10 = vld [vmem:[#allocation11 + $0x120] ss:$16 sps:$4 sm:$0xff]  }
 0xb10   :  { %7471 = vmatmul.mubr.bf16.gmra.mrb[4].mxu1 %v11293_v9  ;;  %10508 = vmatprep.subr.bf16.mxu0 %v7232_v34  ;;  %v11326_v2 = vld [vmem:[#allocation11 + $0x144] ss:$16 sps:$4 sm:$0xff]  }
 0xb11   :  { %10509 = vmatpush3.bf16.msra.mxu0 %v7232_v34  ;;  %7478 = vmatprep.mubr.bf16.mxu1 %v11298_v61  ;;  %v11319_v9 = vld [vmem:[#allocation6 + $0x78] ss:$12 sps:$4 sm:$0xff]   ;;  %v11338_v61 = vld [vmem:[#allocation6 + $0x94] ss:$12 sps:$4 sm:$0xff]  }
 0xb12   :  { %v10498_v28 = vpop.f32.mrb[8].mxu0  ;;  %10510 = vmatprep.subr.bf16.mxu0 %v7233_v41  ;;  %7974 = vmatpush1.bf16.msra.mxu1 %v11327_v31  ;;  %v11332_v34 = vld [vmem:[#allocation11 + $0x164] ss:$16 sps:$4 sm:$0xff]  }
 0xb13   :  { %v7199_v52 = vpop.f32.mrb[9].mxu0  ;;  %7975 = vmatprep.subr.bf16.mxu1 %v11335_v46  ;;  %v11339_v31 = vld [vmem:[#allocation6 + $0x68] ss:$12 sps:$4 sm:$0xff]   ;;  %v11330_v46 = vld [vmem:[#allocation11 + $0x160] ss:$16 sps:$4 sm:$0xff]  }
 0xb14   :  { %v10499_v23 = vpop.f32.mrb[10].mxu0 }
 0xb15   :  { %v7235_v43 = vpack.c.bf16 %v10499_v23, %v10498_v28  ;;  %v7202_v53 = vpop.f32.mrb[11].mxu0  ;;  %10511 = vmatpush3.bf16.msra.mxu0 %v7233_v41  ;;  %v11323_v41 = vld [vmem:[#allocation6 + $0x50] ss:$12 sps:$4 sm:$0xff]   ;;  %v11343_v28 = vld [vmem:[#allocation11 + $0x184] ss:$16 sps:$4 sm:$0xff]  }
 0xb16   :  { %v7234_v18 = vpack.c.bf16 %v7202_v53, %v7199_v52  ;;  %7976 = vmatpush1.bf16.msra.mxu1 %v11333_v40  ;;  %v11336_v40 = vld [vmem:[#allocation6 + $0x90] ss:$12 sps:$4 sm:$0xff]   ;;  %v11340_v52 = vld [vmem:[#allocation6 + $0x80] ss:$12 sps:$4 sm:$0xff]  }
 0xb17   :  { %7977 = vmatprep.subr.bf16.mxu1 %v11346_v19  ;;  %v11341_v19 = vld [vmem:[#allocation11 + $0x180] ss:$16 sps:$4 sm:$0xff]   ;;  %v11355_v23 = vld [vmem:[#allocation6 + $0xac] ss:$12 sps:$4 sm:$0xff]  }
 0xb18   :  { %7479 = vmatmul.mubr.bf16.gmra.mrb[8].mxu1 %v11296_v7  ;;  %10512 = vmatprep.subr.bf16.mxu0 %v7234_v18  ;;  %v11349_v7 = vld [vmem:[#allocation11 + $0x1a4] ss:$16 sps:$4 sm:$0xff]   ;;  %v11347_v53 = vld [vmem:[#allocation11 + $0x1a0] ss:$16 sps:$4 sm:$0xff]  }
 0xb19   :  { %10513 = vmatpush3.bf16.msra.mxu0 %v7234_v18  ;;  %7486 = vmatprep.mubr.bf16.mxu1 %v11301_v58  ;;  %v11360_v58 = vld [vmem:[#allocation11 + $0x1c4] ss:$16 sps:$4 sm:$0xff]  }
 0xb1a   :  { %v10502_v15 = vpop.f32.mrb[12].mxu0  ;;  %10514 = vmatprep.subr.bf16.mxu0 %v7235_v43  ;;  %7978 = vmatpush1.bf16.msra.mxu1 %v11344_v33  ;;  %v11353_v18 = vld [vmem:[#allocation6 + $0xa8] ss:$12 sps:$4 sm:$0xff]   ;;  %v11357_v33 = vld [vmem:[#allocation6 + $0xb0] ss:$12 sps:$4 sm:$0xff]  }
 0xb1b   :  { %v7215_v50 = vpop.f32.mrb[13].mxu0  ;;  %7979 = vmatprep.subr.bf16.mxu1 %v11352_v22  ;;  %v11358_v22 = vld [vmem:[#allocation11 + $0x1c0] ss:$16 sps:$4 sm:$0xff]  }
 0xb1c   :  { %v10503_v14 = vpop.f32.mrb[14].mxu0 }
 0xb1d   :  { %v7237_v24 = vpack.c.bf16 %v10503_v14, %v10502_v15  ;;  %v7218_v11 = vpop.f32.mrb[15].mxu0  ;;  %10515 = vmatpush3.bf16.msra.mxu0 %v7235_v43  ;;  %v11356_v43 = vld [vmem:[#allocation6 + $0x98] ss:$12 sps:$4 sm:$0xff]   ;;  %v11370_v14 = vld [vmem:[#allocation9 + $0x100] ss:$16 sps:$4 sm:$0xff]  }
 0xb1e   :  { %v7236_v45 = vpack.c.bf16 %v7218_v11, %v7215_v50  ;;  %7980 = vmatpush1.bf16.msra.mxu1 %v11350_v35  ;;  %v11366_v15 = vld [vmem:[#allocation11 + $0x1e4] ss:$16 sps:$4 sm:$0xff]   ;;  %v11364_v35 = vld [vmem:[#allocation11 + $0x1e0] ss:$16 sps:$4 sm:$0xff]   ;;  %v13530_v50 = vmov 0  }
 0xb1f   :  { %7981 = vmatprep.subr.bf16.mxu1 %v11363_v25  ;;  %v11372_v25 = vld [vmem:[#allocation9 + $0x104] ss:$16 sps:$4 sm:$0xff]   ;;  %v11390_v11 = vld [vmem:[#allocation9 + $0x12c] ss:$16 sps:$4 sm:$0xff]  }
 0xb20   :  { %7487 = vmatmul.mubr.bf16.gmra.mrb[12].mxu1 %v11299_v21  ;;  %10516 = vmatprep.subr.bf16.mxu0 %v7236_v45  ;;  %v11382_v21 = vld [vmem:[#allocation9 + $0x108] ss:$16 sps:$4 sm:$0xff]  }
 0xb21   :  { %10517 = vmatpush3.bf16.msra.mxu0 %v7236_v45  ;;  %7494 = vmatprep.mubr.bf16.mxu1 %v11304_v47  ;;  %v11373_v47 = vld [vmem:[#allocation9 + $0x120] ss:$16 sps:$4 sm:$0xff]   ;;  %v11388_v45 = vld [vmem:[#allocation9 + $0x128] ss:$16 sps:$4 sm:$0xff]  }
 0xb22   :  { %10518 = vmatprep.subr.bf16.mxu0 %v7237_v24  ;;  %7982 = vmatpush1.bf16.msra.mxu1 %v11361_v4  ;;  %v11378_v4 = vld [vmem:[#allocation9 + $0x144] ss:$16 sps:$4 sm:$0xff]  }
 0xb23   :  { %7983 = vmatprep.subr.bf16.mxu1 %v11369_v49  ;;  %v11396_v49 = vld [vmem:[#allocation9 + $0x14c] ss:$16 sps:$4 sm:$0xff]  }
 0xb25   :  { %10519 = vmatpush3.bf16.msra.mxu0 %v7237_v24  ;;  %v11375_v24 = vld [vmem:[#allocation9 + $0x124] ss:$16 sps:$4 sm:$0xff]  }
 0xb26   :  { %7856 = vmatprep.subr.bf16.mxu0 %v11309_v39  ;;  %7984 = vmatpush1.bf16.msra.mxu1 %v11367_v63  ;;  %v11376_v39 = vld [vmem:[#allocation9 + $0x140] ss:$16 sps:$4 sm:$0xff]   ;;  %v11394_v63 = vld [vmem:[#allocation9 + $0x148] ss:$16 sps:$4 sm:$0xff]  }
 0xb27   :  { %8355 = vmatprep.subr.bf16.mxu1 %v11384_v55  ;;  %v11381_v55 = vld [vmem:[#allocation9 + $0x164] ss:$16 sps:$4 sm:$0xff]  }
 0xb28   :  { %7495 = vmatmul.mubr.bf16.gmra.mrb[16].mxu1 %v11302_v0  ;;  %10521 = vmatmul.mubr.bf16.vlgmr.msra.gmra.mrb[16].mxu0 %v11306_v38  ;;  %v11379_v0 = vld [vmem:[#allocation9 + $0x160] ss:$16 sps:$4 sm:$0xff]   ;;  %v11397_v38 = vld [vmem:[#allocation9 + $0x168] ss:$16 sps:$4 sm:$0xff]  }
 0xb29   :  { %7857 = vmatpush1.bf16.msra.mxu0 %v11307_v42  ;;  %7502 = vmatprep.mubr.bf16.mxu1 %v11321_v8  ;;  %v11387_v42 = vld [vmem:[#allocation9 + $0x184] ss:$16 sps:$4 sm:$0xff]   ;;  %v11405_v8 = vld [vmem:[#allocation9 + $0x18c] ss:$16 sps:$4 sm:$0xff]  }
 0xb2a   :  { %7858 = vmatprep.subr.bf16.mxu0 %v11315_v37  ;;  %10524 = vmatprep.mubr.bf16.mxu0 %v11322_v16  ;;  %v11385_v37 = vld [vmem:[#allocation9 + $0x180] ss:$16 sps:$4 sm:$0xff]   ;;  %v11403_v16 = vld [vmem:[#allocation9 + $0x188] ss:$16 sps:$4 sm:$0xff]  }
 0xb2d   :  { %7859 = vmatpush1.bf16.msra.mxu0 %v11313_v10  ;;  %v11393_v10 = vld [vmem:[#allocation9 + $0x1a4] ss:$16 sps:$4 sm:$0xff]  }
 0xb2e   :  { %7860 = vmatprep.subr.bf16.mxu0 %v11326_v2  ;;  %v11402_v2 = vld [vmem:[#allocation9 + $0x1c4] ss:$16 sps:$4 sm:$0xff]  }
 0xb30   :  { %7503 = vmatmul.mubr.bf16.gmra.mrb[20].mxu1 %v11319_v9  ;;  %10525 = vmatmul.mubr.bf16.gmra.mrb[20].mxu0 %v11323_v41  ;;  %v11400_v9 = vld [vmem:[#allocation9 + $0x1c0] ss:$16 sps:$4 sm:$0xff]   ;;  %v11406_v41 = vld [vmem:[#allocation9 + $0x1a8] ss:$16 sps:$4 sm:$0xff]  }
 0xb31   :  { %7861 = vmatpush1.bf16.msra.mxu0 %v11324_v36  ;;  %7510 = vmatprep.mubr.bf16.mxu1 %v11338_v61  ;;  %v11408_v36 = vld [vmem:[#allocation9 + $0x1ac] ss:$16 sps:$4 sm:$0xff]   ;;  %v11411_v61 = vld [vmem:[#allocation9 + $0x1e4] ss:$16 sps:$4 sm:$0xff]  }
 0xb32   :  { %7862 = vmatprep.subr.bf16.mxu0 %v11332_v34  ;;  %10528 = vmatprep.mubr.bf16.mxu0 %v11339_v31  ;;  %v11417_v34 = vld [vmem:[#allocation9 + $0x1ec] ss:$16 sps:$4 sm:$0xff]  }
 0xb35   :  { %7863 = vmatpush1.bf16.msra.mxu0 %v11330_v46 }
 0xb36   :  { %7864 = vmatprep.subr.bf16.mxu0 %v11343_v28 }
 0xb38   :  { %7511 = vmatmul.mubr.bf16.gmra.mrb[24].mxu1 %v11336_v40  ;;  %10529 = vmatmul.mubr.bf16.gmra.mrb[24].mxu0 %v11340_v52 }
 0xb39   :  { %7865 = vmatpush1.bf16.msra.mxu0 %v11341_v19  ;;  %7518 = vmatprep.mubr.bf16.mxu1 %v11355_v23 }
 0xb3a   :  { %7866 = vmatprep.subr.bf16.mxu0 %v11349_v7  ;;  %10532 = vmatprep.mubr.bf16.mxu0 %v11356_v43 }
 0xb3d   :  { %7867 = vmatpush1.bf16.msra.mxu0 %v11347_v53 }
 0xb3e   :  { %7868 = vmatprep.subr.bf16.mxu0 %v11360_v58 }
 0xb40   :  { %7519 = vmatmul.mubr.bf16.gmra.mrb[28].mxu1 %v11353_v18  ;;  %10533 = vmatmul.mubr.bf16.gmra.mrb[28].mxu0 %v11357_v33 }
 0xb41   :  { %7869 = vmatpush1.bf16.msra.mxu0 %v11358_v22  ;;  %7888 = vmatprep.mubr.bf16.mxu0 %v13530_v50 }
 0xb42   :  { %7870 = vmatprep.subr.bf16.mxu0 %v11366_v15  ;;  %8001 = vmatprep.mubr.bf16.mxu1 %v13530_v50 }
 0xb45   :  { %7871 = vmatpush1.bf16.msra.mxu0 %v11364_v35 }
 0xb46   :  { %8242 = vmatprep.subr.bf16.mxu0 %v11372_v25 }
 0xb48   :  { %7889 = vmatmul.mubr.bf16.vlgmr.msra.gmra.mrb[32].mxu0 %v13150_v60  ;;  %8002 = vmatmul.mubr.bf16.vlgmr.msra.gmra.mrb[32].mxu1 %v13150_v60  ;;  %v11399_v60 = vld [vmem:[#allocation9 + $0x16c] ss:$16 sps:$4 sm:$0xff]  }
 0xb49   :  { %7898 = vmatprep.mubr.bf16.mxu0 %v13530_v50  ;;  %8011 = vmatprep.mubr.bf16.mxu1 %v13530_v50 }
 0xb4a   :  { %8243 = vmatpush1.bf16.msra.mxu0 %v11370_v14  ;;  %8356 = vmatpush1.bf16.msra.mxu1 %v11382_v21 }
 0xb4b   :  { %8244 = vmatprep.subr.bf16.mxu0 %v11375_v24  ;;  %8357 = vmatprep.subr.bf16.mxu1 %v11390_v11 }
 0xb4e   :  { %8245 = vmatpush1.bf16.msra.mxu0 %v11373_v47  ;;  %8358 = vmatpush1.bf16.msra.mxu1 %v11388_v45 }
 0xb4f   :  { %8246 = vmatprep.subr.bf16.mxu0 %v11378_v4  ;;  %8359 = vmatprep.subr.bf16.mxu1 %v11396_v49 }
 0xb50   :  { %7899 = vmatmul.mubr.bf16.gmra.mrb[36].mxu0 %v13193_v6  ;;  %8012 = vmatmul.mubr.bf16.gmra.mrb[36].mxu1 %v13193_v6  ;;  %v11391_v6 = vld [vmem:[#allocation9 + $0x1a0] ss:$16 sps:$4 sm:$0xff]  }
 0xb51   :  { %7908 = vmatprep.mubr.bf16.mxu0 %v13530_v50  ;;  %8021 = vmatprep.mubr.bf16.mxu1 %v13530_v50 }
 0xb52   :  { %8247 = vmatpush1.bf16.msra.mxu0 %v11376_v39  ;;  %8360 = vmatpush1.bf16.msra.mxu1 %v11394_v63 }
 0xb53   :  { %8248 = vmatprep.subr.bf16.mxu0 %v11381_v55  ;;  %8361 = vmatprep.subr.bf16.mxu1 %v11399_v60 }
 0xb56   :  { %8249 = vmatpush1.bf16.msra.mxu0 %v11379_v0  ;;  %8362 = vmatpush1.bf16.msra.mxu1 %v11397_v38 }
 0xb57   :  { %8250 = vmatprep.subr.bf16.mxu0 %v11387_v42  ;;  %8363 = vmatprep.subr.bf16.mxu1 %v11405_v8 }
 0xb58   :  { %7909 = vmatmul.mubr.bf16.gmra.mrb[40].mxu0 %v13204_v29  ;;  %8022 = vmatmul.mubr.bf16.gmra.mrb[40].mxu1 %v13204_v29  ;;  %v11414_v29 = vld [vmem:[#allocation9 + $0x1cc] ss:$16 sps:$4 sm:$0xff]  }
 0xb59   :  { %7918 = vmatprep.mubr.bf16.mxu0 %v13530_v50  ;;  %8031 = vmatprep.mubr.bf16.mxu1 %v13530_v50 }
 0xb5a   :  { %8251 = vmatpush1.bf16.msra.mxu0 %v11385_v37  ;;  %8364 = vmatpush1.bf16.msra.mxu1 %v11403_v16 }
 0xb5b   :  { %8252 = vmatprep.subr.bf16.mxu0 %v11393_v10  ;;  %8365 = vmatprep.subr.bf16.mxu1 %v11408_v36 }
 0xb5e   :  { %8253 = vmatpush1.bf16.msra.mxu0 %v11391_v6  ;;  %8366 = vmatpush1.bf16.msra.mxu1 %v11406_v41 }
 0xb5f   :  { %8254 = vmatprep.subr.bf16.mxu0 %v11402_v2  ;;  %8367 = vmatprep.subr.bf16.mxu1 %v11414_v29 }
 0xb60   :  { %7919 = vmatmul.mubr.bf16.gmra.mrb[44].mxu0 %v13222_v56  ;;  %8032 = vmatmul.mubr.bf16.gmra.mrb[44].mxu1 %v13222_v56  ;;  %v11412_v56 = vld [vmem:[#allocation9 + $0x1c8] ss:$16 sps:$4 sm:$0xff]  }
 0xb61   :  { %7928 = vmatprep.mubr.bf16.mxu0 %v13530_v50  ;;  %8041 = vmatprep.mubr.bf16.mxu1 %v13530_v50 }
 0xb62   :  { %8255 = vmatpush1.bf16.msra.mxu0 %v11400_v9  ;;  %8368 = vmatpush1.bf16.msra.mxu1 %v11412_v56 }
 0xb63   :  { %8256 = vmatprep.subr.bf16.mxu0 %v11411_v61  ;;  %8369 = vmatprep.subr.bf16.mxu1 %v11417_v34 }
 0xb68   :  { %7929 = vmatmul.mubr.bf16.gmra.mrb[48].mxu0 %v13244_v27  ;;  %8042 = vmatmul.mubr.bf16.gmra.mrb[48].mxu1 %v13244_v27  ;;  %v11409_v27 = vld [vmem:[#allocation9 + $0x1e0] ss:$16 sps:$4 sm:$0xff]  }
 0xb69   :  { %7938 = vmatprep.mubr.bf16.mxu0 %v13530_v50  ;;  %8051 = vmatprep.mubr.bf16.mxu1 %v13530_v50 }
 0xb6a   :  { %8257 = vmatpush1.bf16.msra.mxu0 %v11409_v27 }
 0xb70   :  { %7939 = vmatmul.mubr.bf16.gmra.mrb[52].mxu0 %v13259_v1  ;;  %8052 = vmatmul.mubr.bf16.gmra.mrb[52].mxu1 %v13259_v1  ;;  %v11415_v1 = vld [vmem:[#allocation9 + $0x1e8] ss:$16 sps:$4 sm:$0xff]  }
 0xb71   :  { %7948 = vmatprep.mubr.bf16.mxu0 %v13530_v50  ;;  %8061 = vmatprep.mubr.bf16.mxu1 %v13530_v50 }
 0xb72   :  { %8370 = vmatpush1.bf16.msra.mxu1 %v11415_v1 }
 0xb78   :  { %7949 = vmatmul.mubr.bf16.gmra.mrb[56].mxu0 %v13271_v44  ;;  %8062 = vmatmul.mubr.bf16.gmra.mrb[56].mxu1 %v13271_v44 }
 0xb79   :  { %7958 = vmatprep.mubr.bf16.mxu0 %v13530_v50  ;;  %8071 = vmatprep.mubr.bf16.mxu1 %v13530_v50 }
 0xb80   :  { %7959 = vmatmul.mubr.bf16.gmra.mrb[60].mxu0 %v13282_v12  ;;  %8072 = vmatmul.mubr.bf16.gmra.mrb[60].mxu1 %v13282_v12 }
 0xb81   :  { %8274 = vmatprep.mubr.bf16.mxu0 %v13530_v50  ;;  %8387 = vmatprep.mubr.bf16.mxu1 %v13530_v50 }
 0xbdb   :  { %v9960_v44 = vpop.f32.mrb[0].mxu1 }
 0xbdc   :  { %v9961_v31 = vpop.f32.mrb[1].mxu1 }
 0xbdd   :  { %v9962_v46 = vadd.f32 %v9961_v31, %v9960_v44  ;;  %v9963_v28 = vpop.f32.mrb[2].mxu1 }
 0xbde   :  { %v9964_v40 = vpop.f32.mrb[3].mxu1 }
 0xbdf   :  { %v9965_v52 = vadd.f32 %v9964_v40, %v9963_v28 }
 0xbe3   :  { %v9966_v19 = vpop.f32.mrb[4].mxu1 }
 0xbe4   :  { %v9967_v23 = vpop.f32.mrb[5].mxu1 }
 0xbe5   :  { %v9968_v7 = vadd.f32 %v9967_v23, %v9966_v19  ;;  %v9969_v43 = vpop.f32.mrb[6].mxu1 }
 0xbe6   :  { %v9970_v53 = vpop.f32.mrb[7].mxu1 }
 0xbe7   :  { %v9971_v58 = vadd.f32 %v9970_v53, %v9969_v43 }
 0xbeb   :  { %v9972_v18 = vpop.f32.mrb[8].mxu1 }
 0xbec   :  { %v9973_v33 = vpop.f32.mrb[9].mxu1 }
 0xbed   :  { %v9974_v12 = vadd.f32 %v9973_v33, %v9972_v18  ;;  %v9975_v22 = vpop.f32.mrb[10].mxu1 }
 0xbee   :  { %v9976_v15 = vpop.f32.mrb[11].mxu1 }
 0xbef   :  { %v9977_v35 = vadd.f32 %v9976_v15, %v9975_v22 }
 0xbf3   :  { %v9978_v25 = vpop.f32.mrb[12].mxu1 }
 0xbf4   :  { %v9979_v14 = vpop.f32.mrb[13].mxu1 }
 0xbf5   :  { %v9980_v21 = vadd.f32 %v9979_v14, %v9978_v25  ;;  %v9981_v24 = vpop.f32.mrb[14].mxu1 }
 0xbf6   :  { %v9982_v11 = vpop.f32.mrb[15].mxu1 }
 0xbf7   :  { %v9983_v47 = vadd.f32 %v9982_v11, %v9981_v24 }
 0xbfb   :  { %v10522_v45 = vpop.f32.mrb[16].mxu0  ;;  %v9984_v4 = vpop.f32.mrb[16].mxu1 }
 0xbfc   :  { %v7570_v49 = vadd.f32 %v10522_v45, %v9968_v7  ;;  %v7561_v39 = vpop.f32.mrb[17].mxu0  ;;  %v9985_v63 = vpop.f32.mrb[17].mxu1 }
 0xbfd   :  { %v7562_v55 = vadd.f32 %v9962_v46, %v7561_v39  ;;  %v10523_v60 = vpop.f32.mrb[18].mxu0  ;;  %v9986_v0 = vadd.f32 %v9985_v63, %v9984_v4  ;;  %v9987_v38 = vpop.f32.mrb[18].mxu1 }
 0xbfe   :  { %v7573_v42 = vadd.f32 %v10523_v60, %v9971_v58  ;;  %v7564_v8 = vpop.f32.mrb[19].mxu0  ;;  %v9988_v37 = vpop.f32.mrb[19].mxu1 }
 0xbff   :  { %v7565_v16 = vadd.f32 %v9965_v52, %v7564_v8  ;;  %v9989_v10 = vadd.f32 %v9988_v37, %v9987_v38 }
 0xc00   :  { %v7625_v6 = vpack.c.bf16 %v7573_v42, %v7570_v49 }
 0xc01   :  { %v7624_v2 = vpack.c.bf16 %v7565_v16, %v7562_v55 }
 0xc03   :  { %8275 = vmatmul.mubr.bf16.vlgmr.msra.gmra.mrb[32].mxu0 %v7624_v2  ;;  %8388 = vmatmul.mubr.bf16.vlgmr.msra.gmra.mrb[32].mxu1 %v7624_v2  ;;  %v10526_v9 = vpop.f32.mrb[20].mxu0  ;;  %v9990_v41 = vpop.f32.mrb[20].mxu1  ;;  %v8468_v2 = vld [vmem:[#allocation12 + $0x200] sm:$0xff] }
 0xc04   :  { %v7586_v36 = vadd.f32 %v10526_v9, %v9980_v21  ;;  %v7577_v29 = vpop.f32.mrb[21].mxu0  ;;  %8284 = vmatprep.mubr.bf16.mxu0 %v13530_v50  ;;  %8397 = vmatprep.mubr.bf16.mxu1 %v13530_v50  ;;  %v9991_v56 = vpop.f32.mrb[21].mxu1  ;;  %v8469_v9 = vld [vmem:[#allocation12 + $0x208] sm:$0xff] }
 0xc05   :  { %v7578_v27 = vadd.f32 %v9974_v12, %v7577_v29  ;;  %v10527_v61 = vpop.f32.mrb[22].mxu0  ;;  %v9992_v34 = vadd.f32 %v9991_v56, %v9990_v41  ;;  %v9993_v1 = vpop.f32.mrb[22].mxu1  ;;  %v8472_v29 = vld [vmem:[#allocation12 + $0x220] sm:$0xff] }
 0xc06   :  { %v7589_v44 = vadd.f32 %v10527_v61, %v9983_v47  ;;  %v7580_v31 = vpop.f32.mrb[23].mxu0  ;;  %v9994_v46 = vpop.f32.mrb[23].mxu1 }
 0xc07   :  { %v7581_v28 = vadd.f32 %v9977_v35, %v7580_v31  ;;  %v9995_v40 = vadd.f32 %v9994_v46, %v9993_v1 }
 0xc08   :  { %v7627_v52 = vpack.c.bf16 %v7589_v44, %v7586_v36 }
 0xc09   :  { %v7626_v19 = vpack.c.bf16 %v7581_v28, %v7578_v27 }
 0xc0b   :  { %8285 = vmatmul.mubr.bf16.gmra.mrb[36].mxu0 %v7625_v6  ;;  %8398 = vmatmul.mubr.bf16.gmra.mrb[36].mxu1 %v7625_v6  ;;  %v10530_v23 = vpop.f32.mrb[24].mxu0  ;;  %v9996_v7 = vpop.f32.mrb[24].mxu1 }
 0xc0c   :  { %8294 = vmatprep.mubr.bf16.mxu0 %v13530_v50  ;;  %8407 = vmatprep.mubr.bf16.mxu1 %v13530_v50  ;;  %v7602_v43 = vadd.f32 %v10530_v23, %v9992_v34  ;;  %v7593_v53 = vpop.f32.mrb[25].mxu0  ;;  %v9997_v58 = vpop.f32.mrb[25].mxu1  ;;  %v8473_v34 = vld [vmem:[#allocation12 + $0x228] sm:$0xff] }
 0xc0d   :  { %v7594_v18 = vadd.f32 %v9986_v0, %v7593_v53  ;;  %v10531_v33 = vpop.f32.mrb[26].mxu0  ;;  %v9998_v12 = vadd.f32 %v9997_v58, %v9996_v7  ;;  %v9999_v22 = vpop.f32.mrb[26].mxu1  ;;  %v8476_v7 = vld [vmem:[#allocation12 + $0x240] sm:$0xff] }
 0xc0e   :  { %v7605_v15 = vadd.f32 %v10531_v33, %v9995_v40  ;;  %v7596_v35 = vpop.f32.mrb[27].mxu0  ;;  %v10000_v25 = vpop.f32.mrb[27].mxu1  ;;  %v8480_v33 = vld [vmem:[#allocation12 + $0x260] sm:$0xff] }
 0xc0f   :  { %v7597_v14 = vadd.f32 %v9989_v10, %v7596_v35  ;;  %v10001_v21 = vadd.f32 %v10000_v25, %v9999_v22  ;;  %v8481_v35 = vld [vmem:[#allocation12 + $0x268] sm:$0xff] }
 0xc10   :  { %v7629_v24 = vpack.c.bf16 %v7605_v15, %v7602_v43  ;;  %v8477_v43 = vld [vmem:[#allocation12 + $0x248] sm:$0xff] }
 0xc11   :  { %v7628_v11 = vpack.c.bf16 %v7597_v14, %v7594_v18 }
 0xc13   :  { %8295 = vmatmul.mubr.bf16.gmra.mrb[40].mxu0 %v7626_v19  ;;  %8408 = vmatmul.mubr.bf16.gmra.mrb[40].mxu1 %v7626_v19  ;;  %v10002_v47 = vpop.f32.mrb[28].mxu1  ;;  %v10534_v45 = vpop.f32.mrb[28].mxu0 }
 0xc14   :  { %8304 = vmatprep.mubr.bf16.mxu0 %v13530_v50  ;;  %8417 = vmatprep.mubr.bf16.mxu1 %v13530_v50  ;;  %v10003_v4 = vpop.f32.mrb[29].mxu1  ;;  %v7609_v49 = vpop.f32.mrb[29].mxu0 }
 0xc15   :  { %v10004_v39 = vadd.f32 %v10003_v4, %v10002_v47  ;;  %v10005_v63 = vpop.f32.mrb[30].mxu1  ;;  %v7610_v55 = vadd.f32 %v9998_v12, %v7609_v49  ;;  %v10535_v60 = vpop.f32.mrb[30].mxu0 }
 0xc16   :  { %v10006_v0 = vpop.f32.mrb[31].mxu1  ;;  %v7612_v38 = vpop.f32.mrb[31].mxu0 }
 0xc17   :  { %v7618_v42 = vadd.f32 %v10534_v45, %v10004_v39  ;;  %v10007_v8 = vadd.f32 %v10006_v0, %v10005_v63  ;;  %v7613_v37 = vadd.f32 %v10001_v21, %v7612_v38  ;;  %v8484_v63 = vld [vmem:[#allocation12 + $0x280] sm:$0xff]  ;;  %v8485_v0 = vld [vmem:[#allocation12 + $0x288] sm:$0xff] }
 0xc19   :  { %v7621_v16 = vadd.f32 %v10535_v60, %v10007_v8  ;;  %v7630_v10 = vpack.c.bf16 %v7613_v37, %v7610_v55 }
 0xc1b   :  { %8305 = vmatmul.mubr.bf16.gmra.mrb[44].mxu0 %v7627_v52  ;;  %8418 = vmatmul.mubr.bf16.gmra.mrb[44].mxu1 %v7627_v52  ;;  %v7631_v6 = vpack.c.bf16 %v7621_v16, %v7618_v42  ;;  %v8488_v16 = vld [vmem:[#allocation12 + $0x2a0] sm:$0xff] }
 0xc1c   :  { %8314 = vmatprep.mubr.bf16.mxu0 %v13530_v50  ;;  %8427 = vmatprep.mubr.bf16.mxu1 %v13530_v50 }
 0xc23   :  { %8315 = vmatmul.mubr.bf16.gmra.mrb[48].mxu0 %v7628_v11  ;;  %8428 = vmatmul.mubr.bf16.gmra.mrb[48].mxu1 %v7628_v11 }
 0xc24   :  { %8324 = vmatprep.mubr.bf16.mxu0 %v13530_v50  ;;  %8437 = vmatprep.mubr.bf16.mxu1 %v13530_v50 }
 0xc2b   :  { %8325 = vmatmul.mubr.bf16.gmra.mrb[52].mxu0 %v7629_v24  ;;  %8438 = vmatmul.mubr.bf16.gmra.mrb[52].mxu1 %v7629_v24 }
 0xc2c   :  { %8334 = vmatprep.mubr.bf16.mxu0 %v13530_v50  ;;  %8447 = vmatprep.mubr.bf16.mxu1 %v13530_v50 }
 0xc33   :  { %8335 = vmatmul.mubr.bf16.gmra.mrb[56].mxu0 %v7630_v10  ;;  %8448 = vmatmul.mubr.bf16.gmra.mrb[56].mxu1 %v7630_v10 }
 0xc34   :  { %8344 = vmatprep.mubr.bf16.mxu0 %v13530_v50  ;;  %8457 = vmatprep.mubr.bf16.mxu1 %v13530_v50 }
 0xc3b   :  { %8345 = vmatmul.mubr.bf16.gmra.mrb[60].mxu0 %v7631_v6  ;;  %8458 = vmatmul.mubr.bf16.gmra.mrb[60].mxu1 %v7631_v6 }
 0xcd6   :  { %v8276_v41 = vpop.f32.mrb[32].mxu0  ;;  %v13342_v36 = vpop.f32.mrb[32].mxu1 }
 0xcd7   :  { %v8532_v56 = vadd.f32 %v8468_v2, %v8276_v41  ;;  %v8278_v27 = vpop.f32.mrb[33].mxu0  ;;  %v13344_v61 = vpop.f32.mrb[33].mxu1  ;;  %v8489_v41 = vld [vmem:[#allocation12 + $0x2a8] sm:$0xff] }
 0xcd8   :  { %v8533_v1 = vadd.f32 %v8469_v9, %v8278_v27  ;;  %v8280_v44 = vpop.f32.mrb[34].mxu0  ;;  %v13346_v31 = vpop.f32.mrb[34].mxu1 }
 0xcd9   :  { %v9480_v46 = vmul.f32 -1.442695, %v8532_v56  ;;  %v8536_v28 = vadd.f32 %v8472_v29, %v8280_v44  ;;  %v8282_v50 = vpop.f32.mrb[35].mxu0  ;;  %v13348_v40 = vpop.f32.mrb[35].mxu1 }
 0xcda   :  { %v9496_v52 = vmul.f32 -1.442695, %v8533_v1  ;;  %v8537_v19 = vadd.f32 %v8473_v34, %v8282_v50 }
 0xcdb   :  { %11898 = vpow2.f32 %v9480_v46  ;;  %v9481_v23 = vmul.f32 -1.442695, %v8536_v28 }
 0xcdc   :  { %11900 = vpow2.f32 %v9496_v52  ;;  %v9497_v53 = vmul.f32 -1.442695, %v8537_v19 }
 0xcdd   :  { %11902 = vpow2.f32 %v9481_v23 }
 0xcde   :  { %v8286_v58 = vpop.f32.mrb[36].mxu0  ;;  %v13350_v18 = vpop.f32.mrb[36].mxu1  ;;  %11904 = vpow2.f32 %v9497_v53 }
 0xcdf   :  { %v8540_v12 = vadd.f32 %v8476_v7, %v8286_v58  ;;  %v8288_v22 = vpop.f32.mrb[37].mxu0  ;;  %v13352_v15 = vpop.f32.mrb[37].mxu1 }
 0xce0   :  { %v8541_v25 = vadd.f32 %v8477_v43, %v8288_v22  ;;  %v8290_v14 = vpop.f32.mrb[38].mxu0  ;;  %v13354_v21 = vpop.f32.mrb[38].mxu1  ;;  %v8492_v43 = vld [vmem:[#allocation12 + $0x2c0] sm:$0xff] }
 0xce1   :  { %v9482_v24 = vmul.f32 -1.442695, %v8540_v12  ;;  %v8544_v11 = vadd.f32 %v8480_v33, %v8290_v14  ;;  %v8292_v47 = vpop.f32.mrb[39].mxu0  ;;  %v13356_v45 = vpop.f32.mrb[39].mxu1  ;;  %v8493_v33 = vld [vmem:[#allocation12 + $0x2c8] sm:$0xff]  ;;  %v8471_v12 = vld [vmem:[#allocation12 + $0x218] sm:$0xff] }
 0xce2   :  { %v8545_v4 = vadd.f32 %v8481_v35, %v8292_v47  ;;  %v9498_v49 = vmul.f32 -1.442695, %v8541_v25  ;;  %v8496_v14 = vld [vmem:[#allocation12 + $0x2e0] sm:$0xff] }
 0xce3   :  { %11906 = vpow2.f32 %v9482_v24  ;;  %v9483_v39 = vmul.f32 -1.442695, %v8544_v11  ;;  %v8470_v11 = vld [vmem:[#allocation12 + $0x210] sm:$0xff] }
 0xce4   :  { %v9499_v60 = vmul.f32 -1.442695, %v8545_v4 }
 0xce5   :  { %v11899_v55 = vpop.eup %11898  ;;  %11908 = vpow2.f32 %v9483_v39 }
 0xce6   :  { %v11901_v38 = vpop.eup %11900  ;;  %v8644_v42 = vadd.f32 1.0, %v11899_v55  ;;  %v8296_v8 = vpop.f32.mrb[40].mxu0  ;;  %11910 = vpow2.f32 %v9498_v49 }
 0xce7   :  { %v13358_v37 = vpop.f32.mrb[40].mxu1  ;;  %v11903_v10 = vpop.eup %11902  ;;  %v8548_v6 = vadd.f32 %v8484_v63, %v8296_v8  ;;  %v8740_v1 = vadd.f32 1.0, %v11901_v38  ;;  %v8475_v63 = vld [vmem:[#allocation12 + $0x238] sm:$0xff]  ;;  %v8535_v8 = vadd.f32 %v8471_v12, %v13344_v61 }
 0xce8   :  { %v8298_v2 = vpop.f32.mrb[41].mxu0  ;;  %v13360_v9 = vpop.f32.mrb[41].mxu1  ;;  %11912 = vrcp.f32 %v8644_v42  ;;  %v8645_v29 = vadd.f32 1.0, %v11903_v10 }
 0xce9   :  { %v8549_v56 = vadd.f32 %v8485_v0, %v8298_v2  ;;  %v8300_v27 = vpop.f32.mrb[42].mxu0  ;;  %v13362_v34 = vpop.f32.mrb[42].mxu1  ;;  %11914 = vpow2.f32 %v9499_v60  ;;  %v9484_v44 = vmul.f32 -1.442695, %v8548_v6 }
 0xcea   :  { %v8552_v46 = vadd.f32 %v8488_v16, %v8300_v27  ;;  %v8302_v28 = vpop.f32.mrb[43].mxu0  ;;  %v13364_v50 = vpop.f32.mrb[43].mxu1  ;;  %11916 = vrcp.f32 %v8645_v29  ;;  %v8474_v16 = vld [vmem:[#allocation12 + $0x230] sm:$0xff] }
 0xceb   :  { %v8553_v52 = vadd.f32 %v8489_v41, %v8302_v28  ;;  %v9500_v19 = vmul.f32 -1.442695, %v8549_v56  ;;  %v11905_v7 = vpop.eup %11904  ;;  %11918 = vpow2.f32 %v9484_v44  ;;  %v8534_v56 = vadd.f32 %v8470_v11, %v13342_v36 }
 0xcec   :  { %v9485_v23 = vmul.f32 -1.442695, %v8552_v46  ;;  %11920 = vrcp.f32 %v8740_v1  ;;  %v8741_v47 = vadd.f32 1.0, %v11905_v7  ;;  %v8497_v1 = vld [vmem:[#allocation12 + $0x2e8] sm:$0xff]  ;;  %v8539_v28 = vadd.f32 %v8475_v63, %v13348_v40  ;;  %v8500_v7 = vld [vmem:[#allocation12 + $0x300] sm:$0xff]  ;;  %v8482_v63 = vld [vmem:[#allocation12 + $0x270] sm:$0xff] }
 0xced   :  { %v11907_v53 = vpop.eup %11906  ;;  %v9501_v58 = vmul.f32 -1.442695, %v8553_v52 }
 0xcee   :  { %v8646_v22 = vadd.f32 1.0, %v11907_v53  ;;  %11922 = vpow2.f32 %v9485_v23  ;;  %v8306_v35 = vpop.f32.mrb[44].mxu0  ;;  %v13366_v25 = vpop.f32.mrb[44].mxu1 }
 0xcef   :  { %v11909_v24 = vpop.eup %11908  ;;  %11924 = vpow2.f32 %v9500_v19  ;;  %v8556_v4 = vadd.f32 %v8492_v43, %v8306_v35  ;;  %v8308_v49 = vpop.f32.mrb[45].mxu0  ;;  %v8538_v19 = vadd.f32 %v8474_v16, %v13346_v31  ;;  %v8486_v16 = vld [vmem:[#allocation12 + $0x290] sm:$0xff] }
 0xcf0   :  { %v13368_v39 = vpop.f32.mrb[45].mxu1  ;;  %11926 = vrcp.f32 %v8646_v22  ;;  %v8647_v55 = vadd.f32 1.0, %v11909_v24  ;;  %v8557_v60 = vadd.f32 %v8493_v33, %v8308_v49  ;;  %v8310_v0 = vpop.f32.mrb[46].mxu0  ;;  %v8479_v33 = vld [vmem:[#allocation12 + $0x258] sm:$0xff]  ;;  %v8478_v49 = vld [vmem:[#allocation12 + $0x250] sm:$0xff] }
 0xcf1   :  { %v13370_v38 = vpop.f32.mrb[46].mxu1  ;;  %v11911_v42 = vpop.eup %11910  ;;  %11928 = vpow2.f32 %v9501_v58  ;;  %v9486_v10 = vmul.f32 -1.442695, %v8556_v4  ;;  %v8560_v6 = vadd.f32 %v8496_v14, %v8310_v0 }
 0xcf2   :  { %v8312_v2 = vpop.f32.mrb[47].mxu0  ;;  %v13373_v41 = vpop.f32.mrb[47].mxu1  ;;  %11930 = vrcp.f32 %v8647_v55  ;;  %v9502_v27 = vmul.f32 -1.442695, %v8557_v60  ;;  %v8742_v23 = vadd.f32 1.0, %v11911_v42  ;;  %v8483_v55 = vld [vmem:[#allocation12 + $0x278] sm:$0xff] }
 0xcf3   :  { %v11913_v29 = vpop.eup %11912  ;;  %11932 = vrcp.f32 %v8741_v47  ;;  %v9487_v52 = vmul.f32 -1.442695, %v8560_v6  ;;  %v8561_v58 = vadd.f32 %v8497_v1, %v8312_v2  ;;  %v8501_v1 = vld [vmem:[#allocation12 + $0x308] sm:$0xff] }
 0xcf4   :  { %v11915_v44 = vpop.eup %11914  ;;  %v8788_v46 = vmul.f32 %v11913_v29, %v8535_v8  ;;  %11934 = vpow2.f32 %v9486_v10  ;;  %v8543_v8 = vadd.f32 %v8479_v33, %v13352_v15  ;;  %v8504_v15 = vld [vmem:[#allocation12 + $0x320] sm:$0xff] }
 0xcf5   :  { %v11917_v61 = vpop.eup %11916  ;;  %11936 = vpow2.f32 %v9502_v27  ;;  %v8743_v12 = vadd.f32 1.0, %v11915_v44  ;;  %v9503_v6 = vmul.f32 -1.442695, %v8561_v58 }
 0xcf6   :  { %v8804_v43 = vadd.f32 %v8788_v46, %v8534_v56  ;;  %v8789_v53 = vmul.f32 %v11917_v61, %v8539_v28  ;;  %v11919_v36 = vpop.eup %11918  ;;  %11938 = vpow2.f32 %v9487_v52  ;;  %v8316_v22 = vpop.f32.mrb[48].mxu0  ;;  %v8542_v46 = vadd.f32 %v8478_v49, %v13350_v18  ;;  %v8487_v61 = vld [vmem:[#allocation12 + $0x298] sm:$0xff] }
 0xcf7   :  { %v13378_v35 = vpop.f32.mrb[48].mxu1  ;;  %v13380_v14 = vpop.eup %11920  ;;  %v8648_v24 = vadd.f32 1.0, %v11919_v36  ;;  %v8564_v31 = vadd.f32 %v8500_v7, %v8316_v22  ;;  %v8547_v52 = vadd.f32 %v8483_v55, %v13356_v45  ;;  %v8546_v7 = vadd.f32 %v8482_v63, %v13354_v21  ;;  %v8508_v22 = vld [vmem:[#allocation12 + $0x340] sm:$0xff]  ;;  %v8505_v55 = vld [vmem:[#allocation12 + $0x328] sm:$0xff] }
 0xcf8   :  { %11940 = vtanh.f32 %v8804_v43  ;;  %v8805_v40 = vadd.f32 %v8789_v53, %v8538_v19  ;;  %v8318_v11 = vpop.f32.mrb[49].mxu0  ;;  %v13382_v47 = vpop.f32.mrb[49].mxu1  ;;  %v8490_v19 = vld [vmem:[#allocation12 + $0x2b0] sm:$0xff]  ;;  %v13393_v43 = vadd.f32 %v8486_v16, %v13358_v37  ;;  %v8551_v45 = vadd.f32 %v8487_v61, %v13360_v9 }
 0xcf9   :  { %v11923_v4 = vpop.eup %11922  ;;  %11942 = vrcp.f32 %v8742_v23  ;;  %v8320_v60 = vpop.f32.mrb[50].mxu0  ;;  %v9488_v27 = vmul.f32 -1.442695, %v8564_v31  ;;  %v8565_v18 = vadd.f32 %v8501_v1, %v8318_v11  ;;  %v8836_v9 = vsub.f32 1.0, %v13380_v14  ;;  %v13531_v16 = vld [vmem:[#allocation22_spill] sm:$0xff] }
 0xcfa   :  { %v13384_v0 = vpop.f32.mrb[50].mxu1  ;;  %v11925_v42 = vpop.eup %11924  ;;  %11944 = vtanh.f32 %v8805_v40  ;;  %v8649_v10 = vadd.f32 1.0, %v11923_v4  ;;  %v13397_v40 = vadd.f32 %v8490_v19, %v13362_v34  ;;  %v8868_v34 = vmul.f32 %v13380_v14, %v13531_v16 }
 0xcfb   :  { %v8322_v2 = vpop.f32.mrb[51].mxu0  ;;  %v13387_v29 = vpop.f32.mrb[51].mxu1  ;;  %11946 = vrcp.f32 %v8648_v24  ;;  %v8744_v53 = vadd.f32 1.0, %v11925_v42  ;;  %v8568_v24 = vadd.f32 %v8504_v15, %v8320_v60  ;;  %v8491_v60 = vld [vmem:[#allocation12 + $0x2b8] sm:$0xff]  ;;  %v8494_v15 = vld [vmem:[#allocation12 + $0x2d0] sm:$0xff] }
 0xcfc   :  { %v11927_v56 = vpop.eup %11926  ;;  %11948 = vrcp.f32 %v8743_v12 }
 0xcfd   :  { %v11929_v44 = vpop.eup %11928  ;;  %v8790_v28 = vmul.f32 %v11927_v56, %v8543_v8  ;;  %11950 = vrcp.f32 %v8649_v10  ;;  %v9489_v14 = vmul.f32 -1.442695, %v8568_v24  ;;  %v8516_v24 = vld [vmem:[#allocation12 + $0x380] sm:$0xff] }
 0xcfe   :  { %v11931_v23 = vpop.eup %11930  ;;  %11952 = vpow2.f32 %v9503_v6  ;;  %v8326_v21 = vpop.f32.mrb[52].mxu0  ;;  %v8745_v49 = vadd.f32 1.0, %v11929_v44 }
 0xcff   :  { %v11933_v58 = vpop.eup %11932  ;;  %v8806_v36 = vadd.f32 %v8790_v28, %v8542_v46  ;;  %v8791_v33 = vmul.f32 %v11931_v23, %v8547_v52  ;;  %11954 = vpow2.f32 %v9488_v27  ;;  %v13399_v31 = vpop.f32.mrb[52].mxu1  ;;  %v8572_v10 = vadd.f32 %v8508_v22, %v8326_v21  ;;  %v8512_v21 = vld [vmem:[#allocation12 + $0x360] sm:$0xff] }
 0xd00   :  { %v11935_v12 = vpop.eup %11934  ;;  %v8328_v42 = vpop.f32.mrb[53].mxu0  ;;  %v8837_v1 = vsub.f32 1.0, %v11933_v58  ;;  %v9504_v46 = vmul.f32 -1.442695, %v8565_v18  ;;  %v8569_v23 = vadd.f32 %v8505_v55, %v8322_v2  ;;  %v8555_v22 = vadd.f32 %v8491_v60, %v13364_v50 }
 0xd01   :  { %v11937_v37 = vpop.eup %11936  ;;  %11956 = vtanh.f32 %v8806_v36  ;;  %v8807_v4 = vadd.f32 %v8791_v33, %v8546_v7  ;;  %v8650_v63 = vadd.f32 1.0, %v11935_v12  ;;  %v13401_v11 = vpop.f32.mrb[53].mxu1  ;;  %v8509_v7 = vld [vmem:[#allocation12 + $0x348] sm:$0xff]  ;;  %v13532_v36 = vld [vmem:[#allocation23_spill] sm:$0xff]  ;;  %v9490_v16 = vmul.f32 -1.442695, %v8572_v10 }
 0xd02   :  { %v11939_v8 = vpop.eup %11938  ;;  %11958 = vrcp.f32 %v8744_v53  ;;  %v8330_v6 = vpop.f32.mrb[54].mxu0  ;;  %v8869_v33 = vmul.f32 %v11933_v58, %v13532_v36  ;;  %v8746_v12 = vadd.f32 1.0, %v11937_v37  ;;  %v8573_v2 = vadd.f32 %v8509_v7, %v8328_v42 }
 0xd03   :  { %v13406_v56 = vpop.f32.mrb[54].mxu1  ;;  %v11941_v27 = vpop.eup %11940  ;;  %11960 = vtanh.f32 %v8807_v4  ;;  %v8651_v44 = vadd.f32 1.0, %v11939_v8  ;;  %v9505_v50 = vmul.f32 -1.442695, %v8569_v23  ;;  %v8576_v37 = vadd.f32 %v8512_v21, %v8330_v6 }
 0xd04   :  { %v13408_v28 = vpop.f32.mrb[55].mxu0  ;;  %v13410_v52 = vpop.f32.mrb[55].mxu1  ;;  %v8852_v19 = vmul.f32 %v11941_v27, %v8836_v9  ;;  %11962 = vrcp.f32 %v8650_v63  ;;  %v13415_v63 = vadd.f32 %v8494_v15, %v13366_v25  ;;  %v8513_v25 = vld [vmem:[#allocation12 + $0x368] sm:$0xff]  ;;  %v8495_v15 = vld [vmem:[#allocation12 + $0x2d8] sm:$0xff]  ;;  %v9506_v36 = vmul.f32 -1.442695, %v8573_v2 }
 0xd05   :  { %v11943_v61 = vpop.eup %11942  ;;  %11964 = vrcp.f32 %v8745_v49  ;;  %v9491_v21 = vmul.f32 -1.442695, %v8576_v37  ;;  %v8520_v37 = vld [vmem:[#allocation12 + $0x3a0] sm:$0xff] }
 0xd06   :  { %v11945_v53 = vpop.eup %11944  ;;  %v8884_v4 = vadd.f32 %v8868_v34, %v8852_v19  ;;  %11966 = vrcp.f32 %v8651_v44  ;;  %v8336_v49 = vpop.f32.mrb[56].mxu0  ;;  %v8838_v27 = vsub.f32 1.0, %v11943_v61 }
 0xd07   :  { %v11947_v18 = vpop.eup %11946  ;;  %v8853_v8 = vmul.f32 %v11945_v53, %v8837_v1  ;;  %11968 = vpow2.f32 %v9504_v46  ;;  %v13417_v60 = vpop.f32.mrb[56].mxu1  ;;  %v8870_v46 = vmul.f32 %v11943_v61, %v13181_v17  ;;  %v8580_v6 = vadd.f32 %v8516_v24, %v8336_v49  ;;  %v8499_v61 = vld [vmem:[#allocation12 + $0x2f8] sm:$0xff] }
 0xd08   :  { %v11949_v30 = vpop.eup %11948  ;;  %v8792_v9 = vmul.f32 %v11947_v18, %v8551_v45  ;;  %8900 = vst [vmem:[#allocation14] sm:$0xff] %v8884_v4  ;;  %11970 = vpow2.f32 %v9489_v14  ;;  %v8338_v1 = vpop.f32.mrb[57].mxu0  ;;  %v8577_v18 = vadd.f32 %v8513_v25, %v13408_v28  ;;  %v8517_v4 = vld [vmem:[#allocation12 + $0x388] sm:$0xff] }
 0xd09   :  { %v11951_v55 = vpop.eup %11950  ;;  %v8885_v58 = vadd.f32 %v8869_v33, %v8853_v8  ;;  %11972 = vrcp.f32 %v8746_v12  ;;  %v13420_v44 = vpop.f32.mrb[57].mxu1  ;;  %v8839_v19 = vsub.f32 1.0, %v11949_v30  ;;  %v9492_v49 = vmul.f32 -1.442695, %v8580_v6 }
 0xd0a   :  { %v11953_v34 = vpop.eup %11952  ;;  %v8808_v10 = vadd.f32 %v8792_v9, %v13393_v43  ;;  %v8793_v45 = vmul.f32 %v11951_v55, %v8555_v22  ;;  %11974 = vpow2.f32 %v9490_v16  ;;  %v8340_v14 = vpop.f32.mrb[58].mxu0  ;;  %v8871_v16 = vmul.f32 %v11949_v30, %v13184_v51 }
 0xd0b   :  { %v11955_v42 = vpop.eup %11954  ;;  %8901 = vst [vmem:[#allocation14 + $0x8] sm:$0xff] %v8885_v58  ;;  %v13423_v23 = vpop.f32.mrb[58].mxu1  ;;  %v8747_v9 = vadd.f32 1.0, %v11953_v34  ;;  %v8498_v58 = vld [vmem:[#allocation12 + $0x2f0] sm:$0xff]  ;;  %v8581_v28 = vadd.f32 %v8517_v4, %v8338_v1  ;;  %v9507_v30 = vmul.f32 -1.442695, %v8577_v18 }
 0xd0c   :  { %v11957_v7 = vpop.eup %11956  ;;  %11976 = vtanh.f32 %v8808_v10  ;;  %v8809_v43 = vadd.f32 %v8793_v45, %v13397_v40  ;;  %v8652_v53 = vadd.f32 1.0, %v11955_v42  ;;  %v13426_v33 = vpop.f32.mrb[59].mxu0  ;;  %v8559_v40 = vadd.f32 %v8495_v15, %v13368_v39  ;;  %v8524_v15 = vld [vmem:[#allocation12 + $0x3c0] sm:$0xff] }
 0xd0d   :  { %v13428_v22 = vpop.f32.mrb[59].mxu1  ;;  %v13430_v12 = vpop.eup %11958  ;;  %v8854_v17 = vmul.f32 %v11957_v7, %v8838_v27  ;;  %11978 = vpow2.f32 %v9505_v50  ;;  %v8563_v50 = vadd.f32 %v8499_v61, %v13373_v41  ;;  %v8584_v7 = vadd.f32 %v8520_v37, %v8340_v14 }
 0xd0e   :  { %v11961_v8 = vpop.eup %11960  ;;  %11980 = vtanh.f32 %v8809_v43  ;;  %v8346_v39 = vpop.f32.mrb[60].mxu0  ;;  %v8840_v4 = vsub.f32 1.0, %v13430_v12  ;;  %v8872_v14 = vmul.f32 %v13430_v12, %v13188_v32  ;;  %v8528_v12 = vld [vmem:[#allocation12 + $0x3e0] sm:$0xff] }
 0xd0f   :  { %v11963_v2 = vpop.eup %11962  ;;  %v8886_v24 = vadd.f32 %v8870_v46, %v8854_v17  ;;  %v8855_v55 = vmul.f32 %v11961_v8, %v8839_v19  ;;  %11982 = vrcp.f32 %v8652_v53  ;;  %v13436_v34 = vpop.f32.mrb[60].mxu1  ;;  %v8562_v46 = vadd.f32 %v8498_v58, %v13370_v38  ;;  %v8503_v8 = vld [vmem:[#allocation12 + $0x318] sm:$0xff] }
 0xd10   :  { %v11965_v27 = vpop.eup %11964  ;;  %v8794_v10 = vmul.f32 %v11963_v2, %v8559_v40  ;;  %11984 = vpow2.f32 %v9506_v36  ;;  %v8348_v41 = vpop.f32.mrb[61].mxu0  ;;  %v8567_v37 = vadd.f32 %v8503_v8, %v13382_v47 }
 0xd11   :  { %v11967_v45 = vpop.eup %11966  ;;  %8902 = vst [vmem:[#allocation14 + $0x10] sm:$0xff] %v8886_v24  ;;  %v8887_v51 = vadd.f32 %v8871_v16, %v8855_v55  ;;  %11986 = vpow2.f32 %v9491_v21  ;;  %v13440_v6 = vpop.f32.mrb[61].mxu1  ;;  %v8588_v16 = vadd.f32 %v8524_v15, %v8346_v39  ;;  %v8841_v58 = vsub.f32 1.0, %v11965_v27 }
 0xd12   :  { %v11969_v25 = vpop.eup %11968  ;;  %v8810_v42 = vadd.f32 %v8794_v10, %v13415_v63  ;;  %11988 = vrcp.f32 %v8747_v9  ;;  %v8795_v19 = vmul.f32 %v11967_v45, %v8563_v50  ;;  %v8350_v43 = vpop.f32.mrb[62].mxu0  ;;  %v9508_v63 = vmul.f32 -1.442695, %v8581_v28  ;;  %v8521_v45 = vld [vmem:[#allocation12 + $0x3a8] sm:$0xff] }
 0xd13   :  { %v11971_v1 = vpop.eup %11970  ;;  %8903 = vst [vmem:[#allocation14 + $0x18] sm:$0xff] %v8887_v51  ;;  %11990 = vpow2.f32 %v9492_v49  ;;  %v13442_v53 = vpop.f32.mrb[62].mxu1  ;;  %v8748_v9 = vadd.f32 1.0, %v11969_v25  ;;  %v8502_v49 = vld [vmem:[#allocation12 + $0x310] sm:$0xff]  ;;  %v9493_v10 = vmul.f32 -1.442695, %v8584_v7  ;;  %v8873_v28 = vmul.f32 %v11965_v27, %v13195_v26 }
 0xd14   :  { %v11973_v36 = vpop.eup %11972  ;;  %11992 = vtanh.f32 %v8810_v42  ;;  %v8811_v17 = vadd.f32 %v8795_v19, %v8562_v46  ;;  %v8653_v61 = vadd.f32 1.0, %v11971_v1  ;;  %v13444_v21 = vpop.f32.mrb[63].mxu0  ;;  %v9494_v32 = vmul.f32 -1.442695, %v8588_v16  ;;  %v8525_v19 = vld [vmem:[#allocation12 + $0x3c8] sm:$0xff] }
 0xd15   :  { %v13446_v38 = vpop.f32.mrb[63].mxu1  ;;  %v11975_v18 = vpop.eup %11974  ;;  %11994 = vpow2.f32 %v9507_v30  ;;  %v8566_v42 = vadd.f32 %v8502_v49, %v13378_v35  ;;  %v8585_v26 = vadd.f32 %v8521_v45, %v13426_v33  ;;  %v8589_v35 = vadd.f32 %v8525_v19, %v8348_v41  ;;  %v8510_v41 = vld [vmem:[#allocation12 + $0x350] sm:$0xff]  ;;  %v8529_v45 = vld [vmem:[#allocation12 + $0x3e8] sm:$0xff] }
 0xd16   :  { %v11977_v40 = vpop.eup %11976  ;;  %11996 = vtanh.f32 %v8811_v17  ;;  %v8654_v2 = vadd.f32 1.0, %v11975_v18  ;;  %v8842_v18 = vsub.f32 1.0, %v11973_v36  ;;  %v8874_v16 = vmul.f32 %v11973_v36, %v13212_v5 }
 0xd17   :  { %v11979_v24 = vpop.eup %11978  ;;  %v8856_v55 = vmul.f32 %v11977_v40, %v8840_v4  ;;  %11998 = vrcp.f32 %v8653_v61  ;;  %v8592_v61 = vadd.f32 %v8528_v12, %v8350_v43  ;;  %v8507_v4 = vld [vmem:[#allocation12 + $0x338] sm:$0xff] }
 0xd18   :  { %v11981_v50 = vpop.eup %11980  ;;  %12000 = vpow2.f32 %v9508_v63  ;;  %v8749_v7 = vadd.f32 1.0, %v11979_v24  ;;  %v9509_v24 = vmul.f32 -1.442695, %v8585_v26 }
 0xd19   :  { %v11983_v51 = vpop.eup %11982  ;;  %v8888_v30 = vadd.f32 %v8872_v14, %v8856_v55  ;;  %v8857_v39 = vmul.f32 %v11981_v50, %v8841_v58  ;;  %12002 = vrcp.f32 %v8654_v2  ;;  %v8506_v55 = vld [vmem:[#allocation12 + $0x330] sm:$0xff]  ;;  %v8511_v58 = vld [vmem:[#allocation12 + $0x358] sm:$0xff]  ;;  %v9495_v50 = vmul.f32 -1.442695, %v8592_v61 }
 0xd1a   :  { %v11985_v25 = vpop.eup %11984  ;;  %12004 = vrcp.f32 %v8748_v9  ;;  %v8796_v46 = vmul.f32 %v11983_v51, %v8567_v37  ;;  %v9510_v37 = vmul.f32 -1.442695, %v8589_v35 }
 0xd1b   :  { %v11987_v15 = vpop.eup %11986  ;;  %8904 = vst [vmem:[#allocation14 + $0x20] sm:$0xff] %v8888_v30  ;;  %v8889_v1 = vadd.f32 %v8873_v28, %v8857_v39  ;;  %12006 = vpow2.f32 %v9493_v10  ;;  %v8750_v40 = vadd.f32 1.0, %v11985_v25  ;;  %v8571_v10 = vadd.f32 %v8507_v4, %v13387_v29 }
 0xd1c   :  { %v11989_v47 = vpop.eup %11988  ;;  %v8812_v27 = vadd.f32 %v8796_v46, %v8566_v42  ;;  %v8655_v17 = vadd.f32 1.0, %v11987_v15  ;;  %12008 = vpow2.f32 %v9494_v32  ;;  %v8570_v30 = vadd.f32 %v8506_v55, %v13384_v0  ;;  %v8515_v0 = vld [vmem:[#allocation12 + $0x378] sm:$0xff] }
 0xd1d   :  { %v11991_v63 = vpop.eup %11990  ;;  %8905 = vst [vmem:[#allocation14 + $0x28] sm:$0xff] %v8889_v1  ;;  %v8843_v33 = vsub.f32 1.0, %v11989_v47  ;;  %v8875_v49 = vmul.f32 %v11989_v47, %v13217_v20  ;;  %v8575_v32 = vadd.f32 %v8511_v58, %v13401_v11  ;;  %v8574_v29 = vadd.f32 %v8510_v41, %v13399_v31  ;;  %v8519_v31 = vld [vmem:[#allocation12 + $0x398] sm:$0xff] }
 0xd1e   :  { %v11993_v8 = vpop.eup %11992  ;;  %12010 = vtanh.f32 %v8812_v27  ;;  %v8656_v14 = vadd.f32 1.0, %v11991_v63  ;;  %v8593_v15 = vadd.f32 %v8529_v45, %v13444_v21  ;;  %v8579_v63 = vadd.f32 %v8515_v0, %v13410_v52 }
 0xd1f   :  { %v11995_v9 = vpop.eup %11994  ;;  %v8858_v2 = vmul.f32 %v11993_v8, %v8842_v18  ;;  %12012 = vrcp.f32 %v8655_v17  ;;  %v8514_v17 = vld [vmem:[#allocation12 + $0x370] sm:$0xff] }
 0xd20   :  { %v11997_v43 = vpop.eup %11996  ;;  %12014 = vrcp.f32 %v8749_v7  ;;  %v8751_v25 = vadd.f32 1.0, %v11995_v9  ;;  %v9511_v4 = vmul.f32 -1.442695, %v8593_v15 }
 0xd21   :  { %v11999_v28 = vpop.eup %11998  ;;  %v8890_v5 = vadd.f32 %v8874_v16, %v8858_v2  ;;  %v8859_v36 = vmul.f32 %v11997_v43, %v8843_v33  ;;  %12016 = vrcp.f32 %v8656_v14  ;;  %v8518_v16 = vld [vmem:[#allocation12 + $0x390] sm:$0xff]  ;;  %v8578_v14 = vadd.f32 %v8514_v17, %v13406_v56 }
 0xd22   :  { %v12001_v51 = vpop.eup %12000  ;;  %v8797_v39 = vmul.f32 %v11999_v28, %v8571_v10  ;;  %12018 = vrcp.f32 %v8750_v40  ;;  %v8583_v2 = vadd.f32 %v8519_v31, %v13420_v44  ;;  %v8531_v31 = vld [vmem:[#allocation12 + $0x3f8] sm:$0xff] }
 0xd23   :  { %v12003_v12 = vpop.eup %12002  ;;  %8906 = vst [vmem:[#allocation14 + $0x30] sm:$0xff] %v8890_v5  ;;  %v8891_v20 = vadd.f32 %v8875_v49, %v8859_v36  ;;  %12020 = vpow2.f32 %v9509_v24  ;;  %v8752_v11 = vadd.f32 1.0, %v12001_v51  ;;  %v8582_v24 = vadd.f32 %v8518_v16, %v13417_v60  ;;  %v8522_v60 = vld [vmem:[#allocation12 + $0x3b0] sm:$0xff] }
 0xd24   :  { %v12005_v42 = vpop.eup %12004  ;;  %v8813_v46 = vadd.f32 %v8797_v39, %v8570_v30  ;;  %v8798_v19 = vmul.f32 %v12003_v12, %v8575_v32  ;;  %12022 = vpow2.f32 %v9495_v50  ;;  %v8523_v50 = vld [vmem:[#allocation12 + $0x3b8] sm:$0xff]  ;;  %v8586_v15 = vadd.f32 %v8522_v60, %v13423_v23 }
 0xd25   :  { %v12007_v1 = vpop.eup %12006  ;;  %8907 = vst [vmem:[#allocation14 + $0x38] sm:$0xff] %v8891_v20  ;;  %12024 = vpow2.f32 %v9510_v37  ;;  %v8844_v7 = vsub.f32 1.0, %v12005_v42  ;;  %v8876_v35 = vmul.f32 %v12005_v42, %v13232_v3  ;;  %v8527_v30 = vld [vmem:[#allocation12 + $0x3d8] sm:$0xff]  ;;  %v8587_v32 = vadd.f32 %v8523_v50, %v13428_v22  ;;  %v13533_v50 = vld [vmem:[#allocation20_spill] sm:$0xff] }
 0xd26   :  { %12026 = vtanh.f32 %v8813_v46  ;;  %v8814_v26 = vadd.f32 %v8798_v19, %v8574_v29  ;;  %v8657_v47 = vadd.f32 1.0, %v12007_v1  ;;  %v12009_v27 = vpop.eup %12008  ;;  %v8526_v46 = vld [vmem:[#allocation12 + $0x3d0] sm:$0xff]  ;;  %v8591_v1 = vadd.f32 %v8527_v30, %v13440_v6 }
 0xd27   :  { %12028 = vrcp.f32 %v8751_v25  ;;  %v8658_v18 = vadd.f32 1.0, %v12009_v27 }
 0xd28   :  { %v12011_v61 = vpop.eup %12010  ;;  %12030 = vtanh.f32 %v8814_v26 }
 0xd29   :  { %v12013_v21 = vpop.eup %12012  ;;  %v8860_v8 = vmul.f32 %v12011_v61, %v8844_v7  ;;  %12032 = vrcp.f32 %v8657_v47  ;;  %v8590_v47 = vadd.f32 %v8526_v46, %v13436_v34 }
 0xd2a   :  { %v12015_v40 = vpop.eup %12014  ;;  %v8799_v9 = vmul.f32 %v12013_v21, %v8579_v63  ;;  %12034 = vrcp.f32 %v8752_v11 }
 0xd2b   :  { %v12017_v33 = vpop.eup %12016  ;;  %v8892_v55 = vadd.f32 %v8876_v35, %v8860_v8  ;;  %12036 = vrcp.f32 %v8658_v18  ;;  %v8845_v56 = vsub.f32 1.0, %v12015_v40  ;;  %v8877_v37 = vmul.f32 %v12015_v40, %v13238_v62 }
 0xd2c   :  { %v12019_v58 = vpop.eup %12018  ;;  %v8815_v52 = vadd.f32 %v8799_v9, %v8578_v14  ;;  %v8800_v43 = vmul.f32 %v12017_v33, %v8583_v2  ;;  %12038 = vpow2.f32 %v9511_v4  ;;  %v8530_v4 = vld [vmem:[#allocation12 + $0x3f0] sm:$0xff]  ;;  %v8595_v8 = vadd.f32 %v8531_v31, %v13446_v38 }
 0xd2d   :  { %v12021_v3 = vpop.eup %12020  ;;  %8908 = vst [vmem:[#allocation14 + $0x40] sm:$0xff] %v8892_v55  ;;  %v8846_v51 = vsub.f32 1.0, %v12019_v58  ;;  %v8878_v25 = vmul.f32 %v12019_v58, %v13246_v54  ;;  %v8594_v14 = vadd.f32 %v8530_v4, %v13442_v53 }
 0xd2e   :  { %v12023_v49 = vpop.eup %12022  ;;  %12040 = vtanh.f32 %v8815_v52  ;;  %v8816_v10 = vadd.f32 %v8800_v43, %v8582_v24  ;;  %v8753_v44 = vadd.f32 1.0, %v12021_v3 }
 0xd2f   :  { %v12025_v41 = vpop.eup %12024  ;;  %v8659_v28 = vadd.f32 1.0, %v12023_v49 }
 0xd30   :  { %v12027_v5 = vpop.eup %12026  ;;  %12042 = vtanh.f32 %v8816_v10  ;;  %v8754_v12 = vadd.f32 1.0, %v12025_v41 }
 0xd31   :  { %v12029_v36 = vpop.eup %12028  ;;  %v8861_v45 = vmul.f32 %v12027_v5, %v8845_v56  ;;  %12044 = vrcp.f32 %v8659_v28 }
 0xd32   :  { %v12031_v39 = vpop.eup %12030  ;;  %12046 = vrcp.f32 %v8753_v44  ;;  %v8847_v54 = vsub.f32 1.0, %v12029_v36  ;;  %v8879_v23 = vmul.f32 %v12029_v36, %v13254_v13 }
 0xd33   :  { %v12033_v20 = vpop.eup %12032  ;;  %v8893_v29 = vadd.f32 %v8877_v37, %v8861_v45  ;;  %v8862_v42 = vmul.f32 %v12031_v39, %v8846_v51  ;;  %12048 = vrcp.f32 %v8754_v12 }
 0xd34   :  { %v12035_v19 = vpop.eup %12034  ;;  %v8801_v62 = vmul.f32 %v12033_v20, %v8587_v32 }
 0xd35   :  { %v12037_v0 = vpop.eup %12036  ;;  %8909 = vst [vmem:[#allocation14 + $0x48] sm:$0xff] %v8893_v29  ;;  %v8894_v26 = vadd.f32 %v8878_v25, %v8862_v42  ;;  %v8848_v63 = vsub.f32 1.0, %v12035_v19  ;;  %v8880_v35 = vmul.f32 %v12035_v19, %v13261_v48 }
 0xd36   :  { %v12039_v11 = vpop.eup %12038  ;;  %v8817_v22 = vadd.f32 %v8801_v62, %v8586_v15  ;;  %v8802_v27 = vmul.f32 %v12037_v0, %v8591_v1 }
 0xd37   :  { %8910 = vst [vmem:[#allocation14 + $0x50] sm:$0xff] %v8894_v26  ;;  %v8755_v6 = vadd.f32 1.0, %v12039_v11 }
 0xd38   :  { %v12041_v7 = vpop.eup %12040  ;;  %12050 = vtanh.f32 %v8817_v22  ;;  %v8818_v17 = vadd.f32 %v8802_v27, %v8590_v47 }
 0xd39   :  { %v8863_v61 = vmul.f32 %v12041_v7, %v8847_v54 }
 0xd3a   :  { %v12043_v18 = vpop.eup %12042  ;;  %12052 = vtanh.f32 %v8818_v17 }
 0xd3b   :  { %v8895_v21 = vadd.f32 %v8879_v23, %v8863_v61  ;;  %v8864_v34 = vmul.f32 %v12043_v18, %v8848_v63  ;;  %v12045_v16 = vpop.eup %12044  ;;  %12054 = vrcp.f32 %v8755_v6 }
 0xd3c   :  { %v8803_v9 = vmul.f32 %v12045_v16, %v8595_v8  ;;  %v12047_v13 = vpop.eup %12046 }
 0xd3d   :  { %8911 = vst [vmem:[#allocation14 + $0x58] sm:$0xff] %v8895_v21  ;;  %v8896_v40 = vadd.f32 %v8880_v35, %v8864_v34  ;;  %v12049_v33 = vpop.eup %12048  ;;  %v8849_v55 = vsub.f32 1.0, %v12047_v13  ;;  %v8881_v52 = vmul.f32 %v12047_v13, %v13267_v59 }
 0xd3e   :  { %v8819_v2 = vadd.f32 %v8803_v9, %v8594_v14  ;;  %v8850_v24 = vsub.f32 1.0, %v12049_v33  ;;  %v8882_v3 = vmul.f32 %v12049_v33, %v13273_v57 }
 0xd3f   :  { %8912 = vst [vmem:[#allocation14 + $0x60] sm:$0xff] %v8896_v40 }
 0xd40   :  { %12056 = vtanh.f32 %v8819_v2 }
 0xd42   :  { %v12051_v58 = vpop.eup %12050 }
 0xd43   :  { %v8865_v48 = vmul.f32 %v12051_v58, %v8849_v55 }
 0xd44   :  { %v12053_v43 = vpop.eup %12052 }
 0xd45   :  { %v8897_v38 = vadd.f32 %v8881_v52, %v8865_v48  ;;  %v8866_v49 = vmul.f32 %v12053_v43, %v8850_v24  ;;  %v12055_v10 = vpop.eup %12054 }
 0xd46   :  { %v8851_v41 = vsub.f32 1.0, %v12055_v10  ;;  %v8883_v28 = vmul.f32 %v12055_v10, %v13533_v50 }
 0xd47   :  { %8913 = vst [vmem:[#allocation14 + $0x68] sm:$0xff] %v8897_v38  ;;  %v8898_v53 = vadd.f32 %v8882_v3, %v8866_v49 }
 0xd49   :  { %8914 = vst [vmem:[#allocation14 + $0x70] sm:$0xff] %v8898_v53 }
 0xd4a   :  { %v12057_v56 = vpop.eup %12056 }
 0xd4b   :  { %v8867_v5 = vmul.f32 %v12057_v56, %v8851_v41 }
 0xd4d   :  { %v8899_v44 = vadd.f32 %v8883_v28, %v8867_v5 }
 0xd4f   :  { %8915 = vst [vmem:[#allocation14 + $0x78] sm:$0xff] %v8899_v44 }
 0xd50   :  { %12217 = shalt.err (!%p12214_p10)
}
 0xd51   :  { %s12218_s30 = scalar_lea.hbm %s13501_s6, 2048 }
 0xd52   :  { %p12219_p11 = scmp.ne.s32.totalorder %s13501_s6, %s12218_s30  ;;  %p12222_p12 = scmp.lt.u32.totalorder %s12218_s30, %s13501_s6 }
 0xd54   :  { %p12224_p13 = pnand %p12222_p12, %p12219_p11 }
 0xd56   :  { %12227 = shalt.err (!%p12224_p13)
}
 0xd57   :  { %8927 = dma.vmem_to_hbm [thread:$0]  %s8922_s26, 2048, %s13501_s6, [#allocation5], %s12245_s3, %s12245_s3, %s12246_s10  }
 0xd58   :  { %12236 = dma.done.wait [#allocation5], 2048  }
 0xd59   :  { %12237 = vsyncadd [#allocation5], 4294965248 }
 0xd5a   :  { %8931 = vsyncpa [#allocation4], 1 }
 0xd5b   :  { %8932 = vsyncpa [#allocation7], 1 }
 0xd5c   :  { %8933 = vsyncpa [#allocation10], 1 }
 0xd5d   :  { %8934 = vsyncpa [#allocation13], 1 }
 0xd5e   :  { %8935 = vsyncpa [#allocation5], 1 }

</bundles_post_ra>
